<compile_context>
chip_gen: v6e
topology: v6e:2x2x1
jax: 0.10.0
libtpu: 0.0.40
codegen_flags: <defaults>
</compile_context>

<pallas_src>
import math
from functools import partial

import jax
import jax.numpy as jnp
from jax.experimental import pallas as pl
from jax.experimental.pallas import tpu as pltpu


# -------------------------- model config --------------------------
EMBED_DIM = 128
NUM_HEADS = 4
HEAD_DIM = EMBED_DIM // NUM_HEADS
HIDDEN_DIM = 4 * EMBED_DIM
SEQ_LEN = 128
BATCH = 2
LN_EPS = 1e-5


def _layernorm(x, gamma, beta):
    # x: (R, D) f32; gamma/beta: (1, D) f32
    mean = jnp.mean(x, axis=-1, keepdims=True)
    var = jnp.mean((x - mean) ** 2, axis=-1, keepdims=True)
    inv = jax.lax.rsqrt(var + LN_EPS)
    return (x - mean) * inv * gamma + beta


def _gelu_tanh(x):
    # GELU with tanh approximation (matches nn.GELU(approximate='tanh'))
    c = math.sqrt(2.0 / math.pi)
    return 0.5 * x * (1.0 + jnp.tanh(c * (x + 0.044715 * x * x * x)))


def transformer_block_kernel(
    x_ref,                       # (nb, S, D)  f32
    ln1_g_ref, ln1_b_ref,        # (1, D)      f32
    w_qkv_ref, b_qkv_ref,        # (D, 3D) bf16 (Q cols pre-scaled), (1, 3D) f32 (pre-scaled)
    w_out_ref, b_out_ref,        # (D, D)  bf16, (1, D)  f32
    ln2_g_ref, ln2_b_ref,        # (1, D)      f32
    w_fc_ref, b_fc_ref,          # (D, 4D) bf16, (1, 4D) f32
    w_proj_ref, b_proj_ref,      # (4D, D) bf16, (1, D)  f32
    o_ref,                       # (nb, S, D)  f32
    ctx_ref,                     # scratch (nb*S, D) bf16 : packed attention contexts
    *, nb, gelu_bf16,
):
    S, D = SEQ_LEN, EMBED_DIM
    R = nb * S
    bf16 = jnp.bfloat16

    x = x_ref[...].reshape(R, D)                                  # row-packed batch

    # ----- LN1 (f32 stats) + fused QKV projection (one lane-dense bf16 GEMM) -----
    h1 = _layernorm(x, ln1_g_ref[...], ln1_b_ref[...])
    qkv = jnp.dot(h1.astype(bf16), w_qkv_ref[...],
                  preferred_element_type=jnp.float32) + b_qkv_ref[...]   # (R, 3D) f32

    # bf16 casts hoisted out of the head loop; 1/sqrt(head_dim) already folded into Q weights.
    q_all = qkv[:, :D].astype(bf16)                               # (R, D)
    k_all = qkv[:, D:2 * D].astype(bf16)                          # (R, D)
    v_all = qkv[:, 2 * D:].astype(bf16)                           # (R, D)

    # Additive causal bias, computed once and reused by every (batch, head).
    row = jax.lax.broadcasted_iota(jnp.int32, (S, S), 0)
    col = jax.lax.broadcasted_iota(jnp.int32, (S, S), 1)
    causal_bias = jnp.where(row >= col, 0.0, -1e30).astype(jnp.float32)  # (S, S)

    # ----- causal attention: heads unrolled, contexts packed lane-dense into ctx_ref -----
    for b in range(nb):
        r0 = b * S
        for hidx in range(NUM_HEADS):
            lo = hidx * HEAD_DIM
            hi = lo + HEAD_DIM
            qh = q_all[r0:r0 + S, lo:hi]                          # (S, hd) bf16
            kh = k_all[r0:r0 + S, lo:hi]
            vh = v_all[r0:r0 + S, lo:hi]

            # scores = qh @ kh^T without explicit transpose (contract head_dim of both)
            scores = jax.lax.dot_general(
                qh, kh, (((1,), (1,)), ((), ())),
                preferred_element_type=jnp.float32) + causal_bias  # (S, S) f32
            scores = scores - jnp.max(scores, axis=-1, keepdims=True)
            p = jnp.exp(scores)
            p = p * pl.reciprocal(jnp.sum(p, axis=-1, keepdims=True), approx=True)

            ctx = jnp.dot(p.astype(bf16), vh,
                          preferred_element_type=jnp.float32)      # (S, hd) f32
            # pack into lane-dense (R, D) bf16 so the output projection is ONE K=128 GEMM
            ctx_ref[r0:r0 + S, lo:hi] = ctx.astype(bf16)

    attn = jnp.dot(ctx_ref[...], w_out_ref[...],
                   preferred_element_type=jnp.float32)             # (R, D) f32

    x1 = x + attn + b_out_ref[...]                                 # (R, D) f32

    # ----- LN2 + MLP (bf16 GEMMs; GELU in bf16 on bf16-VPU chips, f32 otherwise) -----
    h2 = _layernorm(x1, ln2_g_ref[...], ln2_b_ref[...])
    hfc = jnp.dot(h2.astype(bf16), w_fc_ref[...],
                  preferred_element_type=jnp.float32) + b_fc_ref[...]    # (R, 4D) f32
    if gelu_bf16:
        act = _gelu_tanh(hfc.astype(bf16))                         # bf16 VPU/EUP path
    else:
        act = _gelu_tanh(hfc).astype(bf16)                         # f32 path (v5e)
    mlp_out = jnp.dot(act, w_proj_ref[...],
                      preferred_element_type=jnp.float32) + b_proj_ref[...]  # (R, D) f32

    o_ref[...] = (x1 + mlp_out).reshape(nb, S, D).astype(o_ref.dtype)


def _tpu_kind():
    try:
        return jax.devices()[0].device_kind.lower()
    except Exception:
        return ""


def prepare_params(params):
    """One-time weight prep: bf16 casts + softmax scale folded into Q weights/bias."""
    bf16 = jnp.bfloat16
    D = EMBED_DIM
    scale = 1.0 / math.sqrt(HEAD_DIM)
    q_scale = jnp.concatenate(
        [jnp.full((1, D), scale, jnp.float32), jnp.ones((1, 2 * D), jnp.float32)], axis=-1)
    return (
        params["ln1_g"], params["ln1_b"],
        (params["w_qkv"] * q_scale).astype(bf16), params["b_qkv"] * q_scale,
        params["w_out"].astype(bf16), params["b_out"],
        params["ln2_g"], params["ln2_b"],
        params["w_fc"].astype(bf16), params["b_fc"],
        params["w_proj"].astype(bf16), params["b_proj"],
    )


def transformer_block(x, prepped):
    B, S, D = x.shape
    assert D == EMBED_DIM and S == SEQ_LEN

    kind = _tpu_kind()
    multi_core = "v7" in kind           # v7x: 2 TensorCores per chip -> batch-parallel grid
    gelu_bf16 = "v5" not in kind        # v5e has no bf16 VPU/EUP path

    if multi_core and B > 1:
        nb, grid = 1, (B,)
        x_spec = pl.BlockSpec((1, S, D), lambda b: (b, 0, 0))
        o_spec = pl.BlockSpec((1, S, D), lambda b: (b, 0, 0))
        dim_sem = ("parallel",)         # one batch element per TensorCore
    else:
        nb, grid = B, (1,)              # 1-TC chips: fold batch into a single grid step
        x_spec = pl.BlockSpec((B, S, D), lambda b: (0, 0, 0))
        o_spec = pl.BlockSpec((B, S, D), lambda b: (0, 0, 0))
        dim_sem = ("arbitrary",)

    full = lambda shape: pl.BlockSpec(shape, lambda b: tuple(0 for _ in shape))
    in_specs = [
        x_spec,
        full((1, D)), full((1, D)),                            # ln1 gamma/beta
        full((D, 3 * D)), full((1, 3 * D)),                    # qkv
        full((D, D)), full((1, D)),                            # out proj
        full((1, D)), full((1, D)),                            # ln2 gamma/beta
        full((D, HIDDEN_DIM)), full((1, HIDDEN_DIM)),          # fc
        full((HIDDEN_DIM, D)), full((1, D)),                   # proj
    ]

    # Advisory cost estimate so XLA can schedule around the custom call.
    flops_per_b = 2 * S * D * (12 * D) + 4 * S * S * D
    cost = pl.CostEstimate(
        flops=B * flops_per_b,
        transcendentals=B * (NUM_HEADS * S * S + S * HIDDEN_DIM),
        bytes_accessed=int(2 * B * S * D * 4 + 2 * (12 * D * D) + (8 * D + 4 * HIDDEN_DIM) * 4),
    )

    kernel = partial(transformer_block_kernel, nb=nb, gelu_bf16=gelu_bf16)

    return pl.pallas_call(
        kernel,
        out_shape=jax.ShapeDtypeStruct((B, S, D), x.dtype),
        grid_spec=pltpu.PrefetchScalarGridSpec(
            num_scalar_prefetch=0,
            grid=grid,
            in_specs=in_specs,
            out_specs=o_spec,
            scratch_shapes=[pltpu.VMEM((nb * S, D), jnp.bfloat16)],
        ),
        compiler_params=pltpu.CompilerParams(dimension_semantics=dim_sem),
        cost_estimate=cost,
    )(x, *prepped)


# -------------------------- pure-JAX f32 reference --------------------------
def transformer_block_ref(x, p):
    def ln(v, g, b):
        m = jnp.mean(v, axis=-1, keepdims=True)
        var = jnp.mean((v - m) ** 2, axis=-1, keepdims=True)
        return (v - m) * jax.lax.rsqrt(var + LN_EPS) * g + b

    B, S, D = x.shape
    h = ln(x, p["ln1_g"], p["ln1_b"])
    qkv = h @ p["w_qkv"] + p["b_qkv"]
    q, k, v = jnp.split(qkv, 3, axis=-1)
    q = q.reshape(B, S, NUM_HEADS, HEAD_DIM).transpose(0, 2, 1, 3)
    k = k.reshape(B, S, NUM_HEADS, HEAD_DIM).transpose(0, 2, 1, 3)
    v = v.reshape(B, S, NUM_HEADS, HEAD_DIM).transpose(0, 2, 1, 3)
    scores = jnp.einsum("bhqd,bhkd->bhqk", q, k) / math.sqrt(HEAD_DIM)
    mask = jnp.tril(jnp.ones((S, S), dtype=bool))
    scores = jnp.where(mask, scores, -1e30)
    probs = jax.nn.softmax(scores, axis=-1)
    attn = jnp.einsum("bhqk,bhkd->bhqd", probs, v).transpose(0, 2, 1, 3).reshape(B, S, D)
    x1 = x + attn @ p["w_out"] + p["b_out"]

    h2 = ln(x1, p["ln2_g"], p["ln2_b"])
    c = math.sqrt(2.0 / math.pi)
    hfc = h2 @ p["w_fc"] + p["b_fc"]
    hfc = 0.5 * hfc * (1.0 + jnp.tanh(c * (hfc + 0.044715 * hfc ** 3)))
    return x1 + hfc @ p["w_proj"] + p["b_proj"]


# -------------------------- params & main --------------------------
def init_params(key):
    ks = jax.random.split(key, 6)
    std = 0.02
    D, H = EMBED_DIM, HIDDEN_DIM
    return {
        "ln1_g": jnp.ones((1, D), jnp.float32),
        "ln1_b": jnp.zeros((1, D), jnp.float32),
        "w_qkv": (std * jax.random.normal(ks[0], (D, 3 * D))).astype(jnp.float32),
        "b_qkv": jnp.zeros((1, 3 * D), jnp.float32),
        "w_out": (std * jax.random.normal(ks[1], (D, D))).astype(jnp.float32),
        "b_out": jnp.zeros((1, D), jnp.float32),
        "ln2_g": jnp.ones((1, D), jnp.float32),
        "ln2_b": jnp.zeros((1, D), jnp.float32),
        "w_fc": (std * jax.random.normal(ks[2], (D, H))).astype(jnp.float32),
        "b_fc": jnp.zeros((1, H), jnp.float32),
        "w_proj": (std * jax.random.normal(ks[3], (H, D))).astype(jnp.float32),
        "b_proj": jnp.zeros((1, D), jnp.float32),
    }


if __name__ == "__main__":
    key = jax.random.PRNGKey(0)
    pkey, xkey = jax.random.split(key)
    params = init_params(pkey)
    x = jax.random.normal(xkey, (BATCH, SEQ_LEN, EMBED_DIM), dtype=jnp.float32)

    prepped = jax.block_until_ready(prepare_params(params))   # one-time bf16 weight prep

    out = jax.block_until_ready(transformer_block(x, prepped))
    ref = jax.block_until_ready(transformer_block_ref(x, params))

    assert out.shape == (BATCH, SEQ_LEN, EMBED_DIM)
    # bf16 MXU inputs (f32 accumulation), bf16 GELU and approx reciprocal introduce
    # ~1e-3-level error vs. the f32 reference.
    assert jnp.allclose(out, ref, rtol=1e-2, atol=1e-2), (
        f"max abs err {float(jnp.max(jnp.abs(out - ref)))}"
    )
    print("KERNEL_OK")
</pallas_src>

<mosaic_0001>
module attributes {stable_mosaic.version = 11 : i64} {
  func.func @transformer_block_kernel(%arg0: i32, %arg1: memref<2x128x128xf32, #tpu.memory_space<vmem>>, %arg2: memref<1x128xf32, #tpu.memory_space<vmem>>, %arg3: memref<1x128xf32, #tpu.memory_space<vmem>>, %arg4: memref<128x384xbf16, #tpu.memory_space<vmem>>, %arg5: memref<1x384xf32, #tpu.memory_space<vmem>>, %arg6: memref<128x128xbf16, #tpu.memory_space<vmem>>, %arg7: memref<1x128xf32, #tpu.memory_space<vmem>>, %arg8: memref<1x128xf32, #tpu.memory_space<vmem>>, %arg9: memref<1x128xf32, #tpu.memory_space<vmem>>, %arg10: memref<128x512xbf16, #tpu.memory_space<vmem>>, %arg11: memref<1x512xf32, #tpu.memory_space<vmem>>, %arg12: memref<512x128xbf16, #tpu.memory_space<vmem>>, %arg13: memref<1x128xf32, #tpu.memory_space<vmem>>, %arg14: memref<2x128x128xf32, #tpu.memory_space<vmem>>, %arg15: memref<256x128xbf16, #tpu.memory_space<vmem>>) attributes {dimension_semantics = [#tpu.dimension_semantics<arbitrary>], iteration_bounds = array<i64: 1>, scalar_prefetch = 0 : i64, scratch_operands = 1 : i64, tpu.core_type = #tpu.core_type<tc>, window_params = [{pipeline_mode = #tpu.pipeline_mode<synchronous>, transform_indices = @transform_0, window_bounds = array<i64: 2, 128, 128>}, {pipeline_mode = #tpu.pipeline_mode<synchronous>, transform_indices = @transform_1, window_bounds = array<i64: 1, 128>}, {pipeline_mode = #tpu.pipeline_mode<synchronous>, transform_indices = @transform_2, window_bounds = array<i64: 1, 128>}, {pipeline_mode = #tpu.pipeline_mode<synchronous>, transform_indices = @transform_3, window_bounds = array<i64: 128, 384>}, {pipeline_mode = #tpu.pipeline_mode<synchronous>, transform_indices = @transform_4, window_bounds = array<i64: 1, 384>}, {pipeline_mode = #tpu.pipeline_mode<synchronous>, transform_indices = @transform_5, window_bounds = array<i64: 128, 128>}, {pipeline_mode = #tpu.pipeline_mode<synchronous>, transform_indices = @transform_6, window_bounds = array<i64: 1, 128>}, {pipeline_mode = #tpu.pipeline_mode<synchronous>, transform_indices = @transform_7, window_bounds = array<i64: 1, 128>}, {pipeline_mode = #tpu.pipeline_mode<synchronous>, transform_indices = @transform_8, window_bounds = array<i64: 1, 128>}, {pipeline_mode = #tpu.pipeline_mode<synchronous>, transform_indices = @transform_9, window_bounds = array<i64: 128, 512>}, {pipeline_mode = #tpu.pipeline_mode<synchronous>, transform_indices = @transform_10, window_bounds = array<i64: 1, 512>}, {pipeline_mode = #tpu.pipeline_mode<synchronous>, transform_indices = @transform_11, window_bounds = array<i64: 512, 128>}, {pipeline_mode = #tpu.pipeline_mode<synchronous>, transform_indices = @transform_12, window_bounds = array<i64: 1, 128>}, {pipeline_mode = #tpu.pipeline_mode<synchronous>, transform_indices = @transform_13, window_bounds = array<i64: 2, 128, 128>}]} {
    %c0 = arith.constant 0 : index
    %c0_0 = arith.constant 0 : index
    %c0_1 = arith.constant 0 : index
    %0 = vector.load %arg1[%c0, %c0_0, %c0_1] : memref<2x128x128xf32, #tpu.memory_space<vmem>>, vector<2x128x128xf32>
    %1 = vector.shape_cast %0 : vector<2x128x128xf32> to vector<256x128xf32>
    %c0_2 = arith.constant 0 : index
    %c0_3 = arith.constant 0 : index
    %2 = vector.load %arg2[%c0_2, %c0_3] : memref<1x128xf32, #tpu.memory_space<vmem>>, vector<1x128xf32>
    %c0_4 = arith.constant 0 : index
    %c0_5 = arith.constant 0 : index
    %3 = vector.load %arg3[%c0_4, %c0_5] : memref<1x128xf32, #tpu.memory_space<vmem>>, vector<1x128xf32>
    %cst = arith.constant dense<0.000000e+00> : vector<256xf32>
    %4 = vector.multi_reduction <add>, %1, %cst [1] : vector<256x128xf32> to vector<256xf32>
    %5 = vector.shape_cast %4 : vector<256xf32> to vector<256x1xf32>
    %cst_6 = arith.constant 1.280000e+02 : f32
    %6 = vector.broadcast %cst_6 : f32 to vector<256x1xf32>
    %7 = arith.divf %5, %6 : vector<256x1xf32>
    %8 = vector.broadcast %7 : vector<256x1xf32> to vector<256x128xf32>
    %9 = arith.subf %1, %8 : vector<256x128xf32>
    %10 = arith.mulf %9, %9 : vector<256x128xf32>
    %cst_7 = arith.constant dense<0.000000e+00> : vector<256xf32>
    %11 = vector.multi_reduction <add>, %10, %cst_7 [1] : vector<256x128xf32> to vector<256xf32>
    %12 = vector.shape_cast %11 : vector<256xf32> to vector<256x1xf32>
    %cst_8 = arith.constant 1.280000e+02 : f32
    %13 = vector.broadcast %cst_8 : f32 to vector<256x1xf32>
    %14 = arith.divf %12, %13 : vector<256x1xf32>
    %cst_9 = arith.constant 9.99999974E-6 : f32
    %15 = vector.broadcast %cst_9 : f32 to vector<256x1xf32>
    %16 = arith.addf %14, %15 : vector<256x1xf32>
    %17 = math.rsqrt %16 : vector<256x1xf32>
    %18 = vector.broadcast %7 : vector<256x1xf32> to vector<256x128xf32>
    %19 = arith.subf %1, %18 : vector<256x128xf32>
    %20 = vector.broadcast %17 : vector<256x1xf32> to vector<256x128xf32>
    %21 = arith.mulf %19, %20 : vector<256x128xf32>
    %22 = vector.broadcast %2 : vector<1x128xf32> to vector<256x128xf32>
    %23 = arith.mulf %21, %22 : vector<256x128xf32>
    %24 = vector.broadcast %3 : vector<1x128xf32> to vector<256x128xf32>
    %25 = arith.addf %23, %24 : vector<256x128xf32>
    %26 = arith.truncf %25 : vector<256x128xf32> to vector<256x128xbf16>
    %c0_10 = arith.constant 0 : index
    %c0_11 = arith.constant 0 : index
    %27 = vector.load %arg4[%c0_10, %c0_11] : memref<128x384xbf16, #tpu.memory_space<vmem>>, vector<128x384xbf16>
    %cst_12 = arith.constant dense<0.000000e+00> : vector<256x384xf32>
    %28 = tpu.matmul %26, %27, %cst_12 {dimension_numbers = #tpu.dot_dimension_numbers<[1], [0], [0], [1], [0, 0, 1, 1], [], []>} : vector<256x128xbf16>, vector<128x384xbf16>, vector<256x384xf32> -> vector<256x384xf32>
    %c0_13 = arith.constant 0 : index
    %c0_14 = arith.constant 0 : index
    %29 = vector.load %arg5[%c0_13, %c0_14] : memref<1x384xf32, #tpu.memory_space<vmem>>, vector<1x384xf32>
    %30 = vector.broadcast %29 : vector<1x384xf32> to vector<256x384xf32>
    %31 = arith.addf %28, %30 : vector<256x384xf32>
    %32 = vector.extract_strided_slice %31 {offsets = [0, 0], sizes = [256, 128], strides = [1, 1]} : vector<256x384xf32> to vector<256x128xf32>
    %33 = arith.truncf %32 : vector<256x128xf32> to vector<256x128xbf16>
    %34 = vector.extract_strided_slice %31 {offsets = [0, 128], sizes = [256, 128], strides = [1, 1]} : vector<256x384xf32> to vector<256x128xf32>
    %35 = arith.truncf %34 : vector<256x128xf32> to vector<256x128xbf16>
    %36 = vector.extract_strided_slice %31 {offsets = [0, 256], sizes = [256, 128], strides = [1, 1]} : vector<256x384xf32> to vector<256x128xf32>
    %37 = arith.truncf %36 : vector<256x128xf32> to vector<256x128xbf16>
    %38 = tpu.iota {dimensions = array<i32: 0>} : vector<128x128xi32>
    %39 = tpu.iota {dimensions = array<i32: 1>} : vector<128x128xi32>
    %40 = arith.cmpi sge, %38, %39 : vector<128x128xi32>
    %cst_15 = arith.constant 0.000000e+00 : f32
    %cst_16 = arith.constant -1.000000e+30 : f32
    %41 = vector.broadcast %cst_15 : f32 to vector<128x128xf32>
    %42 = vector.broadcast %cst_16 : f32 to vector<128x128xf32>
    %43 = arith.select %40, %41, %42 : vector<128x128xi1>, vector<128x128xf32>
    %44 = vector.extract_strided_slice %33 {offsets = [0, 0], sizes = [128, 32], strides = [1, 1]} : vector<256x128xbf16> to vector<128x32xbf16>
    %45 = vector.extract_strided_slice %35 {offsets = [0, 0], sizes = [128, 32], strides = [1, 1]} : vector<256x128xbf16> to vector<128x32xbf16>
    %46 = vector.extract_strided_slice %37 {offsets = [0, 0], sizes = [128, 32], strides = [1, 1]} : vector<256x128xbf16> to vector<128x32xbf16>
    %cst_17 = arith.constant dense<0.000000e+00> : vector<128x128xf32>
    %47 = tpu.matmul %44, %45, %cst_17 {dimension_numbers = #tpu.dot_dimension_numbers<[1], [1], [0], [0], [0, 0, 1, 0], [], []>} : vector<128x32xbf16>, vector<128x32xbf16>, vector<128x128xf32> -> vector<128x128xf32>
    %48 = arith.addf %47, %43 : vector<128x128xf32>
    %cst_18 = arith.constant dense<0xFF800000> : vector<128xf32>
    %49 = vector.multi_reduction <maximumf>, %48, %cst_18 [1] : vector<128x128xf32> to vector<128xf32>
    %50 = vector.shape_cast %49 : vector<128xf32> to vector<128x1xf32>
    %51 = vector.broadcast %50 : vector<128x1xf32> to vector<128x128xf32>
    %52 = arith.subf %48, %51 : vector<128x128xf32>
    %53 = math.exp %52 : vector<128x128xf32>
    %cst_19 = arith.constant dense<0.000000e+00> : vector<128xf32>
    %54 = vector.multi_reduction <add>, %53, %cst_19 [1] : vector<128x128xf32> to vector<128xf32>
    %55 = vector.shape_cast %54 : vector<128xf32> to vector<128x1xf32>
    %56 = tpu.reciprocal %55 {approx = true} : vector<128x1xf32> -> vector<128x1xf32>
    %57 = vector.broadcast %56 : vector<128x1xf32> to vector<128x128xf32>
    %58 = arith.mulf %53, %57 : vector<128x128xf32>
    %59 = arith.truncf %58 : vector<128x128xf32> to vector<128x128xbf16>
    %cst_20 = arith.constant dense<0.000000e+00> : vector<128x32xf32>
    %60 = tpu.matmul %59, %46, %cst_20 {dimension_numbers = #tpu.dot_dimension_numbers<[1], [0], [0], [1], [0, 0, 1, 1], [], []>} : vector<128x128xbf16>, vector<128x32xbf16>, vector<128x32xf32> -> vector<128x32xf32>
    %61 = arith.truncf %60 : vector<128x32xf32> to vector<128x32xbf16>
    %c0_21 = arith.constant 0 : index
    %c0_22 = arith.constant 0 : index
    %62 = vector.load %arg15[%c0_21, %c0_22] : memref<256x128xbf16, #tpu.memory_space<vmem>>, vector<128x32xbf16>
    tpu.vector_store %arg15[%c0_21, %c0_22], %61 {strides = array<i32>} : memref<256x128xbf16, #tpu.memory_space<vmem>>, vector<128x32xbf16>,
    %63 = vector.extract_strided_slice %33 {offsets = [0, 32], sizes = [128, 32], strides = [1, 1]} : vector<256x128xbf16> to vector<128x32xbf16>
    %64 = vector.extract_strided_slice %35 {offsets = [0, 32], sizes = [128, 32], strides = [1, 1]} : vector<256x128xbf16> to vector<128x32xbf16>
    %65 = vector.extract_strided_slice %37 {offsets = [0, 32], sizes = [128, 32], strides = [1, 1]} : vector<256x128xbf16> to vector<128x32xbf16>
    %cst_23 = arith.constant dense<0.000000e+00> : vector<128x128xf32>
    %66 = tpu.matmul %63, %64, %cst_23 {dimension_numbers = #tpu.dot_dimension_numbers<[1], [1], [0], [0], [0, 0, 1, 0], [], []>} : vector<128x32xbf16>, vector<128x32xbf16>, vector<128x128xf32> -> vector<128x128xf32>
    %67 = arith.addf %66, %43 : vector<128x128xf32>
    %cst_24 = arith.constant dense<0xFF800000> : vector<128xf32>
    %68 = vector.multi_reduction <maximumf>, %67, %cst_24 [1] : vector<128x128xf32> to vector<128xf32>
    %69 = vector.shape_cast %68 : vector<128xf32> to vector<128x1xf32>
    %70 = vector.broadcast %69 : vector<128x1xf32> to vector<128x128xf32>
    %71 = arith.subf %67, %70 : vector<128x128xf32>
    %72 = math.exp %71 : vector<128x128xf32>
    %cst_25 = arith.constant dense<0.000000e+00> : vector<128xf32>
    %73 = vector.multi_reduction <add>, %72, %cst_25 [1] : vector<128x128xf32> to vector<128xf32>
    %74 = vector.shape_cast %73 : vector<128xf32> to vector<128x1xf32>
    %75 = tpu.reciprocal %74 {approx = true} : vector<128x1xf32> -> vector<128x1xf32>
    %76 = vector.broadcast %75 : vector<128x1xf32> to vector<128x128xf32>
    %77 = arith.mulf %72, %76 : vector<128x128xf32>
    %78 = arith.truncf %77 : vector<128x128xf32> to vector<128x128xbf16>
    %cst_26 = arith.constant dense<0.000000e+00> : vector<128x32xf32>
    %79 = tpu.matmul %78, %65, %cst_26 {dimension_numbers = #tpu.dot_dimension_numbers<[1], [0], [0], [1], [0, 0, 1, 1], [], []>} : vector<128x128xbf16>, vector<128x32xbf16>, vector<128x32xf32> -> vector<128x32xf32>
    %80 = arith.truncf %79 : vector<128x32xf32> to vector<128x32xbf16>
    %c0_27 = arith.constant 0 : index
    %c32 = arith.constant 32 : index
    %81 = vector.load %arg15[%c0_27, %c32] : memref<256x128xbf16, #tpu.memory_space<vmem>>, vector<128x32xbf16>
    tpu.vector_store %arg15[%c0_27, %c32], %80 {strides = array<i32>} : memref<256x128xbf16, #tpu.memory_space<vmem>>, vector<128x32xbf16>,
    %82 = vector.extract_strided_slice %33 {offsets = [0, 64], sizes = [128, 32], strides = [1, 1]} : vector<256x128xbf16> to vector<128x32xbf16>
    %83 = vector.extract_strided_slice %35 {offsets = [0, 64], sizes = [128, 32], strides = [1, 1]} : vector<256x128xbf16> to vector<128x32xbf16>
    %84 = vector.extract_strided_slice %37 {offsets = [0, 64], sizes = [128, 32], strides = [1, 1]} : vector<256x128xbf16> to vector<128x32xbf16>
    %cst_28 = arith.constant dense<0.000000e+00> : vector<128x128xf32>
    %85 = tpu.matmul %82, %83, %cst_28 {dimension_numbers = #tpu.dot_dimension_numbers<[1], [1], [0], [0], [0, 0, 1, 0], [], []>} : vector<128x32xbf16>, vector<128x32xbf16>, vector<128x128xf32> -> vector<128x128xf32>
    %86 = arith.addf %85, %43 : vector<128x128xf32>
    %cst_29 = arith.constant dense<0xFF800000> : vector<128xf32>
    %87 = vector.multi_reduction <maximumf>, %86, %cst_29 [1] : vector<128x128xf32> to vector<128xf32>
    %88 = vector.shape_cast %87 : vector<128xf32> to vector<128x1xf32>
    %89 = vector.broadcast %88 : vector<128x1xf32> to vector<128x128xf32>
    %90 = arith.subf %86, %89 : vector<128x128xf32>
    %91 = math.exp %90 : vector<128x128xf32>
    %cst_30 = arith.constant dense<0.000000e+00> : vector<128xf32>
    %92 = vector.multi_reduction <add>, %91, %cst_30 [1] : vector<128x128xf32> to vector<128xf32>
    %93 = vector.shape_cast %92 : vector<128xf32> to vector<128x1xf32>
    %94 = tpu.reciprocal %93 {approx = true} : vector<128x1xf32> -> vector<128x1xf32>
    %95 = vector.broadcast %94 : vector<128x1xf32> to vector<128x128xf32>
    %96 = arith.mulf %91, %95 : vector<128x128xf32>
    %97 = arith.truncf %96 : vector<128x128xf32> to vector<128x128xbf16>
    %cst_31 = arith.constant dense<0.000000e+00> : vector<128x32xf32>
    %98 = tpu.matmul %97, %84, %cst_31 {dimension_numbers = #tpu.dot_dimension_numbers<[1], [0], [0], [1], [0, 0, 1, 1], [], []>} : vector<128x128xbf16>, vector<128x32xbf16>, vector<128x32xf32> -> vector<128x32xf32>
    %99 = arith.truncf %98 : vector<128x32xf32> to vector<128x32xbf16>
    %c0_32 = arith.constant 0 : index
    %c64 = arith.constant 64 : index
    %100 = vector.load %arg15[%c0_32, %c64] : memref<256x128xbf16, #tpu.memory_space<vmem>>, vector<128x32xbf16>
    tpu.vector_store %arg15[%c0_32, %c64], %99 {strides = array<i32>} : memref<256x128xbf16, #tpu.memory_space<vmem>>, vector<128x32xbf16>,
    %101 = vector.extract_strided_slice %33 {offsets = [0, 96], sizes = [128, 32], strides = [1, 1]} : vector<256x128xbf16> to vector<128x32xbf16>
    %102 = vector.extract_strided_slice %35 {offsets = [0, 96], sizes = [128, 32], strides = [1, 1]} : vector<256x128xbf16> to vector<128x32xbf16>
    %103 = vector.extract_strided_slice %37 {offsets = [0, 96], sizes = [128, 32], strides = [1, 1]} : vector<256x128xbf16> to vector<128x32xbf16>
    %cst_33 = arith.constant dense<0.000000e+00> : vector<128x128xf32>
    %104 = tpu.matmul %101, %102, %cst_33 {dimension_numbers = #tpu.dot_dimension_numbers<[1], [1], [0], [0], [0, 0, 1, 0], [], []>} : vector<128x32xbf16>, vector<128x32xbf16>, vector<128x128xf32> -> vector<128x128xf32>
    %105 = arith.addf %104, %43 : vector<128x128xf32>
    %cst_34 = arith.constant dense<0xFF800000> : vector<128xf32>
    %106 = vector.multi_reduction <maximumf>, %105, %cst_34 [1] : vector<128x128xf32> to vector<128xf32>
    %107 = vector.shape_cast %106 : vector<128xf32> to vector<128x1xf32>
    %108 = vector.broadcast %107 : vector<128x1xf32> to vector<128x128xf32>
    %109 = arith.subf %105, %108 : vector<128x128xf32>
    %110 = math.exp %109 : vector<128x128xf32>
    %cst_35 = arith.constant dense<0.000000e+00> : vector<128xf32>
    %111 = vector.multi_reduction <add>, %110, %cst_35 [1] : vector<128x128xf32> to vector<128xf32>
    %112 = vector.shape_cast %111 : vector<128xf32> to vector<128x1xf32>
    %113 = tpu.reciprocal %112 {approx = true} : vector<128x1xf32> -> vector<128x1xf32>
    %114 = vector.broadcast %113 : vector<128x1xf32> to vector<128x128xf32>
    %115 = arith.mulf %110, %114 : vector<128x128xf32>
    %116 = arith.truncf %115 : vector<128x128xf32> to vector<128x128xbf16>
    %cst_36 = arith.constant dense<0.000000e+00> : vector<128x32xf32>
    %117 = tpu.matmul %116, %103, %cst_36 {dimension_numbers = #tpu.dot_dimension_numbers<[1], [0], [0], [1], [0, 0, 1, 1], [], []>} : vector<128x128xbf16>, vector<128x32xbf16>, vector<128x32xf32> -> vector<128x32xf32>
    %118 = arith.truncf %117 : vector<128x32xf32> to vector<128x32xbf16>
    %c0_37 = arith.constant 0 : index
    %c96 = arith.constant 96 : index
    %119 = vector.load %arg15[%c0_37, %c96] : memref<256x128xbf16, #tpu.memory_space<vmem>>, vector<128x32xbf16>
    tpu.vector_store %arg15[%c0_37, %c96], %118 {strides = array<i32>} : memref<256x128xbf16, #tpu.memory_space<vmem>>, vector<128x32xbf16>,
    %120 = vector.extract_strided_slice %33 {offsets = [128, 0], sizes = [128, 32], strides = [1, 1]} : vector<256x128xbf16> to vector<128x32xbf16>
    %121 = vector.extract_strided_slice %35 {offsets = [128, 0], sizes = [128, 32], strides = [1, 1]} : vector<256x128xbf16> to vector<128x32xbf16>
    %122 = vector.extract_strided_slice %37 {offsets = [128, 0], sizes = [128, 32], strides = [1, 1]} : vector<256x128xbf16> to vector<128x32xbf16>
    %cst_38 = arith.constant dense<0.000000e+00> : vector<128x128xf32>
    %123 = tpu.matmul %120, %121, %cst_38 {dimension_numbers = #tpu.dot_dimension_numbers<[1], [1], [0], [0], [0, 0, 1, 0], [], []>} : vector<128x32xbf16>, vector<128x32xbf16>, vector<128x128xf32> -> vector<128x128xf32>
    %124 = arith.addf %123, %43 : vector<128x128xf32>
    %cst_39 = arith.constant dense<0xFF800000> : vector<128xf32>
    %125 = vector.multi_reduction <maximumf>, %124, %cst_39 [1] : vector<128x128xf32> to vector<128xf32>
    %126 = vector.shape_cast %125 : vector<128xf32> to vector<128x1xf32>
    %127 = vector.broadcast %126 : vector<128x1xf32> to vector<128x128xf32>
    %128 = arith.subf %124, %127 : vector<128x128xf32>
    %129 = math.exp %128 : vector<128x128xf32>
    %cst_40 = arith.constant dense<0.000000e+00> : vector<128xf32>
    %130 = vector.multi_reduction <add>, %129, %cst_40 [1] : vector<128x128xf32> to vector<128xf32>
    %131 = vector.shape_cast %130 : vector<128xf32> to vector<128x1xf32>
    %132 = tpu.reciprocal %131 {approx = true} : vector<128x1xf32> -> vector<128x1xf32>
    %133 = vector.broadcast %132 : vector<128x1xf32> to vector<128x128xf32>
    %134 = arith.mulf %129, %133 : vector<128x128xf32>
    %135 = arith.truncf %134 : vector<128x128xf32> to vector<128x128xbf16>
    %cst_41 = arith.constant dense<0.000000e+00> : vector<128x32xf32>
    %136 = tpu.matmul %135, %122, %cst_41 {dimension_numbers = #tpu.dot_dimension_numbers<[1], [0], [0], [1], [0, 0, 1, 1], [], []>} : vector<128x128xbf16>, vector<128x32xbf16>, vector<128x32xf32> -> vector<128x32xf32>
    %137 = arith.truncf %136 : vector<128x32xf32> to vector<128x32xbf16>
    %c128 = arith.constant 128 : index
    %c0_42 = arith.constant 0 : index
    %138 = vector.load %arg15[%c128, %c0_42] : memref<256x128xbf16, #tpu.memory_space<vmem>>, vector<128x32xbf16>
    tpu.vector_store %arg15[%c128, %c0_42], %137 {strides = array<i32>} : memref<256x128xbf16, #tpu.memory_space<vmem>>, vector<128x32xbf16>,
    %139 = vector.extract_strided_slice %33 {offsets = [128, 32], sizes = [128, 32], strides = [1, 1]} : vector<256x128xbf16> to vector<128x32xbf16>
    %140 = vector.extract_strided_slice %35 {offsets = [128, 32], sizes = [128, 32], strides = [1, 1]} : vector<256x128xbf16> to vector<128x32xbf16>
    %141 = vector.extract_strided_slice %37 {offsets = [128, 32], sizes = [128, 32], strides = [1, 1]} : vector<256x128xbf16> to vector<128x32xbf16>
    %cst_43 = arith.constant dense<0.000000e+00> : vector<128x128xf32>
    %142 = tpu.matmul %139, %140, %cst_43 {dimension_numbers = #tpu.dot_dimension_numbers<[1], [1], [0], [0], [0, 0, 1, 0], [], []>} : vector<128x32xbf16>, vector<128x32xbf16>, vector<128x128xf32> -> vector<128x128xf32>
    %143 = arith.addf %142, %43 : vector<128x128xf32>
    %cst_44 = arith.constant dense<0xFF800000> : vector<128xf32>
    %144 = vector.multi_reduction <maximumf>, %143, %cst_44 [1] : vector<128x128xf32> to vector<128xf32>
    %145 = vector.shape_cast %144 : vector<128xf32> to vector<128x1xf32>
    %146 = vector.broadcast %145 : vector<128x1xf32> to vector<128x128xf32>
    %147 = arith.subf %143, %146 : vector<128x128xf32>
    %148 = math.exp %147 : vector<128x128xf32>
    %cst_45 = arith.constant dense<0.000000e+00> : vector<128xf32>
    %149 = vector.multi_reduction <add>, %148, %cst_45 [1] : vector<128x128xf32> to vector<128xf32>
    %150 = vector.shape_cast %149 : vector<128xf32> to vector<128x1xf32>
    %151 = tpu.reciprocal %150 {approx = true} : vector<128x1xf32> -> vector<128x1xf32>
    %152 = vector.broadcast %151 : vector<128x1xf32> to vector<128x128xf32>
    %153 = arith.mulf %148, %152 : vector<128x128xf32>
    %154 = arith.truncf %153 : vector<128x128xf32> to vector<128x128xbf16>
    %cst_46 = arith.constant dense<0.000000e+00> : vector<128x32xf32>
    %155 = tpu.matmul %154, %141, %cst_46 {dimension_numbers = #tpu.dot_dimension_numbers<[1], [0], [0], [1], [0, 0, 1, 1], [], []>} : vector<128x128xbf16>, vector<128x32xbf16>, vector<128x32xf32> -> vector<128x32xf32>
    %156 = arith.truncf %155 : vector<128x32xf32> to vector<128x32xbf16>
    %c128_47 = arith.constant 128 : index
    %c32_48 = arith.constant 32 : index
    %157 = vector.load %arg15[%c128_47, %c32_48] : memref<256x128xbf16, #tpu.memory_space<vmem>>, vector<128x32xbf16>
    tpu.vector_store %arg15[%c128_47, %c32_48], %156 {strides = array<i32>} : memref<256x128xbf16, #tpu.memory_space<vmem>>, vector<128x32xbf16>,
    %158 = vector.extract_strided_slice %33 {offsets = [128, 64], sizes = [128, 32], strides = [1, 1]} : vector<256x128xbf16> to vector<128x32xbf16>
    %159 = vector.extract_strided_slice %35 {offsets = [128, 64], sizes = [128, 32], strides = [1, 1]} : vector<256x128xbf16> to vector<128x32xbf16>
    %160 = vector.extract_strided_slice %37 {offsets = [128, 64], sizes = [128, 32], strides = [1, 1]} : vector<256x128xbf16> to vector<128x32xbf16>
    %cst_49 = arith.constant dense<0.000000e+00> : vector<128x128xf32>
    %161 = tpu.matmul %158, %159, %cst_49 {dimension_numbers = #tpu.dot_dimension_numbers<[1], [1], [0], [0], [0, 0, 1, 0], [], []>} : vector<128x32xbf16>, vector<128x32xbf16>, vector<128x128xf32> -> vector<128x128xf32>
    %162 = arith.addf %161, %43 : vector<128x128xf32>
    %cst_50 = arith.constant dense<0xFF800000> : vector<128xf32>
    %163 = vector.multi_reduction <maximumf>, %162, %cst_50 [1] : vector<128x128xf32> to vector<128xf32>
    %164 = vector.shape_cast %163 : vector<128xf32> to vector<128x1xf32>
    %165 = vector.broadcast %164 : vector<128x1xf32> to vector<128x128xf32>
    %166 = arith.subf %162, %165 : vector<128x128xf32>
    %167 = math.exp %166 : vector<128x128xf32>
    %cst_51 = arith.constant dense<0.000000e+00> : vector<128xf32>
    %168 = vector.multi_reduction <add>, %167, %cst_51 [1] : vector<128x128xf32> to vector<128xf32>
    %169 = vector.shape_cast %168 : vector<128xf32> to vector<128x1xf32>
    %170 = tpu.reciprocal %169 {approx = true} : vector<128x1xf32> -> vector<128x1xf32>
    %171 = vector.broadcast %170 : vector<128x1xf32> to vector<128x128xf32>
    %172 = arith.mulf %167, %171 : vector<128x128xf32>
    %173 = arith.truncf %172 : vector<128x128xf32> to vector<128x128xbf16>
    %cst_52 = arith.constant dense<0.000000e+00> : vector<128x32xf32>
    %174 = tpu.matmul %173, %160, %cst_52 {dimension_numbers = #tpu.dot_dimension_numbers<[1], [0], [0], [1], [0, 0, 1, 1], [], []>} : vector<128x128xbf16>, vector<128x32xbf16>, vector<128x32xf32> -> vector<128x32xf32>
    %175 = arith.truncf %174 : vector<128x32xf32> to vector<128x32xbf16>
    %c128_53 = arith.constant 128 : index
    %c64_54 = arith.constant 64 : index
    %176 = vector.load %arg15[%c128_53, %c64_54] : memref<256x128xbf16, #tpu.memory_space<vmem>>, vector<128x32xbf16>
    tpu.vector_store %arg15[%c128_53, %c64_54], %175 {strides = array<i32>} : memref<256x128xbf16, #tpu.memory_space<vmem>>, vector<128x32xbf16>,
    %177 = vector.extract_strided_slice %33 {offsets = [128, 96], sizes = [128, 32], strides = [1, 1]} : vector<256x128xbf16> to vector<128x32xbf16>
    %178 = vector.extract_strided_slice %35 {offsets = [128, 96], sizes = [128, 32], strides = [1, 1]} : vector<256x128xbf16> to vector<128x32xbf16>
    %179 = vector.extract_strided_slice %37 {offsets = [128, 96], sizes = [128, 32], strides = [1, 1]} : vector<256x128xbf16> to vector<128x32xbf16>
    %cst_55 = arith.constant dense<0.000000e+00> : vector<128x128xf32>
    %180 = tpu.matmul %177, %178, %cst_55 {dimension_numbers = #tpu.dot_dimension_numbers<[1], [1], [0], [0], [0, 0, 1, 0], [], []>} : vector<128x32xbf16>, vector<128x32xbf16>, vector<128x128xf32> -> vector<128x128xf32>
    %181 = arith.addf %180, %43 : vector<128x128xf32>
    %cst_56 = arith.constant dense<0xFF800000> : vector<128xf32>
    %182 = vector.multi_reduction <maximumf>, %181, %cst_56 [1] : vector<128x128xf32> to vector<128xf32>
    %183 = vector.shape_cast %182 : vector<128xf32> to vector<128x1xf32>
    %184 = vector.broadcast %183 : vector<128x1xf32> to vector<128x128xf32>
    %185 = arith.subf %181, %184 : vector<128x128xf32>
    %186 = math.exp %185 : vector<128x128xf32>
    %cst_57 = arith.constant dense<0.000000e+00> : vector<128xf32>
    %187 = vector.multi_reduction <add>, %186, %cst_57 [1] : vector<128x128xf32> to vector<128xf32>
    %188 = vector.shape_cast %187 : vector<128xf32> to vector<128x1xf32>
    %189 = tpu.reciprocal %188 {approx = true} : vector<128x1xf32> -> vector<128x1xf32>
    %190 = vector.broadcast %189 : vector<128x1xf32> to vector<128x128xf32>
    %191 = arith.mulf %186, %190 : vector<128x128xf32>
    %192 = arith.truncf %191 : vector<128x128xf32> to vector<128x128xbf16>
    %cst_58 = arith.constant dense<0.000000e+00> : vector<128x32xf32>
    %193 = tpu.matmul %192, %179, %cst_58 {dimension_numbers = #tpu.dot_dimension_numbers<[1], [0], [0], [1], [0, 0, 1, 1], [], []>} : vector<128x128xbf16>, vector<128x32xbf16>, vector<128x32xf32> -> vector<128x32xf32>
    %194 = arith.truncf %193 : vector<128x32xf32> to vector<128x32xbf16>
    %c128_59 = arith.constant 128 : index
    %c96_60 = arith.constant 96 : index
    %195 = vector.load %arg15[%c128_59, %c96_60] : memref<256x128xbf16, #tpu.memory_space<vmem>>, vector<128x32xbf16>
    tpu.vector_store %arg15[%c128_59, %c96_60], %194 {strides = array<i32>} : memref<256x128xbf16, #tpu.memory_space<vmem>>, vector<128x32xbf16>,
    %c0_61 = arith.constant 0 : index
    %c0_62 = arith.constant 0 : index
    %196 = vector.load %arg15[%c0_61, %c0_62] : memref<256x128xbf16, #tpu.memory_space<vmem>>, vector<256x128xbf16>
    %c0_63 = arith.constant 0 : index
    %c0_64 = arith.constant 0 : index
    %197 = vector.load %arg6[%c0_63, %c0_64] : memref<128x128xbf16, #tpu.memory_space<vmem>>, vector<128x128xbf16>
    %cst_65 = arith.constant dense<0.000000e+00> : vector<256x128xf32>
    %198 = tpu.matmul %196, %197, %cst_65 {dimension_numbers = #tpu.dot_dimension_numbers<[1], [0], [0], [1], [0, 0, 1, 1], [], []>} : vector<256x128xbf16>, vector<128x128xbf16>, vector<256x128xf32> -> vector<256x128xf32>
    %199 = arith.addf %1, %198 : vector<256x128xf32>
    %c0_66 = arith.constant 0 : index
    %c0_67 = arith.constant 0 : index
    %200 = vector.load %arg7[%c0_66, %c0_67] : memref<1x128xf32, #tpu.memory_space<vmem>>, vector<1x128xf32>
    %201 = vector.broadcast %200 : vector<1x128xf32> to vector<256x128xf32>
    %202 = arith.addf %199, %201 : vector<256x128xf32>
    %c0_68 = arith.constant 0 : index
    %c0_69 = arith.constant 0 : index
    %203 = vector.load %arg8[%c0_68, %c0_69] : memref<1x128xf32, #tpu.memory_space<vmem>>, vector<1x128xf32>
    %c0_70 = arith.constant 0 : index
    %c0_71 = arith.constant 0 : index
    %204 = vector.load %arg9[%c0_70, %c0_71] : memref<1x128xf32, #tpu.memory_space<vmem>>, vector<1x128xf32>
    %cst_72 = arith.constant dense<0.000000e+00> : vector<256xf32>
    %205 = vector.multi_reduction <add>, %202, %cst_72 [1] : vector<256x128xf32> to vector<256xf32>
    %206 = vector.shape_cast %205 : vector<256xf32> to vector<256x1xf32>
    %cst_73 = arith.constant 1.280000e+02 : f32
    %207 = vector.broadcast %cst_73 : f32 to vector<256x1xf32>
    %208 = arith.divf %206, %207 : vector<256x1xf32>
    %209 = vector.broadcast %208 : vector<256x1xf32> to vector<256x128xf32>
    %210 = arith.subf %202, %209 : vector<256x128xf32>
    %211 = arith.mulf %210, %210 : vector<256x128xf32>
    %cst_74 = arith.constant dense<0.000000e+00> : vector<256xf32>
    %212 = vector.multi_reduction <add>, %211, %cst_74 [1] : vector<256x128xf32> to vector<256xf32>
    %213 = vector.shape_cast %212 : vector<256xf32> to vector<256x1xf32>
    %cst_75 = arith.constant 1.280000e+02 : f32
    %214 = vector.broadcast %cst_75 : f32 to vector<256x1xf32>
    %215 = arith.divf %213, %214 : vector<256x1xf32>
    %cst_76 = arith.constant 9.99999974E-6 : f32
    %216 = vector.broadcast %cst_76 : f32 to vector<256x1xf32>
    %217 = arith.addf %215, %216 : vector<256x1xf32>
    %218 = math.rsqrt %217 : vector<256x1xf32>
    %219 = vector.broadcast %208 : vector<256x1xf32> to vector<256x128xf32>
    %220 = arith.subf %202, %219 : vector<256x128xf32>
    %221 = vector.broadcast %218 : vector<256x1xf32> to vector<256x128xf32>
    %222 = arith.mulf %220, %221 : vector<256x128xf32>
    %223 = vector.broadcast %203 : vector<1x128xf32> to vector<256x128xf32>
    %224 = arith.mulf %222, %223 : vector<256x128xf32>
    %225 = vector.broadcast %204 : vector<1x128xf32> to vector<256x128xf32>
    %226 = arith.addf %224, %225 : vector<256x128xf32>
    %227 = arith.truncf %226 : vector<256x128xf32> to vector<256x128xbf16>
    %c0_77 = arith.constant 0 : index
    %c0_78 = arith.constant 0 : index
    %228 = vector.load %arg10[%c0_77, %c0_78] : memref<128x512xbf16, #tpu.memory_space<vmem>>, vector<128x512xbf16>
    %cst_79 = arith.constant dense<0.000000e+00> : vector<256x512xf32>
    %229 = tpu.matmul %227, %228, %cst_79 {dimension_numbers = #tpu.dot_dimension_numbers<[1], [0], [0], [1], [0, 0, 1, 1], [], []>} : vector<256x128xbf16>, vector<128x512xbf16>, vector<256x512xf32> -> vector<256x512xf32>
    %c0_80 = arith.constant 0 : index
    %c0_81 = arith.constant 0 : index
    %230 = vector.load %arg11[%c0_80, %c0_81] : memref<1x512xf32, #tpu.memory_space<vmem>>, vector<1x512xf32>
    %231 = vector.broadcast %230 : vector<1x512xf32> to vector<256x512xf32>
    %232 = arith.addf %229, %231 : vector<256x512xf32>
    %233 = arith.truncf %232 : vector<256x512xf32> to vector<256x512xbf16>
    %cst_82 = arith.constant 5.000000e-01 : bf16
    %234 = vector.broadcast %cst_82 : bf16 to vector<256x512xbf16>
    %235 = arith.mulf %234, %233 : vector<256x512xbf16>
    %cst_83 = arith.constant 4.467770e-02 : bf16
    %236 = vector.broadcast %cst_83 : bf16 to vector<256x512xbf16>
    %237 = arith.mulf %236, %233 : vector<256x512xbf16>
    %238 = arith.mulf %237, %233 : vector<256x512xbf16>
    %239 = arith.mulf %238, %233 : vector<256x512xbf16>
    %240 = arith.addf %233, %239 : vector<256x512xbf16>
    %cst_84 = arith.constant 7.968750e-01 : bf16
    %241 = vector.broadcast %cst_84 : bf16 to vector<256x512xbf16>
    %242 = arith.mulf %241, %240 : vector<256x512xbf16>
    %243 = math.tanh %242 : vector<256x512xbf16>
    %cst_85 = arith.constant 1.000000e+00 : bf16
    %244 = vector.broadcast %cst_85 : bf16 to vector<256x512xbf16>
    %245 = arith.addf %244, %243 : vector<256x512xbf16>
    %246 = arith.mulf %235, %245 : vector<256x512xbf16>
    %c0_86 = arith.constant 0 : index
    %c0_87 = arith.constant 0 : index
    %247 = vector.load %arg12[%c0_86, %c0_87] : memref<512x128xbf16, #tpu.memory_space<vmem>>, vector<512x128xbf16>
    %cst_88 = arith.constant dense<0.000000e+00> : vector<256x128xf32>
    %248 = tpu.matmul %246, %247, %cst_88 {dimension_numbers = #tpu.dot_dimension_numbers<[1], [0], [0], [1], [0, 0, 1, 1], [], []>} : vector<256x512xbf16>, vector<512x128xbf16>, vector<256x128xf32> -> vector<256x128xf32>
    %c0_89 = arith.constant 0 : index
    %c0_90 = arith.constant 0 : index
    %249 = vector.load %arg13[%c0_89, %c0_90] : memref<1x128xf32, #tpu.memory_space<vmem>>, vector<1x128xf32>
    %250 = vector.broadcast %249 : vector<1x128xf32> to vector<256x128xf32>
    %251 = arith.addf %248, %250 : vector<256x128xf32>
    %252 = arith.addf %202, %251 : vector<256x128xf32>
    %253 = vector.shape_cast %252 : vector<256x128xf32> to vector<2x128x128xf32>
    %c0_91 = arith.constant 0 : index
    %c0_92 = arith.constant 0 : index
    %c0_93 = arith.constant 0 : index
    %254 = vector.load %arg14[%c0_91, %c0_92, %c0_93] : memref<2x128x128xf32, #tpu.memory_space<vmem>>, vector<2x128x128xf32>
    tpu.vector_store %arg14[%c0_91, %c0_92, %c0_93], %253 {strides = array<i32>} : memref<2x128x128xf32, #tpu.memory_space<vmem>>, vector<2x128x128xf32>,
    return
  }
  func.func @transform_0(%arg0: i32) -> (i32, i32, i32) {
    %c0_i32 = arith.constant 0 : i32
    %c0_i32_0 = arith.constant 0 : i32
    %c0_i32_1 = arith.constant 0 : i32
    %c0_i32_2 = arith.constant 0 : i32
    return %c0_i32, %c0_i32_0, %c0_i32_1 : i32, i32, i32
  }
  func.func @transform_1(%arg0: i32) -> (i32, i32) {
    %c0_i32 = arith.constant 0 : i32
    %c0_i32_0 = arith.constant 0 : i32
    %c0_i32_1 = arith.constant 0 : i32
    return %c0_i32, %c0_i32_0 : i32, i32
  }
  func.func @transform_2(%arg0: i32) -> (i32, i32) {
    %c0_i32 = arith.constant 0 : i32
    %c0_i32_0 = arith.constant 0 : i32
    %c0_i32_1 = arith.constant 0 : i32
    return %c0_i32, %c0_i32_0 : i32, i32
  }
  func.func @transform_3(%arg0: i32) -> (i32, i32) {
    %c0_i32 = arith.constant 0 : i32
    %c0_i32_0 = arith.constant 0 : i32
    %c0_i32_1 = arith.constant 0 : i32
    return %c0_i32, %c0_i32_0 : i32, i32
  }
  func.func @transform_4(%arg0: i32) -> (i32, i32) {
    %c0_i32 = arith.constant 0 : i32
    %c0_i32_0 = arith.constant 0 : i32
    %c0_i32_1 = arith.constant 0 : i32
    return %c0_i32, %c0_i32_0 : i32, i32
  }
  func.func @transform_5(%arg0: i32) -> (i32, i32) {
    %c0_i32 = arith.constant 0 : i32
    %c0_i32_0 = arith.constant 0 : i32
    %c0_i32_1 = arith.constant 0 : i32
    return %c0_i32, %c0_i32_0 : i32, i32
  }
  func.func @transform_6(%arg0: i32) -> (i32, i32) {
    %c0_i32 = arith.constant 0 : i32
    %c0_i32_0 = arith.constant 0 : i32
    %c0_i32_1 = arith.constant 0 : i32
    return %c0_i32, %c0_i32_0 : i32, i32
  }
  func.func @transform_7(%arg0: i32) -> (i32, i32) {
    %c0_i32 = arith.constant 0 : i32
    %c0_i32_0 = arith.constant 0 : i32
    %c0_i32_1 = arith.constant 0 : i32
    return %c0_i32, %c0_i32_0 : i32, i32
  }
  func.func @transform_8(%arg0: i32) -> (i32, i32) {
    %c0_i32 = arith.constant 0 : i32
    %c0_i32_0 = arith.constant 0 : i32
    %c0_i32_1 = arith.constant 0 : i32
    return %c0_i32, %c0_i32_0 : i32, i32
  }
  func.func @transform_9(%arg0: i32) -> (i32, i32) {
    %c0_i32 = arith.constant 0 : i32
    %c0_i32_0 = arith.constant 0 : i32
    %c0_i32_1 = arith.constant 0 : i32
    return %c0_i32, %c0_i32_0 : i32, i32
  }
  func.func @transform_10(%arg0: i32) -> (i32, i32) {
    %c0_i32 = arith.constant 0 : i32
    %c0_i32_0 = arith.constant 0 : i32
    %c0_i32_1 = arith.constant 0 : i32
    return %c0_i32, %c0_i32_0 : i32, i32
  }
  func.func @transform_11(%arg0: i32) -> (i32, i32) {
    %c0_i32 = arith.constant 0 : i32
    %c0_i32_0 = arith.constant 0 : i32
    %c0_i32_1 = arith.constant 0 : i32
    return %c0_i32, %c0_i32_0 : i32, i32
  }
  func.func @transform_12(%arg0: i32) -> (i32, i32) {
    %c0_i32 = arith.constant 0 : i32
    %c0_i32_0 = arith.constant 0 : i32
    %c0_i32_1 = arith.constant 0 : i32
    return %c0_i32, %c0_i32_0 : i32, i32
  }
  func.func @transform_13(%arg0: i32) -> (i32, i32, i32) {
    %c0_i32 = arith.constant 0 : i32
    %c0_i32_0 = arith.constant 0 : i32
    %c0_i32_1 = arith.constant 0 : i32
    %c0_i32_2 = arith.constant 0 : i32
    return %c0_i32, %c0_i32_0, %c0_i32_1 : i32, i32, i32
  }
}

</mosaic_0001>

<bundles_post_ra>
// kernel: tpu_custom_call.1
= control target key start
LH: loop header
LB: loop body
LE: loop exit
PB: predicated region body
PF: predicated region fallthrough
CT: control target
= control target key end

     0   :  { %18 = vsyncpa [#allocation4], 0  ;;  %s15538_s0 = inlined_call_operand.hbm [shape: f32[2,128,128], index: 0, kind: input, shape index: {}]   ;;  %s15539_s1 = inlined_call_operand.hbm [shape: f32[1,128], index: 1, kind: input, shape index: {}]   ;;  %s15540_s2 = inlined_call_operand.hbm [shape: f32[1,128], index: 2, kind: input, shape index: {}]   ;;  %s15541_s3 = inlined_call_operand.hbm [shape: bf16[128,384], index: 3, kind: input, shape index: {}]   ;;  %s15542_s4 = inlined_call_operand.vmem [shape: f32[1,384], index: 4, kind: input, shape index: {}]   ;;  %s15543_s5 = inlined_call_operand.hbm [shape: bf16[128,128], index: 5, kind: input, shape index: {}]   ;;  %s15544_s6 = inlined_call_operand.vmem [shape: f32[1,128], index: 6, kind: input, shape index: {}]   ;;  %s15545_s7 = inlined_call_operand.vmem [shape: f32[1,128], index: 7, kind: input, shape index: {}]   ;;  %s15546_s8 = inlined_call_operand.vmem [shape: f32[1,128], index: 8, kind: input, shape index: {}]   ;;  %s15547_s9 = inlined_call_operand.hbm [shape: bf16[128,512], index: 9, kind: input, shape index: {}]   ;;  %s15548_s10 = inlined_call_operand.vmem [shape: f32[1,512], index: 10, kind: input, shape index: {}]   ;;  %s15549_s11 = inlined_call_operand.hbm [shape: bf16[512,128], index: 11, kind: input, shape index: {}]   ;;  %s15550_s12 = inlined_call_operand.vmem [shape: f32[1,128], index: 12, kind: input, shape index: {}]   ;;  %s15551_s13 = inlined_call_operand.hbm [shape: f32[2,128,128], index: 13, kind: output, shape index: {}]  }
   0x1   :  { %19 = vsyncpa [#allocation7], 0 }
   0x2   :  { %20 = vsyncpa [#allocation10], 0 }
   0x3   :  { %21 = vsyncpa [#allocation13], 0 }
   0x4   :  { %22 = vsyncpa [#allocation5], 0  ;;  %s11184_s25 = smov [#allocation6]   ;;  %s11185_s27 = smov [#allocation9]  }
   0x5   :  { %s41_s26 = sshll.u32 %s11184_s25, 4  ;;  %s60_s28 = sshll.u32 %s11185_s27, 4  ;;  %s42_s26 = int_to_ptr.vmem [resolvable:$true] %s41_s26  ;;  %s61_s28 = int_to_ptr.vmem [resolvable:$true] %s60_s28 }
   0x6   :  { %s11022_s29 = scalar_lea.vmem %s42_s26, 16  ;;  %s11026_s30 = scalar_lea.vmem %s42_s26, 32 }
   0x7   :  { %p11023_p0 = scmp.ne.s32.totalorder %s42_s26, %s11022_s29  ;;  %p11027_p1 = scmp.lt.s32.totalorder %s42_s26, %s42_s26 }
   0x8   :  { %p11028_p2 = scmp.lt.s32.totalorder %s11026_s30, %s11022_s29 }
   0xa   :  { %p11029_p3 = por %p11028_p2, %p11027_p1 }
   0xc   :  { %p11030_p4 = pnand %p11029_p3, %p11023_p0 }
   0xe   :  { %11033 = shalt.err (!%p11030_p4)
}
   0xf   :  { %44 = dma.hbm_to_vmem [thread:$0]  %s15539_s1, 16, %s42_s26, [#allocation7]  }
  0x10   :  { %s11042_s16 = scalar_lea.vmem %s61_s28, 3072  ;;  %p11047_p6 = scmp.lt.s32.totalorder %s61_s28, %s61_s28 }
  0x11   :  { %p11043_p5 = scmp.ne.s32.totalorder %s61_s28, %s11042_s16  ;;  %p11048_p7 = scmp.lt.s32.totalorder %s11042_s16, %s11042_s16 }
  0x13   :  { %p11049_p8 = por %p11048_p7, %p11047_p6 }
  0x15   :  { %p11050_p9 = pnand %p11049_p8, %p11043_p5 }
  0x17   :  { %11053 = shalt.err (!%p11050_p9)
}
  0x18   :  { %s11186_s17 = smov 192   ;;  %s11187_s18 = smov 12  }
  0x19   :  { %66 = dma.hbm_to_vmem [thread:$0]  %s15541_s3, 3072, %s61_s28, [#allocation10], %s11186_s17, %s11186_s17, %s11187_s18  }
  0x1a   :  { %s11188_s21 = smov [#allocation12]  }
  0x1b   :  { %s92_s22 = sshll.u32 %s11188_s21, 4  ;;  %s93_s22 = int_to_ptr.vmem [resolvable:$true] %s92_s22 }
  0x1c   :  { %s11062_s23 = scalar_lea.vmem %s93_s22, 4096  ;;  %p11067_p11 = scmp.lt.s32.totalorder %s93_s22, %s93_s22 }
  0x1d   :  { %p11063_p10 = scmp.ne.s32.totalorder %s93_s22, %s11062_s23  ;;  %p11068_p12 = scmp.lt.s32.totalorder %s11062_s23, %s11062_s23 }
  0x1f   :  { %p11069_p13 = por %p11068_p12, %p11067_p11 }
  0x21   :  { %p11070_p0 = pnand %p11069_p13, %p11063_p10 }
  0x23   :  { %11073 = shalt.err (!%p11070_p0)
}
  0x24   :  { %s11189_s1 = smov 256   ;;  %s11190_s24 = smov 16  }
  0x25   :  { %98 = dma.hbm_to_vmem [thread:$0]  %s15547_s9, 4096, %s93_s22, [#allocation13], %s11189_s1, %s11189_s1, %s11190_s24  }
  0x26   :  { %s11191_s27 = smov [#allocation3]  }
  0x27   :  { %s28_s29 = sshll.u32 %s11191_s27, 4  ;;  %s29_s29 = int_to_ptr.vmem [resolvable:$true] %s28_s29 }
  0x28   :  { %s11082_s3 = scalar_lea.vmem %s29_s29, 4096  ;;  %p11087_p2 = scmp.lt.s32.totalorder %s29_s29, %s29_s29 }
  0x29   :  { %p11083_p1 = scmp.ne.s32.totalorder %s29_s29, %s11082_s3  ;;  %p11088_p3 = scmp.lt.s32.totalorder %s11082_s3, %s11082_s3 }
  0x2b   :  { %p11089_p4 = por %p11088_p3, %p11087_p2 }
  0x2d   :  { %p11090_p5 = pnand %p11089_p4, %p11083_p1 }
  0x2f   :  { %11093 = shalt.err (!%p11090_p5)
}
  0x30   :  { %s11192_s28 = smov 128   ;;  %s11193_s30 = smov 8  }
  0x31   :  { %34 = dma.hbm_to_vmem [thread:$0]  %s15538_s0, 4096, %s29_s29, [#allocation4], %s11192_s28, %s11192_s28, %s11193_s30  }
  0x32   :  { %s11194_s9 = smov [#allocation8]   ;;  %s11195_s17 = smov [#allocation11]  }
  0x33   :  { %s51_s16 = sshll.u32 %s11194_s9, 4  ;;  %s74_s18 = sshll.u32 %s11195_s17, 4  ;;  %s52_s16 = int_to_ptr.vmem [resolvable:$true] %s51_s16  ;;  %s75_s18 = int_to_ptr.vmem [resolvable:$true] %s74_s18 }
  0x34   :  { %s11102_s19 = scalar_lea.vmem %s52_s16, 16  ;;  %s11106_s20 = scalar_lea.vmem %s52_s16, 32 }
  0x35   :  { %p11103_p6 = scmp.ne.s32.totalorder %s52_s16, %s11102_s19  ;;  %p11107_p7 = scmp.lt.s32.totalorder %s52_s16, %s52_s16 }
  0x36   :  { %p11108_p8 = scmp.lt.s32.totalorder %s11106_s20, %s11102_s19 }
  0x38   :  { %p11109_p9 = por %p11108_p8, %p11107_p7 }
  0x3a   :  { %p11110_p10 = pnand %p11109_p9, %p11103_p6 }
  0x3c   :  { %11113 = shalt.err (!%p11110_p10)
}
  0x3d   :  { %54 = dma.hbm_to_vmem [thread:$0]  %s15540_s2, 16, %s52_s16, [#allocation7]  }
  0x3e   :  { %s11122_s23 = scalar_lea.vmem %s75_s18, 1024  ;;  %p11127_p12 = scmp.lt.s32.totalorder %s75_s18, %s75_s18 }
  0x3f   :  { %p11123_p11 = scmp.ne.s32.totalorder %s75_s18, %s11122_s23  ;;  %p11128_p13 = scmp.lt.s32.totalorder %s11122_s23, %s11122_s23 }
  0x41   :  { %p11129_p0 = por %p11128_p13, %p11127_p12 }
  0x43   :  { %p11130_p1 = pnand %p11129_p0, %p11123_p11 }
  0x45   :  { %11133 = shalt.err (!%p11130_p1)
}
  0x46   :  { %s11196_s0 = smov 64   ;;  %s11197_s1 = smov 4  }
  0x47   :  { %80 = dma.hbm_to_vmem [thread:$0]  %s15543_s5, 1024, %s75_s18, [#allocation10], %s11196_s0, %s11196_s0, %s11197_s1  }
  0x48   :  { %s11198_s26 = smov [#allocation14]  }
  0x49   :  { %s106_s27 = sshll.u32 %s11198_s26, 4  ;;  %s107_s27 = int_to_ptr.vmem [resolvable:$true] %s106_s27 }
  0x4a   :  { %s11142_s29 = scalar_lea.vmem %s107_s27, 4096  ;;  %p11147_p3 = scmp.lt.s32.totalorder %s107_s27, %s107_s27 }
  0x4b   :  { %p11143_p2 = scmp.ne.s32.totalorder %s107_s27, %s11142_s29  ;;  %p11148_p4 = scmp.lt.s32.totalorder %s11142_s29, %s11142_s29 }
  0x4d   :  { %p11149_p5 = por %p11148_p4, %p11147_p3 }
  0x4f   :  { %p11150_p6 = pnand %p11149_p5, %p11143_p2 }
  0x51   :  { %11153 = shalt.err (!%p11150_p6)
}
  0x52   :  { %112 = dma.hbm_to_vmem [thread:$0]  %s15549_s11, 4096, %s107_s27, [#allocation13], %s11196_s0, %s11196_s0, %s11197_s1  }
  0x53   :  { %11174 = dma.done.wait [#allocation4], 4096  }
  0x54   :  { %11175 = vsyncadd [#allocation4], 4294963200 }
  0x55   :  { %11176 = dma.done.wait [#allocation7], 32  }
  0x56   :  { %11177 = vsyncadd [#allocation7], 4294967264 }
  0x57   :  { %11178 = dma.done.wait [#allocation10], 4096  }
  0x58   :  { %11179 = vsyncadd [#allocation10], 4294963200 }
  0x59   :  { %11180 = dma.done.wait [#allocation13], 8192  }
  0x5a   :  { %11181 = vsyncadd [#allocation13], 4294959104  ;;  %v141_v0 = vld [vmem:[#allocation3] sm:$0xff]  ;;  %v143_v1 = vld [vmem:[#allocation3 + $0x10] sm:$0xff]  ;;  %vm1250_vm0 = vcmask 261120   ;;  %s11201_s14 = smov 32  }
  0x5b   :  { %175 = vadd.xlane.f32.xlu0 %v141_v0  ;;  %179 = vadd.xlane.f32.xlu1 %v143_v1  ;;  %v142_v2 = vld [vmem:[#allocation3 + $0x8] sm:$0xff]  ;;  %v144_v3 = vld [vmem:[#allocation3 + $0x18] sm:$0xff]  ;;  %v145_v4 = vld [vmem:[#allocation3 + $0x20] sm:$0xff] }
  0x5c   :  { %v146_v5 = vld [vmem:[#allocation3 + $0x28] sm:$0xff]  ;;  %v147_v6 = vld [vmem:[#allocation3 + $0x30] sm:$0xff]  ;;  %v148_v7 = vld [vmem:[#allocation3 + $0x38] sm:$0xff] }
  0x5d   :  { %v11302_v8 = vld [vmem:[#allocation3 + $0x40] sm:$0xff]  ;;  %v11304_v9 = vld [vmem:[#allocation3 + $0x48] sm:$0xff]  ;;  %v11306_v10 = vld [vmem:[#allocation3 + $0x50] sm:$0xff] }
  0x5e   :  { %v11308_v11 = vld [vmem:[#allocation3 + $0x58] sm:$0xff]  ;;  %v11312_v12 = vld [vmem:[#allocation3 + $0x60] sm:$0xff]  ;;  %v11314_v13 = vld [vmem:[#allocation3 + $0x68] sm:$0xff] }
  0x5f   :  { %177 = vadd.xlane.f32.xlu0 %v142_v2  ;;  %181 = vadd.xlane.f32.xlu1 %v144_v3  ;;  %v11318_v14 = vld [vmem:[#allocation3 + $0x70] sm:$0xff]  ;;  %v11320_v15 = vld [vmem:[#allocation3 + $0x78] sm:$0xff]  ;;  %v10082_v63 = vld [vmem:[#allocation9 + $0x7c] ss:$12 sps:$4 sm:$0xff]  }
  0x60   :  { %v10076_v16 = vld [vmem:[#allocation9 + $0xac] ss:$12 sps:$4 sm:$0xff]   ;;  %v10078_v17 = vld [vmem:[#allocation9 + $0xa8] ss:$12 sps:$4 sm:$0xff]   ;;  %v10081_v54 = vld [vmem:[#allocation9 + $0x90] ss:$12 sps:$4 sm:$0xff]  }
  0x61   :  { %797 = vmatprep.subr.bf16.mxu0 %v10076_v16  ;;  %9976 = vmatprep.subr.bf16.mxu1 %v10076_v16  ;;  %v10079_v53 = vld [vmem:[#allocation9 + $0x94] ss:$12 sps:$4 sm:$0xff]  }
  0x62   :  { %798 = vmatpush1.bf16.msra.mxu0 %v10078_v17  ;;  %9984 = vmatpush1.bf16.msra.mxu1 %v10078_v17  ;;  %v10087_v17 = vld [vmem:[#allocation9 + $0x60] ss:$12 sps:$4 sm:$0xff]  }
  0x63   :  { %183 = vadd.xlane.f32.xlu0 %v145_v4  ;;  %185 = vadd.xlane.f32.xlu1 %v146_v5 }
  0x64   :  { %799 = vmatprep.subr.bf16.mxu0 %v10079_v53  ;;  %9977 = vmatprep.subr.bf16.mxu1 %v10079_v53  ;;  %v11435_v53 = vld [vmem:[#allocation3 + $0xa0] sm:$0xff] }
  0x66   :  { %800 = vmatpush1.bf16.msra.mxu0 %v10081_v54  ;;  %9985 = vmatpush1.bf16.msra.mxu1 %v10081_v54  ;;  %v11439_v54 = vld [vmem:[#allocation3 + $0xa8] sm:$0xff] }
  0x67   :  { %187 = vadd.xlane.f32.xlu0 %v147_v6  ;;  %189 = vadd.xlane.f32.xlu1 %v148_v7 }
  0x68   :  { %801 = vmatprep.subr.bf16.mxu0 %v10082_v63  ;;  %9978 = vmatprep.subr.bf16.mxu1 %v10082_v63 }
  0x6b   :  { %191 = vadd.xlane.f32.xlu0 %v11302_v8  ;;  %193 = vadd.xlane.f32.xlu1 %v11304_v9 }
  0x6f   :  { %195 = vadd.xlane.f32.xlu0 %v11306_v10  ;;  %197 = vadd.xlane.f32.xlu1 %v11308_v11 }
  0x73   :  { %199 = vadd.xlane.f32.xlu0 %v11312_v12  ;;  %201 = vadd.xlane.f32.xlu1 %v11314_v13 }
  0x77   :  { %203 = vadd.xlane.f32.xlu0 %v11318_v14  ;;  %205 = vadd.xlane.f32.xlu1 %v11320_v15 }
  0xe4   :  { %v176_v18 = vpop.xlane.xlu0 %175  ;;  %v180_v19 = vpop.xlane.xlu1 %179 }
  0xe5   :  { %v240_v20 = vmul.f32 0.0078125, %v176_v18  ;;  %v242_v21 = vmul.f32 0.0078125, %v180_v19 }
  0xe7   :  { %v11326_v22 = vsub.f32 %v141_v0, %v240_v20  ;;  %v11328_v23 = vsub.f32 %v143_v1, %v242_v21 }
  0xe8   :  { %v178_v24 = vpop.xlane.xlu0 %177  ;;  %v182_v25 = vpop.xlane.xlu1 %181 }
  0xe9   :  { %v241_v26 = vmul.f32 0.0078125, %v178_v24  ;;  %v304_v27 = vmul.f32 %v11326_v22, %v11326_v22  ;;  %v243_v28 = vmul.f32 0.0078125, %v182_v25  ;;  %v306_v29 = vmul.f32 %v11328_v23, %v11328_v23  ;;  %v10088_v25 = vld [vmem:[#allocation9 + $0x4c] ss:$12 sps:$4 sm:$0xff]  }
  0xeb   :  { %336 = vadd.xlane.f32.xlu0 %v304_v27  ;;  %v11334_v30 = vsub.f32 %v142_v2, %v241_v26  ;;  %v11336_v31 = vsub.f32 %v144_v3, %v243_v28  ;;  %v10084_v3 = vld [vmem:[#allocation9 + $0x78] ss:$12 sps:$4 sm:$0xff]   ;;  %v10090_v27 = vld [vmem:[#allocation9 + $0x48] ss:$12 sps:$4 sm:$0xff]  }
  0xec   :  { %v184_v32 = vpop.xlane.xlu0 %183  ;;  %v186_v33 = vpop.xlane.xlu1 %185  ;;  %802 = vmatpush1.bf16.msra.mxu0 %v10084_v3  ;;  %9986 = vmatpush1.bf16.msra.mxu1 %v10084_v3 }
  0xed   :  { %v244_v34 = vmul.f32 0.0078125, %v184_v32  ;;  %v305_v35 = vmul.f32 %v11334_v30, %v11334_v30  ;;  %v245_v36 = vmul.f32 0.0078125, %v186_v33  ;;  %v307_v37 = vmul.f32 %v11336_v31, %v11336_v31  ;;  %v10093_v33 = vld [vmem:[#allocation9 + $0x30] ss:$12 sps:$4 sm:$0xff]  }
  0xef   :  { %340 = vadd.xlane.f32.xlu0 %v306_v29  ;;  %338 = vadd.xlane.f32.xlu1 %v305_v35  ;;  %v11342_v38 = vsub.f32 %v145_v4, %v244_v34  ;;  %v11344_v39 = vsub.f32 %v146_v5, %v245_v36  ;;  %v10091_v29 = vld [vmem:[#allocation9 + $0x34] ss:$12 sps:$4 sm:$0xff]   ;;  %v10096_v34 = vld [vmem:[#allocation9 + $0x18] ss:$12 sps:$4 sm:$0xff]   ;;  %v11403_v36 = vld [vmem:[#allocation3 + $0xd0] sm:$0xff] }
  0xf0   :  { %v188_v40 = vpop.xlane.xlu0 %187  ;;  %v190_v41 = vpop.xlane.xlu1 %189  ;;  %v11401_v35 = vld [vmem:[#allocation3 + $0xc8] sm:$0xff] }
  0xf1   :  { %v246_v42 = vmul.f32 0.0078125, %v188_v40  ;;  %v308_v43 = vmul.f32 %v11342_v38, %v11342_v38  ;;  %v247_v44 = vmul.f32 0.0078125, %v190_v41  ;;  %v309_v45 = vmul.f32 %v11344_v39, %v11344_v39  ;;  %v10099_v40 = vld [vmem:[#allocation9] ss:$12 sps:$4 sm:$0xff]   ;;  %v11407_v41 = vld [vmem:[#allocation3 + $0xd8] sm:$0xff] }
  0xf3   :  { %342 = vadd.xlane.f32.xlu1 %v307_v37  ;;  %344 = vadd.xlane.f32.xlu0 %v308_v43  ;;  %v11350_v46 = vsub.f32 %v147_v6, %v246_v42  ;;  %v11352_v47 = vsub.f32 %v148_v7, %v247_v44  ;;  %v10097_v37 = vld [vmem:[#allocation9 + $0x4] ss:$12 sps:$4 sm:$0xff]   ;;  %v11409_v42 = vld [vmem:[#allocation3 + $0xe0] sm:$0xff] }
  0xf4   :  { %v192_v48 = vpop.xlane.xlu0 %191  ;;  %v194_v49 = vpop.xlane.xlu1 %193  ;;  %v11413_v43 = vld [vmem:[#allocation3 + $0xe8] sm:$0xff]  ;;  %v11415_v44 = vld [vmem:[#allocation3 + $0xf0] sm:$0xff] }
  0xf5   :  { %v248_v50 = vmul.f32 0.0078125, %v192_v48  ;;  %v310_v51 = vmul.f32 %v11350_v46, %v11350_v46  ;;  %v249_v52 = vmul.f32 0.0078125, %v194_v49  ;;  %v311_v55 = vmul.f32 %v11352_v47, %v11352_v47  ;;  %v11421_v48 = vld [vmem:[#allocation3 + $0xf8] sm:$0xff]  ;;  %v11423_v49 = vld [vmem:[#allocation3 + $0x80] sm:$0xff] }
  0xf7   :  { %346 = vadd.xlane.f32.xlu1 %v309_v45  ;;  %348 = vadd.xlane.f32.xlu0 %v310_v51  ;;  %v11359_v56 = vsub.f32 %v11302_v8, %v248_v50  ;;  %v11362_v57 = vsub.f32 %v11304_v9, %v249_v52  ;;  %v10085_v9 = vld [vmem:[#allocation9 + $0x64] ss:$12 sps:$4 sm:$0xff]   ;;  %v15554_v45 = vmov 0   ;;  %v11433_v52 = vld [vmem:[#allocation3 + $0x98] sm:$0xff] }
  0xf8   :  { %v196_v58 = vpop.xlane.xlu0 %195  ;;  %v198_v59 = vpop.xlane.xlu1 %197  ;;  %803 = vmatprep.subr.bf16.mxu0 %v10085_v9  ;;  %9979 = vmatprep.subr.bf16.mxu1 %v10085_v9  ;;  %v11427_v50 = vld [vmem:[#allocation3 + $0x88] sm:$0xff]  ;;  %v11429_v51 = vld [vmem:[#allocation3 + $0x90] sm:$0xff] }
  0xf9   :  { %v250_v60 = vmul.f32 0.0078125, %v196_v58  ;;  %v312_v61 = vmul.f32 %v11359_v56, %v11359_v56  ;;  %v251_v62 = vmul.f32 0.0078125, %v198_v59  ;;  %v313_v0 = vmul.f32 %v11362_v57, %v11362_v57  ;;  %804 = vmatpush1.bf16.msra.mxu0 %v10087_v17  ;;  %9987 = vmatpush1.bf16.msra.mxu1 %v10087_v17  ;;  %v11445_v58 = vld [vmem:[#allocation3 + $0xb8] sm:$0xff] }
  0xfa   :  { %805 = vmatprep.subr.bf16.mxu0 %v10088_v25  ;;  %9980 = vmatprep.subr.bf16.mxu1 %v10088_v25 }
  0xfb   :  { %350 = vadd.xlane.f32.xlu1 %v311_v55  ;;  %352 = vadd.xlane.f32.xlu0 %v312_v61  ;;  %v11369_v1 = vsub.f32 %v11306_v10, %v250_v60  ;;  %v11372_v2 = vsub.f32 %v11308_v11, %v251_v62  ;;  %v11441_v55 = vld [vmem:[#allocation3 + $0xb0] sm:$0xff] }
  0xfc   :  { %v200_v4 = vpop.xlane.xlu0 %199  ;;  %v202_v5 = vpop.xlane.xlu1 %201  ;;  %829 = vmatprep.mubr.bf16.mxu0 %v15554_v45  ;;  %949 = vmatprep.mubr.bf16.mxu1 %v15554_v45 }
  0xfd   :  { %v252_v6 = vmul.f32 0.0078125, %v200_v4  ;;  %v314_v7 = vmul.f32 %v11369_v1, %v11369_v1  ;;  %v253_v8 = vmul.f32 0.0078125, %v202_v5  ;;  %v315_v10 = vmul.f32 %v11372_v2, %v11372_v2  ;;  %806 = vmatpush1.bf16.msra.mxu0 %v10090_v27  ;;  %9988 = vmatpush1.bf16.msra.mxu1 %v10090_v27 }
  0xfe   :  { %807 = vmatprep.subr.bf16.mxu0 %v10091_v29  ;;  %9981 = vmatprep.subr.bf16.mxu1 %v10091_v29 }
  0xff   :  { %354 = vadd.xlane.f32.xlu1 %v313_v0  ;;  %356 = vadd.xlane.f32.xlu0 %v314_v7  ;;  %v11379_v11 = vsub.f32 %v11312_v12, %v252_v6  ;;  %v11382_v16 = vsub.f32 %v11314_v13, %v253_v8 }
 0x100   :  { %v204_v18 = vpop.xlane.xlu0 %203  ;;  %v206_v19 = vpop.xlane.xlu1 %205 }
 0x101   :  { %v254_v20 = vmul.f32 0.0078125, %v204_v18  ;;  %v316_v21 = vmul.f32 %v11379_v11, %v11379_v11  ;;  %v255_v24 = vmul.f32 0.0078125, %v206_v19  ;;  %v317_v12 = vmul.f32 %v11382_v16, %v11382_v16  ;;  %808 = vmatpush1.bf16.msra.mxu0 %v10093_v33  ;;  %9989 = vmatpush1.bf16.msra.mxu1 %v10093_v33 }
 0x103   :  { %358 = vadd.xlane.f32.xlu1 %v315_v10  ;;  %360 = vadd.xlane.f32.xlu0 %v316_v21  ;;  %v11389_v13 = vsub.f32 %v11318_v14, %v254_v20  ;;  %v11392_v26 = vsub.f32 %v11320_v15, %v255_v24  ;;  %v11398_v14 = vld [vmem:[#allocation3 + $0xc0] sm:$0xff] }
 0x104   :  { %v10094_v15 = vld [vmem:[#allocation9 + $0x1c] ss:$12 sps:$4 sm:$0xff]  }
 0x105   :  { %v318_v28 = vmul.f32 %v11389_v13, %v11389_v13  ;;  %v319_v32 = vmul.f32 %v11392_v26, %v11392_v26  ;;  %809 = vmatprep.subr.bf16.mxu0 %v10094_v15  ;;  %9982 = vmatprep.subr.bf16.mxu1 %v10094_v15 }
 0x106   :  { %810 = vmatpush1.bf16.msra.mxu0 %v10096_v34  ;;  %9990 = vmatpush1.bf16.msra.mxu1 %v10096_v34  ;;  %v11449_v34 = vld [vmem:[#allocation6] ss:$0 sm:$0xff] }
 0x107   :  { %362 = vadd.xlane.f32.xlu1 %v317_v12  ;;  %364 = vadd.xlane.f32.xlu0 %v318_v28 }
 0x108   :  { %811 = vmatprep.subr.bf16.mxu0 %v10097_v37  ;;  %9983 = vmatprep.subr.bf16.mxu1 %v10097_v37 }
 0x10a   :  { %812 = vmatpush1.bf16.msra.mxu0 %v10099_v40  ;;  %9991 = vmatpush1.bf16.msra.mxu1 %v10099_v40 }
 0x10b   :  { %366 = vadd.xlane.f32.xlu1 %v319_v32  ;;  %223 = vadd.xlane.f32.xlu0 %v11398_v14 }
 0x10f   :  { %225 = vadd.xlane.f32.xlu1 %v11401_v35  ;;  %227 = vadd.xlane.f32.xlu0 %v11403_v36 }
 0x113   :  { %229 = vadd.xlane.f32.xlu1 %v11407_v41  ;;  %231 = vadd.xlane.f32.xlu0 %v11409_v42 }
 0x117   :  { %233 = vadd.xlane.f32.xlu1 %v11413_v43  ;;  %235 = vadd.xlane.f32.xlu0 %v11415_v44 }
 0x11b   :  { %237 = vadd.xlane.f32.xlu1 %v11421_v48  ;;  %207 = vadd.xlane.f32.xlu0 %v11423_v49 }
 0x11f   :  { %209 = vadd.xlane.f32.xlu1 %v11427_v50  ;;  %211 = vadd.xlane.f32.xlu0 %v11429_v51 }
 0x123   :  { %213 = vadd.xlane.f32.xlu1 %v11433_v52  ;;  %215 = vadd.xlane.f32.xlu0 %v11435_v53 }
 0x127   :  { %217 = vadd.xlane.f32.xlu1 %v11439_v54  ;;  %219 = vadd.xlane.f32.xlu0 %v11441_v55 }
 0x12b   :  { %221 = vadd.xlane.f32.xlu1 %v11445_v58 }
 0x174   :  { %v337_v59 = vpop.xlane.xlu0 %336 }
 0x175   :  { %v400_v60 = vmul.f32 0.0078125, %v337_v59 }
 0x177   :  { %v432_v61 = vadd.f32 1e-05, %v400_v60 }
 0x178   :  { %v339_v62 = vpop.xlane.xlu1 %338  ;;  %v341_v63 = vpop.xlane.xlu0 %340 }
 0x179   :  { %10212 = vrsqrt.f32 %v432_v61  ;;  %v401_v0 = vmul.f32 0.0078125, %v339_v62  ;;  %v402_v3 = vmul.f32 0.0078125, %v341_v63 }
 0x17b   :  { %v433_v4 = vadd.f32 1e-05, %v401_v0  ;;  %v434_v5 = vadd.f32 1e-05, %v402_v3  ;;  %v11455_v3 = vld [vmem:[#allocation8] ss:$0 sm:$0xff] }
 0x17c   :  { %v343_v6 = vpop.xlane.xlu1 %342  ;;  %v345_v7 = vpop.xlane.xlu0 %344 }
 0x17d   :  { %10214 = vrsqrt.f32 %v433_v4  ;;  %v403_v8 = vmul.f32 0.0078125, %v343_v6  ;;  %v404_v9 = vmul.f32 0.0078125, %v345_v7 }
 0x17e   :  { %10216 = vrsqrt.f32 %v434_v5 }
 0x17f   :  { %v435_v10 = vadd.f32 1e-05, %v403_v8  ;;  %v436_v20 = vadd.f32 1e-05, %v404_v9 }
 0x180   :  { %v347_v17 = vpop.xlane.xlu1 %346  ;;  %v349_v18 = vpop.xlane.xlu0 %348 }
 0x181   :  { %10218 = vrsqrt.f32 %v435_v10  ;;  %v405_v19 = vmul.f32 0.0078125, %v347_v17  ;;  %v406_v28 = vmul.f32 0.0078125, %v349_v18 }
 0x183   :  { %v437_v21 = vadd.f32 1e-05, %v405_v19  ;;  %v438_v40 = vadd.f32 1e-05, %v406_v28 }
 0x184   :  { %v351_v24 = vpop.xlane.xlu1 %350  ;;  %v353_v25 = vpop.xlane.xlu0 %352 }
 0x185   :  { %10220 = vrsqrt.f32 %v437_v21  ;;  %v407_v12 = vmul.f32 0.0078125, %v351_v24  ;;  %v408_v5 = vmul.f32 0.0078125, %v353_v25 }
 0x186   :  { %v10213_v27 = vpop.eup %10212  ;;  %10222 = vrsqrt.f32 %v436_v20 }
 0x187   :  { %v496_v29 = vmul.f32 %v10213_v27, %v11326_v22  ;;  %v439_v32 = vadd.f32 1e-05, %v407_v12  ;;  %v440_v24 = vadd.f32 1e-05, %v408_v5 }
 0x188   :  { %v355_v33 = vpop.xlane.xlu1 %354  ;;  %v357_v15 = vpop.xlane.xlu0 %356 }
 0x189   :  { %v534_v60 = vmul.f32 %v11449_v34, %v496_v29  ;;  %10224 = vrsqrt.f32 %v439_v32  ;;  %v409_v62 = vmul.f32 0.0078125, %v355_v33  ;;  %v410_v32 = vmul.f32 0.0078125, %v357_v15 }
 0x18a   :  { %v10215_v37 = vpop.eup %10214  ;;  %10226 = vrsqrt.f32 %v438_v40 }
 0x18b   :  { %v497_v59 = vmul.f32 %v10215_v37, %v11334_v30  ;;  %v10217_v61 = vpop.eup %10216  ;;  %v572_v6 = vadd.f32 %v11455_v3, %v534_v60  ;;  %v441_v9 = vadd.f32 1e-05, %v409_v62 }
 0x18c   :  { %v359_v63 = vpop.xlane.xlu1 %358  ;;  %v11453_v0 = vpop.xlane.xlu0 %360  ;;  %v498_v30 = vmul.f32 %v10217_v61, %v11328_v23 }
 0x18d   :  { %v535_v22 = vmul.f32 %v11449_v34, %v497_v59  ;;  %10228 = vrsqrt.f32 %v441_v9  ;;  %v411_v12 = vmul.f32 0.0078125, %v359_v63 }
 0x18e   :  { %v10219_v4 = vpop.eup %10218  ;;  %v536_v25 = vmul.f32 %v11449_v34, %v498_v30  ;;  %10230 = vrsqrt.f32 %v440_v24 }
 0x18f   :  { %v573_v7 = vadd.f32 %v11455_v3, %v535_v22  ;;  %v499_v8 = vmul.f32 %v10219_v4, %v11336_v31  ;;  %v443_v59 = vadd.f32 1e-05, %v411_v12  ;;  %v412_v12 = vmul.f32 0.0078125, %v11453_v0 }
 0x190   :  { %v363_v10 = vpop.xlane.xlu1 %362  ;;  %v11462_v17 = vpop.xlane.xlu0 %364  ;;  %v574_v37 = vadd.f32 %v11455_v3, %v536_v25 }
 0x191   :  { %v11464_v18 = vpack.c.bf16 %v573_v7, %v572_v6  ;;  %v537_v20 = vmul.f32 %v11449_v34, %v499_v8  ;;  %10232 = vrsqrt.f32 %v443_v59  ;;  %v413_v30 = vmul.f32 0.0078125, %v363_v10 }
 0x192   :  { %v10221_v19 = vpop.eup %10220 }
 0x193   :  { %v10223_v21 = vpop.eup %10222  ;;  %830 = vmatmul.mubr.bf16.vlgmr.msra.gmra.mxu0 %v11464_v18  ;;  %v501_v27 = vmul.f32 %v10221_v19, %v11344_v39  ;;  %v575_v29 = vadd.f32 %v11455_v3, %v537_v20 }
 0x194   :  { %v11469_v23 = vpop.xlane.xlu1 %366  ;;  %v224_v31 = vpop.xlane.xlu0 %223  ;;  %839 = vmatprep.mubr.bf16.mxu0 %v15554_v45  ;;  %v500_v33 = vmul.f32 %v10223_v21, %v11342_v38  ;;  %v442_v38 = vadd.f32 1e-05, %v410_v32 }
 0x195   :  { %v264_v28 = vmul.f32 0.0078125, %v224_v31  ;;  %v539_v62 = vmul.f32 %v11449_v34, %v501_v27  ;;  %v11480_v4 = vpack.c.bf16 %v575_v29, %v574_v37  ;;  %v445_v27 = vadd.f32 1e-05, %v413_v30 }
 0x196   :  { %v10225_v63 = vpop.eup %10224  ;;  %v538_v5 = vmul.f32 %v11449_v34, %v500_v33  ;;  %10234 = vrsqrt.f32 %v442_v38 }
 0x197   :  { %v11477_v40 = vsub.f32 %v11398_v14, %v264_v28  ;;  %v10227_v6 = vpop.eup %10226  ;;  %v577_v19 = vadd.f32 %v11455_v3, %v539_v62  ;;  %v503_v20 = vmul.f32 %v10225_v63, %v11352_v47  ;;  %10236 = vrsqrt.f32 %v445_v27 }
 0x198   :  { %v226_v60 = vpop.xlane.xlu1 %225  ;;  %v228_v61 = vpop.xlane.xlu0 %227  ;;  %v502_v10 = vmul.f32 %v10227_v6, %v11350_v46 }
 0x199   :  { %v265_v22 = vmul.f32 0.0078125, %v226_v60  ;;  %v266_v39 = vmul.f32 0.0078125, %v228_v61  ;;  %v328_v15 = vmul.f32 %v11477_v40, %v11477_v40  ;;  %v541_v33 = vmul.f32 %v11449_v34, %v503_v20 }
 0x19a   :  { %v10229_v37 = vpop.eup %10228  ;;  %v540_v60 = vmul.f32 %v11449_v34, %v502_v10 }
 0x19b   :  { %840 = vmatmul.mubr.bf16.gmra.mxu0 %v11480_v4  ;;  %384 = vadd.xlane.f32.xlu0 %v328_v15  ;;  %v11487_v14 = vsub.f32 %v11401_v35, %v265_v22  ;;  %v11490_v7 = vsub.f32 %v11403_v36, %v266_v39  ;;  %v576_v36 = vadd.f32 %v11455_v3, %v538_v5  ;;  %v10231_v63 = vpop.eup %10230  ;;  %v415_v22 = vmul.f32 0.0078125, %v11469_v23 }
 0x19c   :  { %v230_v8 = vpop.xlane.xlu1 %229  ;;  %v232_v9 = vpop.xlane.xlu0 %231  ;;  %849 = vmatprep.mubr.bf16.mxu0 %v15554_v45  ;;  %v579_v38 = vadd.f32 %v11455_v3, %v541_v33  ;;  %v505_v5 = vmul.f32 %v10229_v37, %v11362_v57  ;;  %v578_v23 = vadd.f32 %v11455_v3, %v540_v60  ;;  %v504_v57 = vmul.f32 %v10231_v63, %v11359_v56 }
 0x19d   :  { %v267_v21 = vmul.f32 0.0078125, %v230_v8  ;;  %v268_v24 = vmul.f32 0.0078125, %v232_v9  ;;  %v329_v25 = vmul.f32 %v11487_v14, %v11487_v14  ;;  %v330_v35 = vmul.f32 %v11490_v7, %v11490_v7 }
 0x19e   :  { %v11508_v32 = vpack.c.bf16 %v577_v19, %v576_v36  ;;  %v414_v8 = vmul.f32 0.0078125, %v11462_v17  ;;  %v447_v20 = vadd.f32 1e-05, %v415_v22  ;;  %v543_v17 = vmul.f32 %v11449_v34, %v505_v5 }
 0x19f   :  { %386 = vadd.xlane.f32.xlu1 %v329_v25  ;;  %388 = vadd.xlane.f32.xlu0 %v330_v35  ;;  %v11503_v31 = vsub.f32 %v11407_v41, %v267_v21  ;;  %v11506_v47 = vsub.f32 %v11409_v42, %v268_v24  ;;  %v444_v42 = vadd.f32 1e-05, %v412_v12  ;;  %v11540_v25 = vpack.c.bf16 %v579_v38, %v578_v23  ;;  %v10233_v35 = vpop.eup %10232 }
 0x1a0   :  { %v234_v28 = vpop.xlane.xlu1 %233  ;;  %v236_v29 = vpop.xlane.xlu0 %235  ;;  %v446_v27 = vadd.f32 1e-05, %v414_v8 }
 0x1a1   :  { %v269_v59 = vmul.f32 0.0078125, %v234_v28  ;;  %v270_v46 = vmul.f32 0.0078125, %v236_v29  ;;  %v331_v0 = vmul.f32 %v11503_v31, %v11503_v31  ;;  %v332_v41 = vmul.f32 %v11506_v47, %v11506_v47 }
 0x1a2   :  { %10238 = vrsqrt.f32 %v444_v42  ;;  %v542_v29 = vmul.f32 %v11449_v34, %v504_v57 }
 0x1a3   :  { %390 = vadd.xlane.f32.xlu1 %v331_v0  ;;  %850 = vmatmul.mubr.bf16.gmra.mxu0 %v11508_v32  ;;  %v11518_v61 = vsub.f32 %v11413_v43, %v269_v59  ;;  %v11521_v62 = vsub.f32 %v11415_v44, %v270_v46  ;;  %v10235_v12 = vpop.eup %10234  ;;  %10240 = vrsqrt.f32 %v447_v20  ;;  %v581_v59 = vadd.f32 %v11455_v3, %v543_v17 }
 0x1a4   :  { %392 = vadd.xlane.f32.xlu0 %v332_v41  ;;  %v238_v39 = vpop.xlane.xlu1 %237  ;;  %v208_v15 = vpop.xlane.xlu0 %207  ;;  %859 = vmatprep.mubr.bf16.mxu0 %v15554_v45  ;;  %v507_v46 = vmul.f32 %v10233_v35, %v11372_v2  ;;  %v506_v60 = vmul.f32 %v10235_v12, %v11369_v1  ;;  %10242 = vrsqrt.f32 %v446_v27  ;;  %v580_v63 = vadd.f32 %v11455_v3, %v542_v29 }
 0x1a5   :  { %v271_v6 = vmul.f32 0.0078125, %v238_v39  ;;  %v256_v30 = vmul.f32 0.0078125, %v208_v15  ;;  %v333_v43 = vmul.f32 %v11518_v61, %v11518_v61  ;;  %v334_v44 = vmul.f32 %v11521_v62, %v11521_v62  ;;  %v10237_v15 = vpop.eup %10236 }
 0x1a6   :  { %v11572_v5 = vpack.c.bf16 %v581_v59, %v580_v63  ;;  %v509_v57 = vmul.f32 %v10237_v15, %v11382_v16  ;;  %v11612_v59 = vld [vmem:[#allocation9 + $0xb0] ss:$12 sps:$4 sm:$0xff]  }
 0x1a7   :  { %394 = vadd.xlane.f32.xlu1 %v333_v43  ;;  %v11534_v9 = vsub.f32 %v11421_v48, %v271_v6  ;;  %v11537_v19 = vsub.f32 %v11423_v49, %v256_v30  ;;  %v545_v6 = vmul.f32 %v11449_v34, %v507_v46  ;;  %9368 = vmatprep.subr.bf16.mxu1 %v11612_v59 }
 0x1a8   :  { %396 = vadd.xlane.f32.xlu0 %v334_v44  ;;  %v210_v21 = vpop.xlane.xlu1 %209  ;;  %v212_v24 = vpop.xlane.xlu0 %211 }
 0x1a9   :  { %v257_v36 = vmul.f32 0.0078125, %v210_v21  ;;  %v258_v10 = vmul.f32 0.0078125, %v212_v24  ;;  %v335_v48 = vmul.f32 %v11534_v9, %v11534_v9  ;;  %v320_v49 = vmul.f32 %v11537_v19, %v11537_v19 }
 0x1aa   :  { %v583_v23 = vadd.f32 %v11455_v3, %v545_v6 }
 0x1ab   :  { %398 = vadd.xlane.f32.xlu1 %v335_v48  ;;  %860 = vmatmul.mubr.bf16.gmra.mxu0 %v11540_v25  ;;  %v11549_v56 = vsub.f32 %v11427_v50, %v257_v36  ;;  %v11552_v28 = vsub.f32 %v11429_v51, %v258_v10  ;;  %v547_v10 = vmul.f32 %v11449_v34, %v509_v57 }
 0x1ac   :  { %368 = vadd.xlane.f32.xlu0 %v320_v49  ;;  %v214_v33 = vpop.xlane.xlu1 %213  ;;  %v216_v37 = vpop.xlane.xlu0 %215  ;;  %869 = vmatprep.mubr.bf16.mxu0 %v15554_v45 }
 0x1ad   :  { %v259_v0 = vmul.f32 0.0078125, %v214_v33  ;;  %v321_v50 = vmul.f32 %v11549_v56, %v11549_v56  ;;  %v322_v51 = vmul.f32 %v11552_v28, %v11552_v28  ;;  %v260_v41 = vmul.f32 0.0078125, %v216_v37 }
 0x1af   :  { %370 = vadd.xlane.f32.xlu1 %v321_v50  ;;  %v11564_v42 = vsub.f32 %v11433_v52, %v259_v0  ;;  %v11568_v22 = vsub.f32 %v11435_v53, %v260_v41  ;;  %v544_v52 = vmul.f32 %v11449_v34, %v506_v60  ;;  %v10239_v44 = vpop.eup %10238 }
 0x1b0   :  { %372 = vadd.xlane.f32.xlu0 %v322_v51  ;;  %v218_v2 = vpop.xlane.xlu1 %217  ;;  %v220_v39 = vpop.xlane.xlu0 %219 }
 0x1b1   :  { %v323_v38 = vmul.f32 %v11564_v42, %v11564_v42  ;;  %v261_v1 = vmul.f32 0.0078125, %v218_v2  ;;  %v324_v53 = vmul.f32 %v11568_v22, %v11568_v22  ;;  %v262_v30 = vmul.f32 0.0078125, %v220_v39  ;;  %v10241_v35 = vpop.eup %10240 }
 0x1b2   :  { %v582_v20 = vadd.f32 %v11455_v3, %v544_v52  ;;  %v511_v12 = vmul.f32 %v10241_v35, %v11392_v26 }
 0x1b3   :  { %374 = vadd.xlane.f32.xlu1 %v323_v38  ;;  %870 = vmatmul.mubr.bf16.gmra.mxu0 %v11572_v5  ;;  %v11580_v43 = vsub.f32 %v11439_v54, %v261_v1  ;;  %v11589_v17 = vsub.f32 %v11441_v55, %v262_v30  ;;  %v508_v54 = vmul.f32 %v10239_v44, %v11379_v11  ;;  %v10243_v55 = vpop.eup %10242 }
 0x1b4   :  { %879 = vmatprep.mubr.bf16.mxu0 %v15554_v45  ;;  %v222_v8 = vpop.xlane.xlu1 %221  ;;  %v11592_v36 = vpack.c.bf16 %v583_v23, %v582_v20  ;;  %v585_v11 = vadd.f32 %v11455_v3, %v547_v10  ;;  %v510_v33 = vmul.f32 %v10243_v55, %v11389_v13 }
 0x1b5   :  { %v325_v21 = vmul.f32 %v11580_v43, %v11580_v43  ;;  %v263_v24 = vmul.f32 0.0078125, %v222_v8  ;;  %v326_v16 = vmul.f32 %v11589_v17, %v11589_v17  ;;  %v546_v48 = vmul.f32 %v11449_v34, %v508_v54 }
 0x1b6   :  { %v548_v46 = vmul.f32 %v11449_v34, %v510_v33 }
 0x1b7   :  { %376 = vadd.xlane.f32.xlu1 %v324_v53  ;;  %v11600_v49 = vsub.f32 %v11445_v58, %v263_v24  ;;  %v584_v27 = vadd.f32 %v11455_v3, %v546_v48  ;;  %v549_v58 = vmul.f32 %v11449_v34, %v511_v12 }
 0x1b8   :  { %v586_v0 = vadd.f32 %v11455_v3, %v548_v46 }
 0x1b9   :  { %v327_v29 = vmul.f32 %v11600_v49, %v11600_v49  ;;  %v11609_v37 = vpack.c.bf16 %v585_v11, %v584_v27  ;;  %v587_v26 = vadd.f32 %v11455_v3, %v549_v58 }
 0x1bb   :  { %880 = vmatmul.mubr.bf16.gmra.mxu0 %v11592_v36  ;;  %378 = vadd.xlane.f32.xlu1 %v325_v21  ;;  %v11620_v13 = vpack.c.bf16 %v587_v26, %v586_v0 }
 0x1bc   :  { %889 = vmatprep.mubr.bf16.mxu0 %v15554_v45 }
 0x1bf   :  { %380 = vadd.xlane.f32.xlu1 %v326_v16 }
 0x1c3   :  { %890 = vmatmul.mubr.bf16.gmra.mxu0 %v11609_v37  ;;  %382 = vadd.xlane.f32.xlu1 %v327_v29 }
 0x1c4   :  { %899 = vmatprep.mubr.bf16.mxu0 %v15554_v45 }
 0x1cb   :  { %900 = vmatmul.mubr.bf16.gmra.mxu0 %v11620_v13 }
 0x1cc   :  { %909 = vmatprep.mubr.bf16.mxu0 %v15554_v45 }
 0x224   :  { %v385_v50 = vpop.xlane.xlu0 %384 }
 0x225   :  { %v424_v51 = vmul.f32 0.0078125, %v385_v50 }
 0x227   :  { %v456_v41 = vadd.f32 1e-05, %v424_v51 }
 0x228   :  { %v387_v60 = vpop.xlane.xlu1 %386  ;;  %v389_v63 = vpop.xlane.xlu0 %388 }
 0x229   :  { %10244 = vrsqrt.f32 %v456_v41  ;;  %v425_v2 = vmul.f32 0.0078125, %v387_v60  ;;  %v426_v39 = vmul.f32 0.0078125, %v389_v63 }
 0x22b   :  { %v457_v15 = vadd.f32 1e-05, %v425_v2  ;;  %v458_v38 = vadd.f32 1e-05, %v426_v39 }
 0x22c   :  { %v391_v1 = vpop.xlane.xlu1 %390 }
 0x22d   :  { %10246 = vrsqrt.f32 %v457_v15  ;;  %v427_v6 = vmul.f32 0.0078125, %v391_v1  ;;  %v393_v52 = vpop.xlane.xlu0 %392 }
 0x22e   :  { %v428_v53 = vmul.f32 0.0078125, %v393_v52  ;;  %10248 = vrsqrt.f32 %v458_v38 }
 0x22f   :  { %v459_v30 = vadd.f32 1e-05, %v427_v6 }
 0x230   :  { %v395_v44 = vpop.xlane.xlu1 %394  ;;  %v460_v57 = vadd.f32 1e-05, %v428_v53 }
 0x231   :  { %10250 = vrsqrt.f32 %v459_v30  ;;  %v429_v8 = vmul.f32 0.0078125, %v395_v44  ;;  %v397_v23 = vpop.xlane.xlu0 %396  ;;  %v10101_v30 = vld [vmem:[#allocation9 + $0x98] ss:$12 sps:$4 sm:$0xff]  }
 0x232   :  { %v430_v21 = vmul.f32 0.0078125, %v397_v23 }
 0x233   :  { %v461_v20 = vadd.f32 1e-05, %v429_v8 }
 0x234   :  { %v399_v24 = vpop.xlane.xlu1 %398  ;;  %v462_v48 = vadd.f32 1e-05, %v430_v21 }
 0x235   :  { %10252 = vrsqrt.f32 %v461_v20  ;;  %v431_v54 = vmul.f32 0.0078125, %v399_v24  ;;  %v369_v35 = vpop.xlane.xlu0 %368 }
 0x236   :  { %v10245_v10 = vpop.eup %10244  ;;  %10254 = vrsqrt.f32 %v460_v57  ;;  %v416_v16 = vmul.f32 0.0078125, %v369_v35 }
 0x237   :  { %v520_v55 = vmul.f32 %v10245_v10, %v11477_v40  ;;  %v463_v11 = vadd.f32 1e-05, %v431_v54  ;;  %v10102_v54 = vld [vmem:[#allocation9 + $0x80] ss:$12 sps:$4 sm:$0xff]  }
 0x238   :  { %v448_v12 = vadd.f32 1e-05, %v416_v16  ;;  %v371_v27 = vpop.xlane.xlu1 %370 }
 0x239   :  { %v417_v29 = vmul.f32 0.0078125, %v371_v27  ;;  %v373_v33 = vpop.xlane.xlu0 %372  ;;  %v558_v26 = vmul.f32 %v11449_v34, %v520_v55 }
 0x23a   :  { %v10247_v58 = vpop.eup %10246  ;;  %10256 = vrsqrt.f32 %v448_v12  ;;  %v418_v46 = vmul.f32 0.0078125, %v373_v33 }
 0x23b   :  { %10258 = vrsqrt.f32 %v462_v48  ;;  %v449_v0 = vadd.f32 1e-05, %v417_v29  ;;  %v521_v50 = vmul.f32 %v10247_v58, %v11487_v14  ;;  %v10249_v51 = vpop.eup %10248  ;;  %v596_v39 = vadd.f32 %v11455_v3, %v558_v26 }
 0x23c   :  { %10260 = vrsqrt.f32 %v463_v11  ;;  %v450_v41 = vadd.f32 1e-05, %v418_v46  ;;  %v375_v60 = vpop.xlane.xlu1 %374  ;;  %v522_v1 = vmul.f32 %v10249_v51, %v11490_v7 }
 0x23d   :  { %10262 = vrsqrt.f32 %v449_v0  ;;  %v419_v40 = vmul.f32 0.0078125, %v375_v60  ;;  %v559_v63 = vmul.f32 %v11449_v34, %v521_v50 }
 0x23e   :  { %v10251_v2 = vpop.eup %10250  ;;  %10264 = vrsqrt.f32 %v450_v41  ;;  %v560_v20 = vmul.f32 %v11449_v34, %v522_v1 }
 0x23f   :  { %v451_v15 = vadd.f32 1e-05, %v419_v40  ;;  %v597_v38 = vadd.f32 %v11455_v3, %v559_v63  ;;  %v523_v6 = vmul.f32 %v10251_v2, %v11503_v31  ;;  %v10104_v2 = vld [vmem:[#allocation9 + $0x50] ss:$12 sps:$4 sm:$0xff]  }
 0x240   :  { %v377_v14 = vpop.xlane.xlu1 %376  ;;  %v598_v48 = vadd.f32 %v11455_v3, %v560_v20 }
 0x241   :  { %10266 = vrsqrt.f32 %v451_v15  ;;  %v420_v52 = vmul.f32 0.0078125, %v377_v14  ;;  %v11632_v53 = vpack.c.bf16 %v597_v38, %v596_v39  ;;  %v561_v44 = vmul.f32 %v11449_v34, %v523_v6 }
 0x242   :  { %v10253_v8 = vpop.eup %10252 }
 0x243   :  { %v10255_v23 = vpop.eup %10254  ;;  %v452_v57 = vadd.f32 1e-05, %v420_v52  ;;  %950 = vmatmul.mubr.bf16.vlgmr.msra.gmra.mxu1 %v11632_v53  ;;  %v525_v7 = vmul.f32 %v10253_v8, %v11518_v61  ;;  %v599_v24 = vadd.f32 %v11455_v3, %v561_v44 }
 0x244   :  { %v379_v21 = vpop.xlane.xlu1 %378  ;;  %9369 = vmatpush3.bf16.msra.mxu1 %v11612_v59  ;;  %959 = vmatprep.mubr.bf16.mxu1 %v15554_v45  ;;  %v524_v35 = vmul.f32 %v10255_v23, %v11506_v47  ;;  %v15556_v59 = vlaneseq  ;;  %v10103_v47 = vld [vmem:[#allocation9 + $0x68] ss:$12 sps:$4 sm:$0xff]  }
 0x245   :  { %v421_v31 = vmul.f32 0.0078125, %v379_v21  ;;  %9370 = vmatprep.subr.bf16.mxu1 %v10101_v30  ;;  %10268 = vrsqrt.f32 %v452_v57  ;;  %v563_v61 = vmul.f32 %v11449_v34, %v525_v7  ;;  %v11645_v33 = vpack.c.bf16 %v599_v24, %v598_v48 }
 0x246   :  { %v562_v26 = vmul.f32 %v11449_v34, %v524_v35  ;;  %v11653_v41 = vshrl.u32 %v15556_v59, 7 }
 0x247   :  { %v10257_v10 = vpop.eup %10256  ;;  %v453_v16 = vadd.f32 1e-05, %v421_v31  ;;  %v601_v60 = vadd.f32 %v11455_v3, %v563_v61 }
 0x248   :  { %v10259_v55 = vpop.eup %10258  ;;  %v381_v11 = vpop.xlane.xlu1 %380  ;;  %9371 = vmatpush3.bf16.msra.mxu1 %v10101_v30  ;;  %v512_v12 = vmul.f32 %v10257_v10, %v11537_v19  ;;  %15689 = vst [vmem:[#allocation21_spill] sm:$0xff] %v11653_v41  ;;  %v15553_v44 = vsub.s32 0, %v11653_v41  ;;  %v10106_v10 = vld [vmem:[#allocation9 + $0x20] ss:$12 sps:$4 sm:$0xff]  }
 0x249   :  { %v10261_v27 = vpop.eup %10260  ;;  %10270 = vrsqrt.f32 %v453_v16  ;;  %v422_v29 = vmul.f32 0.0078125, %v381_v11  ;;  %9372 = vmatprep.subr.bf16.mxu1 %v10102_v54  ;;  %v526_v6 = vmul.f32 %v10259_v55, %v11521_v62  ;;  %v10105_v62 = vld [vmem:[#allocation9 + $0x38] ss:$12 sps:$4 sm:$0xff]  }
 0x24a   :  { %v10263_v58 = vpop.eup %10262  ;;  %v550_v46 = vmul.f32 %v11449_v34, %v512_v12  ;;  %v527_v39 = vmul.f32 %v10261_v27, %v11534_v9  ;;  %v11670_v9 = vld [vmem:[%s15542_s4] sm:$0x7]  ;;  %s11200_s4 = smov 96  }
 0x24b   :  { %v10265_v0 = vpop.eup %10264  ;;  %v454_v50 = vadd.f32 1e-05, %v422_v29  ;;  %960 = vmatmul.mubr.bf16.gmra.mxu1 %v11645_v33  ;;  %v513_v19 = vmul.f32 %v10263_v58, %v11549_v56  ;;  %v600_v56 = vadd.f32 %v11455_v3, %v562_v26  ;;  %v564_v21 = vmul.f32 %v11449_v34, %v526_v6  ;;  %v10107_v26 = vld [vmem:[#allocation9 + $0x8] ss:$12 sps:$4 sm:$0xff]  }
 0x24c   :  { %v383_v51 = vpop.xlane.xlu1 %382  ;;  %9373 = vmatpush3.bf16.msra.mxu1 %v10102_v54  ;;  %969 = vmatprep.mubr.bf16.mxu1 %v15554_v45  ;;  %v588_v38 = vadd.f32 %v11455_v3, %v550_v46  ;;  %v514_v1 = vmul.f32 %v10265_v0, %v11552_v28  ;;  %v565_v57 = vmul.f32 %v11449_v34, %v527_v39 }
 0x24d   :  { %v423_v40 = vmul.f32 0.0078125, %v383_v51  ;;  %9374 = vmatprep.subr.bf16.mxu1 %v10103_v47  ;;  %v551_v63 = vmul.f32 %v11449_v34, %v513_v19  ;;  %10272 = vrsqrt.f32 %v454_v50  ;;  %v11665_v8 = vpack.c.bf16 %v601_v60, %v600_v56 }
 0x24e   :  { %v10267_v15 = vpop.eup %10266  ;;  %v552_v20 = vmul.f32 %v11449_v34, %v514_v1  ;;  %v11683_v31 = vrot.slane %v11670_v9, %v15553_v44  ;;  %v603_v35 = vadd.f32 %v11455_v3, %v565_v57  ;;  %v602_v11 = vadd.f32 %v11455_v3, %v564_v21 }
 0x24f   :  { %v455_v14 = vadd.f32 1e-05, %v423_v40  ;;  %v589_v52 = vadd.f32 %v11455_v3, %v551_v63  ;;  %v515_v30 = vmul.f32 %v10267_v15, %v11564_v42 }
 0x250   :  { %9375 = vmatpush3.bf16.msra.mxu1 %v10103_v47  ;;  %v590_v55 = vadd.f32 %v11455_v3, %v552_v20  ;;  %v11701_v46 = vpack.c.bf16 %v603_v35, %v602_v11 }
 0x251   :  { %10274 = vrsqrt.f32 %v455_v14  ;;  %v11672_v28 = vpack.c.bf16 %v589_v52, %v588_v38  ;;  %9376 = vmatprep.subr.bf16.mxu1 %v10104_v2  ;;  %v553_v23 = vmul.f32 %v11449_v34, %v515_v30 }
 0x252   :  { %v10269_v7 = vpop.eup %10268 }
 0x253   :  { %v831_v42 = vpop.f32.mrf.mxu0  ;;  %910 = vmatmul.mubr.bf16.gmra.mxu0 %v11672_v28  ;;  %970 = vmatmul.mubr.bf16.gmra.mxu1 %v11665_v8  ;;  %v591_v54 = vadd.f32 %v11455_v3, %v553_v23  ;;  %v516_v12 = vmul.f32 %v10269_v7, %v11568_v22 }
 0x254   :  { %9377 = vmatpush3.bf16.msra.mxu1 %v10104_v2  ;;  %919 = vmatprep.mubr.bf16.mxu0 %v15554_v45  ;;  %v832_v27 = vadd.f32 %v831_v42, %v11683_v31 }
 0x255   :  { %v11686_v24 = vpop.f32.mrf.mxu0  ;;  %9378 = vmatprep.subr.bf16.mxu1 %v10105_v62  ;;  %979 = vmatprep.mubr.bf16.mxu1 %v15554_v45  ;;  %v11699_v58 = vpack.c.bf16 %v591_v54, %v590_v55 }
 0x256   :  { %v10271_v16 = vpop.eup %10270 }
 0x257   :  { %v835_v48 = vpop.f32.mrf.mxu0  ;;  %v517_v61 = vmul.f32 %v10271_v16, %v11580_v43  ;;  %v554_v43 = vmul.f32 %v11449_v34, %v516_v12 }
 0x258   :  { %v836_v29 = vadd.f32 %v835_v48, %v11683_v31  ;;  %9379 = vmatpush3.bf16.msra.mxu1 %v10105_v62 }
 0x259   :  { %v11697_v47 = vpop.f32.mrf.mxu0  ;;  %9380 = vmatprep.subr.bf16.mxu1 %v10106_v10  ;;  %v555_v0 = vmul.f32 %v11449_v34, %v517_v61  ;;  %v592_v2 = vadd.f32 %v11455_v3, %v554_v43  ;;  %v15552_v61 = vsub.s32 1, %v11653_v41 }
 0x25a   :  { %v11704_v50 = vpack.c.bf16 %v836_v29, %v832_v27  ;;  %v10273_v19 = vpop.eup %10272 }
 0x25b   :  { %v841_v22 = vpop.f32.mrf.mxu0  ;;  %920 = vmatmul.mubr.bf16.gmra.mxu0 %v11699_v58  ;;  %980 = vmatmul.mubr.bf16.gmra.mxu1 %v11701_v46  ;;  %v593_v60 = vadd.f32 %v11455_v3, %v555_v0  ;;  %v518_v39 = vmul.f32 %v10273_v19, %v11589_v17 }
 0x25c   :  { %15690 = vst [vmem:[#allocation22_spill] sm:$0xff] %v11704_v50  ;;  %9381 = vmatpush3.bf16.msra.mxu1 %v10106_v10  ;;  %9384 = vmatprep.mubr.bf16.mxu1 %v11464_v18  ;;  %v842_v38 = vadd.f32 %v841_v22, %v11683_v31 }
 0x25d   :  { %v11710_v51 = vpop.f32.mrf.mxu0  ;;  %9382 = vmatprep.subr.bf16.mxu1 %v10107_v26  ;;  %929 = vmatprep.mubr.bf16.mxu0 %v15554_v45  ;;  %v614_v1 = vpack.c.bf16 %v593_v60, %v592_v2  ;;  %v556_v17 = vmul.f32 %v11449_v34, %v518_v39 }
 0x25e   :  { %v10275_v40 = vpop.eup %10274 }
 0x25f   :  { %v845_v63 = vpop.f32.mrf.mxu0  ;;  %v519_v15 = vmul.f32 %v10275_v40, %v11600_v49  ;;  %v594_v23 = vadd.f32 %v11455_v3, %v556_v17 }
 0x260   :  { %v846_v56 = vadd.f32 %v845_v63, %v11683_v31  ;;  %9383 = vmatpush3.bf16.msra.mxu1 %v10107_v26 }
 0x261   :  { %v11719_v18 = vpop.f32.mrf.mxu0  ;;  %v557_v6 = vmul.f32 %v11449_v34, %v519_v15 }
 0x262   :  { %v11722_v14 = vpack.c.bf16 %v846_v56, %v842_v38 }
 0x263   :  { %v11724_v52 = vpop.f32.mrf.mxu0  ;;  %930 = vmatmul.mubr.bf16.gmra.mxu0 %v614_v1  ;;  %9385 = vmatmul.mubr.bf16.vlgmr.msra.gmra.mxu1 %v11480_v4  ;;  %v595_v30 = vadd.f32 %v11455_v3, %v557_v6 }
 0x264   :  { %15691 = vst [vmem:[#allocation23_spill] sm:$0xff] %v11722_v14  ;;  %9388 = vmatprep.mubr.bf16.mxu1 %v11508_v32  ;;  %939 = vmatprep.mubr.bf16.mxu0 %v15554_v45 }
 0x265   :  { %v853_v49 = vpop.f32.mrf.mxu0  ;;  %v615_v42 = vpack.c.bf16 %v595_v30, %v594_v23 }
 0x267   :  { %v11731_v62 = vpop.f32.mrf.mxu0 }
 0x269   :  { %v857_v57 = vpop.f32.mrf.mxu0 }
 0x26b   :  { %v861_v20 = vpop.f32.mrf.mxu0  ;;  %940 = vmatmul.mubr.bf16.gmra.mxu0 %v615_v42  ;;  %9389 = vmatmul.mubr.bf16.gmra.mxu1 %v11540_v25 }
 0x26c   :  { %9392 = vmatprep.mubr.bf16.mxu1 %v11572_v5  ;;  %v862_v32 = vadd.f32 %v861_v20, %v11683_v31 }
 0x26d   :  { %v11736_v34 = vpop.f32.mrf.mxu0 }
 0x26f   :  { %v865_v4 = vpop.f32.mrf.mxu0 }
 0x270   :  { %v866_v21 = vadd.f32 %v865_v4, %v11683_v31  ;;  %v852_v4 = vadd.f32 %v11724_v52, %v11683_v31 }
 0x271   :  { %v11740_v7 = vpop.f32.mrf.mxu0 }
 0x272   :  { %v11742_v54 = vpack.c.bf16 %v866_v21, %v862_v32 }
 0x273   :  { %v871_v3 = vpop.f32.mrf.mxu0  ;;  %9393 = vmatmul.mubr.bf16.gmra.mxu1 %v11592_v36 }
 0x274   :  { %15692 = vst [vmem:[#allocation24_spill] sm:$0xff] %v11742_v54  ;;  %9396 = vmatprep.mubr.bf16.mxu1 %v11609_v37  ;;  %v872_v5 = vadd.f32 %v871_v3, %v11683_v31 }
 0x275   :  { %v873_v35 = vpop.f32.mrf.mxu0 }
 0x277   :  { %v875_v25 = vpop.f32.mrf.mxu0 }
 0x278   :  { %v876_v10 = vadd.f32 %v875_v25, %v11683_v31 }
 0x279   :  { %v877_v16 = vpop.f32.mrf.mxu0 }
 0x27a   :  { %v11748_v48 = vpack.c.bf16 %v876_v10, %v872_v5 }
 0x27b   :  { %v11750_v55 = vpop.f32.mrf.mxu0  ;;  %9397 = vmatmul.mubr.bf16.gmra.mxu1 %v11620_v13  ;;  %v11765_v13 = vrot.slane %v11670_v9, %v15552_v61 }
 0x27c   :  { %15693 = vst [vmem:[#allocation25_spill] sm:$0xff] %v11748_v48  ;;  %9400 = vmatprep.mubr.bf16.mxu1 %v11672_v28  ;;  %v882_v32 = vadd.f32 %v11750_v55, %v11683_v31 }
 0x27d   :  { %v883_v11 = vpop.f32.mrf.mxu0  ;;  %15694 = vst [vmem:[#allocation26_spill] sm:$0xff] %v11765_v13  ;;  %v854_v60 = vadd.f32 %v853_v49, %v11765_v13  ;;  %v838_v63 = vadd.f32 %v11697_v47, %v11765_v13  ;;  %v834_v15 = vadd.f32 %v11686_v24, %v11765_v13  ;;  %v878_v6 = vadd.f32 %v877_v16, %v11765_v13 }
 0x27e   :  { %v884_v24 = vadd.f32 %v883_v11, %v11765_v13  ;;  %v868_v49 = vadd.f32 %v11740_v7, %v11765_v13  ;;  %v864_v23 = vadd.f32 %v11736_v34, %v11765_v13  ;;  %v844_v34 = vadd.f32 %v11710_v51, %v11765_v13 }
 0x27f   :  { %v11754_v12 = vpop.f32.mrf.mxu0  ;;  %v11791_v56 = vpack.c.bf16 %v838_v63, %v834_v15 }
 0x280   :  { %v11835_v20 = vpack.c.bf16 %v868_v49, %v864_v23  ;;  %v886_v52 = vadd.f32 %v11754_v12, %v11683_v31 }
 0x281   :  { %v887_v36 = vpop.f32.mrf.mxu0  ;;  %15696 = vst [vmem:[#allocation28_spill] sm:$0xff] %v11791_v56 }
 0x282   :  { %15697 = vst [vmem:[#allocation29_spill] sm:$0xff] %v11835_v20  ;;  %v11867_v21 = vpack.c.bf16 %v886_v52, %v882_v32  ;;  %v1285_v5 = vsel %vm1250_vm0, %v11835_v20, 0 }
 0x283   :  { %v11756_v37 = vpop.f32.mrf.mxu0  ;;  %9401 = vmatmul.mubr.bf16.gmra.mxu1 %v11699_v58  ;;  %v858_v58 = vadd.f32 %v857_v57, %v11765_v13  ;;  %v848_v57 = vadd.f32 %v11719_v18, %v11765_v13 }
 0x284   :  { %9404 = vmatprep.mubr.bf16.mxu1 %v614_v1  ;;  %v888_v1 = vadd.f32 %v887_v36, %v11765_v13  ;;  %15700 = vst [vmem:[#allocation32_spill] sm:$0xff] %v11867_v21  ;;  %v892_v3 = vadd.f32 %v11756_v37, %v11683_v31  ;;  %v1276_v36 = vsel %vm1250_vm0, %v11791_v56, 0 }
 0x285   :  { %v893_v27 = vpop.f32.mrf.mxu0  ;;  %v11782_v2 = vpack.c.bf16 %v858_v58, %v854_v60  ;;  %v11847_v18 = vpack.c.bf16 %v848_v57, %v844_v34 }
 0x286   :  { %v894_v26 = vadd.f32 %v893_v27, %v11765_v13  ;;  %v11807_v17 = vpack.c.bf16 %v888_v1, %v884_v24 }
 0x287   :  { %v11760_v29 = vpop.f32.mrf.mxu0  ;;  %15695 = vst [vmem:[#allocation27_spill] sm:$0xff] %v11782_v2  ;;  %15698 = vst [vmem:[#allocation30_spill] sm:$0xff] %v11847_v18  ;;  %v1282_v10 = vsel %vm1250_vm0, %v11782_v2, 0  ;;  %v1279_v12 = vsel %vm1250_vm0, %v11847_v18, 0 }
 0x288   :  { %v1291_v51 = vsel %vm1250_vm0, %v11807_v17, 0  ;;  %v896_v7 = vadd.f32 %v11760_v29, %v11683_v31 }
 0x289   :  { %v897_v28 = vpop.f32.mrf.mxu0 }
 0x28a   :  { %v898_v0 = vadd.f32 %v897_v28, %v11765_v13  ;;  %v11879_v25 = vpack.c.bf16 %v896_v7, %v892_v3 }
 0x28b   :  { %v11769_v22 = vpop.f32.mrf.mxu0  ;;  %9405 = vmatmul.mubr.bf16.gmra.mxu1 %v615_v42  ;;  %v856_v42 = vadd.f32 %v11731_v62, %v11683_v31 }
 0x28c   :  { %v11772_v43 = vpack.c.bf16 %v898_v0, %v894_v26  ;;  %9408 = vmatprep.mubr.bf16.mxu1 %v11632_v53  ;;  %15701 = vst [vmem:[#allocation33_spill] sm:$0xff] %v11879_v25  ;;  %v902_v55 = vadd.f32 %v11769_v22, %v11683_v31 }
 0x28d   :  { %v903_v19 = vpop.f32.mrf.mxu0  ;;  %v11849_v62 = vpack.c.bf16 %v856_v42, %v852_v4 }
 0x28e   :  { %1770 = vrot.lane.b32.xlu1 %v11772_v43, %s11200_s4  ;;  %v904_v53 = vadd.f32 %v903_v19, %v11765_v13 }
 0x28f   :  { %v11778_v40 = vpop.f32.mrf.mxu0  ;;  %15699 = vst [vmem:[#allocation31_spill] sm:$0xff] %v11849_v62 }
 0x290   :  { %v906_v16 = vadd.f32 %v11778_v40, %v11683_v31 }
 0x291   :  { %v907_v39 = vpop.f32.mrf.mxu0 }
 0x292   :  { %v908_v38 = vadd.f32 %v907_v39, %v11765_v13  ;;  %1762 = vrot.lane.b32.xlu1 %v11782_v2, %s11200_s4  ;;  %v11915_v11 = vpack.c.bf16 %v906_v16, %v902_v55 }
 0x293   :  { %9409 = vmatmul.mubr.bf16.gmra.mxu1 %v11645_v33 }
 0x294   :  { %v11794_v47 = vpack.c.bf16 %v908_v38, %v904_v53  ;;  %9412 = vmatprep.mubr.bf16.mxu1 %v11665_v8  ;;  %v874_v8 = vadd.f32 %v873_v35, %v11765_v13  ;;  %15702 = vst [vmem:[#allocation34_spill] sm:$0xff] %v11915_v11 }
 0x296   :  { %1772 = vrot.lane.b32.xlu0 %v11794_v47, %s11200_s4  ;;  %1758 = vrot.lane.b32.xlu1 %v11791_v56, %s11200_s4  ;;  %v1297_v33 = vsel %vm1250_vm0, %v11794_v47, 0  ;;  %v11819_v30 = vpack.c.bf16 %v878_v6, %v874_v8 }
 0x297   :  { %9992 = vmatprep.subr.msk.bf16.mxu1 %vm1250_vm0, %v11794_v47 }
 0x298   :  { %9417 = vmatpush3.bf16.xpose.msra.mxu1 %v1297_v33  ;;  %v1288_v35 = vsel %vm1250_vm0, %v11819_v30, 0 }
 0x299   :  { %9993 = vmatprep.subr.msk.bf16.mxu1 %vm1250_vm0, %v11772_v43 }
 0x29a   :  { %1768 = vrot.lane.b32.xlu0 %v11807_v17, %s11200_s4  ;;  %2343 = vrot.lane.b32.xlu1 %v11794_v47, %s11196_s0 }
 0x29b   :  { %9413 = vmatmul.mubr.bf16.gmra.mxu1 %v11701_v46  ;;  %v1294_v46 = vsel %vm1250_vm0, %v11772_v43, 0 }
 0x29c   :  { %9432 = vmatprep.mubr.msk.bf16.mxu1 %vm1250_vm0, %v11704_v50 }
 0x29e   :  { %1766 = vrot.lane.b32.xlu0 %v11819_v30, %s11200_s4  ;;  %2341 = vrot.lane.b32.xlu1 %v11772_v43, %s11196_s0 }
 0x2a0   :  { %9419 = vmatpush3.bf16.xpose.msra.mxu1 %v1294_v46 }
 0x2a1   :  { %9994 = vmatprep.subr.msk.bf16.mxu1 %vm1250_vm0, %v11807_v17 }
 0x2a2   :  { %1764 = vrot.lane.b32.xlu0 %v11835_v20, %s11200_s4  ;;  %2337 = vrot.lane.b32.xlu1 %v11819_v30, %s11196_s0 }
 0x2a6   :  { %1760 = vrot.lane.b32.xlu0 %v11847_v18, %s11200_s4  ;;  %1738 = vrot.lane.b32.xlu1 %v11849_v62, %s11200_s4 }
 0x2a8   :  { %9421 = vmatpush3.bf16.xpose.msra.mxu1 %v1291_v51 }
 0x2a9   :  { %9995 = vmatprep.subr.msk.bf16.mxu1 %vm1250_vm0, %v11819_v30 }
 0x2aa   :  { %1734 = vrot.lane.b32.xlu0 %v11704_v50, %s11200_s4  ;;  %2333 = vrot.lane.b32.xlu1 %v11782_v2, %s11196_s0 }
 0x2ae   :  { %1736 = vrot.lane.b32.xlu0 %v11722_v14, %s11200_s4  ;;  %1744 = vrot.lane.b32.xlu1 %v11867_v21, %s11200_s4 }
 0x2b0   :  { %9423 = vmatpush3.bf16.xpose.msra.mxu1 %v1288_v35 }
 0x2b1   :  { %9996 = vmatprep.subr.msk.bf16.mxu1 %vm1250_vm0, %v11835_v20 }
 0x2b2   :  { %2339 = vrot.lane.b32.xlu0 %v11807_v17, %s11196_s0  ;;  %1746 = vrot.lane.b32.xlu1 %v11879_v25, %s11200_s4 }
 0x2b6   :  { %2335 = vrot.lane.b32.xlu0 %v11835_v20, %s11196_s0  ;;  %2329 = vrot.lane.b32.xlu1 %v11791_v56, %s11196_s0 }
 0x2b8   :  { %9425 = vmatpush3.bf16.xpose.msra.mxu1 %v1285_v5 }
 0x2b9   :  { %9997 = vmatprep.subr.msk.bf16.mxu1 %vm1250_vm0, %v11782_v2 }
 0x2ba   :  { %1740 = vrot.lane.b32.xlu0 %v11742_v54, %s11200_s4  ;;  %2315 = vrot.lane.b32.xlu1 %v11722_v14, %s11196_s0 }
 0x2be   :  { %1742 = vrot.lane.b32.xlu0 %v11748_v48, %s11200_s4  ;;  %2319 = vrot.lane.b32.xlu1 %v11742_v54, %s11196_s0 }
 0x2c0   :  { %9427 = vmatpush3.bf16.xpose.msra.mxu1 %v1282_v10 }
 0x2c1   :  { %9998 = vmatprep.subr.msk.bf16.mxu1 %vm1250_vm0, %v11847_v18 }
 0x2c2   :  { %2331 = vrot.lane.b32.xlu0 %v11847_v18, %s11196_s0  ;;  %2323 = vrot.lane.b32.xlu1 %v11867_v21, %s11196_s0 }
 0x2c6   :  { %1748 = vrot.lane.b32.xlu0 %v11915_v11, %s11200_s4  ;;  %2327 = vrot.lane.b32.xlu1 %v11915_v11, %s11196_s0 }
 0x2c8   :  { %9429 = vmatpush3.bf16.xpose.msra.mxu1 %v1279_v12 }
 0x2c9   :  { %9999 = vmatprep.subr.msk.bf16.mxu1 %vm1250_vm0, %v11791_v56 }
 0x2ca   :  { %2313 = vrot.lane.b32.xlu0 %v11704_v50, %s11196_s0 }
 0x2ce   :  { %2317 = vrot.lane.b32.xlu0 %v11849_v62, %s11196_s0 }
 0x2d0   :  { %9431 = vmatpush3.bf16.xpose.msra.mxu1 %v1276_v36 }
 0x2d2   :  { %2321 = vrot.lane.b32.xlu0 %v11748_v48, %s11196_s0 }
 0x2d6   :  { %2325 = vrot.lane.b32.xlu0 %v11879_v25, %s11196_s0 }
 0x2d7   :  { %9433 = vmatmul.mubr.msk.bf16.vlgmr.msra.gmra.mxu1 %vm1250_vm0, %v11722_v14 }
 0x2d8   :  { %9436 = vmatprep.mubr.msk.bf16.mxu1 %vm1250_vm0, %v11849_v62 }
 0x2df   :  { %9437 = vmatmul.mubr.msk.bf16.gmra.mxu1 %vm1250_vm0, %v11742_v54 }
 0x2e0   :  { %9440 = vmatprep.mubr.msk.bf16.mxu1 %vm1250_vm0, %v11748_v48 }
 0x2e7   :  { %9441 = vmatmul.mubr.msk.bf16.gmra.mxu1 %vm1250_vm0, %v11867_v21 }
 0x2e8   :  { %9444 = vmatprep.mubr.msk.bf16.mxu1 %vm1250_vm0, %v11879_v25 }
 0x2ef   :  { %9445 = vmatmul.mubr.msk.bf16.gmra.mxu1 %vm1250_vm0, %v11915_v11 }
 0x300   :  { %v1771_v19 = vpop.permute.xlu1 %1770 }
 0x301   :  { %v1817_v33 = vsel %vm1250_vm0, %v1771_v19, 0 }
 0x303   :  { %v951_v37 = vpop.f32.mrf.mxu1 }
 0x304   :  { %v952_v28 = vadd.f32 %v951_v37, %v11683_v31 }
 0x305   :  { %v11949_v27 = vpop.f32.mrf.mxu1 }
 0x306   :  { %15703 = vst [vmem:[#allocation35_spill] sm:$0xff] %v11949_v27 }
 0x307   :  { %v955_v29 = vpop.f32.mrf.mxu1 }
 0x308   :  { %v956_v26 = vadd.f32 %v955_v29, %v11683_v31  ;;  %v1773_v0 = vpop.permute.xlu0 %1772 }
 0x309   :  { %v11953_v22 = vpop.f32.mrf.mxu1  ;;  %10000 = vmatprep.subr.msk.bf16.mxu0 %vm1250_vm0, %v1773_v0  ;;  %v1820_v58 = vsel %vm1250_vm0, %v1773_v0, 0 }
 0x30a   :  { %15704 = vst [vmem:[#allocation36_spill] sm:$0xff] %v11953_v22  ;;  %v11957_v60 = vpack.c.bf16 %v956_v26, %v952_v28  ;;  %9481 = vmatpush3.bf16.xpose.msra.mxu0 %v1820_v58 }
 0x30b   :  { %v961_v40 = vpop.f32.mrf.mxu1  ;;  %10001 = vmatprep.subr.msk.bf16.mxu0 %vm1250_vm0, %v1771_v19 }
 0x30c   :  { %15705 = vst [vmem:[#allocation37_spill] sm:$0xff] %v11957_v60  ;;  %v1769_v63 = vpop.permute.xlu0 %1768  ;;  %v962_v53 = vadd.f32 %v961_v40, %v11683_v31 }
 0x30d   :  { %v11960_v39 = vpop.f32.mrf.mxu1  ;;  %v1814_v5 = vsel %vm1250_vm0, %v1769_v63, 0 }
 0x30e   :  { %15706 = vst [vmem:[#allocation38_spill] sm:$0xff] %v11960_v39 }
 0x30f   :  { %v965_v15 = vpop.f32.mrf.mxu1 }
 0x310   :  { %v966_v38 = vadd.f32 %v965_v15, %v11683_v31  ;;  %v1767_v1 = vpop.permute.xlu0 %1766 }
 0x311   :  { %v11964_v24 = vpop.f32.mrf.mxu1 }
 0x312   :  { %15707 = vst [vmem:[#allocation39_spill] sm:$0xff] %v11964_v24  ;;  %v11967_v6 = vpack.c.bf16 %v966_v38, %v962_v53  ;;  %9483 = vmatpush3.bf16.xpose.msra.mxu0 %v1817_v33  ;;  %v1811_v53 = vsel %vm1250_vm0, %v1767_v1, 0 }
 0x313   :  { %v911_v8 = vpop.f32.mrf.mxu0  ;;  %v971_v49 = vpop.f32.mrf.mxu1  ;;  %10002 = vmatprep.subr.msk.bf16.mxu0 %vm1250_vm0, %v1769_v63 }
 0x314   :  { %15708 = vst [vmem:[#allocation40_spill] sm:$0xff] %v11967_v6  ;;  %v1765_v23 = vpop.permute.xlu0 %1764  ;;  %v912_v4 = vadd.f32 %v911_v8, %v11683_v31  ;;  %v972_v51 = vadd.f32 %v971_v49, %v11683_v31 }
 0x315   :  { %v11970_v46 = vpop.f32.mrf.mxu0  ;;  %v11972_v57 = vpop.f32.mrf.mxu1 }
 0x316   :  { %15709 = vst [vmem:[#allocation41_spill] sm:$0xff] %v11970_v46  ;;  %15710 = vst [vmem:[#allocation42_spill] sm:$0xff] %v11972_v57 }
 0x317   :  { %v915_v42 = vpop.f32.mrf.mxu0  ;;  %v975_v34 = vpop.f32.mrf.mxu1 }
 0x318   :  { %v916_v52 = vadd.f32 %v915_v42, %v11683_v31  ;;  %v976_v32 = vadd.f32 %v975_v34, %v11683_v31  ;;  %v11978_v7 = vpop.permute.xlu0 %1760 }
 0x319   :  { %v11980_v3 = vpop.f32.mrf.mxu0  ;;  %v11982_v35 = vpop.f32.mrf.mxu1 }
 0x31a   :  { %15711 = vst [vmem:[#allocation43_spill] sm:$0xff] %v11980_v3  ;;  %15712 = vst [vmem:[#allocation44_spill] sm:$0xff] %v11982_v35  ;;  %v11985_v10 = vpack.c.bf16 %v916_v52, %v912_v4  ;;  %v11987_v16 = vpack.c.bf16 %v976_v32, %v972_v51  ;;  %9485 = vmatpush3.bf16.xpose.msra.mxu0 %v1814_v5  ;;  %v1763_v52 = vpop.permute.xlu1 %1762 }
 0x31b   :  { %v921_v55 = vpop.f32.mrf.mxu0  ;;  %v981_v12 = vpop.f32.mrf.mxu1  ;;  %10003 = vmatprep.subr.msk.bf16.mxu0 %vm1250_vm0, %v1767_v1 }
 0x31c   :  { %15713 = vst [vmem:[#allocation45_spill] sm:$0xff] %v11985_v10  ;;  %15714 = vst [vmem:[#allocation46_spill] sm:$0xff] %v11987_v16  ;;  %v1735_v36 = vpop.permute.xlu0 %1734  ;;  %v922_v0 = vadd.f32 %v921_v55, %v11683_v31  ;;  %v982_v58 = vadd.f32 %v981_v12, %v11683_v31  ;;  %v1808_v12 = vsel %vm1250_vm0, %v1765_v23, 0  ;;  %v15747_v10 = vmov -1e+30  }
 0x31d   :  { %v11990_v37 = vpop.f32.mrf.mxu0  ;;  %v11992_v29 = vpop.f32.mrf.mxu1  ;;  %9496 = vmatprep.mubr.msk.bf16.mxu0 %vm1250_vm0, %v1735_v36 }
 0x31e   :  { %15715 = vst [vmem:[#allocation47_spill] sm:$0xff] %v11990_v37  ;;  %15716 = vst [vmem:[#allocation48_spill] sm:$0xff] %v11992_v29 }
 0x31f   :  { %v925_v28 = vpop.f32.mrf.mxu0  ;;  %v985_v26 = vpop.f32.mrf.mxu1 }
 0x320   :  { %v926_v19 = vadd.f32 %v925_v28, %v11683_v31  ;;  %v986_v40 = vadd.f32 %v985_v26, %v11683_v31 }
 0x321   :  { %v11999_v63 = vpop.f32.mrf.mxu0  ;;  %v12001_v15 = vpop.f32.mrf.mxu1 }
 0x322   :  { %15717 = vst [vmem:[#allocation49_spill] sm:$0xff] %v11999_v63  ;;  %15718 = vst [vmem:[#allocation50_spill] sm:$0xff] %v12001_v15  ;;  %v12004_v38 = vpack.c.bf16 %v926_v19, %v922_v0  ;;  %v12006_v33 = vpack.c.bf16 %v986_v40, %v982_v58  ;;  %9487 = vmatpush3.bf16.xpose.msra.mxu0 %v1811_v53  ;;  %v1759_v19 = vpop.permute.xlu1 %1758 }
 0x323   :  { %v931_v8 = vpop.f32.mrf.mxu0  ;;  %v9386_v49 = vpop.f32.mrf.mxu1  ;;  %10004 = vmatprep.subr.msk.bf16.mxu0 %vm1250_vm0, %v1765_v23  ;;  %v1805_v23 = vsel %vm1250_vm0, %v1763_v52, 0 }
 0x324   :  { %15719 = vst [vmem:[#allocation51_spill] sm:$0xff] %v12004_v38  ;;  %15720 = vst [vmem:[#allocation52_spill] sm:$0xff] %v12006_v33  ;;  %v932_v32 = vadd.f32 %v931_v8, %v11683_v31 }
 0x325   :  { %v12009_v42 = vpop.f32.mrf.mxu0  ;;  %v12011_v34 = vpop.f32.mrf.mxu1 }
 0x326   :  { %15721 = vst [vmem:[#allocation53_spill] sm:$0xff] %v12009_v42  ;;  %v12035_v44 = vpop.permute.xlu1 %2343 }
 0x327   :  { %v935_v4 = vpop.f32.mrf.mxu0  ;;  %v9387_v51 = vpop.f32.mrf.mxu1 }
 0x328   :  { %v936_v1 = vadd.f32 %v935_v4, %v11683_v31 }
 0x329   :  { %v12015_v5 = vpop.f32.mrf.mxu0  ;;  %v12017_v55 = vpop.f32.mrf.mxu1 }
 0x32a   :  { %15722 = vst [vmem:[#allocation54_spill] sm:$0xff] %v12015_v5  ;;  %v12020_v36 = vpack.c.bf16 %v936_v1, %v932_v32  ;;  %9489 = vmatpush3.bf16.xpose.msra.mxu0 %v1808_v12  ;;  %v15560_v32 = vsub.s32 2, %v11653_v41  ;;  %v12049_v16 = vpop.permute.xlu1 %2341 }
 0x32b   :  { %v941_v28 = vpop.f32.mrf.mxu0  ;;  %v9390_v26 = vpop.f32.mrf.mxu1  ;;  %10005 = vmatprep.subr.msk.bf16.mxu0 %vm1250_vm0, %v1763_v52 }
 0x32c   :  { %15723 = vst [vmem:[#allocation55_spill] sm:$0xff] %v12020_v36  ;;  %v942_v8 = vadd.f32 %v941_v28, %v11683_v31  ;;  %v12040_v28 = vrot.slane %v11670_v9, %v15560_v32 }
 0x32d   :  { %v12023_v0 = vpop.f32.mrf.mxu0  ;;  %v12025_v58 = vpop.f32.mrf.mxu1 }
 0x32e   :  { %15724 = vst [vmem:[#allocation56_spill] sm:$0xff] %v12023_v0  ;;  %v1049_v9 = vadd.f32 %v9390_v26, %v12040_v28  ;;  %v12065_v26 = vpop.permute.xlu1 %2337 }
 0x32f   :  { %v945_v40 = vpop.f32.mrf.mxu0  ;;  %v9391_v53 = vpop.f32.mrf.mxu1 }
 0x330   :  { %v946_v4 = vadd.f32 %v945_v40, %v11683_v31  ;;  %v1737_v31 = vpop.permute.xlu0 %1736  ;;  %v1052_v59 = vadd.f32 %v9391_v53, %v12040_v28  ;;  %v1033_v53 = vadd.f32 %v9386_v49, %v12040_v28 }
 0x331   :  { %v1043_v61 = vpop.f32.mrf.mxu1 }
 0x332   :  { %v12031_v1 = vpack.c.bf16 %v946_v4, %v942_v8  ;;  %9491 = vmatpush3.bf16.xpose.msra.mxu0 %v1805_v23  ;;  %v1802_v23 = vsel %vm1250_vm0, %v11978_v7, 0  ;;  %v12058_v32 = vpack.c.bf16 %v1052_v59, %v1049_v9 }
 0x333   :  { %v9394_v12 = vpop.f32.mrf.mxu1  ;;  %10006 = vmatprep.subr.msk.bf16.mxu0 %vm1250_vm0, %v11978_v7 }
 0x334   :  { %15725 = vst [vmem:[#allocation57_spill] sm:$0xff] %v12031_v1  ;;  %v1065_v52 = vadd.f32 %v9394_v12, %v12040_v28  ;;  %v12055_v12 = vpop.permute.xlu0 %2339  ;;  %15727 = vst [vmem:[#allocation59_spill] sm:$0xff] %v12058_v32 }
 0x335   :  { %v1056_v45 = vpop.f32.mrf.mxu1 }
 0x337   :  { %v9395_v40 = vpop.f32.mrf.mxu1 }
 0x338   :  { %v1068_v8 = vadd.f32 %v9395_v40, %v12040_v28  ;;  %v1036_v40 = vadd.f32 %v9387_v51, %v12040_v28  ;;  %v1799_v51 = vsel %vm1250_vm0, %v1759_v19, 0 }
 0x339   :  { %v1059_v4 = vpop.f32.mrf.mxu1 }
 0x33a   :  { %v12047_v33 = vpack.c.bf16 %v1068_v8, %v1065_v52  ;;  %9493 = vmatpush3.bf16.xpose.msra.mxu0 %v1802_v23  ;;  %v12067_v60 = vpack.c.bf16 %v1036_v40, %v1033_v53  ;;  %v1060_v59 = vadd.f32 %v1059_v4, %v12040_v28  ;;  %v1057_v40 = vadd.f32 %v1056_v45, %v12040_v28  ;;  %v1739_v45 = vpop.permute.xlu1 %1738 }
 0x33b   :  { %v9398_v6 = vpop.f32.mrf.mxu1  ;;  %10007 = vmatprep.subr.msk.bf16.mxu0 %vm1250_vm0, %v1759_v19 }
 0x33c   :  { %15726 = vst [vmem:[#allocation58_spill] sm:$0xff] %v12047_v33  ;;  %2089 = vrot.lane.b32.xlu1 %v12047_v33, %s11200_s4  ;;  %v1081_v8 = vadd.f32 %v9398_v6, %v12040_v28  ;;  %15728 = vst [vmem:[#allocation60_spill] sm:$0xff] %v12067_v60  ;;  %v12088_v4 = vpack.c.bf16 %v1060_v59, %v1057_v40  ;;  %v1041_v59 = vadd.f32 %v12025_v58, %v12040_v28 }
 0x33d   :  { %v1072_v7 = vpop.f32.mrf.mxu1  ;;  %v2391_v40 = vsel %vm1250_vm0, %v12035_v44, 0 }
 0x33e   :  { %v1073_v9 = vadd.f32 %v1072_v7, %v12040_v28  ;;  %15731 = vst [vmem:[#allocation63_spill] sm:$0xff] %v12088_v4 }
 0x33f   :  { %v9399_v52 = vpop.f32.mrf.mxu1 }
 0x340   :  { %v1084_v23 = vadd.f32 %v9399_v52, %v12040_v28  ;;  %2085 = vrot.lane.b32.xlu1 %v12058_v32, %s11200_s4  ;;  %v12075_v52 = vpop.permute.xlu0 %2335 }
 0x341   :  { %v1075_v1 = vpop.f32.mrf.mxu1 }
 0x342   :  { %v12072_v49 = vpack.c.bf16 %v1084_v23, %v1081_v8  ;;  %v1076_v6 = vadd.f32 %v1075_v1, %v12040_v28  ;;  %9495 = vmatpush3.bf16.xpose.msra.mxu0 %v1799_v51  ;;  %v1044_v8 = vadd.f32 %v1043_v61, %v12040_v28 }
 0x343   :  { %v9402_v36 = vpop.f32.mrf.mxu1  ;;  %10008 = vmatprep.subr.msk.bf16.mxu0 %vm1250_vm0, %v12035_v44  ;;  %v12121_v44 = vpop.permute.xlu1 %2333 }
 0x344   :  { %15729 = vst [vmem:[#allocation61_spill] sm:$0xff] %v12072_v49  ;;  %v12080_v53 = vpack.c.bf16 %v1076_v6, %v1073_v9  ;;  %v1097_v19 = vadd.f32 %v9402_v36, %v12040_v28  ;;  %2081 = vrot.lane.b32.xlu1 %v12067_v60, %s11200_s4  ;;  %2093 = vrot.lane.b32.xlu0 %v12072_v49, %s11200_s4  ;;  %v1741_v51 = vpop.permute.xlu0 %1740 }
 0x345   :  { %9448 = vmatprep.subr.bf16.mxu1 %v12072_v49  ;;  %v1088_v1 = vpop.f32.mrf.mxu1 }
 0x346   :  { %15730 = vst [vmem:[#allocation62_spill] sm:$0xff] %v12080_v53  ;;  %v1089_v7 = vadd.f32 %v1088_v1, %v12040_v28  ;;  %9449 = vmatpush3.bf16.msra.mxu1 %v12072_v49  ;;  %v1028_v1 = vadd.f32 %v12017_v55, %v12040_v28  ;;  %v1025_v55 = vadd.f32 %v12011_v34, %v12040_v28 }
 0x347   :  { %9450 = vmatprep.subr.bf16.mxu1 %v12080_v53  ;;  %v9403_v36 = vpop.f32.mrf.mxu1 }
 0x348   :  { %v1100_v23 = vadd.f32 %v9403_v36, %v12040_v28  ;;  %2656 = vrot.lane.b32.xlu1 %v12072_v49, %s11196_s0  ;;  %2087 = vrot.lane.b32.xlu0 %v12088_v4, %s11200_s4  ;;  %v12111_v36 = vpack.c.bf16 %v1044_v8, %v1041_v59  ;;  %v12129_v8 = vpack.c.bf16 %v1028_v1, %v1025_v55  ;;  %v2388_v1 = vsel %vm1250_vm0, %v12049_v16, 0  ;;  %v12386_v49 = vpop.f32.mrf.mxu0 }
 0x349   :  { %v1091_v9 = vpop.f32.mrf.mxu1  ;;  %9497 = vmatmul.mubr.msk.bf16.vlgmr.msra.gmra.mxu0 %vm1250_vm0, %v1737_v31  ;;  %15767 = vst [vmem:[#allocation97_spill] sm:$0xff] %v12386_v49 }
 0x34a   :  { %v12102_v6 = vpack.c.bf16 %v1100_v23, %v1097_v19  ;;  %v1092_v61 = vadd.f32 %v1091_v9, %v12040_v28  ;;  %9451 = vmatpush3.bf16.msra.mxu1 %v12080_v53  ;;  %9500 = vmatprep.mubr.msk.bf16.mxu0 %vm1250_vm0, %v1739_v45  ;;  %15733 = vst [vmem:[#allocation65_spill] sm:$0xff] %v12111_v36  ;;  %15735 = vst [vmem:[#allocation67_spill] sm:$0xff] %v12129_v8  ;;  %v1743_v23 = vpop.permute.xlu0 %1742 }
 0x34b   :  { %9452 = vmatprep.subr.bf16.mxu1 %v12047_v33  ;;  %9545 = vmatpush3.bf16.xpose.msra.mxu0 %v2391_v40  ;;  %v9406_v58 = vpop.f32.mrf.mxu1 }
 0x34c   :  { %15732 = vst [vmem:[#allocation64_spill] sm:$0xff] %v12102_v6  ;;  %v12114_v31 = vpack.c.bf16 %v1092_v61, %v1089_v7  ;;  %v1113_v19 = vadd.f32 %v9406_v58, %v12040_v28  ;;  %10009 = vmatprep.subr.msk.bf16.mxu0 %vm1250_vm0, %v12049_v16  ;;  %2650 = vrot.lane.b32.xlu1 %v12088_v4, %s11196_s0  ;;  %v1745_v58 = vpop.permute.xlu1 %1744 }
 0x34d   :  { %2083 = vrot.lane.b32.xlu0 %v12111_v36, %s11200_s4  ;;  %v1104_v45 = vpop.f32.mrf.mxu1 }
 0x34e   :  { %15734 = vst [vmem:[#allocation66_spill] sm:$0xff] %v12114_v31  ;;  %v1105_v7 = vadd.f32 %v1104_v45, %v12040_v28  ;;  %9453 = vmatpush3.bf16.msra.mxu1 %v12047_v33 }
 0x34f   :  { %9454 = vmatprep.subr.bf16.mxu1 %v12088_v4  ;;  %v9407_v59 = vpop.f32.mrf.mxu1 }
 0x350   :  { %v1116_v9 = vadd.f32 %v9407_v59, %v12040_v28  ;;  %2648 = vrot.lane.b32.xlu1 %v12058_v32, %s11196_s0 }
 0x351   :  { %2079 = vrot.lane.b32.xlu0 %v12129_v8, %s11200_s4  ;;  %v1107_v34 = vpop.f32.mrf.mxu1  ;;  %9501 = vmatmul.mubr.msk.bf16.gmra.mxu0 %vm1250_vm0, %v1741_v51 }
 0x352   :  { %v12138_v61 = vpack.c.bf16 %v1116_v9, %v1113_v19  ;;  %v1108_v40 = vadd.f32 %v1107_v34, %v12040_v28  ;;  %9455 = vmatpush3.bf16.msra.mxu1 %v12088_v4  ;;  %9504 = vmatprep.mubr.msk.bf16.mxu0 %vm1250_vm0, %v1743_v23  ;;  %v2332_v19 = vpop.permute.xlu0 %2331  ;;  %v1747_v9 = vpop.permute.xlu1 %1746 }
 0x353   :  { %9456 = vmatprep.subr.bf16.mxu1 %v12058_v32  ;;  %9547 = vmatpush3.bf16.xpose.msra.mxu0 %v2388_v1  ;;  %v9410_v55 = vpop.f32.mrf.mxu1 }
 0x354   :  { %15736 = vst [vmem:[#allocation68_spill] sm:$0xff] %v12138_v61  ;;  %v12146_v45 = vpack.c.bf16 %v1108_v40, %v1105_v7  ;;  %v1129_v51 = vadd.f32 %v9410_v55, %v12040_v28  ;;  %10010 = vmatprep.subr.msk.bf16.mxu0 %vm1250_vm0, %v12055_v12  ;;  %2646 = vrot.lane.b32.xlu1 %v12111_v36, %s11196_s0  ;;  %v2385_v55 = vsel %vm1250_vm0, %v12055_v12, 0 }
 0x355   :  { %2652 = vrot.lane.b32.xlu0 %v12047_v33, %s11196_s0  ;;  %v1120_v16 = vpop.f32.mrf.mxu1 }
 0x356   :  { %15737 = vst [vmem:[#allocation69_spill] sm:$0xff] %v12146_v45  ;;  %v1121_v23 = vadd.f32 %v1120_v16, %v12040_v28  ;;  %9457 = vmatpush3.bf16.msra.mxu1 %v12058_v32  ;;  %v1749_v16 = vpop.permute.xlu0 %1748 }
 0x357   :  { %9458 = vmatprep.subr.bf16.mxu1 %v12111_v36  ;;  %v9411_v7 = vpop.f32.mrf.mxu1 }
 0x358   :  { %v1132_v59 = vadd.f32 %v9411_v7, %v12040_v28  ;;  %2642 = vrot.lane.b32.xlu1 %v12129_v8, %s11196_s0 }
 0x359   :  { %2644 = vrot.lane.b32.xlu0 %v12067_v60, %s11196_s0  ;;  %v1123_v34 = vpop.f32.mrf.mxu1  ;;  %9505 = vmatmul.mubr.msk.bf16.gmra.mxu0 %vm1250_vm0, %v1745_v58 }
 0x35a   :  { %v12164_v40 = vpack.c.bf16 %v1132_v59, %v1129_v51  ;;  %v1124_v1 = vadd.f32 %v1123_v34, %v12040_v28  ;;  %9459 = vmatpush3.bf16.msra.mxu1 %v12111_v36  ;;  %9508 = vmatprep.mubr.msk.bf16.mxu0 %vm1250_vm0, %v1747_v9  ;;  %v2314_v9 = vpop.permute.xlu0 %2313 }
 0x35b   :  { %9460 = vmatprep.subr.bf16.mxu1 %v12067_v60  ;;  %9549 = vmatpush3.bf16.xpose.msra.mxu0 %v2385_v55  ;;  %v9414_v7 = vpop.f32.mrf.mxu1 }
 0x35c   :  { %15738 = vst [vmem:[#allocation70_spill] sm:$0xff] %v12164_v40  ;;  %v12172_v38 = vpack.c.bf16 %v1124_v1, %v1121_v23  ;;  %v1145_v58 = vadd.f32 %v9414_v7, %v12040_v28  ;;  %10011 = vmatprep.subr.msk.bf16.mxu0 %vm1250_vm0, %v12065_v26  ;;  %2904 = vrot.lane.b32.xlu1 %v11772_v43, %s11201_s14  ;;  %v2382_v1 = vsel %vm1250_vm0, %v12065_v26, 0  ;;  %v2373_v26 = vsel %vm1250_vm0, %v2332_v19, 0 }
 0x35d   :  { %2902 = vrot.lane.b32.xlu0 %v11807_v17, %s11201_s14  ;;  %v1136_v12 = vpop.f32.mrf.mxu1 }
 0x35e   :  { %15739 = vst [vmem:[#allocation71_spill] sm:$0xff] %v12172_v38  ;;  %v1137_v51 = vadd.f32 %v1136_v12, %v12040_v28  ;;  %9461 = vmatpush3.bf16.msra.mxu1 %v12067_v60  ;;  %v15742_v12 = vlaneseq }
 0x35f   :  { %9462 = vmatprep.subr.bf16.mxu1 %v12129_v8  ;;  %v9415_v23 = vpop.f32.mrf.mxu1 }
 0x360   :  { %v1148_v59 = vadd.f32 %v9415_v23, %v12040_v28  ;;  %2091 = vrot.lane.b32.xlu1 %v12080_v53, %s11200_s4 }
 0x361   :  { %2906 = vrot.lane.b32.xlu0 %v11794_v47, %s11201_s14  ;;  %v1139_v43 = vpop.f32.mrf.mxu1  ;;  %9509 = vmatmul.mubr.msk.bf16.gmra.mxu0 %vm1250_vm0, %v1749_v16  ;;  %v2379_v47 = vsel %vm1250_vm0, %v12075_v52, 0  ;;  %v2330_v16 = vpop.permute.xlu1 %2329 }
 0x362   :  { %v12190_v17 = vpack.c.bf16 %v1148_v59, %v1145_v58  ;;  %v1140_v34 = vadd.f32 %v1139_v43, %v12040_v28  ;;  %9463 = vmatpush3.bf16.msra.mxu1 %v12129_v8  ;;  %9560 = vmatprep.mubr.msk.bf16.mxu0 %vm1250_vm0, %v2314_v9  ;;  %v2376_v28 = vsel %vm1250_vm0, %v12121_v44, 0  ;;  %v2370_v7 = vsel %vm1250_vm0, %v2330_v16, 0  ;;  %v2318_v58 = vpop.permute.xlu0 %2317 }
 0x363   :  { %9551 = vmatpush3.bf16.xpose.msra.mxu0 %v2382_v1  ;;  %v1201_v59 = vadd.s32 8, %v11653_v41  ;;  %v15565_v9 = vmov -1e+30  }
 0x364   :  { %15740 = vst [vmem:[#allocation72_spill] sm:$0xff] %v12190_v17  ;;  %v12197_v55 = vpack.c.bf16 %v1140_v34, %v1137_v51  ;;  %10012 = vmatprep.subr.msk.bf16.mxu0 %vm1250_vm0, %v12075_v52  ;;  %2654 = vrot.lane.b32.xlu1 %v12080_v53, %s11196_s0  ;;  %v12217_v51 = vand.u32 127, %v15742_v12  ;;  %v1203_v34 = vadd.s32 24, %v11653_v41 }
 0x365   :  { %v2316_v52 = vpop.permute.xlu1 %2315 }
 0x366   :  { %15741 = vst [vmem:[#allocation73_spill] sm:$0xff] %v12197_v55  ;;  %vm1218_vm2 = vcmp.ge.s32.totalorder %v11653_v41, %v12217_v51  ;;  %vm1219_vm3 = vcmp.ge.s32.totalorder %v1201_v59, %v12217_v51  ;;  %vm1221_vm4 = vcmp.ge.s32.totalorder %v1203_v34, %v12217_v51 }
 0x367   :  { %v12243_v12 = vsel %vm1219_vm3, 0.0, %v15565_v9  ;;  %vm2859_vm3 = vcmask 781824  }
 0x368   :  { %15745 = vst [vmem:[#allocation76_spill] sm:$0xff] %v12243_v12 }
 0x369   :  { %v2320_v23 = vpop.permute.xlu1 %2319 }
 0x36b   :  { %9553 = vmatpush3.bf16.xpose.msra.mxu0 %v2379_v47 }
 0x36c   :  { %10013 = vmatprep.subr.msk.bf16.mxu0 %vm1250_vm0, %v12121_v44  ;;  %v1202_v44 = vadd.s32 16, %v11653_v41 }
 0x36e   :  { %vm1220_vm1 = vcmp.ge.s32.totalorder %v1202_v44, %v12217_v51 }
 0x36f   :  { %v12224_v43 = vsel %vm1220_vm1, 0.0, %v15565_v9 }
 0x370   :  { %15743 = vst [vmem:[#allocation74_spill] sm:$0xff] %v12224_v43 }
 0x373   :  { %9555 = vmatpush3.bf16.xpose.msra.mxu0 %v2376_v28  ;;  %v2324_v28 = vpop.permute.xlu1 %2323 }
 0x374   :  { %10014 = vmatprep.subr.msk.bf16.mxu0 %vm1250_vm0, %v2332_v19  ;;  %v2322_v19 = vpop.permute.xlu0 %2321 }
 0x37b   :  { %9557 = vmatpush3.bf16.xpose.msra.mxu0 %v2373_v26  ;;  %v12234_v26 = vsel %vm1218_vm2, 0.0, %v15565_v9  ;;  %vm1709_vm2 = vcmask 257024  }
 0x37c   :  { %10015 = vmatprep.subr.msk.bf16.mxu0 %vm1250_vm0, %v2330_v16  ;;  %15744 = vst [vmem:[#allocation75_spill] sm:$0xff] %v12234_v26 }
 0x383   :  { %9559 = vmatpush3.bf16.xpose.msra.mxu0 %v2370_v7  ;;  %v2326_v7 = vpop.permute.xlu0 %2325 }
 0x38a   :  { %9561 = vmatmul.mubr.msk.bf16.vlgmr.msra.gmra.mxu0 %vm1250_vm0, %v2316_v52  ;;  %v1206_v52 = vadd.s32 48, %v11653_v41 }
 0x38b   :  { %9564 = vmatprep.mubr.msk.bf16.mxu0 %vm1250_vm0, %v2318_v58  ;;  %v1207_v58 = vadd.s32 56, %v11653_v41 }
 0x38c   :  { %vm1224_vm5 = vcmp.ge.s32.totalorder %v1206_v52, %v12217_v51  ;;  %v1210_v52 = vadd.s32 80, %v11653_v41 }
 0x38d   :  { %vm1225_vm6 = vcmp.ge.s32.totalorder %v1207_v58, %v12217_v51  ;;  %v12264_v46 = vsel %vm1224_vm5, 0.0, %v15747_v10  ;;  %v1211_v58 = vadd.s32 88, %v11653_v41 }
 0x38e   :  { %15748 = vst [vmem:[#allocation78_spill] sm:$0xff] %v12264_v46  ;;  %v12267_v3 = vsel %vm1225_vm6, 0.0, %v15747_v10  ;;  %vm1228_vm9 = vcmp.ge.s32.totalorder %v1210_v52, %v12217_v51  ;;  %v1215_v52 = vadd.s32 120, %v11653_v41 }
 0x38f   :  { %15749 = vst [vmem:[#allocation79_spill] sm:$0xff] %v12267_v3  ;;  %vm1229_vm10 = vcmp.ge.s32.totalorder %v1211_v58, %v12217_v51  ;;  %v12300_v27 = vsel %vm1228_vm9, 0.0, %v15747_v10 }
 0x390   :  { %15752 = vst [vmem:[#allocation82_spill] sm:$0xff] %v12300_v27  ;;  %v12303_v39 = vsel %vm1229_vm10, 0.0, %v15747_v10  ;;  %vm1233_vm14 = vcmp.ge.s32.totalorder %v1215_v52, %v12217_v51 }
 0x391   :  { %15753 = vst [vmem:[#allocation83_spill] sm:$0xff] %v12303_v39  ;;  %v12339_v60 = vsel %vm1233_vm14, 0.0, %v15747_v10 }
 0x392   :  { %9565 = vmatmul.mubr.msk.bf16.gmra.mxu0 %vm1250_vm0, %v2320_v23  ;;  %15757 = vst [vmem:[#allocation87_spill] sm:$0xff] %v12339_v60 }
 0x393   :  { %9568 = vmatprep.mubr.msk.bf16.mxu0 %vm1250_vm0, %v2322_v19  ;;  %v12249_v19 = vsel %vm1221_vm4, 0.0, %v15565_v9  ;;  %v2328_v9 = vpop.permute.xlu1 %2327  ;;  %vm3422_vm4 = vcmask 1044224  }
 0x394   :  { %15746 = vst [vmem:[#allocation77_spill] sm:$0xff] %v12249_v19 }
 0x397   :  { %v9434_v1 = vpop.f32.mrf.mxu1 }
 0x398   :  { %v12230_v47 = vadd.f32 %v9434_v1, %v12224_v43  ;;  %v1204_v1 = vadd.s32 32, %v11653_v41 }
 0x399   :  { %v1333_v16 = vpop.f32.mrf.mxu1 }
 0x39a   :  { %1400 = vmax.xlane.f32.xlu0 %v12230_v47  ;;  %9569 = vmatmul.mubr.msk.bf16.gmra.mxu0 %vm1250_vm0, %v2324_v28  ;;  %v12246_v23 = vadd.f32 %v1333_v16, %v12234_v26  ;;  %v1205_v28 = vadd.s32 40, %v11653_v41  ;;  %vm1222_vm7 = vcmp.ge.s32.totalorder %v1204_v1, %v12217_v51 }
 0x39b   :  { %v9435_v44 = vpop.f32.mrf.mxu1  ;;  %9572 = vmatprep.mubr.msk.bf16.mxu0 %vm1250_vm0, %v2326_v7  ;;  %v12282_v42 = vsel %vm1222_vm7, 0.0, %v15747_v10 }
 0x39c   :  { %v12260_v16 = vadd.f32 %v9435_v44, %v12249_v19  ;;  %vm1223_vm8 = vcmp.ge.s32.totalorder %v1205_v28, %v12217_v51  ;;  %15750 = vst [vmem:[#allocation80_spill] sm:$0xff] %v12282_v42  ;;  %v1208_v28 = vadd.s32 64, %v11653_v41 }
 0x39d   :  { %v1336_v59 = vpop.f32.mrf.mxu1  ;;  %v12285_v1 = vsel %vm1223_vm8, 0.0, %v15747_v10 }
 0x39e   :  { %v12253_v34 = vadd.f32 %v1336_v59, %v12243_v12  ;;  %1396 = vmax.xlane.f32.xlu0 %v12246_v23  ;;  %15751 = vst [vmem:[#allocation81_spill] sm:$0xff] %v12285_v1  ;;  %vm1226_vm11 = vcmp.ge.s32.totalorder %v1208_v28, %v12217_v51 }
 0x39f   :  { %v9438_v7 = vpop.f32.mrf.mxu1  ;;  %v12318_v29 = vsel %vm1226_vm11, 0.0, %v15747_v10 }
 0x3a0   :  { %1398 = vmax.xlane.f32.xlu1 %v12253_v34  ;;  %v12276_v37 = vadd.f32 %v9438_v7, %v12264_v46  ;;  %v1209_v7 = vadd.s32 72, %v11653_v41  ;;  %15754 = vst [vmem:[#allocation84_spill] sm:$0xff] %v12318_v29 }
 0x3a1   :  { %v1349_v59 = vpop.f32.mrf.mxu1 }
 0x3a2   :  { %1402 = vmax.xlane.f32.xlu0 %v12260_v16  ;;  %9573 = vmatmul.mubr.msk.bf16.gmra.mxu0 %vm1250_vm0, %v2328_v9  ;;  %v12294_v5 = vadd.f32 %v1349_v59, %v12282_v42  ;;  %vm1227_vm12 = vcmp.ge.s32.totalorder %v1209_v7, %v12217_v51  ;;  %v1214_v59 = vadd.s32 112, %v11653_v41  ;;  %v1212_v7 = vadd.s32 96, %v11653_v41 }
 0x3a3   :  { %v9439_v44 = vpop.f32.mrf.mxu1  ;;  %v12321_v28 = vsel %vm1227_vm12, 0.0, %v15747_v10 }
 0x3a4   :  { %v12279_v63 = vadd.f32 %v9439_v44, %v12267_v3  ;;  %15755 = vst [vmem:[#allocation85_spill] sm:$0xff] %v12321_v28  ;;  %vm1232_vm13 = vcmp.ge.s32.totalorder %v1214_v59, %v12217_v51  ;;  %vm1230_vm15 = vcmp.ge.s32.totalorder %v1212_v7, %v12217_v51 }
 0x3a5   :  { %v1352_v9 = vpop.f32.mrf.mxu1  ;;  %v12336_v13 = vsel %vm1232_vm13, 0.0, %v15747_v10  ;;  %v12352_v52 = vsel %vm1230_vm15, 0.0, %v15747_v10 }
 0x3a6   :  { %1410 = vmax.xlane.f32.xlu1 %v12279_v63  ;;  %1408 = vmax.xlane.f32.xlu0 %v12276_v37  ;;  %v12297_v0 = vadd.f32 %v1352_v9, %v12285_v1  ;;  %15756 = vst [vmem:[#allocation86_spill] sm:$0xff] %v12336_v13  ;;  %15758 = vst [vmem:[#allocation88_spill] sm:$0xff] %v12352_v52 }
 0x3a7   :  { %v9442_v44 = vpop.f32.mrf.mxu1 }
 0x3a8   :  { %v12312_v9 = vadd.f32 %v9442_v44, %v12300_v27  ;;  %v1213_v44 = vadd.s32 104, %v11653_v41 }
 0x3a9   :  { %v1365_v22 = vpop.f32.mrf.mxu1 }
 0x3aa   :  { %1406 = vmax.xlane.f32.xlu1 %v12297_v0  ;;  %1404 = vmax.xlane.f32.xlu0 %v12294_v5  ;;  %v12330_v57 = vadd.f32 %v1365_v22, %v12318_v29  ;;  %vm1231_vm1 = vcmp.ge.s32.totalorder %v1213_v44, %v12217_v51 }
 0x3ab   :  { %v9443_v58 = vpop.f32.mrf.mxu1  ;;  %v12355_v41 = vsel %vm1231_vm1, 0.0, %v15747_v10 }
 0x3ac   :  { %v12315_v24 = vadd.f32 %v9443_v58, %v12303_v39  ;;  %15759 = vst [vmem:[#allocation89_spill] sm:$0xff] %v12355_v41 }
 0x3ad   :  { %v1368_v15 = vpop.f32.mrf.mxu1 }
 0x3ae   :  { %1418 = vmax.xlane.f32.xlu1 %v12315_v24  ;;  %1416 = vmax.xlane.f32.xlu0 %v12312_v9  ;;  %v12333_v35 = vadd.f32 %v1368_v15, %v12321_v28  ;;  %v12370_v10 = vpop.permute.xlu1 %2089 }
 0x3af   :  { %v9446_v58 = vpop.f32.mrf.mxu1 }
 0x3b0   :  { %v12346_v59 = vadd.f32 %v9446_v58, %v12336_v13 }
 0x3b1   :  { %v1381_v8 = vpop.f32.mrf.mxu1 }
 0x3b2   :  { %1414 = vmax.xlane.f32.xlu1 %v12333_v35  ;;  %1412 = vmax.xlane.f32.xlu0 %v12330_v57  ;;  %v12363_v51 = vadd.f32 %v1381_v8, %v12352_v52  ;;  %v12372_v58 = vpop.permute.xlu1 %2085 }
 0x3b3   :  { %v9447_v22 = vpop.f32.mrf.mxu1  ;;  %15760 = vst [vmem:[#allocation90_spill] sm:$0xff] %v12372_v58 }
 0x3b4   :  { %v12349_v15 = vadd.f32 %v9447_v22, %v12339_v60 }
 0x3b5   :  { %v1384_v7 = vpop.f32.mrf.mxu1 }
 0x3b6   :  { %1426 = vmax.xlane.f32.xlu1 %v12349_v15  ;;  %1424 = vmax.xlane.f32.xlu0 %v12346_v59  ;;  %v12359_v32 = vpop.permute.xlu0 %2093  ;;  %v12366_v44 = vadd.f32 %v1384_v7, %v12355_v41  ;;  %v12374_v22 = vpop.permute.xlu1 %2081 }
 0x3b7   :  { %9512 = vmatprep.subr.bf16.mxu1 %v12359_v32  ;;  %15761 = vst [vmem:[#allocation91_spill] sm:$0xff] %v12374_v22 }
 0x3ba   :  { %1422 = vmax.xlane.f32.xlu1 %v12366_v44  ;;  %1420 = vmax.xlane.f32.xlu0 %v12363_v51  ;;  %v12376_v4 = vpop.permute.xlu1 %2656  ;;  %v12378_v33 = vpop.permute.xlu0 %2087 }
 0x3bb   :  { %15762 = vst [vmem:[#allocation92_spill] sm:$0xff] %v12376_v4  ;;  %15763 = vst [vmem:[#allocation93_spill] sm:$0xff] %v12378_v33 }
 0x3be   :  { %v12380_v36 = vpop.permute.xlu1 %2650 }
 0x3bf   :  { %15764 = vst [vmem:[#allocation94_spill] sm:$0xff] %v12380_v36  ;;  %v12382_v8 = vpop.permute.xlu0 %2083 }
 0x3c0   :  { %15765 = vst [vmem:[#allocation95_spill] sm:$0xff] %v12382_v8 }
 0x3c2   :  { %v12384_v7 = vpop.permute.xlu1 %2648 }
 0x3c3   :  { %15766 = vst [vmem:[#allocation96_spill] sm:$0xff] %v12384_v7  ;;  %v12388_v31 = vpop.permute.xlu0 %2079 }
 0x3c4   :  { %15768 = vst [vmem:[#allocation98_spill] sm:$0xff] %v12388_v31 }
 0x3c6   :  { %v12393_v38 = vpop.permute.xlu1 %2646 }
 0x3c7   :  { %15769 = vst [vmem:[#allocation99_spill] sm:$0xff] %v12393_v38  ;;  %v12396_v40 = vpop.permute.xlu0 %2652 }
 0x3c8   :  { %15770 = vst [vmem:[#allocation100_spill] sm:$0xff] %v12396_v40 }
 0x3ca   :  { %v12406_v25 = vpop.permute.xlu1 %2642 }
 0x3cb   :  { %15771 = vst [vmem:[#allocation101_spill] sm:$0xff] %v12406_v25  ;;  %v12414_v48 = vpop.permute.xlu0 %2644 }
 0x3cc   :  { %15772 = vst [vmem:[#allocation102_spill] sm:$0xff] %v12414_v48 }
 0x409   :  { %v9498_v6 = vpop.f32.mrf.mxu0 }
 0x40a   :  { %v12391_v45 = vadd.f32 %v9498_v6, %v12224_v43 }
 0x40b   :  { %v1856_v61 = vpop.f32.mrf.mxu0 }
 0x40c   :  { %1923 = vmax.xlane.f32.xlu0 %v12391_v45  ;;  %v12399_v17 = vadd.f32 %v1856_v61, %v12234_v26 }
 0x40d   :  { %v9499_v55 = vpop.f32.mrf.mxu0 }
 0x40e   :  { %v12402_v53 = vadd.f32 %v9499_v55, %v12249_v19 }
 0x40f   :  { %v1859_v49 = vpop.f32.mrf.mxu0 }
 0x410   :  { %1925 = vmax.xlane.f32.xlu1 %v12402_v53  ;;  %1919 = vmax.xlane.f32.xlu0 %v12399_v17  ;;  %v12409_v11 = vadd.f32 %v1859_v49, %v12243_v12  ;;  %v12424_v49 = vpop.permute.xlu1 %2904 }
 0x411   :  { %v9502_v6 = vpop.f32.mrf.mxu0  ;;  %15773 = vst [vmem:[#allocation103_spill] sm:$0xff] %v12424_v49 }
 0x412   :  { %v12412_v38 = vadd.f32 %v9502_v6, %v12264_v46  ;;  %v12428_v6 = vpop.permute.xlu0 %2902 }
 0x413   :  { %v1872_v61 = vpop.f32.mrf.mxu0  ;;  %15774 = vst [vmem:[#allocation104_spill] sm:$0xff] %v12428_v6 }
 0x414   :  { %1921 = vmax.xlane.f32.xlu1 %v12409_v11  ;;  %1931 = vmax.xlane.f32.xlu0 %v12412_v38  ;;  %v12419_v21 = vadd.f32 %v1872_v61, %v12282_v42  ;;  %v12438_v49 = vpop.permute.xlu1 %2091 }
 0x415   :  { %v9503_v55 = vpop.f32.mrf.mxu0 }
 0x416   :  { %v12422_v7 = vadd.f32 %v9503_v55, %v12267_v3  ;;  %v12446_v50 = vpop.permute.xlu0 %2906 }
 0x417   :  { %v1875_v25 = vpop.f32.mrf.mxu0  ;;  %15775 = vst [vmem:[#allocation105_spill] sm:$0xff] %v12446_v50 }
 0x418   :  { %1933 = vmax.xlane.f32.xlu1 %v12422_v7  ;;  %1927 = vmax.xlane.f32.xlu0 %v12419_v21  ;;  %v12431_v62 = vadd.f32 %v1875_v25, %v12285_v1 }
 0x419   :  { %v9506_v48 = vpop.f32.mrf.mxu0 }
 0x41a   :  { %v12434_v54 = vadd.f32 %v9506_v48, %v12300_v27 }
 0x41b   :  { %v1888_v61 = vpop.f32.mrf.mxu0 }
 0x41c   :  { %1929 = vmax.xlane.f32.xlu1 %v12431_v62  ;;  %1939 = vmax.xlane.f32.xlu0 %v12434_v54  ;;  %v12441_v36 = vadd.f32 %v1888_v61, %v12318_v29 }
 0x41d   :  { %v9507_v55 = vpop.f32.mrf.mxu0 }
 0x41e   :  { %v12444_v6 = vadd.f32 %v9507_v55, %v12303_v39  ;;  %v12459_v55 = vpop.permute.xlu1 %2654 }
 0x41f   :  { %v1891_v25 = vpop.f32.mrf.mxu0  ;;  %15776 = vst [vmem:[#allocation106_spill] sm:$0xff] %v12459_v55 }
 0x420   :  { %1941 = vmax.xlane.f32.xlu1 %v12444_v6  ;;  %1935 = vmax.xlane.f32.xlu0 %v12441_v36  ;;  %v12451_v14 = vadd.f32 %v1891_v25, %v12321_v28 }
 0x421   :  { %v9510_v48 = vpop.f32.mrf.mxu0 }
 0x422   :  { %v12454_v40 = vadd.f32 %v9510_v48, %v12336_v13 }
 0x423   :  { %v1401_v18 = vpop.xlane.xlu0 %1400  ;;  %v1904_v61 = vpop.f32.mrf.mxu0 }
 0x424   :  { %v1430_v56 = vsub.f32 %v12230_v47, %v1401_v18  ;;  %1937 = vmax.xlane.f32.xlu1 %v12451_v14  ;;  %1947 = vmax.xlane.f32.xlu0 %v12454_v40  ;;  %v12462_v2 = vadd.f32 %v1904_v61, %v12352_v52 }
 0x425   :  { %v9511_v50 = vpop.f32.mrf.mxu0 }
 0x426   :  { %v1448_v20 = vmul.f32 1.442695, %v1430_v56  ;;  %v12465_v25 = vadd.f32 %v9511_v50, %v12339_v60 }
 0x427   :  { %v1397_v48 = vpop.xlane.xlu0 %1396  ;;  %v1907_v4 = vpop.f32.mrf.mxu0 }
 0x428   :  { %10276 = vpow2.f32 %v1448_v20  ;;  %v1428_v31 = vsub.f32 %v12246_v23, %v1397_v48  ;;  %1949 = vmax.xlane.f32.xlu1 %v12465_v25  ;;  %1943 = vmax.xlane.f32.xlu0 %v12462_v2  ;;  %v12471_v55 = vadd.f32 %v1907_v4, %v12355_v41 }
 0x429   :  { %v1399_v18 = vpop.xlane.xlu1 %1398 }
 0x42a   :  { %v1444_v47 = vmul.f32 1.442695, %v1428_v31  ;;  %v1429_v61 = vsub.f32 %v12253_v34, %v1399_v18 }
 0x42b   :  { %v1403_v56 = vpop.xlane.xlu0 %1402 }
 0x42c   :  { %10278 = vpow2.f32 %v1444_v47  ;;  %v1431_v50 = vsub.f32 %v12260_v16, %v1403_v56  ;;  %1945 = vmax.xlane.f32.xlu1 %v12471_v55  ;;  %v1446_v48 = vmul.f32 1.442695, %v1429_v61 }
 0x42e   :  { %v1450_v20 = vmul.f32 1.442695, %v1431_v50 }
 0x42f   :  { %v1411_v22 = vpop.xlane.xlu1 %1410  ;;  %v1409_v23 = vpop.xlane.xlu0 %1408 }
 0x430   :  { %10280 = vpow2.f32 %v1450_v20  ;;  %v1435_v8 = vsub.f32 %v12279_v63, %v1411_v22  ;;  %v1434_v31 = vsub.f32 %v12276_v37, %v1409_v23 }
 0x431   :  { %10282 = vpow2.f32 %v1446_v48 }
 0x432   :  { %v1456_v58 = vmul.f32 1.442695, %v1434_v31  ;;  %v1458_v47 = vmul.f32 1.442695, %v1435_v8 }
 0x433   :  { %v1407_v4 = vpop.xlane.xlu1 %1406  ;;  %v1405_v33 = vpop.xlane.xlu0 %1404 }
 0x434   :  { %v1433_v34 = vsub.f32 %v12297_v0, %v1407_v4  ;;  %v1432_v16 = vsub.f32 %v12294_v5, %v1405_v33  ;;  %10284 = vpow2.f32 %v1456_v58 }
 0x435   :  { %v12480_v18 = vpop.eup %10276  ;;  %10286 = vpow2.f32 %v1458_v47 }
 0x436   :  { %v1452_v56 = vmul.f32 1.442695, %v1432_v16  ;;  %1480 = vadd.xlane.f32.xlu0 %v12480_v18  ;;  %v1454_v63 = vmul.f32 1.442695, %v1433_v34 }
 0x437   :  { %v1419_v61 = vpop.xlane.xlu1 %1418  ;;  %v1417_v50 = vpop.xlane.xlu0 %1416 }
 0x438   :  { %v1439_v37 = vsub.f32 %v12315_v24, %v1419_v61  ;;  %v1438_v22 = vsub.f32 %v12312_v9, %v1417_v50  ;;  %10288 = vpow2.f32 %v1452_v56 }
 0x439   :  { %v12485_v20 = vpop.eup %10278  ;;  %10290 = vpow2.f32 %v1454_v63 }
 0x43a   :  { %v1464_v0 = vmul.f32 1.442695, %v1438_v22  ;;  %1476 = vadd.xlane.f32.xlu0 %v12485_v20  ;;  %v1466_v58 = vmul.f32 1.442695, %v1439_v37 }
 0x43b   :  { %v1415_v33 = vpop.xlane.xlu1 %1414  ;;  %v1413_v5 = vpop.xlane.xlu0 %1412 }
 0x43c   :  { %v1437_v8 = vsub.f32 %v12333_v35, %v1415_v33  ;;  %v1436_v23 = vsub.f32 %v12330_v57, %v1413_v5  ;;  %10292 = vpow2.f32 %v1464_v0 }
 0x43d   :  { %v12490_v48 = vpop.eup %10280  ;;  %10294 = vpow2.f32 %v1466_v58 }
 0x43e   :  { %v1460_v24 = vmul.f32 1.442695, %v1436_v23  ;;  %1482 = vadd.xlane.f32.xlu1 %v12490_v48  ;;  %v1462_v31 = vmul.f32 1.442695, %v1437_v8  ;;  %v12493_v4 = vpop.eup %10282 }
 0x43f   :  { %v1425_v9 = vpop.xlane.xlu0 %1424  ;;  %v1427_v47 = vpop.xlane.xlu1 %1426 }
 0x440   :  { %10296 = vpow2.f32 %v1460_v24  ;;  %v1442_v34 = vsub.f32 %v12346_v59, %v1425_v9  ;;  %v1443_v57 = vsub.f32 %v12349_v15, %v1427_v47 }
 0x441   :  { %v12496_v16 = vpop.eup %10284  ;;  %10298 = vpow2.f32 %v1462_v31 }
 0x442   :  { %1478 = vadd.xlane.f32.xlu1 %v12493_v4  ;;  %1488 = vadd.xlane.f32.xlu0 %v12496_v16  ;;  %v12501_v35 = vpop.eup %10286  ;;  %v1472_v56 = vmul.f32 1.442695, %v1442_v34  ;;  %v1474_v59 = vmul.f32 1.442695, %v1443_v57 }
 0x443   :  { %v1421_v50 = vpop.xlane.xlu0 %1420 }
 0x444   :  { %10300 = vpow2.f32 %v1472_v56  ;;  %v1440_v37 = vsub.f32 %v12363_v51, %v1421_v50 }
 0x445   :  { %v12503_v61 = vpop.eup %10288  ;;  %10302 = vpow2.f32 %v1474_v59 }
 0x446   :  { %1490 = vadd.xlane.f32.xlu1 %v12501_v35  ;;  %1484 = vadd.xlane.f32.xlu0 %v12503_v61  ;;  %v12507_v63 = vpop.eup %10290  ;;  %v1468_v5 = vmul.f32 1.442695, %v1440_v37 }
 0x448   :  { %10304 = vpow2.f32 %v1468_v5 }
 0x449   :  { %v12510_v22 = vpop.eup %10292 }
 0x44a   :  { %v9562_v0 = vpop.f32.mrf.mxu0  ;;  %1486 = vadd.xlane.f32.xlu1 %v12507_v63  ;;  %1496 = vadd.xlane.f32.xlu0 %v12510_v22  ;;  %v12514_v33 = vpop.eup %10294 }
 0x44b   :  { %v12523_v23 = vadd.f32 %v9562_v0, %v12224_v43 }
 0x44c   :  { %v2427_v15 = vpop.f32.mrf.mxu0 }
 0x44d   :  { %v12516_v58 = vpop.eup %10296  ;;  %v12537_v57 = vadd.f32 %v2427_v15, %v12234_v26 }
 0x44e   :  { %v9563_v8 = vpop.f32.mrf.mxu0  ;;  %1498 = vadd.xlane.f32.xlu1 %v12514_v33  ;;  %1492 = vadd.xlane.f32.xlu0 %v12516_v58  ;;  %v12520_v51 = vpop.eup %10298 }
 0x44f   :  { %v12528_v9 = vadd.f32 %v9563_v8, %v12249_v19 }
 0x450   :  { %v2430_v24 = vpop.f32.mrf.mxu0 }
 0x451   :  { %v12530_v31 = vpop.eup %10300  ;;  %v12542_v50 = vadd.f32 %v2430_v24, %v12243_v12 }
 0x452   :  { %1494 = vadd.xlane.f32.xlu1 %v12520_v51  ;;  %2494 = vmax.xlane.f32.xlu0 %v12523_v23  ;;  %15777 = vst [vmem:[#allocation107_spill] sm:$0xff] %v12530_v31  ;;  %v9566_v47 = vpop.f32.mrf.mxu0  ;;  %v12534_v34 = vpop.eup %10302 }
 0x453   :  { %v12549_v0 = vadd.f32 %v9566_v47, %v12264_v46  ;;  %v1423_v47 = vpop.xlane.xlu1 %1422 }
 0x454   :  { %v2443_v56 = vpop.f32.mrf.mxu0 }
 0x455   :  { %v12544_v59 = vpop.eup %10304  ;;  %v12553_v5 = vadd.f32 %v2443_v56, %v12282_v42  ;;  %v1441_v56 = vsub.f32 %v12366_v44, %v1423_v47 }
 0x456   :  { %2496 = vmax.xlane.f32.xlu1 %v12528_v9  ;;  %1504 = vadd.xlane.f32.xlu0 %v12530_v31  ;;  %v9567_v37 = vpop.f32.mrf.mxu0 }
 0x457   :  { %v1470_v42 = vmul.f32 1.442695, %v1441_v56 }
 0x458   :  { %v2446_v15 = vpop.f32.mrf.mxu0 }
 0x459   :  { %10306 = vpow2.f32 %v1470_v42 }
 0x45a   :  { %1506 = vadd.xlane.f32.xlu1 %v12534_v34  ;;  %2490 = vmax.xlane.f32.xlu0 %v12537_v57  ;;  %v9570_v8 = vpop.f32.mrf.mxu0 }
 0x45b   :  { %v12557_v24 = vadd.f32 %v9570_v8, %v12300_v27  ;;  %v12571_v8 = vadd.f32 %v9567_v37, %v12267_v3 }
 0x45c   :  { %v2459_v19 = vpop.f32.mrf.mxu0 }
 0x45d   :  { %v12561_v12 = vadd.f32 %v2459_v19, %v12318_v29 }
 0x45e   :  { %2492 = vmax.xlane.f32.xlu1 %v12542_v50  ;;  %1500 = vadd.xlane.f32.xlu0 %v12544_v59  ;;  %v9571_v47 = vpop.f32.mrf.mxu0 }
 0x45f   :  { %v12580_v42 = vadd.f32 %v9571_v47, %v12303_v39 }
 0x460   :  { %v2462_v3 = vpop.f32.mrf.mxu0 }
 0x462   :  { %2502 = vmax.xlane.f32.xlu0 %v12549_v0  ;;  %v9574_v43 = vpop.f32.mrf.mxu0 }
 0x463   :  { %v12591_v39 = vadd.f32 %v9574_v43, %v12336_v13 }
 0x466   :  { %2498 = vmax.xlane.f32.xlu0 %v12553_v5  ;;  %v12567_v46 = vpop.eup %10306 }
 0x46a   :  { %2510 = vmax.xlane.f32.xlu0 %v12557_v24 }
 0x46e   :  { %2506 = vmax.xlane.f32.xlu0 %v12561_v12 }
 0x46f   :  { %2900 = vrot.lane.b32.xlu1 %v11819_v30, %s11201_s14  ;;  %v12576_v30 = vadd.f32 %v2446_v15, %v12285_v1  ;;  %v12585_v15 = vadd.f32 %v2462_v3, %v12321_v28  ;;  %v2475_v28 = vpop.f32.mrf.mxu0 }
 0x470   :  { %v12601_v43 = vadd.f32 %v2475_v28, %v12352_v52 }
 0x493   :  { %1502 = vadd.xlane.f32.xlu1 %v12567_v46 }
 0x495   :  { %v1924_v27 = vpop.xlane.xlu0 %1923 }
 0x496   :  { %v1953_v19 = vsub.f32 %v12391_v45, %v1924_v27 }
 0x497   :  { %2504 = vmax.xlane.f32.xlu1 %v12571_v8 }
 0x498   :  { %v1971_v29 = vmul.f32 1.442695, %v1953_v19 }
 0x499   :  { %v1926_v26 = vpop.xlane.xlu1 %1925  ;;  %v1920_v44 = vpop.xlane.xlu0 %1919 }
 0x49a   :  { %10308 = vpow2.f32 %v1971_v29  ;;  %v1951_v19 = vsub.f32 %v12399_v17, %v1920_v44 }
 0x49b   :  { %2500 = vmax.xlane.f32.xlu1 %v12576_v30 }
 0x49d   :  { %v1922_v37 = vpop.xlane.xlu1 %1921  ;;  %v1932_v56 = vpop.xlane.xlu0 %1931 }
 0x49e   :  { %v1957_v27 = vsub.f32 %v12412_v38, %v1932_v56  ;;  %v1954_v38 = vsub.f32 %v12402_v53, %v1926_v26  ;;  %v1967_v56 = vmul.f32 1.442695, %v1951_v19  ;;  %v1952_v26 = vsub.f32 %v12409_v11, %v1922_v37  ;;  %v9575_v19 = vpop.f32.mrf.mxu0 }
 0x49f   :  { %2512 = vmax.xlane.f32.xlu1 %v12580_v42 }
 0x4a0   :  { %v1979_v45 = vmul.f32 1.442695, %v1957_v27  ;;  %v1973_v53 = vmul.f32 1.442695, %v1954_v38 }
 0x4a1   :  { %v1934_v1 = vpop.xlane.xlu1 %1933  ;;  %v1928_v29 = vpop.xlane.xlu0 %1927 }
 0x4a2   :  { %v1958_v31 = vsub.f32 %v12422_v7, %v1934_v1  ;;  %10310 = vpow2.f32 %v1979_v45  ;;  %v1955_v28 = vsub.f32 %v12419_v21, %v1928_v29 }
 0x4a3   :  { %2508 = vmax.xlane.f32.xlu1 %v12585_v15 }
 0x4a4   :  { %v1981_v47 = vmul.f32 1.442695, %v1958_v31 }
 0x4a5   :  { %v1930_v27 = vpop.xlane.xlu1 %1929  ;;  %v1940_v3 = vpop.xlane.xlu0 %1939 }
 0x4a6   :  { %10312 = vpow2.f32 %v1981_v47  ;;  %v1956_v17 = vsub.f32 %v12431_v62, %v1930_v27  ;;  %v1961_v1 = vsub.f32 %v12434_v54, %v1940_v3  ;;  %v12607_v54 = vadd.f32 %v9575_v19, %v12339_v60 }
 0x4a7   :  { %v12595_v44 = vpop.eup %10308  ;;  %2518 = vmax.xlane.f32.xlu1 %v12591_v39  ;;  %10314 = vpow2.f32 %v1967_v56  ;;  %v1969_v27 = vmul.f32 1.442695, %v1952_v26  ;;  %v2478_v56 = vpop.f32.mrf.mxu0 }
 0x4a8   :  { %v1977_v7 = vmul.f32 1.442695, %v1956_v17  ;;  %2003 = vadd.xlane.f32.xlu0 %v12595_v44  ;;  %v1987_v62 = vmul.f32 1.442695, %v1961_v1  ;;  %v1975_v1 = vmul.f32 1.442695, %v1955_v28 }
 0x4a9   :  { %v1942_v31 = vpop.xlane.xlu1 %1941  ;;  %v1936_v45 = vpop.xlane.xlu0 %1935 }
 0x4aa   :  { %10316 = vpow2.f32 %v1977_v7  ;;  %v1959_v47 = vsub.f32 %v12441_v36, %v1936_v45  ;;  %v1962_v11 = vsub.f32 %v12444_v6, %v1942_v31  ;;  %v12615_v36 = vadd.f32 %v2478_v56, %v12355_v41 }
 0x4ab   :  { %2514 = vmax.xlane.f32.xlu1 %v12601_v43  ;;  %10318 = vpow2.f32 %v1973_v53 }
 0x4ac   :  { %10320 = vpow2.f32 %v1987_v62  ;;  %v1983_v37 = vmul.f32 1.442695, %v1959_v47  ;;  %v1989_v53 = vmul.f32 1.442695, %v1962_v11 }
 0x4ad   :  { %v1938_v38 = vpop.xlane.xlu1 %1937  ;;  %v1948_v3 = vpop.xlane.xlu0 %1947  ;;  %10322 = vpow2.f32 %v1969_v27 }
 0x4ae   :  { %v1960_v7 = vsub.f32 %v12451_v14, %v1938_v38  ;;  %10324 = vpow2.f32 %v1983_v37  ;;  %v1965_v6 = vsub.f32 %v12454_v40, %v1948_v3 }
 0x4af   :  { %2520 = vmax.xlane.f32.xlu1 %v12607_v54  ;;  %v12612_v17 = vpop.eup %10310  ;;  %10326 = vpow2.f32 %v1975_v1 }
 0x4b0   :  { %2011 = vadd.xlane.f32.xlu0 %v12612_v17  ;;  %v1985_v31 = vmul.f32 1.442695, %v1960_v7  ;;  %10328 = vpow2.f32 %v1989_v53  ;;  %v1995_v47 = vmul.f32 1.442695, %v1965_v6 }
 0x4b1   :  { %v1950_v21 = vpop.xlane.xlu1 %1949  ;;  %v1944_v26 = vpop.xlane.xlu0 %1943 }
 0x4b2   :  { %v1963_v27 = vsub.f32 %v12462_v2, %v1944_v26  ;;  %10330 = vpow2.f32 %v1985_v31  ;;  %v1966_v38 = vsub.f32 %v12465_v25, %v1950_v21 }
 0x4b3   :  { %v12619_v29 = vpop.eup %10312  ;;  %2516 = vmax.xlane.f32.xlu1 %v12615_v36  ;;  %10332 = vpow2.f32 %v1995_v47 }
 0x4b4   :  { %2013 = vadd.xlane.f32.xlu0 %v12619_v29  ;;  %v12624_v19 = vpop.eup %10314  ;;  %v1991_v56 = vmul.f32 1.442695, %v1963_v27  ;;  %v1997_v3 = vmul.f32 1.442695, %v1966_v38 }
 0x4b5   :  { %v1946_v45 = vpop.xlane.xlu1 %1945 }
 0x4b6   :  { %v1964_v14 = vsub.f32 %v12471_v55, %v1946_v45 }
 0x4b7   :  { %v12627_v62 = vpop.eup %10316  ;;  %1999 = vadd.xlane.f32.xlu1 %v12624_v19 }
 0x4b8   :  { %v1993_v40 = vmul.f32 1.442695, %v1964_v14  ;;  %2009 = vadd.xlane.f32.xlu0 %v12627_v62  ;;  %v12632_v28 = vpop.eup %10318 }
 0x4b9   :  { %v12636_v55 = vpop.eup %10320 }
 0x4ba   :  { %10334 = vpow2.f32 %v1993_v40  ;;  %v12639_v2 = vpop.eup %10322 }
 0x4bb   :  { %2005 = vadd.xlane.f32.xlu1 %v12632_v28  ;;  %10336 = vpow2.f32 %v1991_v56  ;;  %v12642_v11 = vpop.eup %10324 }
 0x4bc   :  { %2019 = vadd.xlane.f32.xlu0 %v12636_v55  ;;  %v12645_v25 = vpop.eup %10326  ;;  %10338 = vpow2.f32 %v1997_v3 }
 0x4bd   :  { %v12648_v1 = vpop.eup %10328 }
 0x4bf   :  { %2001 = vadd.xlane.f32.xlu1 %v12639_v2  ;;  %v1481_v37 = vpop.xlane.xlu0 %1480  ;;  %v12651_v7 = vpop.eup %10330 }
 0x4c0   :  { %2015 = vadd.xlane.f32.xlu0 %v12642_v11  ;;  %v12654_v6 = vpop.eup %10332 }
 0x4c1   :  { %15778 = vst [vmem:[#allocation108_spill] sm:$0xff] %v12654_v6 }
 0x4c3   :  { %2007 = vadd.xlane.f32.xlu1 %v12645_v25  ;;  %v1477_v21 = vpop.xlane.xlu0 %1476 }
 0x4c4   :  { %2021 = vadd.xlane.f32.xlu0 %v12648_v1 }
 0x4c7   :  { %v1483_v53 = vpop.xlane.xlu1 %1482  ;;  %2017 = vadd.xlane.f32.xlu1 %v12651_v7  ;;  %v12657_v26 = vpop.eup %10334 }
 0x4c8   :  { %10340 = vrcp.f32 %v1483_v53  ;;  %2027 = vadd.xlane.f32.xlu0 %v12654_v6  ;;  %15779 = vst [vmem:[#allocation109_spill] sm:$0xff] %v12657_v26  ;;  %v12660_v45 = vpop.eup %10336 }
 0x4c9   :  { %10342 = vrcp.f32 %v1477_v21  ;;  %15780 = vst [vmem:[#allocation110_spill] sm:$0xff] %v12660_v45  ;;  %v12663_v27 = vpop.eup %10338 }
 0x4ca   :  { %10344 = vrcp.f32 %v1481_v37  ;;  %15781 = vst [vmem:[#allocation111_spill] sm:$0xff] %v12663_v27 }
 0x4cb   :  { %v1479_v31 = vpop.xlane.xlu1 %1478  ;;  %2025 = vadd.xlane.f32.xlu1 %v12657_v26  ;;  %v1489_v14 = vpop.xlane.xlu0 %1488 }
 0x4cc   :  { %10346 = vrcp.f32 %v1479_v31  ;;  %2023 = vadd.xlane.f32.xlu0 %v12660_v45 }
 0x4cf   :  { %v1491_v47 = vpop.xlane.xlu1 %1490  ;;  %v1485_v40 = vpop.xlane.xlu0 %1484 }
 0x4d0   :  { %10348 = vrcp.f32 %v1491_v47  ;;  %2029 = vadd.xlane.f32.xlu0 %v12663_v27 }
 0x4d1   :  { %10350 = vrcp.f32 %v1485_v40 }
 0x4d2   :  { %10352 = vrcp.f32 %v1489_v14 }
 0x4d3   :  { %v1487_v38 = vpop.xlane.xlu1 %1486  ;;  %v1497_v56 = vpop.xlane.xlu0 %1496 }
 0x4d4   :  { %10354 = vrcp.f32 %v1487_v38 }
 0x4d5   :  { %v10341_v3 = vpop.eup %10340 }
 0x4d6   :  { %v10343_v37 = vpop.eup %10342  ;;  %v1527_v13 = vmul.f32 %v10341_v3, %v12490_v48 }
 0x4d7   :  { %v1499_v21 = vpop.xlane.xlu1 %1498  ;;  %v10345_v53 = vpop.eup %10344  ;;  %v1524_v41 = vmul.f32 %v10343_v37, %v12485_v20 }
 0x4d8   :  { %v1493_v31 = vpop.xlane.xlu0 %1492  ;;  %10356 = vrcp.f32 %v1499_v21  ;;  %v1526_v14 = vmul.f32 %v10345_v53, %v12480_v18 }
 0x4d9   :  { %v10347_v52 = vpop.eup %10346  ;;  %10358 = vrcp.f32 %v1493_v31 }
 0x4da   :  { %v1525_v47 = vmul.f32 %v10347_v52, %v12493_v4  ;;  %10360 = vrcp.f32 %v1497_v56  ;;  %v1541_v27 = vpack.c.bf16 %v1527_v13, %v1526_v14 }
 0x4db   :  { %v1495_v40 = vpop.xlane.xlu1 %1494 }
 0x4dc   :  { %10362 = vrcp.f32 %v1495_v40  ;;  %v2495_v38 = vpop.xlane.xlu0 %2494  ;;  %v1540_v60 = vpack.c.bf16 %v1525_v47, %v1524_v41 }
 0x4dd   :  { %v2524_v6 = vsub.f32 %v12523_v23, %v2495_v38  ;;  %v10349_v26 = vpop.eup %10348 }
 0x4de   :  { %9464 = vmatprep.mubr.bf16.mxu1 %v1540_v60  ;;  %v10351_v21 = vpop.eup %10350  ;;  %v1531_v41 = vmul.f32 %v10349_v26, %v12501_v35 }
 0x4df   :  { %v2542_v45 = vmul.f32 1.442695, %v2524_v6  ;;  %v2497_v48 = vpop.xlane.xlu1 %2496  ;;  %9465 = vmatmul.mubr.bf16.vlgmr.msra.gmra.mxu1 %v1541_v27  ;;  %v10353_v3 = vpop.eup %10352  ;;  %v1528_v60 = vmul.f32 %v10351_v21, %v12503_v61 }
 0x4e0   :  { %v2525_v20 = vsub.f32 %v12528_v9, %v2497_v48  ;;  %9513 = vmatpush3.bf16.msra.mxu1 %v12359_v32  ;;  %v12673_v52 = vpop.xlane.xlu0 %1504  ;;  %v1530_v6 = vmul.f32 %v10353_v3, %v12496_v16  ;;  %v15786_v48 = vld [vmem:[#allocation98_spill] sm:$0xff]  ;;  %v15787_v3 = vld [vmem:[#allocation92_spill] sm:$0xff] }
 0x4e1   :  { %v10355_v18 = vpop.eup %10354  ;;  %10364 = vpow2.f32 %v2542_v45  ;;  %9514 = vmatprep.subr.bf16.mxu1 %v12438_v49 }
 0x4e2   :  { %v2544_v13 = vmul.f32 1.442695, %v2525_v20  ;;  %v1529_v4 = vmul.f32 %v10355_v18, %v12507_v63  ;;  %v1543_v45 = vpack.c.bf16 %v1531_v41, %v1530_v6  ;;  %v15788_v20 = vld [vmem:[#allocation27_spill] sm:$0xff]  ;;  %v15789_v41 = vld [vmem:[#allocation29_spill] sm:$0xff] }
 0x4e3   :  { %v1507_v23 = vpop.xlane.xlu1 %1506 }
 0x4e4   :  { %10366 = vpow2.f32 %v2544_v13  ;;  %9515 = vmatpush3.bf16.msra.mxu1 %v12438_v49  ;;  %v2491_v32 = vpop.xlane.xlu0 %2490  ;;  %v1542_v9 = vpack.c.bf16 %v1529_v4, %v1528_v60  ;;  %v15782_v49 = vld [vmem:[#allocation93_spill] sm:$0xff] }
 0x4e5   :  { %v2522_v27 = vsub.f32 %v12537_v57, %v2491_v32  ;;  %9516 = vmatprep.subr.bf16.mxu1 %v12370_v10  ;;  %v10357_v56 = vpop.eup %10356 }
 0x4e6   :  { %9468 = vmatprep.mubr.bf16.mxu1 %v1542_v9  ;;  %v10359_v35 = vpop.eup %10358  ;;  %v1535_v57 = vmul.f32 %v10357_v56, %v12514_v33 }
 0x4e7   :  { %v2538_v26 = vmul.f32 1.442695, %v2522_v27  ;;  %v2493_v61 = vpop.xlane.xlu1 %2492  ;;  %9469 = vmatmul.mubr.bf16.gmra.mxu1 %v1543_v45  ;;  %v10361_v63 = vpop.eup %10360  ;;  %v1532_v31 = vmul.f32 %v10359_v35, %v12516_v58  ;;  %v15784_v58 = vld [vmem:[#allocation95_spill] sm:$0xff] }
 0x4e8   :  { %v2523_v37 = vsub.f32 %v12542_v50, %v2493_v61  ;;  %9517 = vmatpush3.bf16.msra.mxu1 %v12370_v10  ;;  %v1534_v40 = vmul.f32 %v10361_v63, %v12510_v22  ;;  %v15783_v50 = vld [vmem:[#allocation90_spill] sm:$0xff]  ;;  %v15785_v22 = vld [vmem:[#allocation91_spill] sm:$0xff]  ;;  %v1501_v18 = vpop.xlane.xlu0 %1500 }
 0x4e9   :  { %v10363_v16 = vpop.eup %10362  ;;  %10368 = vpow2.f32 %v2538_v26  ;;  %9518 = vmatprep.subr.bf16.mxu1 %v15782_v49 }
 0x4ea   :  { %v2540_v53 = vmul.f32 1.442695, %v2523_v37  ;;  %v1533_v47 = vmul.f32 %v10363_v16, %v12520_v51  ;;  %v1545_v10 = vpack.c.bf16 %v1535_v57, %v1534_v40 }
 0x4eb   :  { %v12716_v60 = vpop.permute.xlu1 %2900 }
 0x4ec   :  { %10370 = vpow2.f32 %v2540_v53  ;;  %9519 = vmatpush3.bf16.msra.mxu1 %v15782_v49  ;;  %v1544_v14 = vpack.c.bf16 %v1533_v47, %v1532_v31  ;;  %v2503_v13 = vpop.xlane.xlu0 %2502 }
 0x4ed   :  { %9520 = vmatprep.subr.bf16.mxu1 %v15783_v50  ;;  %v2528_v4 = vsub.f32 %v12549_v0, %v2503_v13  ;;  %10372 = vrcp.f32 %v1507_v23 }
 0x4ee   :  { %v12692_v38 = vpop.eup %10364  ;;  %9472 = vmatprep.mubr.bf16.mxu1 %v1544_v14  ;;  %10374 = vrcp.f32 %v1501_v18 }
 0x4ef   :  { %2574 = vadd.xlane.f32.xlu0 %v12692_v38  ;;  %9473 = vmatmul.mubr.bf16.gmra.mxu1 %v1545_v10  ;;  %10376 = vrcp.f32 %v12673_v52  ;;  %v2550_v9 = vmul.f32 1.442695, %v2528_v4 }
 0x4f0   :  { %9521 = vmatpush3.bf16.msra.mxu1 %v15783_v50  ;;  %v2499_v6 = vpop.xlane.xlu0 %2498  ;;  %v15790_v50 = vld [vmem:[#allocation107_spill] sm:$0xff] }
 0x4f1   :  { %v12696_v33 = vpop.eup %10366  ;;  %9522 = vmatprep.subr.bf16.mxu1 %v15784_v58  ;;  %v2526_v27 = vsub.f32 %v12553_v5, %v2499_v6 }
 0x4f3   :  { %2576 = vadd.xlane.f32.xlu0 %v12696_v33  ;;  %v2546_v35 = vmul.f32 1.442695, %v2526_v27 }
 0x4f4   :  { %9523 = vmatpush3.bf16.msra.mxu1 %v15784_v58  ;;  %v2511_v45 = vpop.xlane.xlu0 %2510 }
 0x4f5   :  { %9524 = vmatprep.subr.bf16.mxu1 %v15785_v22  ;;  %v2532_v0 = vsub.f32 %v12557_v24, %v2511_v45 }
 0x4f6   :  { %v12702_v51 = vpop.eup %10368 }
 0x4f7   :  { %2570 = vadd.xlane.f32.xlu1 %v12702_v51  ;;  %v2558_v53 = vmul.f32 1.442695, %v2532_v0 }
 0x4f8   :  { %9525 = vmatpush3.bf16.msra.mxu1 %v15785_v22  ;;  %v2507_v37 = vpop.xlane.xlu0 %2506 }
 0x4f9   :  { %v12706_v21 = vpop.eup %10370  ;;  %9526 = vmatprep.subr.bf16.mxu1 %v15786_v48  ;;  %v2530_v31 = vsub.f32 %v12561_v12, %v2507_v37 }
 0x4fa   :  { %2572 = vadd.xlane.f32.xlu0 %v12706_v21  ;;  %v10373_v52 = vpop.eup %10372 }
 0x4fb   :  { %v10375_v49 = vpop.eup %10374  ;;  %v2554_v58 = vmul.f32 1.442695, %v2530_v31 }
 0x4fc   :  { %9527 = vmatpush3.bf16.msra.mxu1 %v15786_v48  ;;  %v10377_v57 = vpop.eup %10376  ;;  %v1536_v40 = vmul.f32 %v10375_v49, %v12544_v59 }
 0x4fd   :  { %9576 = vmatprep.subr.bf16.mxu1 %v15787_v3  ;;  %v1538_v10 = vmul.f32 %v10377_v57, %v15790_v50 }
 0x508   :  { %2896 = vrot.lane.b32.xlu1 %v15788_v20, %s11201_s14 }
 0x510   :  { %2898 = vrot.lane.b32.xlu0 %v15789_v41, %s11201_s14 }
 0x51c   :  { %v1503_v32 = vpop.xlane.xlu1 %1502 }
 0x51d   :  { %10378 = vrcp.f32 %v1503_v32 }
 0x51e   :  { %10380 = vpow2.f32 %v2550_v9 }
 0x51f   :  { %10382 = vpow2.f32 %v2546_v35 }
 0x520   :  { %v2505_v56 = vpop.xlane.xlu1 %2504 }
 0x521   :  { %v2529_v26 = vsub.f32 %v12571_v8, %v2505_v56  ;;  %v1539_v8 = vmul.f32 %v10373_v52, %v12534_v34 }
 0x523   :  { %v2552_v61 = vmul.f32 1.442695, %v2529_v26  ;;  %v1547_v20 = vpack.c.bf16 %v1539_v8, %v1538_v10 }
 0x524   :  { %v2501_v63 = vpop.xlane.xlu1 %2500 }
 0x525   :  { %v2527_v23 = vsub.f32 %v12576_v30, %v2501_v63  ;;  %10384 = vpow2.f32 %v2552_v61 }
 0x527   :  { %v2548_v16 = vmul.f32 1.442695, %v2527_v23 }
 0x528   :  { %v2513_v5 = vpop.xlane.xlu1 %2512 }
 0x529   :  { %10386 = vpow2.f32 %v2548_v16  ;;  %v2533_v30 = vsub.f32 %v12580_v42, %v2513_v5 }
 0x52a   :  { %v10379_v47 = vpop.eup %10378  ;;  %10388 = vpow2.f32 %v2558_v53 }
 0x52b   :  { %v1537_v24 = vmul.f32 %v10379_v47, %v12567_v46  ;;  %v12730_v48 = vpop.eup %10380  ;;  %v2560_v12 = vmul.f32 1.442695, %v2533_v30  ;;  %10390 = vpow2.f32 %v2554_v58 }
 0x52c   :  { %v2509_v14 = vpop.xlane.xlu1 %2508  ;;  %v12735_v42 = vpop.eup %10382 }
 0x52d   :  { %v1546_v22 = vpack.c.bf16 %v1537_v24, %v1536_v40  ;;  %v2531_v34 = vsub.f32 %v12585_v15, %v2509_v14  ;;  %10392 = vpow2.f32 %v2560_v12 }
 0x52f   :  { %9476 = vmatprep.mubr.bf16.mxu1 %v1546_v22  ;;  %2582 = vadd.xlane.f32.xlu0 %v12730_v48  ;;  %v2556_v41 = vmul.f32 1.442695, %v2531_v34 }
 0x530   :  { %v2519_v59 = vpop.xlane.xlu1 %2518  ;;  %9477 = vmatmul.mubr.bf16.gmra.mxu1 %v1547_v20 }
 0x531   :  { %v2536_v46 = vsub.f32 %v12591_v39, %v2519_v59  ;;  %v2004_v15 = vpop.xlane.xlu0 %2003 }
 0x532   :  { %v12738_v4 = vpop.eup %10384 }
 0x533   :  { %v2566_v18 = vmul.f32 1.442695, %v2536_v46  ;;  %2578 = vadd.xlane.f32.xlu0 %v12735_v42 }
 0x534   :  { %v2515_v13 = vpop.xlane.xlu1 %2514 }
 0x535   :  { %10394 = vpow2.f32 %v2566_v18  ;;  %v2534_v6 = vsub.f32 %v12601_v43, %v2515_v13 }
 0x536   :  { %v12741_v32 = vpop.eup %10386  ;;  %10396 = vpow2.f32 %v2556_v41 }
 0x537   :  { %v2562_v9 = vmul.f32 1.442695, %v2534_v6  ;;  %2580 = vadd.xlane.f32.xlu1 %v12741_v32  ;;  %2584 = vadd.xlane.f32.xlu0 %v12738_v4  ;;  %v12746_v45 = vpop.eup %10388 }
 0x538   :  { %v2521_v39 = vpop.xlane.xlu1 %2520  ;;  %v12750_v61 = vpop.eup %10390 }
 0x539   :  { %10398 = vpow2.f32 %v2562_v9  ;;  %v2537_v27 = vsub.f32 %v12607_v54, %v2521_v39  ;;  %v2012_v56 = vpop.xlane.xlu0 %2011 }
 0x53a   :  { %v12753_v37 = vpop.eup %10392 }
 0x53b   :  { %v2568_v35 = vmul.f32 1.442695, %v2537_v27  ;;  %2590 = vadd.xlane.f32.xlu1 %v12746_v45 }
 0x53c   :  { %v2517_v43 = vpop.xlane.xlu1 %2516 }
 0x53d   :  { %10400 = vpow2.f32 %v2568_v35  ;;  %v2535_v26 = vsub.f32 %v12615_v36, %v2517_v43  ;;  %v2014_v63 = vpop.xlane.xlu0 %2013  ;;  %v15792_v43 = vld [vmem:[#allocation28_spill] sm:$0xff] }
 0x53f   :  { %v2564_v0 = vmul.f32 1.442695, %v2535_v26  ;;  %2586 = vadd.xlane.f32.xlu1 %v12750_v61  ;;  %v15794_v26 = vld [vmem:[#allocation100_spill] sm:$0xff] }
 0x540   :  { %v2000_v23 = vpop.xlane.xlu1 %1999 }
 0x541   :  { %10402 = vpow2.f32 %v2564_v0  ;;  %v2010_v52 = vpop.xlane.xlu0 %2009 }
 0x542   :  { %v12755_v54 = vpop.eup %10394 }
 0x543   :  { %2598 = vadd.xlane.f32.xlu0 %v12755_v54  ;;  %2592 = vadd.xlane.f32.xlu1 %v12753_v37  ;;  %v12759_v49 = vpop.eup %10396 }
 0x544   :  { %v2006_v16 = vpop.xlane.xlu1 %2005 }
 0x545   :  { %10404 = vrcp.f32 %v2006_v16  ;;  %v2020_v5 = vpop.xlane.xlu0 %2019 }
 0x546   :  { %v12761_v36 = vpop.eup %10398  ;;  %10406 = vrcp.f32 %v2000_v23 }
 0x547   :  { %2594 = vadd.xlane.f32.xlu0 %v12761_v36  ;;  %2588 = vadd.xlane.f32.xlu1 %v12759_v49  ;;  %10408 = vrcp.f32 %v2004_v15 }
 0x548   :  { %v2002_v57 = vpop.xlane.xlu1 %2001 }
 0x549   :  { %10410 = vrcp.f32 %v2002_v57  ;;  %v2016_v31 = vpop.xlane.xlu0 %2015 }
 0x54a   :  { %v12765_v53 = vpop.eup %10400  ;;  %10412 = vrcp.f32 %v2010_v52  ;;  %v15795_v52 = vld [vmem:[#allocation23_spill] sm:$0xff] }
 0x54b   :  { %2600 = vadd.xlane.f32.xlu0 %v12765_v53 }
 0x54c   :  { %v2008_v47 = vpop.xlane.xlu1 %2007 }
 0x54d   :  { %10414 = vrcp.f32 %v2008_v47  ;;  %v2022_v40 = vpop.xlane.xlu0 %2021 }
 0x54e   :  { %v12768_v8 = vpop.eup %10402  ;;  %10416 = vrcp.f32 %v2014_v63 }
 0x54f   :  { %2596 = vadd.xlane.f32.xlu1 %v12768_v8  ;;  %10418 = vrcp.f32 %v2012_v56  ;;  %v15791_v56 = vld [vmem:[#allocation106_spill] sm:$0xff] }
 0x550   :  { %v2018_v24 = vpop.xlane.xlu1 %2017 }
 0x551   :  { %10420 = vrcp.f32 %v2018_v24  ;;  %v2028_v30 = vpop.xlane.xlu0 %2027 }
 0x552   :  { %10422 = vrcp.f32 %v2016_v31  ;;  %v10405_v14 = vpop.eup %10404 }
 0x553   :  { %v10407_v50 = vpop.eup %10406  ;;  %10424 = vrcp.f32 %v2022_v40  ;;  %v2050_v20 = vmul.f32 %v10405_v14, %v12632_v28  ;;  %v15799_v40 = vld [vmem:[#allocation110_spill] sm:$0xff]  ;;  %v15801_v14 = vld [vmem:[#allocation96_spill] sm:$0xff] }
 0x554   :  { %v10409_v10 = vpop.eup %10408  ;;  %10426 = vrcp.f32 %v2020_v5  ;;  %v2026_v12 = vpop.xlane.xlu1 %2025  ;;  %v2047_v34 = vmul.f32 %v10407_v50, %v12624_v19  ;;  %v15797_v5 = vld [vmem:[#allocation94_spill] sm:$0xff] }
 0x555   :  { %v2024_v22 = vpop.xlane.xlu0 %2023  ;;  %v2049_v18 = vmul.f32 %v10409_v10, %v12595_v44  ;;  %v15802_v10 = vld [vmem:[#allocation109_spill] sm:$0xff] }
 0x556   :  { %v10411_v58 = vpop.eup %10410  ;;  %10428 = vrcp.f32 %v2024_v22 }
 0x557   :  { %v2048_v59 = vmul.f32 %v10411_v58, %v12639_v2  ;;  %v10413_v46 = vpop.eup %10412  ;;  %10430 = vrcp.f32 %v2026_v12  ;;  %v2064_v6 = vpack.c.bf16 %v2050_v20, %v2049_v18  ;;  %v15807_v18 = vld [vmem:[#allocation34_spill] sm:$0xff] }
 0x558   :  { %v2052_v28 = vmul.f32 %v10413_v46, %v12627_v62 }
 0x559   :  { %v2063_v41 = vpack.c.bf16 %v2048_v59, %v2047_v34  ;;  %v2030_v9 = vpop.xlane.xlu0 %2029  ;;  %v15805_v34 = vld [vmem:[#allocation99_spill] sm:$0xff] }
 0x55a   :  { %v10415_v13 = vpop.eup %10414  ;;  %10432 = vrcp.f32 %v2030_v9  ;;  %v15806_v59 = vld [vmem:[#allocation111_spill] sm:$0xff] }
 0x55b   :  { %v10417_v15 = vpop.eup %10416  ;;  %9528 = vmatprep.mubr.bf16.mxu1 %v2063_v41  ;;  %v2051_v39 = vmul.f32 %v10415_v13, %v12645_v25  ;;  %10434 = vrcp.f32 %v2028_v30  ;;  %v15800_v30 = vld [vmem:[#allocation31_spill] sm:$0xff]  ;;  %v15808_v41 = vld [vmem:[#allocation108_spill] sm:$0xff] }
 0x55c   :  { %9529 = vmatmul.mubr.bf16.vlgmr.msra.gmra.mxu1 %v2064_v6  ;;  %v10419_v27 = vpop.eup %10418  ;;  %v2054_v44 = vmul.f32 %v10417_v15, %v12619_v29  ;;  %v15809_v6 = vld [vmem:[#allocation33_spill] sm:$0xff]  ;;  %v15810_v15 = vld [vmem:[#allocation102_spill] sm:$0xff] }
 0x55d   :  { %9577 = vmatpush3.bf16.msra.mxu1 %v15787_v3  ;;  %v2065_v19 = vpack.c.bf16 %v2052_v28, %v2051_v39  ;;  %v2053_v25 = vmul.f32 %v10419_v27, %v12612_v17  ;;  %v15793_v3 = vld [vmem:[#allocation30_spill] sm:$0xff]  ;;  %v15812_v28 = vld [vmem:[#allocation101_spill] sm:$0xff] }
 0x55e   :  { %v10421_v2 = vpop.eup %10420  ;;  %9578 = vmatprep.subr.bf16.mxu1 %v15791_v56  ;;  %v15811_v39 = vld [vmem:[#allocation62_spill] sm:$0xff] }
 0x55f   :  { %v10423_v35 = vpop.eup %10422  ;;  %9532 = vmatprep.mubr.bf16.mxu1 %v2065_v19  ;;  %v2056_v62 = vmul.f32 %v10421_v2, %v12651_v7  ;;  %v2066_v63 = vpack.c.bf16 %v2054_v44, %v2053_v25  ;;  %v15796_v7 = vld [vmem:[#allocation22_spill] sm:$0xff]  ;;  %v15813_v19 = vld [vmem:[#allocation105_spill] sm:$0xff] }
 0x560   :  { %2892 = vrot.lane.b32.xlu1 %v15792_v43, %s11201_s14  ;;  %v2055_v29 = vmul.f32 %v10423_v35, %v12642_v11  ;;  %v10425_v0 = vpop.eup %10424  ;;  %v15798_v11 = vld [vmem:[#allocation24_spill] sm:$0xff] }
 0x561   :  { %9579 = vmatpush3.bf16.msra.mxu1 %v15791_v56  ;;  %2894 = vrot.lane.b32.xlu0 %v15793_v3, %s11201_s14  ;;  %v10427_v23 = vpop.eup %10426  ;;  %v2058_v57 = vmul.f32 %v10425_v0, %v12648_v1  ;;  %v15803_v1 = vld [vmem:[#allocation32_spill] sm:$0xff] }
 0x562   :  { %9580 = vmatprep.subr.bf16.mxu1 %v15794_v26  ;;  %v2067_v16 = vpack.c.bf16 %v2056_v62, %v2055_v29  ;;  %v2057_v47 = vmul.f32 %v10427_v23, %v12636_v55  ;;  %v15804_v55 = vld [vmem:[#allocation25_spill] sm:$0xff] }
 0x563   :  { %v10429_v17 = vpop.eup %10428 }
 0x564   :  { %2878 = vrot.lane.b32.xlu1 %v15795_v52, %s11201_s14  ;;  %9533 = vmatmul.mubr.bf16.gmra.mxu1 %v2066_v63  ;;  %v10431_v31 = vpop.eup %10430  ;;  %v2059_v24 = vmul.f32 %v10429_v17, %v15799_v40  ;;  %v2068_v50 = vpack.c.bf16 %v2058_v57, %v2057_v47  ;;  %v2954_v52 = vsel %vm1250_vm0, %v15813_v19, 0 }
 0x565   :  { %9581 = vmatpush3.bf16.msra.mxu1 %v15794_v26  ;;  %2876 = vrot.lane.b32.xlu0 %v15796_v7, %s11201_s14  ;;  %v2060_v58 = vmul.f32 %v10431_v31, %v15802_v10 }
 0x566   :  { %9536 = vmatprep.mubr.bf16.mxu1 %v2067_v16  ;;  %9582 = vmatprep.subr.bf16.mxu1 %v15797_v5  ;;  %v15814_v16 = vld [vmem:[#allocation103_spill] sm:$0xff] }
 0x567   :  { %v10433_v22 = vpop.eup %10432  ;;  %v2069_v20 = vpack.c.bf16 %v2060_v58, %v2059_v24 }
 0x568   :  { %2882 = vrot.lane.b32.xlu1 %v15798_v11, %s11201_s14  ;;  %v10435_v12 = vpop.eup %10434  ;;  %v2062_v46 = vmul.f32 %v10433_v22, %v15806_v59 }
 0x569   :  { %9583 = vmatpush3.bf16.msra.mxu1 %v15797_v5  ;;  %2880 = vrot.lane.b32.xlu0 %v15800_v30, %s11201_s14  ;;  %v2061_v13 = vmul.f32 %v10435_v12, %v15808_v41 }
 0x56a   :  { %9584 = vmatprep.subr.bf16.mxu1 %v15801_v14 }
 0x56b   :  { %v2070_v9 = vpack.c.bf16 %v2062_v46, %v2061_v13 }
 0x56c   :  { %2886 = vrot.lane.b32.xlu1 %v15803_v1, %s11201_s14  ;;  %9537 = vmatmul.mubr.bf16.gmra.mxu1 %v2068_v50 }
 0x56d   :  { %9585 = vmatpush3.bf16.msra.mxu1 %v15801_v14  ;;  %2884 = vrot.lane.b32.xlu0 %v15804_v55, %s11201_s14 }
 0x56e   :  { %9540 = vmatprep.mubr.bf16.mxu1 %v2069_v20  ;;  %9586 = vmatprep.subr.bf16.mxu1 %v15805_v34  ;;  %v2945_v20 = vsel %vm1250_vm0, %v12716_v60, 0 }
 0x570   :  { %2890 = vrot.lane.b32.xlu1 %v15807_v18, %s11201_s14 }
 0x571   :  { %9587 = vmatpush3.bf16.msra.mxu1 %v15805_v34  ;;  %2888 = vrot.lane.b32.xlu0 %v15809_v6, %s11201_s14 }
 0x572   :  { %9588 = vmatprep.subr.bf16.mxu1 %v15810_v15 }
 0x574   :  { %3217 = vrot.lane.b32.xlu1 %v15811_v39, %s11201_s14  ;;  %9541 = vmatmul.mubr.bf16.gmra.mxu1 %v2070_v9 }
 0x575   :  { %9589 = vmatpush3.bf16.msra.mxu1 %v15810_v15 }
 0x576   :  { %9590 = vmatprep.subr.bf16.mxu1 %v15812_v28 }
 0x578   :  { %v2575_v27 = vpop.xlane.xlu0 %2574 }
 0x579   :  { %9591 = vmatpush3.bf16.msra.mxu1 %v15812_v28 }
 0x57a   :  { %10016 = vmatprep.subr.msk.bf16.mxu1 %vm1250_vm0, %v15813_v19 }
 0x57c   :  { %v2577_v2 = vpop.xlane.xlu0 %2576 }
 0x57d   :  { %10436 = vrcp.f32 %v2577_v2 }
 0x580   :  { %v2571_v56 = vpop.xlane.xlu1 %2570 }
 0x581   :  { %10438 = vrcp.f32 %v2571_v56 }
 0x582   :  { %10440 = vrcp.f32 %v2575_v27 }
 0x583   :  { %v2573_v44 = vpop.xlane.xlu0 %2572 }
 0x584   :  { %10442 = vrcp.f32 %v2573_v44  ;;  %v2897_v6 = vpop.permute.xlu1 %2896 }
 0x585   :  { %v2939_v39 = vsel %vm1250_vm0, %v2897_v6, 0 }
 0x587   :  { %v2899_v12 = vpop.permute.xlu0 %2898 }
 0x58a   :  { %v10437_v35 = vpop.eup %10436 }
 0x58b   :  { %v2621_v3 = vmul.f32 %v10437_v35, %v12696_v33  ;;  %v2951_v33 = vsel %vm1250_vm0, %v15814_v16, 0 }
 0x58e   :  { %v10439_v43 = vpop.eup %10438 }
 0x58f   :  { %v10441_v25 = vpop.eup %10440  ;;  %v2618_v26 = vmul.f32 %v10439_v43, %v12702_v51 }
 0x590   :  { %v2620_v29 = vmul.f32 %v10441_v25, %v12692_v38 }
 0x591   :  { %v10443_v62 = vpop.eup %10442 }
 0x592   :  { %v2619_v63 = vmul.f32 %v10443_v62, %v12706_v21  ;;  %v2635_v23 = vpack.c.bf16 %v2621_v3, %v2620_v29  ;;  %v15815_v21 = vld [vmem:[#allocation104_spill] sm:$0xff] }
 0x593   :  { %v2948_v40 = vsel %vm1250_vm0, %v15815_v21, 0 }
 0x594   :  { %v2634_v0 = vpack.c.bf16 %v2619_v63, %v2618_v26 }
 0x596   :  { %9592 = vmatprep.mubr.bf16.mxu1 %v2634_v0 }
 0x597   :  { %9593 = vmatmul.mubr.bf16.vlgmr.msra.gmra.mxu1 %v2635_v23 }
 0x598   :  { %9609 = vmatpush3.bf16.xpose.msra.mxu1 %v2954_v52 }
 0x599   :  { %10017 = vmatprep.subr.msk.bf16.mxu1 %vm1250_vm0, %v15814_v16 }
 0x59f   :  { %v9466_v17 = vpop.f32.mrf.mxu1 }
 0x5a0   :  { %v8714_v51 = vpack.c.bf16 %v9466_v17, %v9466_v17  ;;  %9611 = vmatpush3.bf16.xpose.msra.mxu1 %v2951_v33 }
 0x5a1   :  { %10018 = vmatprep.subr.msk.bf16.mxu1 %vm1250_vm0, %v15815_v21  ;;  %v1582_v38 = vpop.f32.mrf.mxu1 }
 0x5a2   :  { %1712 = vst.msk [vmem:[#allocation2 + $0x8] sm:$0xf] %vm1709_vm2, %v8714_v51  ;;  %v8712_v7 = vpack.c.bf16 %v1582_v38, %v1582_v38 }
 0x5a3   :  { %v9467_v5 = vpop.f32.mrf.mxu1 }
 0x5a4   :  { %1710 = vst.msk [vmem:[#allocation2] sm:$0xf] %vm1709_vm2, %v8712_v7  ;;  %v8715_v57 = vpack.c.bf16 %v9467_v5, %v9467_v5 }
 0x5a5   :  { %v1585_v31 = vpop.f32.mrf.mxu1 }
 0x5a6   :  { %1713 = vst.msk [vmem:[#allocation2 + $0xc] sm:$0xf] %vm1709_vm2, %v8715_v57  ;;  %v8713_v11 = vpack.c.bf16 %v1585_v31, %v1585_v31 }
 0x5a7   :  { %v9470_v47 = vpop.f32.mrf.mxu1 }
 0x5a8   :  { %1711 = vst.msk [vmem:[#allocation2 + $0x4] sm:$0xf] %vm1709_vm2, %v8713_v11  ;;  %v8718_v24 = vpack.c.bf16 %v9470_v47, %v9470_v47  ;;  %9613 = vmatpush3.bf16.xpose.msra.mxu1 %v2948_v40 }
 0x5a9   :  { %10019 = vmatprep.subr.msk.bf16.mxu1 %vm1250_vm0, %v12716_v60  ;;  %v1598_v30 = vpop.f32.mrf.mxu1  ;;  %v2942_v60 = vsel %vm1250_vm0, %v2899_v12, 0 }
 0x5aa   :  { %1716 = vst.msk [vmem:[#allocation2 + $0x18] sm:$0xf] %vm1709_vm2, %v8718_v24  ;;  %v8716_v14 = vpack.c.bf16 %v1598_v30, %v1598_v30  ;;  %v15816_v30 = vld [vmem:[#allocation72_spill] sm:$0xff] }
 0x5ab   :  { %v9471_v50 = vpop.f32.mrf.mxu1 }
 0x5ac   :  { %1714 = vst.msk [vmem:[#allocation2 + $0x10] sm:$0xf] %vm1709_vm2, %v8716_v14  ;;  %v8719_v10 = vpack.c.bf16 %v9471_v50, %v9471_v50 }
 0x5ad   :  { %v1601_v58 = vpop.f32.mrf.mxu1 }
 0x5ae   :  { %1717 = vst.msk [vmem:[#allocation2 + $0x1c] sm:$0xf] %vm1709_vm2, %v8719_v10  ;;  %v8717_v22 = vpack.c.bf16 %v1601_v58, %v1601_v58 }
 0x5af   :  { %v9474_v1 = vpop.f32.mrf.mxu1 }
 0x5b0   :  { %1715 = vst.msk [vmem:[#allocation2 + $0x14] sm:$0xf] %vm1709_vm2, %v8717_v22  ;;  %v8722_v55 = vpack.c.bf16 %v9474_v1, %v9474_v1  ;;  %9615 = vmatpush3.bf16.xpose.msra.mxu1 %v2945_v20 }
 0x5b1   :  { %10020 = vmatprep.subr.msk.bf16.mxu1 %vm1250_vm0, %v2899_v12  ;;  %v1614_v34 = vpop.f32.mrf.mxu1 }
 0x5b2   :  { %1720 = vst.msk [vmem:[#allocation2 + $0x28] sm:$0xf] %vm1709_vm2, %v8722_v55  ;;  %v8720_v59 = vpack.c.bf16 %v1614_v34, %v1614_v34 }
 0x5b3   :  { %v9475_v46 = vpop.f32.mrf.mxu1 }
 0x5b4   :  { %1718 = vst.msk [vmem:[#allocation2 + $0x20] sm:$0xf] %vm1709_vm2, %v8720_v59  ;;  %v8723_v18 = vpack.c.bf16 %v9475_v46, %v9475_v46 }
 0x5b5   :  { %v1617_v41 = vpop.f32.mrf.mxu1 }
 0x5b6   :  { %1721 = vst.msk [vmem:[#allocation2 + $0x2c] sm:$0xf] %vm1709_vm2, %v8723_v18  ;;  %v8721_v13 = vpack.c.bf16 %v1617_v41, %v1617_v41  ;;  %v15818_v41 = vld [vmem:[#allocation70_spill] sm:$0xff] }
 0x5b8   :  { %1719 = vst.msk [vmem:[#allocation2 + $0x24] sm:$0xf] %vm1709_vm2, %v8721_v13  ;;  %9617 = vmatpush3.bf16.xpose.msra.mxu1 %v2942_v60  ;;  %v2583_v15 = vpop.xlane.xlu0 %2582 }
 0x5b9   :  { %10021 = vmatprep.subr.msk.bf16.mxu1 %vm1250_vm0, %v2897_v6  ;;  %v15819_v6 = vld [vmem:[#allocation71_spill] sm:$0xff] }
 0x5bc   :  { %v2579_v9 = vpop.xlane.xlu0 %2578 }
 0x5bd   :  { %10444 = vrcp.f32 %v2579_v9 }
 0x5be   :  { %10446 = vrcp.f32 %v2583_v15  ;;  %v15820_v15 = vld [vmem:[#allocation68_spill] sm:$0xff] }
 0x5c0   :  { %9619 = vmatpush3.bf16.xpose.msra.mxu1 %v2939_v39  ;;  %v2581_v28 = vpop.xlane.xlu1 %2580  ;;  %v2585_v27 = vpop.xlane.xlu0 %2584 }
 0x5c1   :  { %10448 = vrcp.f32 %v2581_v28  ;;  %v15821_v28 = vld [vmem:[#allocation69_spill] sm:$0xff] }
 0x5c2   :  { %10450 = vrcp.f32 %v2585_v27  ;;  %v15822_v27 = vld [vmem:[#allocation64_spill] sm:$0xff] }
 0x5c4   :  { %v2591_v19 = vpop.xlane.xlu1 %2590 }
 0x5c8   :  { %v2587_v2 = vpop.xlane.xlu1 %2586 }
 0x5ca   :  { %v10445_v56 = vpop.eup %10444 }
 0x5cb   :  { %v10447_v43 = vpop.eup %10446  ;;  %v2622_v3 = vmul.f32 %v10445_v56, %v12735_v42 }
 0x5cc   :  { %v2593_v44 = vpop.xlane.xlu1 %2592  ;;  %v2599_v35 = vpop.xlane.xlu0 %2598  ;;  %v2624_v0 = vmul.f32 %v10447_v43, %v12730_v48 }
 0x5cd   :  { %10452 = vrcp.f32 %v2593_v44 }
 0x5ce   :  { %v10449_v25 = vpop.eup %10448  ;;  %10454 = vrcp.f32 %v2587_v2  ;;  %v15823_v2 = vld [vmem:[#allocation66_spill] sm:$0xff] }
 0x5cf   :  { %v10451_v62 = vpop.eup %10450  ;;  %v2623_v26 = vmul.f32 %v10449_v25, %v12741_v32  ;;  %10456 = vrcp.f32 %v2591_v19 }
 0x5d0   :  { %v2589_v63 = vpop.xlane.xlu1 %2588  ;;  %v2595_v29 = vpop.xlane.xlu0 %2594  ;;  %v2625_v23 = vmul.f32 %v10451_v62, %v12738_v4 }
 0x5d1   :  { %10458 = vrcp.f32 %v2589_v63  ;;  %v2636_v52 = vpack.c.bf16 %v2623_v26, %v2622_v3 }
 0x5d2   :  { %v2637_v16 = vpack.c.bf16 %v2625_v23, %v2624_v0 }
 0x5d3   :  { %9596 = vmatprep.mubr.bf16.mxu1 %v2636_v52 }
 0x5d4   :  { %9597 = vmatmul.mubr.bf16.gmra.mxu1 %v2637_v16  ;;  %v2601_v17 = vpop.xlane.xlu0 %2600 }
 0x5d5   :  { %10460 = vrcp.f32 %v2601_v17 }
 0x5d6   :  { %10462 = vrcp.f32 %v2595_v29 }
 0x5d7   :  { %10464 = vrcp.f32 %v2599_v35 }
 0x5d8   :  { %v2597_v33 = vpop.xlane.xlu1 %2596  ;;  %v2895_v42 = vpop.permute.xlu0 %2894 }
 0x5d9   :  { %10466 = vrcp.f32 %v2597_v33  ;;  %10022 = vmatprep.subr.msk.bf16.mxu1 %vm1250_vm0, %v2895_v42  ;;  %v2936_v32 = vsel %vm1250_vm0, %v2895_v42, 0 }
 0x5da   :  { %9621 = vmatpush3.bf16.xpose.msra.mxu1 %v2936_v32  ;;  %v10453_v48 = vpop.eup %10452 }
 0x5db   :  { %v10455_v51 = vpop.eup %10454  ;;  %v2629_v7 = vmul.f32 %v10453_v48, %v12753_v37 }
 0x5dc   :  { %v2893_v4 = vpop.permute.xlu1 %2892  ;;  %v10457_v21 = vpop.eup %10456  ;;  %v2626_v5 = vmul.f32 %v10455_v51, %v12750_v61 }
 0x5dd   :  { %10023 = vmatprep.subr.msk.bf16.mxu1 %vm1250_vm0, %v2893_v4  ;;  %v2628_v31 = vmul.f32 %v10457_v21, %v12746_v45  ;;  %v2933_v11 = vsel %vm1250_vm0, %v2893_v4, 0  ;;  %v2877_v1 = vpop.permute.xlu0 %2876 }
 0x5de   :  { %v10459_v38 = vpop.eup %10458 }
 0x5df   :  { %v2627_v57 = vmul.f32 %v10459_v38, %v12759_v49  ;;  %v2639_v40 = vpack.c.bf16 %v2629_v7, %v2628_v31 }
 0x5e0   :  { %v2879_v34 = vpop.permute.xlu1 %2878 }
 0x5e1   :  { %v2638_v47 = vpack.c.bf16 %v2627_v57, %v2626_v5  ;;  %v2881_v59 = vpop.permute.xlu0 %2880 }
 0x5e2   :  { %9623 = vmatpush3.bf16.xpose.msra.mxu1 %v2933_v11  ;;  %v10461_v24 = vpop.eup %10460 }
 0x5e3   :  { %9600 = vmatprep.mubr.bf16.mxu1 %v2638_v47  ;;  %9704 = vmatprep.subr.bf16.mxu1 %v15816_v30  ;;  %v10463_v14 = vpop.eup %10462  ;;  %v2633_v37 = vmul.f32 %v10461_v24, %v12765_v53 }
 0x5e4   :  { %9601 = vmatmul.mubr.bf16.gmra.mxu1 %v2639_v40  ;;  %v10465_v50 = vpop.eup %10464  ;;  %v2630_v61 = vmul.f32 %v10463_v14, %v12761_v36  ;;  %v2883_v13 = vpop.permute.xlu1 %2882 }
 0x5e5   :  { %v2632_v45 = vmul.f32 %v10465_v50, %v12755_v54  ;;  %v2885_v60 = vpop.permute.xlu0 %2884 }
 0x5e6   :  { %v10467_v10 = vpop.eup %10466 }
 0x5e7   :  { %v2631_v49 = vmul.f32 %v10467_v10, %v12768_v8  ;;  %v2641_v22 = vpack.c.bf16 %v2633_v37, %v2632_v45  ;;  %v15817_v8 = vld [vmem:[#allocation73_spill] sm:$0xff]  ;;  %v15856_v10 = vld [vmem:[#allocation74_spill] sm:$0xff]  ;;  %v15857_v45 = vld [vmem:[#allocation75_spill] sm:$0xff] }
 0x5e8   :  { %v2887_v9 = vpop.permute.xlu1 %2886 }
 0x5e9   :  { %v2640_v58 = vpack.c.bf16 %v2631_v49, %v2630_v61  ;;  %v2889_v39 = vpop.permute.xlu0 %2888 }
 0x5eb   :  { %9604 = vmatprep.mubr.bf16.mxu1 %v2640_v58 }
 0x5ec   :  { %9605 = vmatmul.mubr.bf16.gmra.mxu1 %v2641_v22  ;;  %v2891_v19 = vpop.permute.xlu1 %2890 }
 0x5ed   :  { %9624 = vmatprep.mubr.msk.bf16.mxu1 %vm1250_vm0, %v2877_v1  ;;  %v15858_v1 = vld [vmem:[#allocation76_spill] sm:$0xff] }
 0x5f0   :  { %v9478_v20 = vpop.f32.mrf.mxu1 }
 0x5f1   :  { %v8726_v12 = vpack.c.bf16 %v9478_v20, %v9478_v20 }
 0x5f2   :  { %v1630_v55 = vpop.f32.mrf.mxu1 }
 0x5f3   :  { %1724 = vst.msk [vmem:[#allocation2 + $0x38] sm:$0xf] %vm1709_vm2, %v8726_v12  ;;  %v8724_v53 = vpack.c.bf16 %v1630_v55, %v1630_v55  ;;  %v15859_v55 = vld [vmem:[#allocation77_spill] sm:$0xff] }
 0x5f4   :  { %v9479_v36 = vpop.f32.mrf.mxu1  ;;  %9625 = vmatmul.mubr.msk.bf16.vlgmr.msra.gmra.mxu1 %vm1250_vm0, %v2879_v34 }
 0x5f5   :  { %1722 = vst.msk [vmem:[#allocation2 + $0x30] sm:$0xf] %vm1709_vm2, %v8724_v53  ;;  %v8727_v54 = vpack.c.bf16 %v9479_v36, %v9479_v36  ;;  %9705 = vmatpush3.bf16.msra.mxu1 %v15816_v30  ;;  %9628 = vmatprep.mubr.msk.bf16.mxu1 %vm1250_vm0, %v2881_v59  ;;  %v15860_v36 = vld [vmem:[#allocation79_spill] sm:$0xff] }
 0x5f6   :  { %9706 = vmatprep.subr.bf16.mxu1 %v15817_v8  ;;  %v1633_v46 = vpop.f32.mrf.mxu1 }
 0x5f7   :  { %1725 = vst.msk [vmem:[#allocation2 + $0x3c] sm:$0xf] %vm1709_vm2, %v8727_v54  ;;  %v8725_v18 = vpack.c.bf16 %v1633_v46, %v1633_v46 }
 0x5f9   :  { %1723 = vst.msk [vmem:[#allocation2 + $0x34] sm:$0xf] %vm1709_vm2, %v8725_v18  ;;  %9707 = vmatpush3.bf16.msra.mxu1 %v15817_v8 }
 0x5fa   :  { %9708 = vmatprep.subr.bf16.mxu1 %v15818_v41 }
 0x5fc   :  { %9629 = vmatmul.mubr.msk.bf16.gmra.mxu1 %vm1250_vm0, %v2883_v13  ;;  %v15861_v13 = vld [vmem:[#allocation81_spill] sm:$0xff] }
 0x5fd   :  { %9709 = vmatpush3.bf16.msra.mxu1 %v15818_v41  ;;  %9632 = vmatprep.mubr.msk.bf16.mxu1 %vm1250_vm0, %v2885_v60 }
 0x5fe   :  { %9710 = vmatprep.subr.bf16.mxu1 %v15819_v6 }
 0x601   :  { %9711 = vmatpush3.bf16.msra.mxu1 %v15819_v6 }
 0x602   :  { %9712 = vmatprep.subr.bf16.mxu1 %v15820_v15 }
 0x604   :  { %9633 = vmatmul.mubr.msk.bf16.gmra.mxu1 %vm1250_vm0, %v2887_v9 }
 0x605   :  { %9713 = vmatpush3.bf16.msra.mxu1 %v15820_v15  ;;  %9636 = vmatprep.mubr.msk.bf16.mxu1 %vm1250_vm0, %v2889_v39 }
 0x606   :  { %9714 = vmatprep.subr.bf16.mxu1 %v15821_v28 }
 0x609   :  { %9715 = vmatpush3.bf16.msra.mxu1 %v15821_v28 }
 0x60a   :  { %9716 = vmatprep.subr.bf16.mxu1 %v15822_v27 }
 0x60c   :  { %9637 = vmatmul.mubr.msk.bf16.gmra.mxu1 %vm1250_vm0, %v2891_v19  ;;  %v15862_v19 = vld [vmem:[#allocation83_spill] sm:$0xff] }
 0x60d   :  { %9717 = vmatpush3.bf16.msra.mxu1 %v15822_v27 }
 0x60e   :  { %9718 = vmatprep.subr.bf16.mxu1 %v15823_v2 }
 0x611   :  { %9719 = vmatpush3.bf16.msra.mxu1 %v15823_v2 }
 0x61c   :  { %v12904_v56 = vpop.f32.mrf.mxu1 }
 0x61d   :  { %15824 = vst [vmem:[#allocation93_spill] sm:$0xff] %v12904_v56 }
 0x61e   :  { %v12906_v44 = vpop.f32.mrf.mxu1 }
 0x61f   :  { %15825 = vst [vmem:[#allocation90_spill] sm:$0xff] %v12906_v44 }
 0x620   :  { %v12908_v35 = vpop.f32.mrf.mxu1 }
 0x621   :  { %15826 = vst [vmem:[#allocation95_spill] sm:$0xff] %v12908_v35 }
 0x622   :  { %v12910_v43 = vpop.f32.mrf.mxu1 }
 0x623   :  { %15827 = vst [vmem:[#allocation91_spill] sm:$0xff] %v12910_v43 }
 0x624   :  { %v12912_v25 = vpop.f32.mrf.mxu1 }
 0x625   :  { %15828 = vst [vmem:[#allocation98_spill] sm:$0xff] %v12912_v25 }
 0x626   :  { %v12914_v62 = vpop.f32.mrf.mxu1 }
 0x627   :  { %15829 = vst [vmem:[#allocation92_spill] sm:$0xff] %v12914_v62 }
 0x628   :  { %v12916_v3 = vpop.f32.mrf.mxu1 }
 0x629   :  { %15830 = vst [vmem:[#allocation27_spill] sm:$0xff] %v12916_v3 }
 0x62a   :  { %v12918_v26 = vpop.f32.mrf.mxu1 }
 0x62b   :  { %15831 = vst [vmem:[#allocation29_spill] sm:$0xff] %v12918_v26 }
 0x62c   :  { %v12920_v63 = vpop.f32.mrf.mxu1 }
 0x62d   :  { %15832 = vst [vmem:[#allocation107_spill] sm:$0xff] %v12920_v63  ;;  %v15877_v63 = vld [vmem:[#allocation60_spill] sm:$0xff] }
 0x62e   :  { %v12922_v29 = vpop.f32.mrf.mxu1 }
 0x62f   :  { %15833 = vst [vmem:[#allocation106_spill] sm:$0xff] %v12922_v29  ;;  %v3218_v29 = vpop.permute.xlu1 %3217 }
 0x630   :  { %v12924_v0 = vpop.f32.mrf.mxu1 }
 0x631   :  { %15834 = vst [vmem:[#allocation28_spill] sm:$0xff] %v12924_v0 }
 0x632   :  { %v12926_v23 = vpop.f32.mrf.mxu1 }
 0x633   :  { %15835 = vst [vmem:[#allocation30_spill] sm:$0xff] %v12926_v23 }
 0x634   :  { %v12928_v52 = vpop.f32.mrf.mxu1 }
 0x635   :  { %15836 = vst [vmem:[#allocation100_spill] sm:$0xff] %v12928_v52  ;;  %v15866_v52 = vld [vmem:[#allocation61_spill] sm:$0xff] }
 0x636   :  { %v12930_v16 = vpop.f32.mrf.mxu1 }
 0x637   :  { %15837 = vst [vmem:[#allocation23_spill] sm:$0xff] %v12930_v16 }
 0x638   :  { %v12932_v17 = vpop.f32.mrf.mxu1 }
 0x639   :  { %15838 = vst [vmem:[#allocation22_spill] sm:$0xff] %v12932_v17  ;;  %v15865_v17 = vld [vmem:[#allocation89_spill] sm:$0xff] }
 0x63a   :  { %v12934_v33 = vpop.f32.mrf.mxu1 }
 0x63b   :  { %15839 = vst [vmem:[#allocation94_spill] sm:$0xff] %v12934_v33  ;;  %v15868_v33 = vld [vmem:[#allocation78_spill] sm:$0xff] }
 0x657   :  { %v12936_v42 = vpop.f32.mrf.mxu1 }
 0x658   :  { %15840 = vst [vmem:[#allocation24_spill] sm:$0xff] %v12936_v42 }
 0x659   :  { %v12938_v32 = vpop.f32.mrf.mxu1 }
 0x65a   :  { %15841 = vst [vmem:[#allocation110_spill] sm:$0xff] %v12938_v32 }
 0x65b   :  { %v12940_v48 = vpop.f32.mrf.mxu1 }
 0x65c   :  { %15842 = vst [vmem:[#allocation31_spill] sm:$0xff] %v12940_v48 }
 0x65d   :  { %v12942_v51 = vpop.f32.mrf.mxu1 }
 0x65e   :  { %15843 = vst [vmem:[#allocation96_spill] sm:$0xff] %v12942_v51 }
 0x694   :  { %v12944_v4 = vpop.f32.mrf.mxu1 }
 0x695   :  { %15844 = vst [vmem:[#allocation109_spill] sm:$0xff] %v12944_v4 }
 0x696   :  { %v12946_v21 = vpop.f32.mrf.mxu1 }
 0x697   :  { %15845 = vst [vmem:[#allocation32_spill] sm:$0xff] %v12946_v21 }
 0x698   :  { %v12948_v38 = vpop.f32.mrf.mxu1 }
 0x699   :  { %15846 = vst [vmem:[#allocation25_spill] sm:$0xff] %v12948_v38 }
 0x69a   :  { %v12950_v7 = vpop.f32.mrf.mxu1 }
 0x69b   :  { %15847 = vst [vmem:[#allocation99_spill] sm:$0xff] %v12950_v7 }
 0x6a4   :  { %v12952_v5 = vpop.f32.mrf.mxu1 }
 0x6a5   :  { %15848 = vst [vmem:[#allocation111_spill] sm:$0xff] %v12952_v5  ;;  %v15870_v5 = vld [vmem:[#allocation82_spill] sm:$0xff] }
 0x6a6   :  { %v12954_v57 = vpop.f32.mrf.mxu1 }
 0x6a7   :  { %15849 = vst [vmem:[#allocation34_spill] sm:$0xff] %v12954_v57  ;;  %v15872_v57 = vld [vmem:[#allocation86_spill] sm:$0xff] }
 0x6a8   :  { %v12956_v31 = vpop.f32.mrf.mxu1 }
 0x6a9   :  { %15850 = vst [vmem:[#allocation108_spill] sm:$0xff] %v12956_v31 }
 0x6aa   :  { %v12958_v11 = vpop.f32.mrf.mxu1 }
 0x6ab   :  { %15851 = vst [vmem:[#allocation33_spill] sm:$0xff] %v12958_v11 }
 0x6ac   :  { %v12960_v47 = vpop.f32.mrf.mxu1 }
 0x6ad   :  { %15852 = vst [vmem:[#allocation102_spill] sm:$0xff] %v12960_v47 }
 0x6ae   :  { %v12962_v40 = vpop.f32.mrf.mxu1 }
 0x6af   :  { %15853 = vst [vmem:[#allocation62_spill] sm:$0xff] %v12962_v40 }
 0x6b0   :  { %v12964_v24 = vpop.f32.mrf.mxu1 }
 0x6b1   :  { %15854 = vst [vmem:[#allocation101_spill] sm:$0xff] %v12964_v24 }
 0x6b2   :  { %v12966_v14 = vpop.f32.mrf.mxu1 }
 0x6b3   :  { %15855 = vst [vmem:[#allocation105_spill] sm:$0xff] %v12966_v14 }
 0x6b4   :  { %v9626_v50 = vpop.f32.mrf.mxu1 }
 0x6b5   :  { %v2999_v37 = vadd.f32 %v9626_v50, %v15856_v10 }
 0x6b6   :  { %v2990_v61 = vpop.f32.mrf.mxu1 }
 0x6b7   :  { %3057 = vmax.xlane.f32.xlu0 %v2999_v37  ;;  %v2991_v58 = vadd.f32 %v2990_v61, %v15857_v45 }
 0x6b8   :  { %v9627_v49 = vpop.f32.mrf.mxu1 }
 0x6b9   :  { %v3002_v34 = vadd.f32 %v9627_v49, %v15859_v55 }
 0x6ba   :  { %v2993_v22 = vpop.f32.mrf.mxu1 }
 0x6bb   :  { %v2994_v20 = vadd.f32 %v2993_v22, %v15858_v1  ;;  %3053 = vmax.xlane.f32.xlu0 %v2991_v58  ;;  %v15863_v22 = vld [vmem:[#allocation85_spill] sm:$0xff] }
 0x6bc   :  { %v9630_v12 = vpop.f32.mrf.mxu1 }
 0x6bd   :  { %3055 = vmax.xlane.f32.xlu1 %v2994_v20  ;;  %v13001_v16 = vadd.f32 %v9630_v12, %v15868_v33  ;;  %v15873_v12 = vld [vmem:[#allocation88_spill] sm:$0xff] }
 0x6be   :  { %v3006_v53 = vpop.f32.mrf.mxu1 }
 0x6bf   :  { %3059 = vmax.xlane.f32.xlu0 %v3002_v34 }
 0x6c0   :  { %v9631_v59 = vpop.f32.mrf.mxu1 }
 0x6c1   :  { %v12973_v54 = vadd.f32 %v9631_v59, %v15860_v36 }
 0x6c2   :  { %v3009_v46 = vpop.f32.mrf.mxu1 }
 0x6c3   :  { %3067 = vmax.xlane.f32.xlu1 %v12973_v54  ;;  %v12977_v60 = vadd.f32 %v3009_v46, %v15861_v13  ;;  %v15864_v46 = vld [vmem:[#allocation87_spill] sm:$0xff] }
 0x6c4   :  { %v9634_v18 = vpop.f32.mrf.mxu1 }
 0x6c5   :  { %v13006_v11 = vadd.f32 %v9634_v18, %v15870_v5  ;;  %v15875_v18 = vld [vmem:[#allocation63_spill] sm:$0xff] }
 0x6c6   :  { %v3022_v9 = vpop.f32.mrf.mxu1 }
 0x6c7   :  { %3063 = vmax.xlane.f32.xlu1 %v12977_v60 }
 0x6c8   :  { %v9635_v39 = vpop.f32.mrf.mxu1 }
 0x6c9   :  { %v12981_v50 = vadd.f32 %v9635_v39, %v15862_v19 }
 0x6ca   :  { %v3025_v61 = vpop.f32.mrf.mxu1 }
 0x6cb   :  { %3075 = vmax.xlane.f32.xlu1 %v12981_v50  ;;  %v12985_v59 = vadd.f32 %v3025_v61, %v15863_v22  ;;  %v15867_v61 = vld [vmem:[#allocation65_spill] sm:$0xff] }
 0x6cc   :  { %v9638_v49 = vpop.f32.mrf.mxu1 }
 0x6ce   :  { %v3038_v24 = vpop.f32.mrf.mxu1 }
 0x6cf   :  { %3071 = vmax.xlane.f32.xlu1 %v12985_v59  ;;  %v13018_v0 = vadd.f32 %v3038_v24, %v15873_v12 }
 0x6d0   :  { %v9639_v47 = vpop.f32.mrf.mxu1 }
 0x6d1   :  { %v12989_v14 = vadd.f32 %v9639_v47, %v15864_v46  ;;  %v15869_v47 = vld [vmem:[#allocation80_spill] sm:$0xff] }
 0x6d2   :  { %v3041_v40 = vpop.f32.mrf.mxu1  ;;  %v3007_v31 = vadd.f32 %v3006_v53, %v15869_v47  ;;  %v15874_v53 = vld [vmem:[#allocation58_spill] sm:$0xff] }
 0x6d3   :  { %3083 = vmax.xlane.f32.xlu1 %v12989_v14  ;;  %v12993_v39 = vadd.f32 %v3041_v40, %v15865_v17  ;;  %v15871_v40 = vld [vmem:[#allocation84_spill] sm:$0xff] }
 0x6d5   :  { %3219 = vrot.lane.b32.xlu0 %v15866_v52, %s11201_s14  ;;  %v13010_v52 = vadd.f32 %v3022_v9, %v15871_v40  ;;  %v15876_v9 = vld [vmem:[#allocation59_spill] sm:$0xff] }
 0x6d7   :  { %3079 = vmax.xlane.f32.xlu1 %v12993_v39 }
 0x6e8   :  { %3209 = vrot.lane.b32.xlu1 %v15867_v61, %s11201_s14  ;;  %v13014_v61 = vadd.f32 %v9638_v49, %v15872_v57 }
 0x6f4   :  { %3065 = vmax.xlane.f32.xlu0 %v13001_v16 }
 0x6f8   :  { %3061 = vmax.xlane.f32.xlu0 %v3007_v31 }
 0x6fc   :  { %3073 = vmax.xlane.f32.xlu0 %v13006_v11 }
 0x700   :  { %3069 = vmax.xlane.f32.xlu0 %v13010_v52 }
 0x704   :  { %3081 = vmax.xlane.f32.xlu0 %v13014_v61 }
 0x708   :  { %3077 = vmax.xlane.f32.xlu0 %v13018_v0 }
 0x71e   :  { %3215 = vrot.lane.b32.xlu0 %v15874_v53, %s11201_s14 }
 0x722   :  { %3213 = vrot.lane.b32.xlu0 %v15875_v18, %s11201_s14 }
 0x726   :  { %3211 = vrot.lane.b32.xlu0 %v15876_v9, %s11201_s14 }
 0x72a   :  { %3207 = vrot.lane.b32.xlu0 %v15877_v63, %s11201_s14 }
 0x740   :  { %v3058_v49 = vpop.xlane.xlu0 %3057 }
 0x741   :  { %v3087_v23 = vsub.f32 %v2999_v37, %v3058_v49 }
 0x743   :  { %v3105_v38 = vmul.f32 1.442695, %v3087_v23 }
 0x744   :  { %v3054_v24 = vpop.xlane.xlu0 %3053 }
 0x745   :  { %10468 = vpow2.f32 %v3105_v38  ;;  %v3085_v4 = vsub.f32 %v2991_v58, %v3054_v24 }
 0x746   :  { %v3056_v7 = vpop.xlane.xlu1 %3055 }
 0x747   :  { %v3101_v21 = vmul.f32 1.442695, %v3085_v4  ;;  %v3086_v53 = vsub.f32 %v2994_v20, %v3056_v7 }
 0x748   :  { %v3060_v3 = vpop.xlane.xlu0 %3059 }
 0x749   :  { %10470 = vpow2.f32 %v3101_v21  ;;  %v3088_v25 = vsub.f32 %v3002_v34, %v3060_v3  ;;  %v3103_v62 = vmul.f32 1.442695, %v3086_v53 }
 0x74b   :  { %v3107_v18 = vmul.f32 1.442695, %v3088_v25 }
 0x74c   :  { %v3220_v26 = vpop.permute.xlu0 %3219  ;;  %v3068_v3 = vpop.xlane.xlu1 %3067 }
 0x74d   :  { %10472 = vpow2.f32 %v3107_v18  ;;  %9640 = vmatprep.subr.bf16.mxu0 %v3220_v26  ;;  %v3092_v53 = vsub.f32 %v12973_v54, %v3068_v3 }
 0x74e   :  { %9641 = vmatpush3.bf16.msra.mxu0 %v3220_v26  ;;  %10474 = vpow2.f32 %v3103_v62  ;;  %v15878_v62 = vld [vmem:[#allocation67_spill] sm:$0xff] }
 0x74f   :  { %9642 = vmatprep.subr.bf16.mxu0 %v3218_v29 }
 0x750   :  { %v3064_v26 = vpop.xlane.xlu1 %3063 }
 0x751   :  { %v3090_v38 = vsub.f32 %v12977_v60, %v3064_v26  ;;  %v3115_v60 = vmul.f32 1.442695, %v3092_v53 }
 0x752   :  { %v13029_v63 = vpop.eup %10468  ;;  %9643 = vmatpush3.bf16.msra.mxu0 %v3218_v29 }
 0x753   :  { %3137 = vadd.xlane.f32.xlu1 %v13029_v63  ;;  %v3111_v58 = vmul.f32 1.442695, %v3090_v38 }
 0x754   :  { %v3076_v29 = vpop.xlane.xlu1 %3075 }
 0x755   :  { %10476 = vpow2.f32 %v3111_v58 }
 0x756   :  { %v13032_v23 = vpop.eup %10470 }
 0x757   :  { %3133 = vadd.xlane.f32.xlu1 %v13032_v23 }
 0x758   :  { %v3072_v21 = vpop.xlane.xlu1 %3071 }
 0x759   :  { %v3094_v20 = vsub.f32 %v12985_v59, %v3072_v21 }
 0x75a   :  { %v13035_v4 = vpop.eup %10472 }
 0x75b   :  { %3139 = vadd.xlane.f32.xlu1 %v13035_v4  ;;  %v13038_v25 = vpop.eup %10474  ;;  %v3119_v18 = vmul.f32 1.442695, %v3094_v20 }
 0x75c   :  { %v3084_v37 = vpop.xlane.xlu1 %3083 }
 0x75f   :  { %3135 = vadd.xlane.f32.xlu1 %v13038_v25 }
 0x760   :  { %v3080_v42 = vpop.xlane.xlu1 %3079 }
 0x761   :  { %v3098_v26 = vsub.f32 %v12993_v39, %v3080_v42 }
 0x762   :  { %v13052_v58 = vpop.eup %10476 }
 0x763   :  { %v3127_v54 = vmul.f32 1.442695, %v3098_v26 }
 0x764   :  { %v3210_v53 = vpop.permute.xlu1 %3209 }
 0x770   :  { %3205 = vrot.lane.b32.xlu1 %v15878_v62, %s11201_s14  ;;  %v3096_v62 = vsub.f32 %v12981_v50, %v3076_v29 }
 0x772   :  { %v3123_v21 = vmul.f32 1.442695, %v3096_v62 }
 0x77d   :  { %v3066_v7 = vpop.xlane.xlu0 %3065 }
 0x77e   :  { %v3091_v9 = vsub.f32 %v13001_v16, %v3066_v7 }
 0x780   :  { %v3113_v51 = vmul.f32 1.442695, %v3091_v9 }
 0x781   :  { %v3062_v34 = vpop.xlane.xlu0 %3061 }
 0x782   :  { %v3089_v49 = vsub.f32 %v3007_v31, %v3062_v34  ;;  %v3100_v31 = vsub.f32 %v12989_v14, %v3084_v37 }
 0x784   :  { %v3109_v24 = vmul.f32 1.442695, %v3089_v49  ;;  %v3131_v38 = vmul.f32 1.442695, %v3100_v31 }
 0x785   :  { %v3074_v48 = vpop.xlane.xlu0 %3073 }
 0x786   :  { %10478 = vpow2.f32 %v3109_v24  ;;  %v3095_v50 = vsub.f32 %v13006_v11, %v3074_v48 }
 0x787   :  { %10480 = vpow2.f32 %v3119_v18 }
 0x788   :  { %10482 = vpow2.f32 %v3113_v51  ;;  %v3121_v42 = vmul.f32 1.442695, %v3095_v50 }
 0x789   :  { %v3070_v59 = vpop.xlane.xlu0 %3069  ;;  %10484 = vpow2.f32 %v3115_v60 }
 0x78a   :  { %v3093_v16 = vsub.f32 %v13010_v52, %v3070_v59  ;;  %10486 = vpow2.f32 %v3123_v21  ;;  %v15879_v21 = vld [vmem:[#allocation26_spill] sm:$0xff] }
 0x78b   :  { %10488 = vpow2.f32 %v3127_v54  ;;  %v15881_v54 = vld [vmem:[#allocation42_spill] sm:$0xff] }
 0x78c   :  { %v3117_v29 = vmul.f32 1.442695, %v3093_v16  ;;  %v15880_v16 = vld [vmem:[#allocation44_spill] sm:$0xff] }
 0x78d   :  { %v3082_v3 = vpop.xlane.xlu0 %3081  ;;  %v978_v31 = vadd.f32 %v15880_v16, %v15879_v21 }
 0x78e   :  { %10490 = vpow2.f32 %v3117_v29  ;;  %v3099_v48 = vsub.f32 %v13014_v61, %v3082_v3  ;;  %v974_v3 = vadd.f32 %v15881_v54, %v15879_v21  ;;  %v15882_v29 = vld [vmem:[#allocation50_spill] sm:$0xff] }
 0x78f   :  { %10492 = vpow2.f32 %v3131_v38  ;;  %v988_v38 = vadd.f32 %v15882_v29, %v15879_v21 }
 0x790   :  { %10494 = vpow2.f32 %v3121_v42  ;;  %v3129_v34 = vmul.f32 1.442695, %v3099_v48  ;;  %v13094_v50 = vpack.c.bf16 %v978_v31, %v974_v3 }
 0x791   :  { %v3078_v7 = vpop.xlane.xlu0 %3077 }
 0x792   :  { %v3097_v51 = vsub.f32 %v13018_v0, %v3078_v7  ;;  %v15883_v7 = vld [vmem:[#allocation48_spill] sm:$0xff] }
 0x793   :  { %v13055_v39 = vpop.eup %10478  ;;  %v984_v42 = vadd.f32 %v15883_v7, %v15879_v21 }
 0x794   :  { %3143 = vadd.xlane.f32.xlu1 %v13052_v58  ;;  %3141 = vadd.xlane.f32.xlu0 %v13055_v39  ;;  %v13059_v52 = vpop.eup %10480  ;;  %v3125_v11 = vmul.f32 1.442695, %v3097_v51 }
 0x795   :  { %v3216_v14 = vpop.permute.xlu0 %3215  ;;  %v13062_v37 = vpop.eup %10482  ;;  %v13102_v51 = vpack.c.bf16 %v988_v38, %v984_v42 }
 0x796   :  { %9644 = vmatprep.subr.bf16.mxu0 %v3216_v14  ;;  %v13066_v20 = vpop.eup %10484  ;;  %10496 = vpow2.f32 %v3125_v11 }
 0x797   :  { %9645 = vmatpush3.bf16.msra.mxu0 %v3216_v14  ;;  %v13068_v9 = vpop.eup %10486  ;;  %10498 = vpow2.f32 %v3129_v34  ;;  %15884 = vst [vmem:[#allocation103_spill] sm:$0xff] %v13102_v51  ;;  %v3485_v42 = vsel %vm1250_vm0, %v13102_v51, 0 }
 0x798   :  { %3151 = vadd.xlane.f32.xlu1 %v13059_v52  ;;  %3145 = vadd.xlane.f32.xlu0 %v13062_v37  ;;  %v13072_v49 = vpop.eup %10488 }
 0x799   :  { %v3214_v0 = vpop.permute.xlu0 %3213 }
 0x79a   :  { %9646 = vmatprep.subr.bf16.mxu0 %v3214_v0 }
 0x79b   :  { %9647 = vmatpush3.bf16.msra.mxu0 %v3214_v0  ;;  %v13074_v24 = vpop.eup %10490 }
 0x79c   :  { %3155 = vadd.xlane.f32.xlu1 %v13068_v9  ;;  %3147 = vadd.xlane.f32.xlu0 %v13066_v20  ;;  %v13078_v18 = vpop.eup %10492 }
 0x79d   :  { %v3212_v61 = vpop.permute.xlu0 %3211  ;;  %v13080_v62 = vpop.eup %10494 }
 0x79e   :  { %9648 = vmatprep.subr.bf16.mxu0 %v3212_v61 }
 0x79f   :  { %9649 = vmatpush3.bf16.msra.mxu0 %v3212_v61 }
 0x7a0   :  { %3159 = vadd.xlane.f32.xlu1 %v13072_v49  ;;  %3149 = vadd.xlane.f32.xlu0 %v13074_v24 }
 0x7a1   :  { %9650 = vmatprep.subr.bf16.mxu0 %v3210_v53  ;;  %v3208_v60 = vpop.permute.xlu0 %3207 }
 0x7a3   :  { %9651 = vmatpush3.bf16.msra.mxu0 %v3210_v53  ;;  %v13084_v26 = vpop.eup %10496 }
 0x7a4   :  { %3163 = vadd.xlane.f32.xlu1 %v13078_v18  ;;  %3153 = vadd.xlane.f32.xlu0 %v13080_v62  ;;  %v13087_v59 = vpop.eup %10498 }
 0x7a5   :  { %9652 = vmatprep.subr.bf16.mxu0 %v3208_v60 }
 0x7a7   :  { %9653 = vmatpush3.bf16.msra.mxu0 %v3208_v60 }
 0x7a8   :  { %3157 = vadd.xlane.f32.xlu0 %v13084_v26 }
 0x7ac   :  { %3161 = vadd.xlane.f32.xlu0 %v13087_v59 }
 0x7b5   :  { %3957 = vrot.lane.b32.xlu1 %v13094_v50, %s11200_s4 }
 0x7c2   :  { %3959 = vrot.lane.b32.xlu0 %v13102_v51, %s11200_s4 }
 0x7dc   :  { %v3138_v14 = vpop.xlane.xlu1 %3137 }
 0x7e0   :  { %v3134_v48 = vpop.xlane.xlu1 %3133 }
 0x7e4   :  { %v3140_v11 = vpop.xlane.xlu1 %3139 }
 0x7e5   :  { %10500 = vrcp.f32 %v3140_v11  ;;  %v15888_v11 = vld [vmem:[#allocation36_spill] sm:$0xff] }
 0x7e6   :  { %10502 = vrcp.f32 %v3134_v48 }
 0x7e7   :  { %10504 = vrcp.f32 %v3138_v14  ;;  %v15885_v14 = vld [vmem:[#allocation39_spill] sm:$0xff] }
 0x7e8   :  { %v3136_v0 = vpop.xlane.xlu1 %3135 }
 0x7e9   :  { %10506 = vrcp.f32 %v3136_v0  ;;  %v958_v0 = vadd.f32 %v15888_v11, %v15879_v21 }
 0x7ec   :  { %v3206_v34 = vpop.permute.xlu1 %3205 }
 0x7ed   :  { %9654 = vmatprep.subr.bf16.mxu0 %v3206_v34 }
 0x7ee   :  { %9655 = vmatpush3.bf16.msra.mxu0 %v3206_v34  ;;  %v15889_v34 = vld [vmem:[#allocation35_spill] sm:$0xff] }
 0x7ef   :  { %10024 = vmatprep.subr.msk.bf16.mxu0 %vm1250_vm0, %v13102_v51 }
 0x7f2   :  { %v10501_v61 = vpop.eup %10500 }
 0x7f3   :  { %v10503_v53 = vpop.eup %10502  ;;  %v3184_v31 = vmul.f32 %v10501_v61, %v13035_v4  ;;  %v968_v4 = vadd.f32 %v15885_v14, %v15879_v21  ;;  %v954_v61 = vadd.f32 %v15889_v34, %v15879_v21  ;;  %v15894_v14 = vld [vmem:[#allocation53_spill] sm:$0xff] }
 0x7f4   :  { %v10505_v60 = vpop.eup %10504  ;;  %v3181_v54 = vmul.f32 %v10503_v53, %v13032_v23  ;;  %v15886_v23 = vld [vmem:[#allocation38_spill] sm:$0xff] }
 0x7f5   :  { %v3183_v29 = vmul.f32 %v10505_v60, %v13029_v63  ;;  %v964_v48 = vadd.f32 %v15886_v23, %v15879_v21  ;;  %v3482_v63 = vsel %vm1250_vm0, %v13094_v50, 0  ;;  %v13130_v53 = vpack.c.bf16 %v958_v0, %v954_v61  ;;  %v15896_v0 = vld [vmem:[#allocation49_spill] sm:$0xff] }
 0x7f6   :  { %v10507_v16 = vpop.eup %10506  ;;  %v928_v34 = vadd.f32 %v15896_v0, %v15879_v21 }
 0x7f7   :  { %v3182_v3 = vmul.f32 %v10507_v16, %v13038_v25  ;;  %v3198_v7 = vpack.c.bf16 %v3184_v31, %v3183_v29  ;;  %v13120_v25 = vpack.c.bf16 %v968_v4, %v964_v48  ;;  %v15890_v16 = vld [vmem:[#allocation97_spill] sm:$0xff]  ;;  %v934_v4 = vadd.f32 %v15894_v14, %v15879_v21 }
 0x7f8   :  { %v948_v31 = vadd.f32 %v15890_v16, %v15879_v21  ;;  %v15897_v16 = vld [vmem:[#allocation47_spill] sm:$0xff] }
 0x7f9   :  { %v3197_v38 = vpack.c.bf16 %v3182_v3, %v3181_v54  ;;  %15887 = vst [vmem:[#allocation104_spill] sm:$0xff] %v13120_v25  ;;  %v3479_v60 = vsel %vm1250_vm0, %v13120_v25, 0  ;;  %v15891_v54 = vld [vmem:[#allocation56_spill] sm:$0xff] }
 0x7fa   :  { %v944_v3 = vadd.f32 %v15891_v54, %v15879_v21 }
 0x7fb   :  { %9656 = vmatprep.mubr.bf16.mxu0 %v3197_v38  ;;  %v3476_v38 = vsel %vm1250_vm0, %v13130_v53, 0 }
 0x7fc   :  { %9657 = vmatmul.mubr.bf16.vlgmr.msra.gmra.mxu0 %v3198_v7  ;;  %v13140_v29 = vpack.c.bf16 %v948_v31, %v944_v3  ;;  %v15893_v7 = vld [vmem:[#allocation54_spill] sm:$0xff]  ;;  %v924_v31 = vadd.f32 %v15897_v16, %v15879_v21 }
 0x7fd   :  { %9673 = vmatpush3.bf16.xpose.msra.mxu0 %v3485_v42  ;;  %v938_v42 = vadd.f32 %v15893_v7, %v15879_v21 }
 0x7fe   :  { %10025 = vmatprep.subr.msk.bf16.mxu0 %vm1250_vm0, %v13094_v50  ;;  %15892 = vst [vmem:[#allocation72_spill] sm:$0xff] %v13140_v29  ;;  %v3473_v48 = vsel %vm1250_vm0, %v13140_v29, 0  ;;  %v13160_v54 = vpack.c.bf16 %v928_v34, %v924_v31 }
 0x7ff   :  { %v13150_v23 = vpack.c.bf16 %v938_v42, %v934_v4  ;;  %v15898_v42 = vld [vmem:[#allocation43_spill] sm:$0xff] }
 0x800   :  { %v918_v14 = vadd.f32 %v15898_v42, %v15879_v21  ;;  %v3467_v16 = vsel %vm1250_vm0, %v13160_v54, 0 }
 0x801   :  { %15895 = vst [vmem:[#allocation73_spill] sm:$0xff] %v13150_v23  ;;  %v3470_v3 = vsel %vm1250_vm0, %v13150_v23, 0 }
 0x805   :  { %9675 = vmatpush3.bf16.xpose.msra.mxu0 %v3482_v63 }
 0x806   :  { %10026 = vmatprep.subr.msk.bf16.mxu0 %vm1250_vm0, %v13120_v25 }
 0x80d   :  { %9677 = vmatpush3.bf16.xpose.msra.mxu0 %v3479_v60 }
 0x80e   :  { %10027 = vmatprep.subr.msk.bf16.mxu0 %vm1250_vm0, %v13130_v53 }
 0x815   :  { %9679 = vmatpush3.bf16.xpose.msra.mxu0 %v3476_v38 }
 0x816   :  { %10028 = vmatprep.subr.msk.bf16.mxu0 %vm1250_vm0, %v13140_v29 }
 0x81d   :  { %9681 = vmatpush3.bf16.xpose.msra.mxu0 %v3473_v48  ;;  %v3144_v63 = vpop.xlane.xlu1 %3143  ;;  %v3142_v11 = vpop.xlane.xlu0 %3141  ;;  %v15899_v48 = vld [vmem:[#allocation41_spill] sm:$0xff] }
 0x81e   :  { %10508 = vrcp.f32 %v3144_v63  ;;  %10029 = vmatprep.subr.msk.bf16.mxu0 %vm1250_vm0, %v13150_v23  ;;  %v914_v63 = vadd.f32 %v15899_v48, %v15879_v21 }
 0x81f   :  { %10510 = vrcp.f32 %v3142_v11 }
 0x821   :  { %v3152_v61 = vpop.xlane.xlu1 %3151  ;;  %v3146_v60 = vpop.xlane.xlu0 %3145 }
 0x822   :  { %10512 = vrcp.f32 %v3146_v60  ;;  %v13170_v60 = vpack.c.bf16 %v918_v14, %v914_v63 }
 0x825   :  { %9683 = vmatpush3.bf16.xpose.msra.mxu0 %v3470_v3  ;;  %v3156_v38 = vpop.xlane.xlu1 %3155  ;;  %v3148_v7 = vpop.xlane.xlu0 %3147 }
 0x826   :  { %10030 = vmatprep.subr.msk.bf16.mxu0 %vm1250_vm0, %v13160_v54  ;;  %10514 = vrcp.f32 %v3148_v7 }
 0x827   :  { %10516 = vrcp.f32 %v3152_v61 }
 0x829   :  { %v3150_v4 = vpop.xlane.xlu0 %3149  ;;  %v3160_v0 = vpop.xlane.xlu1 %3159 }
 0x82a   :  { %10518 = vrcp.f32 %v3150_v4 }
 0x82b   :  { %v10509_v11 = vpop.eup %10508  ;;  %10520 = vrcp.f32 %v3156_v38 }
 0x82c   :  { %v10511_v34 = vpop.eup %10510  ;;  %v3186_v31 = vmul.f32 %v10509_v11, %v13052_v58  ;;  %v3464_v58 = vsel %vm1250_vm0, %v13170_v60, 0 }
 0x82d   :  { %9685 = vmatpush3.bf16.xpose.msra.mxu0 %v3467_v16  ;;  %v3154_v3 = vpop.xlane.xlu0 %3153  ;;  %v3185_v61 = vmul.f32 %v10511_v34, %v13055_v39  ;;  %v3164_v7 = vpop.xlane.xlu1 %3163 }
 0x82e   :  { %10031 = vmatprep.subr.msk.bf16.mxu0 %vm1250_vm0, %v13170_v60  ;;  %10522 = vrcp.f32 %v3154_v3 }
 0x82f   :  { %v3199_v21 = vpack.c.bf16 %v3186_v31, %v3185_v61  ;;  %10524 = vrcp.f32 %v3160_v0  ;;  %v10513_v14 = vpop.eup %10512 }
 0x830   :  { %v3187_v39 = vmul.f32 %v10513_v14, %v13062_v37 }
 0x831   :  { %9660 = vmatprep.mubr.bf16.mxu0 %v3199_v21  ;;  %v3158_v42 = vpop.xlane.xlu0 %3157 }
 0x832   :  { %10526 = vrcp.f32 %v3158_v42 }
 0x833   :  { %v10515_v4 = vpop.eup %10514  ;;  %10528 = vrcp.f32 %v3164_v7 }
 0x834   :  { %v3188_v48 = vmul.f32 %v10515_v4, %v13066_v20  ;;  %v10517_v63 = vpop.eup %10516 }
 0x835   :  { %9687 = vmatpush3.bf16.xpose.msra.mxu0 %v3464_v58  ;;  %v3162_v38 = vpop.xlane.xlu0 %3161  ;;  %v3190_v31 = vmul.f32 %v10517_v63, %v13059_v52 }
 0x836   :  { %10530 = vrcp.f32 %v3162_v38  ;;  %v3200_v11 = vpack.c.bf16 %v3188_v48, %v3187_v39 }
 0x837   :  { %v10519_v0 = vpop.eup %10518 }
 0x838   :  { %9661 = vmatmul.mubr.bf16.gmra.mxu0 %v3200_v11  ;;  %v3189_v16 = vmul.f32 %v10519_v0, %v13074_v24  ;;  %v10521_v3 = vpop.eup %10520  ;;  %v15904_v11 = vld [vmem:[#allocation37_spill] sm:$0xff]  ;;  %v15907_v0 = vld [vmem:[#allocation52_spill] sm:$0xff] }
 0x839   :  { %v13182_v34 = vpop.permute.xlu0 %3959  ;;  %v3192_v7 = vmul.f32 %v10521_v3, %v13068_v9  ;;  %v15901_v9 = vld [vmem:[#allocation51_spill] sm:$0xff] }
 0x83a   :  { %10032 = vmatprep.subr.msk.bf16.mxu1 %vm1250_vm0, %v13182_v34  ;;  %v3201_v61 = vpack.c.bf16 %v3190_v31, %v3189_v16 }
 0x83b   :  { %v10523_v21 = vpop.eup %10522 }
 0x83c   :  { %v10525_v37 = vpop.eup %10524  ;;  %9664 = vmatprep.mubr.bf16.mxu0 %v3201_v61  ;;  %v3191_v20 = vmul.f32 %v10523_v21, %v13080_v62  ;;  %v15900_v62 = vld [vmem:[#allocation45_spill] sm:$0xff] }
 0x83d   :  { %v3194_v24 = vmul.f32 %v10525_v37, %v13072_v49  ;;  %v15903_v49 = vld [vmem:[#allocation57_spill] sm:$0xff] }
 0x83e   :  { %v3202_v14 = vpack.c.bf16 %v3192_v7, %v3191_v20 }
 0x83f   :  { %v10527_v42 = vpop.eup %10526 }
 0x840   :  { %v3193_v4 = vmul.f32 %v10527_v42, %v13084_v26  ;;  %v10529_v58 = vpop.eup %10528  ;;  %9665 = vmatmul.mubr.bf16.gmra.mxu0 %v3202_v14  ;;  %v15902_v26 = vld [vmem:[#allocation55_spill] sm:$0xff] }
 0x841   :  { %v3196_v48 = vmul.f32 %v10529_v58, %v13078_v18  ;;  %v15906_v18 = vld [vmem:[#allocation46_spill] sm:$0xff] }
 0x842   :  { %v3203_v52 = vpack.c.bf16 %v3194_v24, %v3193_v4 }
 0x843   :  { %v10531_v38 = vpop.eup %10530 }
 0x844   :  { %9668 = vmatprep.mubr.bf16.mxu0 %v3203_v52  ;;  %v3195_v39 = vmul.f32 %v10531_v38, %v13087_v59  ;;  %v15905_v59 = vld [vmem:[#allocation40_spill] sm:$0xff] }
 0x846   :  { %v3204_v63 = vpack.c.bf16 %v3196_v48, %v3195_v39 }
 0x848   :  { %9669 = vmatmul.mubr.bf16.gmra.mxu0 %v3204_v63 }
 0x849   :  { %9688 = vmatprep.mubr.msk.bf16.mxu0 %vm1250_vm0, %v15900_v62 }
 0x850   :  { %9689 = vmatmul.mubr.msk.bf16.vlgmr.msra.gmra.mxu0 %vm1250_vm0, %v15901_v9 }
 0x851   :  { %9692 = vmatprep.mubr.msk.bf16.mxu0 %vm1250_vm0, %v15902_v26 }
 0x858   :  { %9693 = vmatmul.mubr.msk.bf16.gmra.mxu0 %vm1250_vm0, %v15903_v49 }
 0x859   :  { %9696 = vmatprep.mubr.msk.bf16.mxu0 %vm1250_vm0, %v15904_v11 }
 0x860   :  { %9697 = vmatmul.mubr.msk.bf16.gmra.mxu0 %vm1250_vm0, %v15905_v59 }
 0x861   :  { %9700 = vmatprep.mubr.msk.bf16.mxu0 %vm1250_vm0, %v15906_v18 }
 0x868   :  { %9701 = vmatmul.mubr.msk.bf16.gmra.mxu0 %vm1250_vm0, %v15907_v0 }
 0x8bc   :  { %v13210_v16 = vpop.f32.mrf.mxu0 }
 0x8bd   :  { %15908 = vst [vmem:[#allocation70_spill] sm:$0xff] %v13210_v16 }
 0x8be   :  { %v13212_v31 = vpop.f32.mrf.mxu0 }
 0x8bf   :  { %15909 = vst [vmem:[#allocation71_spill] sm:$0xff] %v13212_v31 }
 0x8c0   :  { %v13214_v3 = vpop.f32.mrf.mxu0 }
 0x8c1   :  { %15910 = vst [vmem:[#allocation68_spill] sm:$0xff] %v13214_v3 }
 0x8c2   :  { %v13216_v61 = vpop.f32.mrf.mxu0 }
 0x8c3   :  { %15911 = vst [vmem:[#allocation69_spill] sm:$0xff] %v13216_v61 }
 0x8f8   :  { %v13218_v21 = vpop.f32.mrf.mxu0 }
 0x8f9   :  { %15912 = vst [vmem:[#allocation74_spill] sm:$0xff] %v13218_v21 }
 0x8fa   :  { %v13220_v37 = vpop.f32.mrf.mxu0 }
 0x8fb   :  { %15913 = vst [vmem:[#allocation75_spill] sm:$0xff] %v13220_v37 }
 0x8fc   :  { %v13222_v20 = vpop.f32.mrf.mxu0 }
 0x8fd   :  { %15914 = vst [vmem:[#allocation76_spill] sm:$0xff] %v13222_v20 }
 0x8fe   :  { %v13224_v7 = vpop.f32.mrf.mxu0 }
 0x8ff   :  { %15915 = vst [vmem:[#allocation77_spill] sm:$0xff] %v13224_v7 }
 0x900   :  { %v13226_v42 = vpop.f32.mrf.mxu0 }
 0x901   :  { %15916 = vst [vmem:[#allocation79_spill] sm:$0xff] %v13226_v42 }
 0x902   :  { %v13228_v14 = vpop.f32.mrf.mxu0 }
 0x903   :  { %15917 = vst [vmem:[#allocation81_spill] sm:$0xff] %v13228_v14 }
 0x904   :  { %v13230_v4 = vpop.f32.mrf.mxu0 }
 0x905   :  { %15918 = vst [vmem:[#allocation83_spill] sm:$0xff] %v13230_v4 }
 0x906   :  { %v13232_v24 = vpop.f32.mrf.mxu0 }
 0x907   :  { %15919 = vst [vmem:[#allocation85_spill] sm:$0xff] %v13232_v24 }
 0x908   :  { %v13234_v58 = vpop.f32.mrf.mxu0 }
 0x909   :  { %15920 = vst [vmem:[#allocation61_spill] sm:$0xff] %v13234_v58 }
 0x90a   :  { %v13236_v52 = vpop.f32.mrf.mxu0 }
 0x90b   :  { %15921 = vst [vmem:[#allocation65_spill] sm:$0xff] %v13236_v52 }
 0x90c   :  { %v13238_v38 = vpop.f32.mrf.mxu0 }
 0x90d   :  { %15922 = vst [vmem:[#allocation58_spill] sm:$0xff] %v13238_v38 }
 0x90e   :  { %v13240_v39 = vpop.f32.mrf.mxu0 }
 0x90f   :  { %15923 = vst [vmem:[#allocation63_spill] sm:$0xff] %v13240_v39 }
 0x910   :  { %v9690_v48 = vpop.f32.mrf.mxu0 }
 0x911   :  { %v3530_v63 = vadd.f32 %v9690_v48, %v15856_v10 }
 0x912   :  { %v3521_v20 = vpop.f32.mrf.mxu0 }
 0x913   :  { %3588 = vmax.xlane.f32.xlu0 %v3530_v63  ;;  %v3522_v14 = vadd.f32 %v3521_v20, %v15857_v45 }
 0x914   :  { %v9691_v42 = vpop.f32.mrf.mxu0 }
 0x915   :  { %v3533_v4 = vadd.f32 %v9691_v42, %v15859_v55 }
 0x916   :  { %v3524_v21 = vpop.f32.mrf.mxu0 }
 0x917   :  { %3590 = vmax.xlane.f32.xlu1 %v3533_v4  ;;  %3584 = vmax.xlane.f32.xlu0 %v3522_v14  ;;  %v3525_v52 = vadd.f32 %v3524_v21, %v15858_v1 }
 0x918   :  { %v9694_v58 = vpop.f32.mrf.mxu0 }
 0x919   :  { %v13247_v38 = vadd.f32 %v9694_v58, %v15868_v33 }
 0x91a   :  { %v3537_v39 = vpop.f32.mrf.mxu0 }
 0x91b   :  { %3586 = vmax.xlane.f32.xlu1 %v3525_v52  ;;  %3596 = vmax.xlane.f32.xlu0 %v13247_v38  ;;  %v13251_v24 = vadd.f32 %v3537_v39, %v15869_v47 }
 0x91c   :  { %v9695_v48 = vpop.f32.mrf.mxu0 }
 0x91d   :  { %v13254_v20 = vadd.f32 %v9695_v48, %v15860_v36 }
 0x91e   :  { %v3540_v42 = vpop.f32.mrf.mxu0 }
 0x91f   :  { %3598 = vmax.xlane.f32.xlu1 %v13254_v20  ;;  %3592 = vmax.xlane.f32.xlu0 %v13251_v24  ;;  %v13259_v58 = vadd.f32 %v3540_v42, %v15861_v13 }
 0x920   :  { %v9698_v21 = vpop.f32.mrf.mxu0 }
 0x921   :  { %v13262_v7 = vadd.f32 %v9698_v21, %v15870_v5 }
 0x922   :  { %v3553_v37 = vpop.f32.mrf.mxu0 }
 0x923   :  { %3594 = vmax.xlane.f32.xlu1 %v13259_v58  ;;  %3604 = vmax.xlane.f32.xlu0 %v13262_v7  ;;  %v13267_v48 = vadd.f32 %v3553_v37, %v15871_v40 }
 0x924   :  { %v9699_v39 = vpop.f32.mrf.mxu0 }
 0x925   :  { %v13270_v3 = vadd.f32 %v9699_v39, %v15862_v19 }
 0x926   :  { %v3556_v16 = vpop.f32.mrf.mxu0 }
 0x927   :  { %3606 = vmax.xlane.f32.xlu1 %v13270_v3  ;;  %3600 = vmax.xlane.f32.xlu0 %v13267_v48  ;;  %v13275_v21 = vadd.f32 %v3556_v16, %v15863_v22 }
 0x928   :  { %v9702_v42 = vpop.f32.mrf.mxu0 }
 0x929   :  { %v13278_v61 = vadd.f32 %v9702_v42, %v15872_v57 }
 0x92a   :  { %v3569_v31 = vpop.f32.mrf.mxu0 }
 0x92b   :  { %3602 = vmax.xlane.f32.xlu1 %v13275_v21  ;;  %3612 = vmax.xlane.f32.xlu0 %v13278_v61  ;;  %v13283_v37 = vadd.f32 %v3569_v31, %v15873_v12  ;;  %v13298_v31 = vpop.permute.xlu1 %3957 }
 0x92c   :  { %v9703_v16 = vpop.f32.mrf.mxu0 }
 0x92d   :  { %v13291_v39 = vadd.f32 %v9703_v16, %v15864_v46 }
 0x92e   :  { %v3572_v42 = vpop.f32.mrf.mxu0 }
 0x92f   :  { %3608 = vmax.xlane.f32.xlu0 %v13283_v37  ;;  %v13295_v32 = vadd.f32 %v3572_v42, %v15865_v17 }
 0x93c   :  { %3953 = vrot.lane.b32.xlu1 %v13130_v53, %s11200_s4 }
 0x945   :  { %3955 = vrot.lane.b32.xlu0 %v13120_v25, %s11200_s4 }
 0x960   :  { %3614 = vmax.xlane.f32.xlu1 %v13291_v39 }
 0x964   :  { %3610 = vmax.xlane.f32.xlu1 %v13295_v32 }
 0x99c   :  { %v3589_v35 = vpop.xlane.xlu0 %3588 }
 0x99d   :  { %v3618_v44 = vsub.f32 %v3530_v63, %v3589_v35 }
 0x99f   :  { %v3636_v56 = vmul.f32 1.442695, %v3618_v44 }
 0x9a0   :  { %v3591_v43 = vpop.xlane.xlu1 %3590  ;;  %v3585_v51 = vpop.xlane.xlu0 %3584 }
 0x9a1   :  { %10532 = vpow2.f32 %v3636_v56  ;;  %v3619_v25 = vsub.f32 %v3533_v4, %v3591_v43  ;;  %v3616_v12 = vsub.f32 %v3522_v14, %v3585_v51 }
 0x9a3   :  { %v3638_v16 = vmul.f32 1.442695, %v3619_v25  ;;  %v3632_v46 = vmul.f32 1.442695, %v3616_v12 }
 0x9a4   :  { %v3587_v57 = vpop.xlane.xlu1 %3586  ;;  %v3597_v35 = vpop.xlane.xlu0 %3596 }
 0x9a5   :  { %10534 = vpow2.f32 %v3638_v16  ;;  %v3617_v40 = vsub.f32 %v3525_v52, %v3587_v57  ;;  %v3622_v12 = vsub.f32 %v13247_v38, %v3597_v35 }
 0x9a6   :  { %10536 = vpow2.f32 %v3632_v46 }
 0x9a7   :  { %v3634_v42 = vmul.f32 1.442695, %v3617_v40  ;;  %v3644_v4 = vmul.f32 1.442695, %v3622_v12 }
 0x9a8   :  { %v3593_v43 = vpop.xlane.xlu0 %3592  ;;  %v3599_v46 = vpop.xlane.xlu1 %3598 }
 0x9a9   :  { %10538 = vpow2.f32 %v3634_v42  ;;  %v3620_v25 = vsub.f32 %v13251_v24, %v3593_v43  ;;  %v3623_v16 = vsub.f32 %v13254_v20, %v3599_v46 }
 0x9aa   :  { %10540 = vpow2.f32 %v3644_v4 }
 0x9ab   :  { %v3640_v42 = vmul.f32 1.442695, %v3620_v25  ;;  %v3646_v33 = vmul.f32 1.442695, %v3623_v16 }
 0x9ac   :  { %v3605_v57 = vpop.xlane.xlu0 %3604  ;;  %v3595_v51 = vpop.xlane.xlu1 %3594 }
 0x9ad   :  { %v3621_v52 = vsub.f32 %v13259_v58, %v3595_v51  ;;  %10542 = vpow2.f32 %v3640_v42  ;;  %v3626_v38 = vsub.f32 %v13262_v7, %v3605_v57 }
 0x9ae   :  { %v13300_v17 = vpop.eup %10532 }
 0x9af   :  { %3668 = vadd.xlane.f32.xlu0 %v13300_v17  ;;  %v3652_v58 = vmul.f32 1.442695, %v3626_v38 }
 0x9b0   :  { %v3601_v40 = vpop.xlane.xlu0 %3600  ;;  %v3607_v63 = vpop.xlane.xlu1 %3606 }
 0x9b1   :  { %v3624_v12 = vsub.f32 %v13267_v48, %v3601_v40  ;;  %v3627_v46 = vsub.f32 %v13270_v3, %v3607_v63 }
 0x9b2   :  { %v13303_v5 = vpop.eup %10534 }
 0x9b3   :  { %v13305_v44 = vpop.eup %10536  ;;  %3670 = vadd.xlane.f32.xlu1 %v13303_v5 }
 0x9b4   :  { %3664 = vadd.xlane.f32.xlu0 %v13305_v44  ;;  %v3613_v14 = vpop.xlane.xlu0 %3612  ;;  %v3603_v35 = vpop.xlane.xlu1 %3602 }
 0x9b5   :  { %v3630_v47 = vsub.f32 %v13278_v61, %v3613_v14  ;;  %v3648_v61 = vmul.f32 1.442695, %v3624_v12 }
 0x9b6   :  { %v13309_v56 = vpop.eup %10538 }
 0x9b7   :  { %3666 = vadd.xlane.f32.xlu1 %v13309_v56  ;;  %v3660_v24 = vmul.f32 1.442695, %v3630_v47  ;;  %v13327_v25 = vpop.eup %10540 }
 0x9b8   :  { %v13325_v51 = vpop.permute.xlu1 %3953 }
 0x9ba   :  { %v13332_v7 = vpop.eup %10542 }
 0x9c8   :  { %3949 = vrot.lane.b32.xlu1 %v13150_v23, %s11200_s4  ;;  %v3642_v23 = vmul.f32 1.442695, %v3621_v52 }
 0x9ca   :  { %3951 = vrot.lane.b32.xlu0 %v13140_v29, %s11200_s4  ;;  %v3609_v29 = vpop.xlane.xlu0 %3608  ;;  %10544 = vpow2.f32 %v3642_v23  ;;  %v3654_v23 = vmul.f32 1.442695, %v3627_v46 }
 0x9cb   :  { %v3628_v43 = vsub.f32 %v13283_v37, %v3609_v29  ;;  %10546 = vpow2.f32 %v3646_v33  ;;  %v3625_v33 = vsub.f32 %v13275_v21, %v3603_v35 }
 0x9cc   :  { %10548 = vpow2.f32 %v3660_v24 }
 0x9cd   :  { %v3656_v20 = vmul.f32 1.442695, %v3628_v43  ;;  %10550 = vpow2.f32 %v3652_v58  ;;  %v3650_v57 = vmul.f32 1.442695, %v3625_v33 }
 0x9ce   :  { %v3956_v35 = vpop.permute.xlu0 %3955 }
 0x9cf   :  { %10552 = vpow2.f32 %v3656_v20 }
 0x9d0   :  { %10554 = vpow2.f32 %v3648_v61 }
 0x9d1   :  { %10556 = vpow2.f32 %v3654_v23 }
 0x9d7   :  { %v13334_v48 = vpop.eup %10544 }
 0x9d8   :  { %v13339_v14 = vpop.eup %10546 }
 0x9d9   :  { %v13341_v21 = vpop.eup %10548 }
 0x9da   :  { %v13345_v4 = vpop.eup %10550 }
 0x9dc   :  { %v13347_v52 = vpop.eup %10552 }
 0x9e9   :  { %3676 = vadd.xlane.f32.xlu0 %v13327_v25  ;;  %v3615_v47 = vpop.xlane.xlu1 %3614 }
 0x9ea   :  { %v3631_v29 = vsub.f32 %v13291_v39, %v3615_v47 }
 0x9ec   :  { %v3662_v3 = vmul.f32 1.442695, %v3631_v29  ;;  %3672 = vadd.xlane.f32.xlu1 %v13332_v7 }
 0x9ed   :  { %3674 = vadd.xlane.f32.xlu0 %v13334_v48  ;;  %v3611_v37 = vpop.xlane.xlu1 %3610 }
 0x9ee   :  { %10558 = vpow2.f32 %v3662_v3  ;;  %v3629_v40 = vsub.f32 %v13295_v32, %v3611_v37  ;;  %v13351_v32 = vpop.eup %10554 }
 0x9ef   :  { %10560 = vpow2.f32 %v3650_v57  ;;  %v13354_v63 = vpop.eup %10556 }
 0x9f0   :  { %3678 = vadd.xlane.f32.xlu1 %v13339_v14  ;;  %v3658_v39 = vmul.f32 1.442695, %v3629_v40  ;;  %v4007_v40 = vsel %vm1250_vm0, %v13182_v34, 0 }
 0x9f1   :  { %3692 = vadd.xlane.f32.xlu0 %v13341_v21 }
 0x9f2   :  { %10562 = vpow2.f32 %v3658_v39 }
 0x9f4   :  { %3684 = vadd.xlane.f32.xlu1 %v13345_v4 }
 0x9f5   :  { %3688 = vadd.xlane.f32.xlu0 %v13347_v52 }
 0x9f8   :  { %3680 = vadd.xlane.f32.xlu1 %v13351_v32 }
 0x9fb   :  { %v13356_v16 = vpop.eup %10558 }
 0x9fc   :  { %3686 = vadd.xlane.f32.xlu1 %v13354_v63  ;;  %3694 = vadd.xlane.f32.xlu0 %v13356_v16  ;;  %v13360_v42 = vpop.eup %10560 }
 0x9ff   :  { %v13363_v38 = vpop.eup %10562 }
 0xa00   :  { %3682 = vadd.xlane.f32.xlu1 %v13360_v42 }
 0xa04   :  { %3690 = vadd.xlane.f32.xlu1 %v13363_v38 }
 0xa12   :  { %3947 = vrot.lane.b32.xlu0 %v13160_v54, %s11200_s4 }
 0xa15   :  { %3945 = vrot.lane.b32.xlu1 %v13170_v60, %s11200_s4 }
 0xa16   :  { %3921 = vrot.lane.b32.xlu0 %v15900_v62, %s11200_s4 }
 0xa19   :  { %3923 = vrot.lane.b32.xlu1 %v15901_v9, %s11200_s4 }
 0xa1a   :  { %3925 = vrot.lane.b32.xlu0 %v15902_v26, %s11200_s4 }
 0xa1d   :  { %3927 = vrot.lane.b32.xlu1 %v15903_v49, %s11200_s4 }
 0xa1e   :  { %3929 = vrot.lane.b32.xlu0 %v15904_v11, %s11200_s4 }
 0xa21   :  { %3931 = vrot.lane.b32.xlu1 %v15905_v59, %s11200_s4 }
 0xa22   :  { %3933 = vrot.lane.b32.xlu0 %v15906_v18, %s11200_s4 }
 0xa25   :  { %3935 = vrot.lane.b32.xlu1 %v15907_v0, %s11200_s4 }
 0xa26   :  { %4280 = vrot.lane.b32.xlu0 %v15816_v30, %s11200_s4 }
 0xa29   :  { %4278 = vrot.lane.b32.xlu1 %v15817_v8, %s11200_s4 }
 0xa2a   :  { %4276 = vrot.lane.b32.xlu0 %v15818_v41, %s11200_s4 }
 0xa2d   :  { %4270 = vrot.lane.b32.xlu1 %v15821_v28, %s11200_s4 }
 0xa2e   :  { %4274 = vrot.lane.b32.xlu0 %v15819_v6, %s11200_s4 }
 0xa31   :  { %4266 = vrot.lane.b32.xlu1 %v15823_v2, %s11200_s4 }
 0xa32   :  { %4272 = vrot.lane.b32.xlu0 %v15820_v15, %s11200_s4 }
 0xa38   :  { %v3669_v24 = vpop.xlane.xlu0 %3668 }
 0xa3c   :  { %v3671_v43 = vpop.xlane.xlu1 %3670 }
 0xa3d   :  { %v3665_v58 = vpop.xlane.xlu0 %3664  ;;  %10564 = vrcp.f32 %v3671_v43 }
 0xa3e   :  { %10566 = vrcp.f32 %v3665_v58 }
 0xa3f   :  { %10568 = vrcp.f32 %v3669_v24 }
 0xa40   :  { %v3667_v12 = vpop.xlane.xlu1 %3666 }
 0xa41   :  { %10570 = vrcp.f32 %v3667_v12  ;;  %v3952_v34 = vpop.permute.xlu0 %3951 }
 0xa4a   :  { %v10565_v20 = vpop.eup %10564 }
 0xa4b   :  { %v10567_v46 = vpop.eup %10566  ;;  %v3715_v47 = vmul.f32 %v10565_v20, %v13303_v5  ;;  %v4004_v5 = vsel %vm1250_vm0, %v13298_v31, 0 }
 0xa4c   :  { %v10569_v61 = vpop.eup %10568  ;;  %v3712_v33 = vmul.f32 %v10567_v46, %v13305_v44  ;;  %v4001_v44 = vsel %vm1250_vm0, %v3956_v35, 0 }
 0xa4d   :  { %v3714_v3 = vmul.f32 %v10569_v61, %v13300_v17  ;;  %v3998_v17 = vsel %vm1250_vm0, %v13325_v51, 0 }
 0xa4e   :  { %v10571_v23 = vpop.eup %10570 }
 0xa4f   :  { %v3713_v29 = vmul.f32 %v10571_v23, %v13309_v56  ;;  %v3729_v57 = vpack.c.bf16 %v3715_v47, %v3714_v3  ;;  %v3950_v56 = vpop.permute.xlu1 %3949 }
 0xa51   :  { %v3728_v37 = vpack.c.bf16 %v3713_v29, %v3712_v33 }
 0xa53   :  { %9720 = vmatprep.mubr.bf16.mxu1 %v3728_v37 }
 0xa54   :  { %9721 = vmatmul.mubr.bf16.vlgmr.msra.gmra.mxu1 %v3729_v57 }
 0xa55   :  { %9737 = vmatpush3.bf16.xpose.msra.mxu1 %v4007_v40 }
 0xa56   :  { %10033 = vmatprep.subr.msk.bf16.mxu1 %vm1250_vm0, %v13298_v31  ;;  %v3995_v31 = vsel %vm1250_vm0, %v3952_v34, 0 }
 0xa5d   :  { %9739 = vmatpush3.bf16.xpose.msra.mxu1 %v4004_v5 }
 0xa5e   :  { %10034 = vmatprep.subr.msk.bf16.mxu1 %vm1250_vm0, %v3956_v35 }
 0xa65   :  { %9741 = vmatpush3.bf16.xpose.msra.mxu1 %v4001_v44 }
 0xa66   :  { %10035 = vmatprep.subr.msk.bf16.mxu1 %vm1250_vm0, %v13325_v51  ;;  %v3992_v51 = vsel %vm1250_vm0, %v3950_v56, 0 }
 0xa6d   :  { %9743 = vmatpush3.bf16.xpose.msra.mxu1 %v3998_v17 }
 0xa6e   :  { %10036 = vmatprep.subr.msk.bf16.mxu1 %vm1250_vm0, %v3952_v34 }
 0xa72   :  { %v3677_v39 = vpop.xlane.xlu0 %3676 }
 0xa75   :  { %9745 = vmatpush3.bf16.xpose.msra.mxu1 %v3995_v31  ;;  %v3673_v24 = vpop.xlane.xlu1 %3672 }
 0xa76   :  { %10572 = vrcp.f32 %v3673_v24  ;;  %10037 = vmatprep.subr.msk.bf16.mxu1 %vm1250_vm0, %v3950_v56  ;;  %v3675_v35 = vpop.xlane.xlu0 %3674 }
 0xa77   :  { %10574 = vrcp.f32 %v3675_v35 }
 0xa78   :  { %10576 = vrcp.f32 %v3677_v39 }
 0xa79   :  { %v3679_v43 = vpop.xlane.xlu1 %3678 }
 0xa7a   :  { %10578 = vrcp.f32 %v3679_v43  ;;  %v3693_v58 = vpop.xlane.xlu0 %3692 }
 0xa7d   :  { %9747 = vmatpush3.bf16.xpose.msra.mxu1 %v3992_v51  ;;  %v3685_v12 = vpop.xlane.xlu1 %3684 }
 0xa7e   :  { %v3689_v20 = vpop.xlane.xlu0 %3688 }
 0xa81   :  { %v3681_v46 = vpop.xlane.xlu1 %3680 }
 0xa83   :  { %v10573_v61 = vpop.eup %10572 }
 0xa84   :  { %v10575_v23 = vpop.eup %10574  ;;  %v3716_v47 = vmul.f32 %v10573_v61, %v13332_v7 }
 0xa85   :  { %v10577_v33 = vpop.eup %10576  ;;  %v3687_v29 = vpop.xlane.xlu1 %3686  ;;  %v3717_v37 = vmul.f32 %v10575_v23, %v13334_v48 }
 0xa86   :  { %v3695_v3 = vpop.xlane.xlu0 %3694  ;;  %10580 = vrcp.f32 %v3687_v29  ;;  %v3718_v5 = vmul.f32 %v10577_v33, %v13327_v25 }
 0xa87   :  { %v10579_v57 = vpop.eup %10578  ;;  %v3730_v40 = vpack.c.bf16 %v3717_v37, %v3716_v47  ;;  %10582 = vrcp.f32 %v3681_v46 }
 0xa88   :  { %v3719_v44 = vmul.f32 %v10579_v57, %v13339_v14  ;;  %10584 = vrcp.f32 %v3685_v12 }
 0xa89   :  { %9724 = vmatprep.mubr.bf16.mxu1 %v3730_v40  ;;  %v3683_v17 = vpop.xlane.xlu1 %3682 }
 0xa8a   :  { %v3948_v34 = vpop.permute.xlu0 %3947  ;;  %10586 = vrcp.f32 %v3683_v17  ;;  %v3731_v56 = vpack.c.bf16 %v3719_v44, %v3718_v5 }
 0xa8b   :  { %10038 = vmatprep.subr.msk.bf16.mxu1 %vm1250_vm0, %v3948_v34  ;;  %v3989_v7 = vsel %vm1250_vm0, %v3948_v34, 0  ;;  %10588 = vrcp.f32 %v3689_v20 }
 0xa8c   :  { %9749 = vmatpush3.bf16.xpose.msra.mxu1 %v3989_v7 }
 0xa8d   :  { %9725 = vmatmul.mubr.bf16.gmra.mxu1 %v3731_v56  ;;  %v3691_v48 = vpop.xlane.xlu1 %3690 }
 0xa8e   :  { %v3922_v39 = vpop.permute.xlu0 %3921  ;;  %10590 = vrcp.f32 %v3691_v48 }
 0xa8f   :  { %10592 = vrcp.f32 %v3695_v3 }
 0xa90   :  { %10594 = vrcp.f32 %v3693_v58 }
 0xa91   :  { %v3946_v25 = vpop.permute.xlu1 %3945 }
 0xa92   :  { %v3926_v14 = vpop.permute.xlu0 %3925  ;;  %10039 = vmatprep.subr.msk.bf16.mxu1 %vm1250_vm0, %v3946_v25  ;;  %v3986_v31 = vsel %vm1250_vm0, %v3946_v25, 0 }
 0xa93   :  { %v10581_v24 = vpop.eup %10580 }
 0xa94   :  { %9751 = vmatpush3.bf16.xpose.msra.mxu1 %v3986_v31  ;;  %v10583_v35 = vpop.eup %10582  ;;  %v3723_v20 = vmul.f32 %v10581_v24, %v13354_v63 }
 0xa95   :  { %v3924_v43 = vpop.permute.xlu1 %3923  ;;  %v10585_v12 = vpop.eup %10584  ;;  %v3720_v61 = vmul.f32 %v10583_v35, %v13351_v32 }
 0xa96   :  { %v3930_v51 = vpop.permute.xlu0 %3929  ;;  %v3722_v29 = vmul.f32 %v10585_v12, %v13345_v4 }
 0xa97   :  { %v10587_v46 = vpop.eup %10586 }
 0xa98   :  { %v3721_v23 = vmul.f32 %v10587_v46, %v13360_v42  ;;  %v10589_v58 = vpop.eup %10588  ;;  %v3733_v57 = vpack.c.bf16 %v3723_v20, %v3722_v29 }
 0xa99   :  { %v3928_v47 = vpop.permute.xlu1 %3927  ;;  %v3724_v5 = vmul.f32 %v10589_v58, %v13347_v52 }
 0xa9a   :  { %v3934_v33 = vpop.permute.xlu0 %3933  ;;  %v3732_v3 = vpack.c.bf16 %v3721_v23, %v3720_v61 }
 0xa9b   :  { %v10591_v37 = vpop.eup %10590 }
 0xa9c   :  { %v10593_v40 = vpop.eup %10592  ;;  %9728 = vmatprep.mubr.bf16.mxu1 %v3732_v3  ;;  %v3725_v44 = vmul.f32 %v10591_v37, %v13363_v38 }
 0xa9d   :  { %v3932_v17 = vpop.permute.xlu1 %3931  ;;  %9729 = vmatmul.mubr.bf16.gmra.mxu1 %v3733_v57  ;;  %v10595_v32 = vpop.eup %10594  ;;  %v3727_v34 = vmul.f32 %v10593_v40, %v13356_v16 }
 0xa9e   :  { %v4281_v63 = vpop.permute.xlu0 %4280  ;;  %v3734_v42 = vpack.c.bf16 %v3725_v44, %v3724_v5  ;;  %v3726_v7 = vmul.f32 %v10595_v32, %v13341_v21 }
 0xa9f   :  { %9768 = vmatprep.subr.bf16.mxu0 %v4281_v63 }
 0xaa0   :  { %9769 = vmatpush3.bf16.msra.mxu0 %v4281_v63  ;;  %9732 = vmatprep.mubr.bf16.mxu1 %v3734_v42  ;;  %v3735_v48 = vpack.c.bf16 %v3727_v34, %v3726_v7 }
 0xaa1   :  { %v3936_v4 = vpop.permute.xlu1 %3935 }
 0xaa2   :  { %v4277_v56 = vpop.permute.xlu0 %4276 }
 0xaa5   :  { %v4279_v25 = vpop.permute.xlu1 %4278  ;;  %9733 = vmatmul.mubr.bf16.gmra.mxu1 %v3735_v48 }
 0xaa6   :  { %9752 = vmatprep.mubr.msk.bf16.mxu1 %vm1250_vm0, %v3922_v39  ;;  %9770 = vmatprep.subr.bf16.mxu0 %v4279_v25  ;;  %v4275_v52 = vpop.permute.xlu0 %4274 }
 0xaa7   :  { %9771 = vmatpush3.bf16.msra.mxu0 %v4279_v25 }
 0xaa8   :  { %9772 = vmatprep.subr.bf16.mxu0 %v4277_v56 }
 0xaa9   :  { %v4271_v21 = vpop.permute.xlu1 %4270 }
 0xaaa   :  { %v4273_v16 = vpop.permute.xlu0 %4272 }
 0xaab   :  { %9773 = vmatpush3.bf16.msra.mxu0 %v4277_v56 }
 0xaac   :  { %9774 = vmatprep.subr.bf16.mxu0 %v4275_v52 }
 0xaad   :  { %9753 = vmatmul.mubr.msk.bf16.vlgmr.msra.gmra.mxu1 %vm1250_vm0, %v3924_v43 }
 0xaae   :  { %9756 = vmatprep.mubr.msk.bf16.mxu1 %vm1250_vm0, %v3926_v14 }
 0xaaf   :  { %9775 = vmatpush3.bf16.msra.mxu0 %v4275_v52 }
 0xab0   :  { %9776 = vmatprep.subr.bf16.mxu0 %v4273_v16 }
 0xab3   :  { %9777 = vmatpush3.bf16.msra.mxu0 %v4273_v16 }
 0xab4   :  { %9778 = vmatprep.subr.bf16.mxu0 %v4271_v21 }
 0xab5   :  { %9757 = vmatmul.mubr.msk.bf16.gmra.mxu1 %vm1250_vm0, %v3928_v47 }
 0xab6   :  { %9760 = vmatprep.mubr.msk.bf16.mxu1 %vm1250_vm0, %v3930_v51 }
 0xab7   :  { %9779 = vmatpush3.bf16.msra.mxu0 %v4271_v21 }
 0xabd   :  { %9761 = vmatmul.mubr.msk.bf16.gmra.mxu1 %vm1250_vm0, %v3932_v17 }
 0xabe   :  { %9764 = vmatprep.mubr.msk.bf16.mxu1 %vm1250_vm0, %v3934_v33 }
 0xac5   :  { %9765 = vmatmul.mubr.msk.bf16.gmra.mxu1 %vm1250_vm0, %v3936_v4 }
 0xb14   :  { %v9722_v38 = vpop.f32.mrf.mxu1 }
 0xb15   :  { %v8778_v39 = vpack.c.bf16 %v9722_v38, %v9722_v38 }
 0xb16   :  { %v3770_v14 = vpop.f32.mrf.mxu1 }
 0xb17   :  { %3899 = vst.msk [vmem:[#allocation2 + $0x48] sm:$0xf] %vm1709_vm2, %v8778_v39  ;;  %v8776_v31 = vpack.c.bf16 %v3770_v14, %v3770_v14 }
 0xb18   :  { %v9723_v24 = vpop.f32.mrf.mxu1 }
 0xb19   :  { %3897 = vst.msk [vmem:[#allocation2 + $0x40] sm:$0xf] %vm1709_vm2, %v8776_v31  ;;  %v8779_v35 = vpack.c.bf16 %v9723_v24, %v9723_v24 }
 0xb1a   :  { %v3773_v43 = vpop.f32.mrf.mxu1 }
 0xb1b   :  { %3900 = vst.msk [vmem:[#allocation2 + $0x4c] sm:$0xf] %vm1709_vm2, %v8779_v35  ;;  %v8777_v51 = vpack.c.bf16 %v3773_v43, %v3773_v43 }
 0xb1d   :  { %3898 = vst.msk [vmem:[#allocation2 + $0x44] sm:$0xf] %vm1709_vm2, %v8777_v51 }
 0xb4d   :  { %v9726_v12 = vpop.f32.mrf.mxu1 }
 0xb4e   :  { %v8782_v46 = vpack.c.bf16 %v9726_v12, %v9726_v12 }
 0xb4f   :  { %v3786_v20 = vpop.f32.mrf.mxu1 }
 0xb50   :  { %3903 = vst.msk [vmem:[#allocation2 + $0x58] sm:$0xf] %vm1709_vm2, %v8782_v46  ;;  %v8780_v61 = vpack.c.bf16 %v3786_v20, %v3786_v20 }
 0xb51   :  { %v9727_v23 = vpop.f32.mrf.mxu1 }
 0xb52   :  { %3901 = vst.msk [vmem:[#allocation2 + $0x50] sm:$0xf] %vm1709_vm2, %v8780_v61  ;;  %v8783_v58 = vpack.c.bf16 %v9727_v23, %v9727_v23 }
 0xb53   :  { %v3789_v47 = vpop.f32.mrf.mxu1 }
 0xb54   :  { %3904 = vst.msk [vmem:[#allocation2 + $0x5c] sm:$0xf] %vm1709_vm2, %v8783_v58  ;;  %v8781_v33 = vpack.c.bf16 %v3789_v47, %v3789_v47 }
 0xb56   :  { %3902 = vst.msk [vmem:[#allocation2 + $0x54] sm:$0xf] %vm1709_vm2, %v8781_v33 }
 0xb5d   :  { %v9730_v29 = vpop.f32.mrf.mxu1 }
 0xb5e   :  { %v8786_v3 = vpack.c.bf16 %v9730_v29, %v9730_v29  ;;  %v15924_v29 = vld [vmem:[#allocation78_spill] sm:$0xff] }
 0xb5f   :  { %v3802_v37 = vpop.f32.mrf.mxu1 }
 0xb60   :  { %3907 = vst.msk [vmem:[#allocation2 + $0x68] sm:$0xf] %vm1709_vm2, %v8786_v3  ;;  %v8784_v57 = vpack.c.bf16 %v3802_v37, %v3802_v37  ;;  %v15925_v37 = vld [vmem:[#allocation80_spill] sm:$0xff] }
 0xb61   :  { %v9731_v40 = vpop.f32.mrf.mxu1 }
 0xb62   :  { %3905 = vst.msk [vmem:[#allocation2 + $0x60] sm:$0xf] %vm1709_vm2, %v8784_v57  ;;  %v8787_v5 = vpack.c.bf16 %v9731_v40, %v9731_v40  ;;  %v15926_v40 = vld [vmem:[#allocation82_spill] sm:$0xff] }
 0xb63   :  { %v3805_v44 = vpop.f32.mrf.mxu1 }
 0xb64   :  { %3908 = vst.msk [vmem:[#allocation2 + $0x6c] sm:$0xf] %vm1709_vm2, %v8787_v5  ;;  %v8785_v17 = vpack.c.bf16 %v3805_v44, %v3805_v44 }
 0xb65   :  { %v9734_v63 = vpop.f32.mrf.mxu1 }
 0xb66   :  { %3906 = vst.msk [vmem:[#allocation2 + $0x64] sm:$0xf] %vm1709_vm2, %v8785_v17  ;;  %v8790_v32 = vpack.c.bf16 %v9734_v63, %v9734_v63  ;;  %v15927_v17 = vld [vmem:[#allocation84_spill] sm:$0xff] }
 0xb67   :  { %v3818_v42 = vpop.f32.mrf.mxu1 }
 0xb68   :  { %3911 = vst.msk [vmem:[#allocation2 + $0x78] sm:$0xf] %vm1709_vm2, %v8790_v32  ;;  %v8788_v34 = vpack.c.bf16 %v3818_v42, %v3818_v42  ;;  %v15928_v42 = vld [vmem:[#allocation86_spill] sm:$0xff] }
 0xb69   :  { %v9735_v4 = vpop.f32.mrf.mxu1 }
 0xb6a   :  { %3909 = vst.msk [vmem:[#allocation2 + $0x70] sm:$0xf] %vm1709_vm2, %v8788_v34  ;;  %v8791_v7 = vpack.c.bf16 %v9735_v4, %v9735_v4 }
 0xb6b   :  { %v3821_v56 = vpop.f32.mrf.mxu1 }
 0xb6c   :  { %3912 = vst.msk [vmem:[#allocation2 + $0x7c] sm:$0xf] %vm1709_vm2, %v8791_v7  ;;  %v8789_v48 = vpack.c.bf16 %v3821_v56, %v3821_v56  ;;  %v15929_v7 = vld [vmem:[#allocation88_spill] sm:$0xff] }
 0xb6d   :  { %v9754_v25 = vpop.f32.mrf.mxu1 }
 0xb6e   :  { %3910 = vst.msk [vmem:[#allocation2 + $0x74] sm:$0xf] %vm1709_vm2, %v8789_v48  ;;  %v4052_v52 = vadd.f32 %v9754_v25, %v15856_v10  ;;  %v15930_v48 = vld [vmem:[#allocation87_spill] sm:$0xff] }
 0xb6f   :  { %v4043_v16 = vpop.f32.mrf.mxu1 }
 0xb70   :  { %4110 = vmax.xlane.f32.xlu0 %v4052_v52  ;;  %v4044_v38 = vadd.f32 %v4043_v16, %v15857_v45 }
 0xb71   :  { %v9755_v21 = vpop.f32.mrf.mxu1 }
 0xb72   :  { %v4055_v24 = vadd.f32 %v9755_v21, %v15859_v55  ;;  %v15931_v21 = vld [vmem:[#allocation89_spill] sm:$0xff] }
 0xb73   :  { %v4046_v39 = vpop.f32.mrf.mxu1 }
 0xb74   :  { %v4047_v14 = vadd.f32 %v4046_v39, %v15858_v1  ;;  %4106 = vmax.xlane.f32.xlu0 %v4044_v38 }
 0xb75   :  { %v9758_v31 = vpop.f32.mrf.mxu1 }
 0xb76   :  { %4108 = vmax.xlane.f32.xlu1 %v4047_v14  ;;  %v4068_v3 = vadd.f32 %v9758_v31, %v15924_v29  ;;  %v15932_v31 = vld [vmem:[#allocation103_spill] sm:$0xff] }
 0xb77   :  { %v4059_v35 = vpop.f32.mrf.mxu1 }
 0xb78   :  { %4112 = vmax.xlane.f32.xlu0 %v4055_v24  ;;  %v13488_v57 = vadd.f32 %v4059_v35, %v15925_v37  ;;  %v15933_v35 = vld [vmem:[#allocation104_spill] sm:$0xff] }
 0xb79   :  { %v9759_v43 = vpop.f32.mrf.mxu1 }
 0xb7a   :  { %v13465_v51 = vadd.f32 %v9759_v43, %v15860_v36  ;;  %v15934_v43 = vld [vmem:[#allocation72_spill] sm:$0xff] }
 0xb7b   :  { %v4062_v12 = vpop.f32.mrf.mxu1 }
 0xb7c   :  { %4120 = vmax.xlane.f32.xlu1 %v13465_v51  ;;  %v13469_v20 = vadd.f32 %v4062_v12, %v15861_v13 }
 0xb7d   :  { %v9762_v46 = vpop.f32.mrf.mxu1 }
 0xb7e   :  { %v13492_v5 = vadd.f32 %v9762_v46, %v15926_v40 }
 0xb7f   :  { %v4075_v61 = vpop.f32.mrf.mxu1 }
 0xb80   :  { %4116 = vmax.xlane.f32.xlu1 %v13469_v20  ;;  %v13496_v63 = vadd.f32 %v4075_v61, %v15927_v17  ;;  %v4267_v61 = vpop.permute.xlu1 %4266 }
 0xb81   :  { %v9763_v23 = vpop.f32.mrf.mxu1 }
 0xb82   :  { %v13473_v58 = vadd.f32 %v9763_v23, %v15862_v19 }
 0xb83   :  { %v4078_v47 = vpop.f32.mrf.mxu1 }
 0xb84   :  { %4128 = vmax.xlane.f32.xlu1 %v13473_v58  ;;  %v13477_v33 = vadd.f32 %v4078_v47, %v15863_v22 }
 0xb85   :  { %v9766_v44 = vpop.f32.mrf.mxu1 }
 0xb86   :  { %v13500_v34 = vadd.f32 %v9766_v44, %v15928_v42 }
 0xb87   :  { %v4091_v32 = vpop.f32.mrf.mxu1 }
 0xb88   :  { %4124 = vmax.xlane.f32.xlu1 %v13477_v33  ;;  %v13504_v56 = vadd.f32 %v4091_v32, %v15929_v7 }
 0xb89   :  { %v9767_v4 = vpop.f32.mrf.mxu1 }
 0xb8a   :  { %v13507_v25 = vadd.f32 %v9767_v4, %v15930_v48 }
 0xb8b   :  { %v4094_v16 = vpop.f32.mrf.mxu1 }
 0xb8c   :  { %v13512_v39 = vadd.f32 %v4094_v16, %v15931_v21 }
 0xb8e   :  { %4268 = vrot.lane.b32.xlu0 %v15822_v27, %s11200_s4 }
 0xb99   :  { %4527 = vrot.lane.b32.xlu1 %v13094_v50, %s11196_s0 }
 0xb9d   :  { %4523 = vrot.lane.b32.xlu1 %v13130_v53, %s11196_s0 }
 0xbad   :  { %4118 = vmax.xlane.f32.xlu0 %v4068_v3 }
 0xbb1   :  { %4114 = vmax.xlane.f32.xlu0 %v13488_v57 }
 0xbb5   :  { %4126 = vmax.xlane.f32.xlu0 %v13492_v5 }
 0xbb9   :  { %4122 = vmax.xlane.f32.xlu0 %v13496_v63 }
 0xbbd   :  { %4134 = vmax.xlane.f32.xlu0 %v13500_v34 }
 0xbc1   :  { %4136 = vmax.xlane.f32.xlu1 %v13507_v25  ;;  %4130 = vmax.xlane.f32.xlu0 %v13504_v56 }
 0xbc5   :  { %4132 = vmax.xlane.f32.xlu1 %v13512_v39 }
 0xbd7   :  { %4529 = vrot.lane.b32.xlu0 %v15932_v31, %s11196_s0 }
 0xbdb   :  { %4525 = vrot.lane.b32.xlu0 %v15933_v35, %s11196_s0 }
 0xbdf   :  { %4521 = vrot.lane.b32.xlu0 %v15934_v43, %s11196_s0 }
 0xbf9   :  { %v4111_v12 = vpop.xlane.xlu0 %4110 }
 0xbfa   :  { %v4140_v46 = vsub.f32 %v4052_v52, %v4111_v12 }
 0xbfc   :  { %v4158_v23 = vmul.f32 1.442695, %v4140_v46 }
 0xbfd   :  { %v4107_v47 = vpop.xlane.xlu0 %4106 }
 0xbfe   :  { %10596 = vpow2.f32 %v4158_v23  ;;  %v4138_v44 = vsub.f32 %v4044_v38, %v4107_v47 }
 0xbff   :  { %v4109_v32 = vpop.xlane.xlu1 %4108 }
 0xc00   :  { %v4154_v4 = vmul.f32 1.442695, %v4138_v44  ;;  %v4139_v21 = vsub.f32 %v4047_v14, %v4109_v32 }
 0xc01   :  { %v4113_v16 = vpop.xlane.xlu0 %4112 }
 0xc02   :  { %10598 = vpow2.f32 %v4154_v4  ;;  %v4141_v48 = vsub.f32 %v4055_v24, %v4113_v16  ;;  %v4156_v42 = vmul.f32 1.442695, %v4139_v21 }
 0xc04   :  { %v4160_v31 = vmul.f32 1.442695, %v4141_v48 }
 0xc05   :  { %v4269_v7 = vpop.permute.xlu0 %4268  ;;  %v4121_v24 = vpop.xlane.xlu1 %4120 }
 0xc06   :  { %10600 = vpow2.f32 %v4160_v31  ;;  %9780 = vmatprep.subr.bf16.mxu0 %v4269_v7  ;;  %v4145_v23 = vsub.f32 %v13465_v51, %v4121_v24 }
 0xc07   :  { %9781 = vmatpush3.bf16.msra.mxu0 %v4269_v7  ;;  %10602 = vpow2.f32 %v4156_v42  ;;  %v15935_v42 = vld [vmem:[#allocation73_spill] sm:$0xff] }
 0xc08   :  { %9782 = vmatprep.subr.bf16.mxu0 %v4267_v61  ;;  %v4168_v43 = vmul.f32 1.442695, %v4145_v23 }
 0xc09   :  { %v4117_v7 = vpop.xlane.xlu1 %4116 }
 0xc0a   :  { %v4143_v21 = vsub.f32 %v13469_v20, %v4117_v7 }
 0xc0b   :  { %v13521_v52 = vpop.eup %10596  ;;  %9783 = vmatpush3.bf16.msra.mxu0 %v4267_v61 }
 0xc0c   :  { %4190 = vadd.xlane.f32.xlu1 %v13521_v52  ;;  %v4164_v47 = vmul.f32 1.442695, %v4143_v21 }
 0xc0d   :  { %v4129_v48 = vpop.xlane.xlu1 %4128 }
 0xc0f   :  { %v13524_v38 = vpop.eup %10598 }
 0xc10   :  { %4186 = vadd.xlane.f32.xlu1 %v13524_v38 }
 0xc11   :  { %v4125_v44 = vpop.xlane.xlu1 %4124 }
 0xc13   :  { %v13527_v12 = vpop.eup %10600 }
 0xc14   :  { %4192 = vadd.xlane.f32.xlu1 %v13527_v12  ;;  %v13530_v14 = vpop.eup %10602 }
 0xc15   :  { %v13539_v17 = vpop.permute.xlu1 %4527 }
 0xc18   :  { %4188 = vadd.xlane.f32.xlu1 %v13530_v14 }
 0xc29   :  { %4519 = vrot.lane.b32.xlu1 %v15935_v42, %s11196_s0 }
 0xc36   :  { %v4119_v31 = vpop.xlane.xlu0 %4118 }
 0xc37   :  { %v4144_v46 = vsub.f32 %v4068_v3, %v4119_v31  ;;  %v4149_v3 = vsub.f32 %v13473_v58, %v4129_v48 }
 0xc39   :  { %v4166_v61 = vmul.f32 1.442695, %v4144_v46  ;;  %v4176_v21 = vmul.f32 1.442695, %v4149_v3  ;;  %v4147_v46 = vsub.f32 %v13477_v33, %v4125_v44 }
 0xc3a   :  { %v4115_v32 = vpop.xlane.xlu0 %4114 }
 0xc3b   :  { %10604 = vpow2.f32 %v4166_v61  ;;  %v4142_v4 = vsub.f32 %v13488_v57, %v4115_v32  ;;  %v13543_v57 = vpop.permute.xlu1 %4523 }
 0xc3c   :  { %10606 = vpow2.f32 %v4164_v47 }
 0xc3d   :  { %v4162_v16 = vmul.f32 1.442695, %v4142_v4 }
 0xc3e   :  { %v4127_v35 = vpop.xlane.xlu0 %4126 }
 0xc3f   :  { %10608 = vpow2.f32 %v4162_v16  ;;  %v4148_v42 = vsub.f32 %v13492_v5, %v4127_v35 }
 0xc40   :  { %10610 = vpow2.f32 %v4168_v43 }
 0xc41   :  { %v4174_v20 = vmul.f32 1.442695, %v4148_v42 }
 0xc42   :  { %v4123_v51 = vpop.xlane.xlu0 %4122 }
 0xc43   :  { %10612 = vpow2.f32 %v4174_v20  ;;  %v4146_v24 = vsub.f32 %v13496_v63, %v4123_v51  ;;  %v4172_v63 = vmul.f32 1.442695, %v4147_v46 }
 0xc45   :  { %v4170_v7 = vmul.f32 1.442695, %v4146_v24 }
 0xc46   :  { %v4135_v31 = vpop.xlane.xlu0 %4134 }
 0xc47   :  { %10614 = vpow2.f32 %v4170_v7  ;;  %v4152_v5 = vsub.f32 %v13500_v34, %v4135_v31 }
 0xc48   :  { %v13547_v35 = vpop.eup %10604  ;;  %10616 = vpow2.f32 %v4176_v21 }
 0xc49   :  { %v4182_v42 = vmul.f32 1.442695, %v4152_v5  ;;  %4198 = vadd.xlane.f32.xlu0 %v13547_v35  ;;  %v13550_v48 = vpop.eup %10606 }
 0xc4a   :  { %v4137_v58 = vpop.xlane.xlu1 %4136  ;;  %v4131_v43 = vpop.xlane.xlu0 %4130 }
 0xc4b   :  { %10618 = vpow2.f32 %v4182_v42  ;;  %v4150_v61 = vsub.f32 %v13504_v56, %v4131_v43  ;;  %v4153_v33 = vsub.f32 %v13507_v25, %v4137_v58 }
 0xc4c   :  { %v13553_v23 = vpop.eup %10608  ;;  %10620 = vpow2.f32 %v4172_v63 }
 0xc4d   :  { %v4178_v47 = vmul.f32 1.442695, %v4150_v61  ;;  %4196 = vadd.xlane.f32.xlu1 %v13550_v48  ;;  %4194 = vadd.xlane.f32.xlu0 %v13553_v23  ;;  %v13560_v32 = vpop.eup %10610  ;;  %v4184_v16 = vmul.f32 1.442695, %v4153_v33 }
 0xc4e   :  { %v4133_v34 = vpop.xlane.xlu1 %4132  ;;  %v13558_v44 = vpop.permute.xlu0 %4529 }
 0xc4f   :  { %v4151_v4 = vsub.f32 %v13512_v39, %v4133_v34  ;;  %10040 = vmatprep.subr.msk.bf16.mxu0 %vm1250_vm0, %v13558_v44  ;;  %10622 = vpow2.f32 %v4178_v47 }
 0xc50   :  { %v13565_v56 = vpop.eup %10612 }
 0xc51   :  { %v4180_v25 = vmul.f32 1.442695, %v4151_v4  ;;  %4200 = vadd.xlane.f32.xlu0 %v13560_v32  ;;  %4206 = vadd.xlane.f32.xlu1 %v13565_v56 }
 0xc53   :  { %10624 = vpow2.f32 %v4180_v25 }
 0xc54   :  { %v13569_v20 = vpop.eup %10614  ;;  %10626 = vpow2.f32 %v4184_v16 }
 0xc55   :  { %4202 = vadd.xlane.f32.xlu1 %v13569_v20  ;;  %v13572_v3 = vpop.eup %10616 }
 0xc58   :  { %v13574_v39 = vpop.eup %10618 }
 0xc59   :  { %4208 = vadd.xlane.f32.xlu1 %v13572_v3  ;;  %4214 = vadd.xlane.f32.xlu0 %v13574_v39  ;;  %v13578_v51 = vpop.eup %10620 }
 0xc5c   :  { %v13580_v24 = vpop.eup %10622 }
 0xc5d   :  { %4204 = vadd.xlane.f32.xlu1 %v13578_v51  ;;  %4210 = vadd.xlane.f32.xlu0 %v13580_v24 }
 0xc60   :  { %v13584_v7 = vpop.eup %10624 }
 0xc61   :  { %v13586_v21 = vpop.eup %10626  ;;  %4212 = vadd.xlane.f32.xlu1 %v13584_v7 }
 0xc62   :  { %4216 = vadd.xlane.f32.xlu0 %v13586_v21 }
 0xc72   :  { %4515 = vrot.lane.b32.xlu1 %v13170_v60, %s11196_s0 }
 0xc76   :  { %4501 = vrot.lane.b32.xlu1 %v15901_v9, %s11196_s0 }
 0xc78   :  { %4517 = vrot.lane.b32.xlu0 %v13160_v54, %s11196_s0 }
 0xc7a   :  { %4505 = vrot.lane.b32.xlu1 %v15903_v49, %s11196_s0 }
 0xc7c   :  { %4499 = vrot.lane.b32.xlu0 %v15900_v62, %s11196_s0 }
 0xc7e   :  { %4509 = vrot.lane.b32.xlu1 %v15905_v59, %s11196_s0 }
 0xc80   :  { %4503 = vrot.lane.b32.xlu0 %v15902_v26, %s11196_s0 }
 0xc82   :  { %4513 = vrot.lane.b32.xlu1 %v15907_v0, %s11196_s0 }
 0xc84   :  { %4507 = vrot.lane.b32.xlu0 %v15904_v11, %s11196_s0 }
 0xc86   :  { %4840 = vrot.lane.b32.xlu1 %v15817_v8, %s11196_s0 }
 0xc88   :  { %4511 = vrot.lane.b32.xlu0 %v15906_v18, %s11196_s0 }
 0xc8a   :  { %4832 = vrot.lane.b32.xlu1 %v15821_v28, %s11196_s0 }
 0xc8c   :  { %4842 = vrot.lane.b32.xlu0 %v15816_v30, %s11196_s0 }
 0xc8e   :  { %4828 = vrot.lane.b32.xlu1 %v15823_v2, %s11196_s0 }
 0xc90   :  { %4838 = vrot.lane.b32.xlu0 %v15818_v41, %s11196_s0 }
 0xc94   :  { %4836 = vrot.lane.b32.xlu0 %v15819_v6, %s11196_s0 }
 0xc95   :  { %v4191_v31 = vpop.xlane.xlu1 %4190 }
 0xc98   :  { %4834 = vrot.lane.b32.xlu0 %v15820_v15, %s11196_s0 }
 0xc99   :  { %v4187_v46 = vpop.xlane.xlu1 %4186 }
 0xc9d   :  { %v4193_v5 = vpop.xlane.xlu1 %4192 }
 0xc9e   :  { %10628 = vrcp.f32 %v4193_v5 }
 0xc9f   :  { %10630 = vrcp.f32 %v4187_v46  ;;  %v4526_v46 = vpop.permute.xlu0 %4525 }
 0xca0   :  { %10632 = vrcp.f32 %v4191_v31  ;;  %v4577_v31 = vsel %vm1250_vm0, %v13558_v44, 0 }
 0xca1   :  { %v4189_v42 = vpop.xlane.xlu1 %4188 }
 0xca2   :  { %10634 = vrcp.f32 %v4189_v42 }
 0xca5   :  { %v4520_v44 = vpop.permute.xlu1 %4519 }
 0xcab   :  { %v10629_v58 = vpop.eup %10628 }
 0xcac   :  { %v10631_v43 = vpop.eup %10630  ;;  %v4237_v33 = vmul.f32 %v10629_v58, %v13527_v12  ;;  %v4574_v12 = vsel %vm1250_vm0, %v13539_v17, 0 }
 0xcad   :  { %v10633_v63 = vpop.eup %10632  ;;  %v4234_v47 = vmul.f32 %v10631_v43, %v13524_v38  ;;  %v4568_v38 = vsel %vm1250_vm0, %v13543_v57, 0 }
 0xcae   :  { %v4236_v4 = vmul.f32 %v10633_v63, %v13521_v52  ;;  %v4571_v52 = vsel %vm1250_vm0, %v4526_v46, 0 }
 0xcaf   :  { %v10635_v61 = vpop.eup %10634 }
 0xcb0   :  { %v4235_v34 = vmul.f32 %v10635_v61, %v13530_v14  ;;  %v4251_v25 = vpack.c.bf16 %v4237_v33, %v4236_v4  ;;  %v4522_v14 = vpop.permute.xlu0 %4521 }
 0xcb2   :  { %v4250_v16 = vpack.c.bf16 %v4235_v34, %v4234_v47 }
 0xcb4   :  { %9784 = vmatprep.mubr.bf16.mxu0 %v4250_v16 }
 0xcb5   :  { %9785 = vmatmul.mubr.bf16.vlgmr.msra.gmra.mxu0 %v4251_v25 }
 0xcb6   :  { %9801 = vmatpush3.bf16.xpose.msra.mxu0 %v4577_v31 }
 0xcb7   :  { %10041 = vmatprep.subr.msk.bf16.mxu0 %vm1250_vm0, %v13539_v17  ;;  %v4565_v17 = vsel %vm1250_vm0, %v4522_v14, 0 }
 0xcbe   :  { %9803 = vmatpush3.bf16.xpose.msra.mxu0 %v4574_v12 }
 0xcbf   :  { %10042 = vmatprep.subr.msk.bf16.mxu0 %vm1250_vm0, %v4526_v46 }
 0xcc6   :  { %9805 = vmatpush3.bf16.xpose.msra.mxu0 %v4571_v52 }
 0xcc7   :  { %10043 = vmatprep.subr.msk.bf16.mxu0 %vm1250_vm0, %v13543_v57  ;;  %v4562_v57 = vsel %vm1250_vm0, %v4520_v44, 0 }
 0xcce   :  { %9807 = vmatpush3.bf16.xpose.msra.mxu0 %v4568_v38 }
 0xccf   :  { %10044 = vmatprep.subr.msk.bf16.mxu0 %vm1250_vm0, %v4522_v14 }
 0xcd2   :  { %v4199_v5 = vpop.xlane.xlu0 %4198 }
 0xcd6   :  { %9809 = vmatpush3.bf16.xpose.msra.mxu0 %v4565_v17  ;;  %v4197_v42 = vpop.xlane.xlu1 %4196  ;;  %v4195_v58 = vpop.xlane.xlu0 %4194 }
 0xcd7   :  { %10636 = vrcp.f32 %v4197_v42  ;;  %10045 = vmatprep.subr.msk.bf16.mxu0 %vm1250_vm0, %v4520_v44 }
 0xcd8   :  { %10638 = vrcp.f32 %v4195_v58 }
 0xcd9   :  { %10640 = vrcp.f32 %v4199_v5 }
 0xcda   :  { %v4207_v43 = vpop.xlane.xlu1 %4206  ;;  %v4201_v63 = vpop.xlane.xlu0 %4200 }
 0xcdb   :  { %10642 = vrcp.f32 %v4201_v63 }
 0xcde   :  { %9811 = vmatpush3.bf16.xpose.msra.mxu0 %v4562_v57  ;;  %v4203_v61 = vpop.xlane.xlu1 %4202 }
 0xce2   :  { %v4209_v33 = vpop.xlane.xlu1 %4208  ;;  %v4215_v47 = vpop.xlane.xlu0 %4214 }
 0xce3   :  { %10644 = vrcp.f32 %v4209_v33 }
 0xce4   :  { %v10637_v34 = vpop.eup %10636  ;;  %10646 = vrcp.f32 %v4203_v61 }
 0xce5   :  { %v10639_v4 = vpop.eup %10638  ;;  %v4239_v16 = vmul.f32 %v10637_v34, %v13550_v48  ;;  %10648 = vrcp.f32 %v4207_v43 }
 0xce6   :  { %v4205_v25 = vpop.xlane.xlu1 %4204  ;;  %v4238_v31 = vmul.f32 %v10639_v4, %v13553_v23  ;;  %v10641_v12 = vpop.eup %10640 }
 0xce7   :  { %10650 = vrcp.f32 %v4205_v25  ;;  %v4211_v46 = vpop.xlane.xlu0 %4210  ;;  %v4240_v44 = vmul.f32 %v10641_v12, %v13547_v35 }
 0xce8   :  { %v4252_v52 = vpack.c.bf16 %v4239_v16, %v4238_v31  ;;  %v10643_v38 = vpop.eup %10642  ;;  %10652 = vrcp.f32 %v4211_v46 }
 0xce9   :  { %v4241_v5 = vmul.f32 %v10643_v38, %v13560_v32 }
 0xcea   :  { %9788 = vmatprep.mubr.bf16.mxu0 %v4252_v52  ;;  %v4213_v14 = vpop.xlane.xlu1 %4212 }
 0xceb   :  { %10654 = vrcp.f32 %v4213_v14  ;;  %v4217_v17 = vpop.xlane.xlu0 %4216  ;;  %v4253_v48 = vpack.c.bf16 %v4241_v5, %v4240_v44 }
 0xcec   :  { %10656 = vrcp.f32 %v4217_v17 }
 0xced   :  { %10658 = vrcp.f32 %v4215_v47  ;;  %9789 = vmatmul.mubr.bf16.gmra.mxu0 %v4253_v48 }
 0xcee   :  { %v4516_v42 = vpop.permute.xlu1 %4515 }
 0xcef   :  { %v4518_v23 = vpop.permute.xlu0 %4517  ;;  %v4556_v52 = vsel %vm1250_vm0, %v4516_v42, 0 }
 0xcf0   :  { %10046 = vmatprep.subr.msk.bf16.mxu0 %vm1250_vm0, %v4518_v23  ;;  %v4559_v58 = vsel %vm1250_vm0, %v4518_v23, 0  ;;  %v10645_v43 = vpop.eup %10644 }
 0xcf1   :  { %9813 = vmatpush3.bf16.xpose.msra.mxu0 %v4559_v58  ;;  %v10647_v63 = vpop.eup %10646  ;;  %v4245_v33 = vmul.f32 %v10645_v43, %v13572_v3 }
 0xcf2   :  { %10047 = vmatprep.subr.msk.bf16.mxu0 %vm1250_vm0, %v4516_v42  ;;  %v4502_v35 = vpop.permute.xlu1 %4501  ;;  %v10649_v57 = vpop.eup %10648  ;;  %v4242_v47 = vmul.f32 %v10647_v63, %v13569_v20 }
 0xcf3   :  { %v4500_v32 = vpop.permute.xlu0 %4499  ;;  %v4244_v25 = vmul.f32 %v10649_v57, %v13565_v56 }
 0xcf4   :  { %v10651_v61 = vpop.eup %10650 }
 0xcf5   :  { %v4243_v34 = vmul.f32 %v10651_v61, %v13578_v51  ;;  %v10653_v4 = vpop.eup %10652  ;;  %v4255_v38 = vpack.c.bf16 %v4245_v33, %v4244_v25 }
 0xcf6   :  { %v4506_v16 = vpop.permute.xlu1 %4505  ;;  %v4246_v44 = vmul.f32 %v10653_v4, %v13580_v24 }
 0xcf7   :  { %v4504_v31 = vpop.permute.xlu0 %4503  ;;  %v4254_v12 = vpack.c.bf16 %v4243_v34, %v4242_v47 }
 0xcf8   :  { %v10655_v46 = vpop.eup %10654 }
 0xcf9   :  { %v10657_v14 = vpop.eup %10656  ;;  %9815 = vmatpush3.bf16.xpose.msra.mxu0 %v4556_v52  ;;  %9792 = vmatprep.mubr.bf16.mxu0 %v4254_v12  ;;  %v4247_v3 = vmul.f32 %v10655_v46, %v13584_v7 }
 0xcfa   :  { %v4510_v20 = vpop.permute.xlu1 %4509  ;;  %9793 = vmatmul.mubr.bf16.gmra.mxu0 %v4255_v38  ;;  %v10659_v51 = vpop.eup %10658  ;;  %v4249_v56 = vmul.f32 %v10657_v14, %v13586_v21 }
 0xcfb   :  { %v4508_v5 = vpop.permute.xlu0 %4507  ;;  %v4256_v17 = vpack.c.bf16 %v4247_v3, %v4246_v44  ;;  %v4248_v48 = vmul.f32 %v10659_v51, %v13574_v39 }
 0xcfd   :  { %9796 = vmatprep.mubr.bf16.mxu0 %v4256_v17  ;;  %v4257_v58 = vpack.c.bf16 %v4249_v56, %v4248_v48 }
 0xcfe   :  { %v4514_v23 = vpop.permute.xlu1 %4513 }
 0xcff   :  { %v4512_v42 = vpop.permute.xlu0 %4511 }
 0xd02   :  { %9797 = vmatmul.mubr.bf16.gmra.mxu0 %v4257_v58  ;;  %v4841_v24 = vpop.permute.xlu1 %4840 }
 0xd03   :  { %v4843_v43 = vpop.permute.xlu0 %4842  ;;  %9816 = vmatprep.mubr.msk.bf16.mxu0 %vm1250_vm0, %v4500_v32 }
 0xd04   :  { %9832 = vmatprep.subr.bf16.mxu1 %v4843_v43 }
 0xd05   :  { %9833 = vmatpush3.bf16.msra.mxu1 %v4843_v43 }
 0xd06   :  { %9834 = vmatprep.subr.bf16.mxu1 %v4841_v24  ;;  %v4833_v63 = vpop.permute.xlu1 %4832 }
 0xd07   :  { %v4839_v7 = vpop.permute.xlu0 %4838 }
 0xd09   :  { %9835 = vmatpush3.bf16.msra.mxu1 %v4841_v24 }
 0xd0a   :  { %9836 = vmatprep.subr.bf16.mxu1 %v4839_v7  ;;  %9817 = vmatmul.mubr.msk.bf16.vlgmr.msra.gmra.mxu0 %vm1250_vm0, %v4502_v35 }
 0xd0b   :  { %v4837_v21 = vpop.permute.xlu0 %4836  ;;  %9820 = vmatprep.mubr.msk.bf16.mxu0 %vm1250_vm0, %v4504_v31 }
 0xd0d   :  { %9837 = vmatpush3.bf16.msra.mxu1 %v4839_v7 }
 0xd0e   :  { %9838 = vmatprep.subr.bf16.mxu1 %v4837_v21 }
 0xd0f   :  { %v4835_v39 = vpop.permute.xlu0 %4834 }
 0xd11   :  { %9839 = vmatpush3.bf16.msra.mxu1 %v4837_v21 }
 0xd12   :  { %9840 = vmatprep.subr.bf16.mxu1 %v4835_v39  ;;  %9821 = vmatmul.mubr.msk.bf16.gmra.mxu0 %vm1250_vm0, %v4506_v16 }
 0xd13   :  { %9824 = vmatprep.mubr.msk.bf16.mxu0 %vm1250_vm0, %v4508_v5 }
 0xd15   :  { %9841 = vmatpush3.bf16.msra.mxu1 %v4835_v39 }
 0xd16   :  { %9842 = vmatprep.subr.bf16.mxu1 %v4833_v63 }
 0xd19   :  { %9843 = vmatpush3.bf16.msra.mxu1 %v4833_v63 }
 0xd1a   :  { %9825 = vmatmul.mubr.msk.bf16.gmra.mxu0 %vm1250_vm0, %v4510_v20 }
 0xd1b   :  { %9828 = vmatprep.mubr.msk.bf16.mxu0 %vm1250_vm0, %v4512_v42 }
 0xd22   :  { %9829 = vmatmul.mubr.msk.bf16.gmra.mxu0 %vm1250_vm0, %v4514_v23 }
 0xd75   :  { %v13668_v35 = vpop.f32.mrf.mxu0 }
 0xd76   :  { %15936 = vst [vmem:[#allocation59_spill] sm:$0xff] %v13668_v35 }
 0xd77   :  { %v13670_v57 = vpop.f32.mrf.mxu0 }
 0xd78   :  { %15937 = vst [vmem:[#allocation60_spill] sm:$0xff] %v13670_v57 }
 0xd79   :  { %v13672_v32 = vpop.f32.mrf.mxu0 }
 0xd7a   :  { %15938 = vst [vmem:[#allocation67_spill] sm:$0xff] %v13672_v32 }
 0xd7b   :  { %v13674_v61 = vpop.f32.mrf.mxu0 }
 0xd7c   :  { %15939 = vst [vmem:[#allocation26_spill] sm:$0xff] %v13674_v61 }
 0xdad   :  { %v13676_v33 = vpop.f32.mrf.mxu0 }
 0xdae   :  { %15940 = vst [vmem:[#allocation44_spill] sm:$0xff] %v13676_v33 }
 0xdaf   :  { %v13678_v47 = vpop.f32.mrf.mxu0 }
 0xdb0   :  { %15941 = vst [vmem:[#allocation42_spill] sm:$0xff] %v13678_v47 }
 0xdb1   :  { %v13680_v34 = vpop.f32.mrf.mxu0 }
 0xdb2   :  { %15942 = vst [vmem:[#allocation50_spill] sm:$0xff] %v13680_v34  ;;  %v4829_v34 = vpop.permute.xlu1 %4828 }
 0xdb3   :  { %v13682_v4 = vpop.f32.mrf.mxu0 }
 0xdb4   :  { %15943 = vst [vmem:[#allocation48_spill] sm:$0xff] %v13682_v4 }
 0xdba   :  { %v13684_v16 = vpop.f32.mrf.mxu0 }
 0xdbb   :  { %15944 = vst [vmem:[#allocation39_spill] sm:$0xff] %v13684_v16 }
 0xdbc   :  { %v13686_v25 = vpop.f32.mrf.mxu0 }
 0xdbd   :  { %15945 = vst [vmem:[#allocation38_spill] sm:$0xff] %v13686_v25 }
 0xdbe   :  { %v13688_v31 = vpop.f32.mrf.mxu0 }
 0xdbf   :  { %15946 = vst [vmem:[#allocation36_spill] sm:$0xff] %v13688_v31 }
 0xdc0   :  { %v13690_v12 = vpop.f32.mrf.mxu0 }
 0xdc1   :  { %15947 = vst [vmem:[#allocation35_spill] sm:$0xff] %v13690_v12  ;;  %v15958_v12 = vld [vmem:[#allocation104_spill] sm:$0xff] }
 0xdc2   :  { %v13692_v46 = vpop.f32.mrf.mxu0 }
 0xdc3   :  { %15948 = vst [vmem:[#allocation97_spill] sm:$0xff] %v13692_v46 }
 0xdc4   :  { %v13694_v52 = vpop.f32.mrf.mxu0 }
 0xdc5   :  { %15949 = vst [vmem:[#allocation56_spill] sm:$0xff] %v13694_v52 }
 0xdc6   :  { %v13696_v38 = vpop.f32.mrf.mxu0 }
 0xdc7   :  { %15950 = vst [vmem:[#allocation54_spill] sm:$0xff] %v13696_v38 }
 0xdc8   :  { %v13698_v14 = vpop.f32.mrf.mxu0 }
 0xdc9   :  { %15951 = vst [vmem:[#allocation53_spill] sm:$0xff] %v13698_v14 }
 0xdca   :  { %v9818_v44 = vpop.f32.mrf.mxu0 }
 0xdcb   :  { %v4622_v3 = vadd.f32 %v9818_v44, %v15856_v10 }
 0xdcc   :  { %v4613_v20 = vpop.f32.mrf.mxu0 }
 0xdcd   :  { %4680 = vmax.xlane.f32.xlu0 %v4622_v3  ;;  %v4614_v5 = vadd.f32 %v4613_v20, %v15857_v45 }
 0xdce   :  { %v9819_v51 = vpop.f32.mrf.mxu0 }
 0xdcf   :  { %v4625_v23 = vadd.f32 %v9819_v51, %v15859_v55 }
 0xdd0   :  { %v4616_v17 = vpop.f32.mrf.mxu0 }
 0xdd1   :  { %v4617_v56 = vadd.f32 %v4616_v17, %v15858_v1  ;;  %4676 = vmax.xlane.f32.xlu0 %v4614_v5 }
 0xdd2   :  { %v9822_v48 = vpop.f32.mrf.mxu0 }
 0xdd3   :  { %4678 = vmax.xlane.f32.xlu1 %v4617_v56  ;;  %v4638_v17 = vadd.f32 %v9822_v48, %v15924_v29 }
 0xdd4   :  { %v4629_v42 = vpop.f32.mrf.mxu0 }
 0xdd5   :  { %4682 = vmax.xlane.f32.xlu0 %v4625_v23 }
 0xdd6   :  { %v9823_v58 = vpop.f32.mrf.mxu0 }
 0xdd7   :  { %v13705_v43 = vadd.f32 %v9823_v58, %v15860_v36  ;;  %v13728_v58 = vadd.f32 %v4629_v42, %v15925_v37  ;;  %v15954_v42 = vld [vmem:[#allocation88_spill] sm:$0xff] }
 0xdd8   :  { %v4632_v24 = vpop.f32.mrf.mxu0 }
 0xdd9   :  { %4690 = vmax.xlane.f32.xlu1 %v13705_v43  ;;  %v13709_v21 = vadd.f32 %v4632_v24, %v15861_v13 }
 0xdda   :  { %v9826_v7 = vpop.f32.mrf.mxu0 }
 0xddb   :  { %v13732_v24 = vadd.f32 %v9826_v7, %v15926_v40  ;;  %v15955_v7 = vld [vmem:[#allocation87_spill] sm:$0xff] }
 0xddc   :  { %v4645_v39 = vpop.f32.mrf.mxu0 }
 0xddd   :  { %4686 = vmax.xlane.f32.xlu1 %v13709_v21 }
 0xdde   :  { %v9827_v63 = vpop.f32.mrf.mxu0 }
 0xddf   :  { %v13713_v44 = vadd.f32 %v9827_v63, %v15862_v19 }
 0xde0   :  { %v4648_v20 = vpop.f32.mrf.mxu0 }
 0xde1   :  { %4698 = vmax.xlane.f32.xlu1 %v13713_v44  ;;  %v13717_v51 = vadd.f32 %v4648_v20, %v15863_v22  ;;  %v15952_v20 = vld [vmem:[#allocation84_spill] sm:$0xff] }
 0xde2   :  { %v9830_v63 = vpop.f32.mrf.mxu0  ;;  %v13736_v38 = vadd.f32 %v4645_v39, %v15952_v20  ;;  %v15956_v39 = vld [vmem:[#allocation89_spill] sm:$0xff] }
 0xde5   :  { %4694 = vmax.xlane.f32.xlu1 %v13717_v51 }
 0xdeb   :  { %4830 = vrot.lane.b32.xlu0 %v15822_v27, %s11196_s0 }
 0xdf6   :  { %5089 = vrot.lane.b32.xlu1 %v13094_v50, %s11201_s14  ;;  %v4661_v50 = vpop.f32.mrf.mxu0 }
 0xdf7   :  { %v13744_v14 = vadd.f32 %v4661_v50, %v15954_v42  ;;  %v15959_v50 = vld [vmem:[#allocation72_spill] sm:$0xff] }
 0xdf8   :  { %v9831_v46 = vpop.f32.mrf.mxu0 }
 0xdf9   :  { %v13747_v52 = vadd.f32 %v9831_v46, %v15955_v7 }
 0xdfa   :  { %5085 = vrot.lane.b32.xlu1 %v13130_v53, %s11201_s14  ;;  %v15953_v53 = vld [vmem:[#allocation86_spill] sm:$0xff]  ;;  %v4664_v31 = vpop.f32.mrf.mxu0 }
 0xdfb   :  { %v13740_v48 = vadd.f32 %v9830_v63, %v15953_v53  ;;  %v13752_v16 = vadd.f32 %v4664_v31, %v15956_v39  ;;  %v15957_v63 = vld [vmem:[#allocation103_spill] sm:$0xff] }
 0xe0a   :  { %4688 = vmax.xlane.f32.xlu0 %v4638_v17 }
 0xe0e   :  { %4684 = vmax.xlane.f32.xlu0 %v13728_v58 }
 0xe12   :  { %4696 = vmax.xlane.f32.xlu0 %v13732_v24 }
 0xe16   :  { %4692 = vmax.xlane.f32.xlu0 %v13736_v38 }
 0xe1a   :  { %4704 = vmax.xlane.f32.xlu0 %v13740_v48 }
 0xe1e   :  { %4706 = vmax.xlane.f32.xlu1 %v13747_v52  ;;  %4700 = vmax.xlane.f32.xlu0 %v13744_v14 }
 0xe22   :  { %4702 = vmax.xlane.f32.xlu1 %v13752_v16 }
 0xe34   :  { %5091 = vrot.lane.b32.xlu0 %v15957_v63, %s11201_s14 }
 0xe38   :  { %5087 = vrot.lane.b32.xlu0 %v15958_v12, %s11201_s14 }
 0xe3c   :  { %5083 = vrot.lane.b32.xlu0 %v15959_v50, %s11201_s14 }
 0xe56   :  { %v4681_v46 = vpop.xlane.xlu0 %4680 }
 0xe57   :  { %v4710_v25 = vsub.f32 %v4622_v3, %v4681_v46 }
 0xe59   :  { %v4728_v33 = vmul.f32 1.442695, %v4710_v25 }
 0xe5a   :  { %v4677_v4 = vpop.xlane.xlu0 %4676 }
 0xe5b   :  { %10660 = vpow2.f32 %v4728_v33  ;;  %v4708_v47 = vsub.f32 %v4614_v5, %v4677_v4 }
 0xe5c   :  { %v4679_v31 = vpop.xlane.xlu1 %4678 }
 0xe5d   :  { %v4724_v32 = vmul.f32 1.442695, %v4708_v47  ;;  %v4709_v61 = vsub.f32 %v4617_v56, %v4679_v31 }
 0xe5e   :  { %v4683_v35 = vpop.xlane.xlu0 %4682 }
 0xe5f   :  { %10662 = vpow2.f32 %v4724_v32  ;;  %v4711_v57 = vsub.f32 %v4625_v23, %v4683_v35  ;;  %v4726_v2 = vmul.f32 1.442695, %v4709_v61 }
 0xe61   :  { %v4730_v63 = vmul.f32 1.442695, %v4711_v57 }
 0xe62   :  { %v4831_v27 = vpop.permute.xlu0 %4830 }
 0xe63   :  { %10664 = vpow2.f32 %v4730_v63  ;;  %9844 = vmatprep.subr.bf16.mxu1 %v4831_v27 }
 0xe64   :  { %9845 = vmatpush3.bf16.msra.mxu1 %v4831_v27  ;;  %10666 = vpow2.f32 %v4726_v2  ;;  %v4691_v27 = vpop.xlane.xlu1 %4690  ;;  %v15960_v2 = vld [vmem:[#allocation73_spill] sm:$0xff] }
 0xe65   :  { %9846 = vmatprep.subr.bf16.mxu1 %v4829_v34  ;;  %v4715_v3 = vsub.f32 %v13705_v43, %v4691_v27 }
 0xe67   :  { %v4738_v31 = vmul.f32 1.442695, %v4715_v3 }
 0xe68   :  { %v13761_v12 = vpop.eup %10660  ;;  %9847 = vmatpush3.bf16.msra.mxu1 %v4829_v34  ;;  %v4687_v57 = vpop.xlane.xlu1 %4686 }
 0xe69   :  { %4760 = vadd.xlane.f32.xlu1 %v13761_v12  ;;  %v4713_v47 = vsub.f32 %v13709_v21, %v4687_v57 }
 0xe6b   :  { %v4734_v5 = vmul.f32 1.442695, %v4713_v47 }
 0xe6c   :  { %v13764_v33 = vpop.eup %10662  ;;  %v4699_v61 = vpop.xlane.xlu1 %4698 }
 0xe6d   :  { %4756 = vadd.xlane.f32.xlu1 %v13764_v33 }
 0xe70   :  { %v13767_v32 = vpop.eup %10664  ;;  %v4695_v56 = vpop.xlane.xlu1 %4694 }
 0xe71   :  { %4762 = vadd.xlane.f32.xlu1 %v13767_v32  ;;  %v13770_v35 = vpop.eup %10666 }
 0xe74   :  { %v13779_v39 = vpop.permute.xlu1 %5089 }
 0xe75   :  { %4758 = vadd.xlane.f32.xlu1 %v13770_v35 }
 0xe86   :  { %5081 = vrot.lane.b32.xlu1 %v15960_v2, %s11201_s14 }
 0xe93   :  { %v4689_v34 = vpop.xlane.xlu0 %4688 }
 0xe94   :  { %v4714_v4 = vsub.f32 %v4638_v17, %v4689_v34  ;;  %v4719_v17 = vsub.f32 %v13713_v44, %v4699_v61 }
 0xe96   :  { %v4736_v25 = vmul.f32 1.442695, %v4714_v4  ;;  %v4746_v47 = vmul.f32 1.442695, %v4719_v17  ;;  %v4717_v4 = vsub.f32 %v13717_v51, %v4695_v56 }
 0xe97   :  { %v4685_v23 = vpop.xlane.xlu0 %4684 }
 0xe98   :  { %10668 = vpow2.f32 %v4736_v25  ;;  %v4712_v50 = vsub.f32 %v13728_v58, %v4685_v23  ;;  %v13783_v58 = vpop.permute.xlu1 %5085 }
 0xe99   :  { %10670 = vpow2.f32 %v4734_v5 }
 0xe9a   :  { %v4732_v46 = vmul.f32 1.442695, %v4712_v50 }
 0xe9b   :  { %v4697_v63 = vpop.xlane.xlu0 %4696 }
 0xe9c   :  { %10672 = vpow2.f32 %v4732_v46  ;;  %v4718_v2 = vsub.f32 %v13732_v24, %v4697_v63 }
 0xe9d   :  { %10674 = vpow2.f32 %v4738_v31 }
 0xe9e   :  { %v4744_v21 = vmul.f32 1.442695, %v4718_v2 }
 0xe9f   :  { %v4693_v43 = vpop.xlane.xlu0 %4692 }
 0xea0   :  { %10676 = vpow2.f32 %v4744_v21  ;;  %v4716_v27 = vsub.f32 %v13736_v38, %v4693_v43  ;;  %v4742_v38 = vmul.f32 1.442695, %v4717_v4  ;;  %v5136_v4 = vsel %vm1250_vm0, %v13779_v39, 0 }
 0xea2   :  { %v4740_v57 = vmul.f32 1.442695, %v4716_v27 }
 0xea3   :  { %v4705_v34 = vpop.xlane.xlu0 %4704 }
 0xea4   :  { %10678 = vpow2.f32 %v4740_v57  ;;  %v4722_v24 = vsub.f32 %v13740_v48, %v4705_v34 }
 0xea5   :  { %v13787_v25 = vpop.eup %10668  ;;  %10680 = vpow2.f32 %v4746_v47 }
 0xea6   :  { %v4752_v3 = vmul.f32 1.442695, %v4722_v24  ;;  %4768 = vadd.xlane.f32.xlu0 %v13787_v25  ;;  %v13790_v5 = vpop.eup %10670 }
 0xea7   :  { %v4707_v44 = vpop.xlane.xlu1 %4706  ;;  %v4701_v61 = vpop.xlane.xlu0 %4700 }
 0xea8   :  { %10682 = vpow2.f32 %v4752_v3  ;;  %v4720_v23 = vsub.f32 %v13744_v14, %v4701_v61  ;;  %v4723_v51 = vsub.f32 %v13747_v52, %v4707_v44 }
 0xea9   :  { %v13793_v50 = vpop.eup %10672  ;;  %10684 = vpow2.f32 %v4742_v38 }
 0xeaa   :  { %v4748_v56 = vmul.f32 1.442695, %v4720_v23  ;;  %4766 = vadd.xlane.f32.xlu1 %v13790_v5  ;;  %4764 = vadd.xlane.f32.xlu0 %v13793_v50  ;;  %v13798_v31 = vpop.eup %10674  ;;  %v4754_v14 = vmul.f32 1.442695, %v4723_v51 }
 0xeab   :  { %v4703_v48 = vpop.xlane.xlu1 %4702  ;;  %v5092_v46 = vpop.permute.xlu0 %5091 }
 0xeac   :  { %v4721_v63 = vsub.f32 %v13752_v16, %v4703_v48  ;;  %10048 = vmatprep.subr.msk.bf16.mxu1 %vm1250_vm0, %v5092_v46  ;;  %10686 = vpow2.f32 %v4748_v56  ;;  %v5139_v34 = vsel %vm1250_vm0, %v5092_v46, 0 }
 0xead   :  { %v13802_v2 = vpop.eup %10676 }
 0xeae   :  { %v4750_v21 = vmul.f32 1.442695, %v4721_v63  ;;  %4770 = vadd.xlane.f32.xlu0 %v13798_v31  ;;  %4776 = vadd.xlane.f32.xlu1 %v13802_v2 }
 0xeb0   :  { %10688 = vpow2.f32 %v4750_v21 }
 0xeb1   :  { %v13806_v52 = vpop.eup %10678  ;;  %10690 = vpow2.f32 %v4754_v14 }
 0xeb2   :  { %4772 = vadd.xlane.f32.xlu1 %v13806_v52  ;;  %v13809_v17 = vpop.eup %10680 }
 0xeb5   :  { %v13811_v16 = vpop.eup %10682 }
 0xeb6   :  { %4778 = vadd.xlane.f32.xlu1 %v13809_v17  ;;  %4784 = vadd.xlane.f32.xlu0 %v13811_v16  ;;  %v13815_v43 = vpop.eup %10684 }
 0xeb9   :  { %v13817_v27 = vpop.eup %10686 }
 0xeba   :  { %4774 = vadd.xlane.f32.xlu1 %v13815_v43  ;;  %4780 = vadd.xlane.f32.xlu0 %v13817_v27 }
 0xebd   :  { %v13821_v57 = vpop.eup %10688 }
 0xebe   :  { %v13823_v47 = vpop.eup %10690  ;;  %4782 = vadd.xlane.f32.xlu1 %v13821_v57 }
 0xebf   :  { %4786 = vadd.xlane.f32.xlu0 %v13823_v47 }
 0xecf   :  { %5077 = vrot.lane.b32.xlu1 %v13170_v60, %s11201_s14 }
 0xed3   :  { %5063 = vrot.lane.b32.xlu1 %v15901_v9, %s11201_s14 }
 0xed5   :  { %5079 = vrot.lane.b32.xlu0 %v13160_v54, %s11201_s14 }
 0xed7   :  { %5067 = vrot.lane.b32.xlu1 %v15903_v49, %s11201_s14 }
 0xed9   :  { %5061 = vrot.lane.b32.xlu0 %v15900_v62, %s11201_s14 }
 0xedb   :  { %5071 = vrot.lane.b32.xlu1 %v15905_v59, %s11201_s14 }
 0xedd   :  { %5065 = vrot.lane.b32.xlu0 %v15902_v26, %s11201_s14 }
 0xedf   :  { %5075 = vrot.lane.b32.xlu1 %v15907_v0, %s11201_s14 }
 0xee1   :  { %5069 = vrot.lane.b32.xlu0 %v15904_v11, %s11201_s14 }
 0xee3   :  { %5402 = vrot.lane.b32.xlu1 %v15817_v8, %s11201_s14 }
 0xee5   :  { %5073 = vrot.lane.b32.xlu0 %v15906_v18, %s11201_s14 }
 0xee9   :  { %5404 = vrot.lane.b32.xlu0 %v15816_v30, %s11201_s14 }
 0xeed   :  { %5400 = vrot.lane.b32.xlu0 %v15818_v41, %s11201_s14 }
 0xef1   :  { %5398 = vrot.lane.b32.xlu0 %v15819_v6, %s11201_s14 }
 0xef2   :  { %v4761_v54 = vpop.xlane.xlu1 %4760 }
 0xef6   :  { %v4757_v60 = vpop.xlane.xlu1 %4756 }
 0xefa   :  { %v4763_v62 = vpop.xlane.xlu1 %4762 }
 0xefb   :  { %10692 = vrcp.f32 %v4763_v62 }
 0xefc   :  { %10694 = vrcp.f32 %v4757_v60 }
 0xefd   :  { %10696 = vrcp.f32 %v4761_v54 }
 0xefe   :  { %v4759_v9 = vpop.xlane.xlu1 %4758 }
 0xeff   :  { %10698 = vrcp.f32 %v4759_v9 }
 0xf02   :  { %v5082_v24 = vpop.permute.xlu1 %5081 }
 0xf08   :  { %v10693_v8 = vpop.eup %10692 }
 0xf09   :  { %v10695_v26 = vpop.eup %10694  ;;  %v4807_v30 = vmul.f32 %v10693_v8, %v13767_v32  ;;  %v5088_v32 = vpop.permute.xlu0 %5087 }
 0xf0a   :  { %v10697_v49 = vpop.eup %10696  ;;  %v4804_v59 = vmul.f32 %v10695_v26, %v13764_v33  ;;  %v5133_v33 = vsel %vm1250_vm0, %v5088_v32, 0 }
 0xf0b   :  { %v4806_v6 = vmul.f32 %v10697_v49, %v13761_v12  ;;  %v5130_v12 = vsel %vm1250_vm0, %v13783_v58, 0 }
 0xf0c   :  { %v10699_v11 = vpop.eup %10698 }
 0xf0d   :  { %v4805_v41 = vmul.f32 %v10699_v11, %v13770_v35  ;;  %v4821_v0 = vpack.c.bf16 %v4807_v30, %v4806_v6  ;;  %v5084_v35 = vpop.permute.xlu0 %5083 }
 0xf0f   :  { %v4820_v18 = vpack.c.bf16 %v4805_v41, %v4804_v59 }
 0xf11   :  { %9848 = vmatprep.mubr.bf16.mxu1 %v4820_v18 }
 0xf12   :  { %9849 = vmatmul.mubr.bf16.vlgmr.msra.gmra.mxu1 %v4821_v0 }
 0xf13   :  { %9865 = vmatpush3.bf16.xpose.msra.mxu1 %v5139_v34 }
 0xf14   :  { %10049 = vmatprep.subr.msk.bf16.mxu1 %vm1250_vm0, %v13779_v39  ;;  %v5127_v39 = vsel %vm1250_vm0, %v5084_v35, 0 }
 0xf1b   :  { %9867 = vmatpush3.bf16.xpose.msra.mxu1 %v5136_v4 }
 0xf1c   :  { %10050 = vmatprep.subr.msk.bf16.mxu1 %vm1250_vm0, %v5088_v32 }
 0xf23   :  { %9869 = vmatpush3.bf16.xpose.msra.mxu1 %v5133_v33 }
 0xf24   :  { %10051 = vmatprep.subr.msk.bf16.mxu1 %vm1250_vm0, %v13783_v58  ;;  %v5124_v58 = vsel %vm1250_vm0, %v5082_v24, 0 }
 0xf2b   :  { %9871 = vmatpush3.bf16.xpose.msra.mxu1 %v5130_v12 }
 0xf2c   :  { %10052 = vmatprep.subr.msk.bf16.mxu1 %vm1250_vm0, %v5084_v35 }
 0xf2f   :  { %v4769_v3 = vpop.xlane.xlu0 %4768 }
 0xf33   :  { %9873 = vmatpush3.bf16.xpose.msra.mxu1 %v5127_v39  ;;  %v4767_v44 = vpop.xlane.xlu1 %4766  ;;  %v4765_v61 = vpop.xlane.xlu0 %4764 }
 0xf34   :  { %10700 = vrcp.f32 %v4767_v44  ;;  %10053 = vmatprep.subr.msk.bf16.mxu1 %vm1250_vm0, %v5082_v24 }
 0xf35   :  { %10702 = vrcp.f32 %v4765_v61 }
 0xf36   :  { %10704 = vrcp.f32 %v4769_v3 }
 0xf37   :  { %v4777_v38 = vpop.xlane.xlu1 %4776  ;;  %v4771_v23 = vpop.xlane.xlu0 %4770 }
 0xf38   :  { %10706 = vrcp.f32 %v4771_v23 }
 0xf3b   :  { %9875 = vmatpush3.bf16.xpose.msra.mxu1 %v5124_v58  ;;  %v4773_v51 = vpop.xlane.xlu1 %4772 }
 0xf3f   :  { %v4779_v56 = vpop.xlane.xlu1 %4778  ;;  %v4785_v48 = vpop.xlane.xlu0 %4784 }
 0xf40   :  { %10708 = vrcp.f32 %v4779_v56 }
 0xf41   :  { %v10701_v46 = vpop.eup %10700  ;;  %10710 = vrcp.f32 %v4773_v51 }
 0xf42   :  { %v10703_v63 = vpop.eup %10702  ;;  %v4809_v14 = vmul.f32 %v10701_v46, %v13790_v5  ;;  %10712 = vrcp.f32 %v4777_v38 }
 0xf43   :  { %v4775_v21 = vpop.xlane.xlu1 %4774  ;;  %v4808_v54 = vmul.f32 %v10703_v63, %v13793_v50  ;;  %v10705_v60 = vpop.eup %10704 }
 0xf44   :  { %10714 = vrcp.f32 %v4775_v21  ;;  %v4781_v62 = vpop.xlane.xlu0 %4780  ;;  %v4810_v49 = vmul.f32 %v10705_v60, %v13787_v25 }
 0xf45   :  { %v4822_v9 = vpack.c.bf16 %v4809_v14, %v4808_v54  ;;  %v10707_v8 = vpop.eup %10706  ;;  %10716 = vrcp.f32 %v4781_v62 }
 0xf46   :  { %v4811_v11 = vmul.f32 %v10707_v8, %v13798_v31 }
 0xf47   :  { %9852 = vmatprep.mubr.bf16.mxu1 %v4822_v9  ;;  %v4783_v26 = vpop.xlane.xlu1 %4782 }
 0xf48   :  { %10718 = vrcp.f32 %v4783_v26  ;;  %v4787_v30 = vpop.xlane.xlu0 %4786  ;;  %v4823_v5 = vpack.c.bf16 %v4811_v11, %v4810_v49 }
 0xf49   :  { %10720 = vrcp.f32 %v4787_v30 }
 0xf4a   :  { %10722 = vrcp.f32 %v4785_v48  ;;  %9853 = vmatmul.mubr.bf16.gmra.mxu1 %v4823_v5 }
 0xf4b   :  { %v5078_v59 = vpop.permute.xlu1 %5077 }
 0xf4c   :  { %v5080_v50 = vpop.permute.xlu0 %5079  ;;  %v5118_v61 = vsel %vm1250_vm0, %v5078_v59, 0 }
 0xf4d   :  { %10054 = vmatprep.subr.msk.bf16.mxu1 %vm1250_vm0, %v5080_v50  ;;  %v5121_v41 = vsel %vm1250_vm0, %v5080_v50, 0  ;;  %v10709_v6 = vpop.eup %10708 }
 0xf4e   :  { %9877 = vmatpush3.bf16.xpose.msra.mxu1 %v5121_v41  ;;  %v10711_v18 = vpop.eup %10710  ;;  %v4815_v4 = vmul.f32 %v10709_v6, %v13809_v17 }
 0xf4f   :  { %10055 = vmatprep.subr.msk.bf16.mxu1 %vm1250_vm0, %v5078_v59  ;;  %v5064_v25 = vpop.permute.xlu1 %5063  ;;  %v10713_v0 = vpop.eup %10712  ;;  %v4812_v32 = vmul.f32 %v10711_v18, %v13806_v52 }
 0xf50   :  { %v5062_v31 = vpop.permute.xlu0 %5061  ;;  %v4814_v24 = vmul.f32 %v10713_v0, %v13802_v2 }
 0xf51   :  { %v10715_v34 = vpop.eup %10714 }
 0xf52   :  { %v4813_v33 = vmul.f32 %v10715_v34, %v13815_v43  ;;  %v10717_v12 = vpop.eup %10716  ;;  %v4825_v38 = vpack.c.bf16 %v4815_v4, %v4814_v24 }
 0xf53   :  { %v5068_v35 = vpop.permute.xlu1 %5067  ;;  %v4816_v58 = vmul.f32 %v10717_v12, %v13817_v27 }
 0xf54   :  { %v5066_v3 = vpop.permute.xlu0 %5065  ;;  %v4824_v39 = vpack.c.bf16 %v4813_v33, %v4812_v32 }
 0xf55   :  { %v10719_v44 = vpop.eup %10718 }
 0xf56   :  { %v10721_v23 = vpop.eup %10720  ;;  %9879 = vmatpush3.bf16.xpose.msra.mxu1 %v5118_v61  ;;  %9856 = vmatprep.mubr.bf16.mxu1 %v4824_v39  ;;  %v4817_v17 = vmul.f32 %v10719_v44, %v13821_v57 }
 0xf57   :  { %v5072_v52 = vpop.permute.xlu1 %5071  ;;  %9857 = vmatmul.mubr.bf16.gmra.mxu1 %v4825_v38  ;;  %v10723_v43 = vpop.eup %10722  ;;  %v4819_v2 = vmul.f32 %v10721_v23, %v13823_v47 }
 0xf58   :  { %v5070_v51 = vpop.permute.xlu0 %5069  ;;  %v4826_v56 = vpack.c.bf16 %v4817_v17, %v4816_v58  ;;  %v4818_v48 = vmul.f32 %v10723_v43, %v13811_v16  ;;  %v15961_v16 = vmov 0   ;;  %v15962_v43 = vld [vmem:[#allocation89_spill] sm:$0xff] }
 0xf5a   :  { %9860 = vmatprep.mubr.bf16.mxu1 %v4826_v56  ;;  %v4827_v14 = vpack.c.bf16 %v4819_v2, %v4818_v48 }
 0xf5b   :  { %v5076_v46 = vpop.permute.xlu1 %5075 }
 0xf5c   :  { %v5074_v63 = vpop.permute.xlu0 %5073 }
 0xf5f   :  { %9861 = vmatmul.mubr.bf16.gmra.mxu1 %v4827_v14  ;;  %v5403_v27 = vpop.permute.xlu1 %5402 }
 0xf60   :  { %v5405_v21 = vpop.permute.xlu0 %5404  ;;  %9880 = vmatprep.mubr.msk.bf16.mxu1 %vm1250_vm0, %v5062_v31 }
 0xf61   :  { %9896 = vmatprep.subr.bf16.mxu0 %v5405_v21 }
 0xf62   :  { %9897 = vmatpush3.bf16.msra.mxu0 %v5405_v21 }
 0xf63   :  { %9898 = vmatprep.subr.bf16.mxu0 %v5403_v27 }
 0xf64   :  { %v5401_v57 = vpop.permute.xlu0 %5400 }
 0xf66   :  { %9899 = vmatpush3.bf16.msra.mxu0 %v5403_v27 }
 0xf67   :  { %9900 = vmatprep.subr.bf16.mxu0 %v5401_v57  ;;  %9881 = vmatmul.mubr.msk.bf16.vlgmr.msra.gmra.mxu1 %vm1250_vm0, %v5064_v25 }
 0xf68   :  { %9884 = vmatprep.mubr.msk.bf16.mxu1 %vm1250_vm0, %v5066_v3  ;;  %v5399_v47 = vpop.permute.xlu0 %5398 }
 0xf6a   :  { %9901 = vmatpush3.bf16.msra.mxu0 %v5401_v57 }
 0xf6b   :  { %9902 = vmatprep.subr.bf16.mxu0 %v5399_v47 }
 0xf6e   :  { %9903 = vmatpush3.bf16.msra.mxu0 %v5399_v47 }
 0xf6f   :  { %9885 = vmatmul.mubr.msk.bf16.gmra.mxu1 %vm1250_vm0, %v5068_v35 }
 0xf70   :  { %9888 = vmatprep.mubr.msk.bf16.mxu1 %vm1250_vm0, %v5070_v51 }
 0xf77   :  { %9889 = vmatmul.mubr.msk.bf16.gmra.mxu1 %vm1250_vm0, %v5072_v52 }
 0xf78   :  { %9892 = vmatprep.mubr.msk.bf16.mxu1 %vm1250_vm0, %v5074_v63 }
 0xf7f   :  { %9893 = vmatmul.mubr.msk.bf16.gmra.mxu1 %vm1250_vm0, %v5076_v46  ;;  %vm2296_vm0 = vcmask 519424  }
 0xf80   :  { %6739 = vmatprep.mubr.bf16.mxu1 %v15961_v16 }
 0xfd2   :  { %v13899_v54 = vpop.f32.mrf.mxu1 }
 0xfd4   :  { %v13901_v60 = vpop.f32.mrf.mxu1 }
 0xfd6   :  { %v13903_v62 = vpop.f32.mrf.mxu1 }
 0xfd8   :  { %v13905_v9 = vpop.f32.mrf.mxu1 }
0x100a   :  { %v13907_v8 = vpop.f32.mrf.mxu1 }
0x100c   :  { %v13909_v26 = vpop.f32.mrf.mxu1 }
0x100e   :  { %v13911_v49 = vpop.f32.mrf.mxu1 }
0x1010   :  { %v13913_v11 = vpop.f32.mrf.mxu1 }
0x1017   :  { %v13915_v30 = vpop.f32.mrf.mxu1 }
0x1019   :  { %v13917_v5 = vpop.f32.mrf.mxu1 }
0x101b   :  { %v13919_v59 = vpop.f32.mrf.mxu1 }
0x101d   :  { %v13921_v50 = vpop.f32.mrf.mxu1 }
0x101f   :  { %v13923_v41 = vpop.f32.mrf.mxu1 }
0x1021   :  { %v13925_v6 = vpop.f32.mrf.mxu1 }
0x1023   :  { %v13927_v18 = vpop.f32.mrf.mxu1 }
0x1025   :  { %v13929_v25 = vpop.f32.mrf.mxu1 }
0x1027   :  { %v9882_v0 = vpop.f32.mrf.mxu1 }
0x1028   :  { %v5184_v31 = vadd.f32 %v9882_v0, %v15856_v10 }
0x1029   :  { %v5175_v34 = vpop.f32.mrf.mxu1 }
0x102a   :  { %5242 = vmax.xlane.f32.xlu0 %v5184_v31  ;;  %v5176_v32 = vadd.f32 %v5175_v34, %v15857_v45 }
0x102b   :  { %v9883_v4 = vpop.f32.mrf.mxu1 }
0x102c   :  { %v5187_v24 = vadd.f32 %v9883_v4, %v15859_v55 }
0x102d   :  { %v5178_v33 = vpop.f32.mrf.mxu1 }
0x102e   :  { %v5179_v12 = vadd.f32 %v5178_v33, %v15858_v1  ;;  %5238 = vmax.xlane.f32.xlu0 %v5176_v32 }
0x102f   :  { %v9886_v35 = vpop.f32.mrf.mxu1 }
0x1030   :  { %5240 = vmax.xlane.f32.xlu1 %v5179_v12  ;;  %v5200_v44 = vadd.f32 %v9886_v35, %v15924_v29 }
0x1031   :  { %v5191_v3 = vpop.f32.mrf.mxu1 }
0x1032   :  { %5244 = vmax.xlane.f32.xlu0 %v5187_v24  ;;  %v5192_v45 = vadd.f32 %v5191_v3, %v15925_v37 }
0x1033   :  { %v9887_v39 = vpop.f32.mrf.mxu1 }
0x1034   :  { %v5203_v10 = vadd.f32 %v9887_v39, %v15860_v36 }
0x1035   :  { %v5194_v61 = vpop.f32.mrf.mxu1 }
0x1036   :  { %5250 = vmax.xlane.f32.xlu0 %v5200_v44  ;;  %5252 = vmax.xlane.f32.xlu1 %v5203_v10  ;;  %v5195_v1 = vadd.f32 %v5194_v61, %v15861_v13 }
0x1037   :  { %v9890_v38 = vpop.f32.mrf.mxu1 }
0x1038   :  { %v13940_v58 = vadd.f32 %v9890_v38, %v15926_v40 }
0x1039   :  { %v5207_v23 = vpop.f32.mrf.mxu1 }
0x103a   :  { %5248 = vmax.xlane.f32.xlu1 %v5195_v1  ;;  %5246 = vmax.xlane.f32.xlu0 %v5192_v45  ;;  %v13948_v36 = vadd.f32 %v5207_v23, %v15952_v20 }
0x103b   :  { %v9891_v55 = vpop.f32.mrf.mxu1 }
0x103c   :  { %v13943_v17 = vadd.f32 %v9891_v55, %v15862_v19 }
0x103d   :  { %v5210_v29 = vpop.f32.mrf.mxu1 }
0x103e   :  { %5258 = vmax.xlane.f32.xlu0 %v13940_v58  ;;  %5260 = vmax.xlane.f32.xlu1 %v13943_v17  ;;  %v13951_v13 = vadd.f32 %v5210_v29, %v15863_v22 }
0x103f   :  { %v9894_v37 = vpop.f32.mrf.mxu1 }
0x1040   :  { %v13956_v40 = vadd.f32 %v9894_v37, %v15953_v53 }
0x1041   :  { %v5223_v19 = vpop.f32.mrf.mxu1 }
0x1042   :  { %5256 = vmax.xlane.f32.xlu1 %v13951_v13  ;;  %5254 = vmax.xlane.f32.xlu0 %v13948_v36  ;;  %v13960_v52 = vadd.f32 %v5223_v19, %v15954_v42 }
0x1043   :  { %v9895_v22 = vpop.f32.mrf.mxu1 }
0x1044   :  { %v13968_v20 = vadd.f32 %v9895_v22, %v15955_v7 }
0x1045   :  { %v5226_v53 = vpop.f32.mrf.mxu1 }
0x1046   :  { %5266 = vmax.xlane.f32.xlu0 %v13956_v40  ;;  %v13972_v51 = vadd.f32 %v5226_v53, %v15962_v43 }
0x104a   :  { %5262 = vmax.xlane.f32.xlu0 %v13960_v52 }
0x1053   :  { %5394 = vrot.lane.b32.xlu1 %v15821_v28, %s11201_s14 }
0x1060   :  { %5396 = vrot.lane.b32.xlu0 %v15820_v15, %s11201_s14 }
0x1077   :  { %5268 = vmax.xlane.f32.xlu1 %v13968_v20 }
0x107b   :  { %5264 = vmax.xlane.f32.xlu1 %v13972_v51 }
0x10b3   :  { %v5243_v42 = vpop.xlane.xlu0 %5242 }
0x10b4   :  { %v5272_v56 = vsub.f32 %v5184_v31, %v5243_v42 }
0x10b6   :  { %v5290_v2 = vmul.f32 1.442695, %v5272_v56  ;;  %v15963_v56 = vld [vmem:[#allocation66_spill] sm:$0xff] }
0x10b7   :  { %v5239_v48 = vpop.xlane.xlu0 %5238 }
0x10b8   :  { %10724 = vpow2.f32 %v5290_v2  ;;  %v5270_v28 = vsub.f32 %v5176_v32, %v5239_v48  ;;  %v15964_v2 = vld [vmem:[#allocation64_spill] sm:$0xff] }
0x10b9   :  { %v5241_v46 = vpop.xlane.xlu1 %5240 }
0x10ba   :  { %v5286_v15 = vmul.f32 1.442695, %v5270_v28  ;;  %v5271_v7 = vsub.f32 %v5179_v12, %v5241_v46 }
0x10bb   :  { %v5245_v63 = vpop.xlane.xlu0 %5244 }
0x10bc   :  { %10726 = vpow2.f32 %v5286_v15  ;;  %v5273_v14 = vsub.f32 %v5187_v24, %v5245_v63  ;;  %v5288_v47 = vmul.f32 1.442695, %v5271_v7 }
0x10be   :  { %v5292_v21 = vmul.f32 1.442695, %v5273_v14 }
0x10bf   :  { %v5253_v27 = vpop.xlane.xlu1 %5252  ;;  %v5251_v57 = vpop.xlane.xlu0 %5250 }
0x10c0   :  { %10728 = vpow2.f32 %v5292_v21  ;;  %v5277_v0 = vsub.f32 %v5203_v10, %v5253_v27  ;;  %v5276_v34 = vsub.f32 %v5200_v44, %v5251_v57 }
0x10c1   :  { %10730 = vpow2.f32 %v5288_v47 }
0x10c2   :  { %v5298_v4 = vmul.f32 1.442695, %v5276_v34  ;;  %v5300_v35 = vmul.f32 1.442695, %v5277_v0 }
0x10c3   :  { %v5249_v33 = vpop.xlane.xlu1 %5248  ;;  %v5247_v31 = vpop.xlane.xlu0 %5246 }
0x10c4   :  { %v5274_v3 = vsub.f32 %v5192_v45, %v5247_v31  ;;  %10732 = vpow2.f32 %v5298_v4  ;;  %v5275_v39 = vsub.f32 %v5195_v1, %v5249_v33 }
0x10c5   :  { %v13975_v32 = vpop.eup %10724  ;;  %10734 = vpow2.f32 %v5300_v35 }
0x10c6   :  { %v5294_v61 = vmul.f32 1.442695, %v5274_v3  ;;  %5322 = vadd.xlane.f32.xlu1 %v13975_v32  ;;  %v5296_v38 = vmul.f32 1.442695, %v5275_v39  ;;  %v15965_v39 = vld [vmem:[#allocation91_spill] sm:$0xff] }
0x10c7   :  { %v5259_v12 = vpop.xlane.xlu0 %5258  ;;  %v5261_v45 = vpop.xlane.xlu1 %5260 }
0x10c8   :  { %10736 = vpow2.f32 %v5294_v61  ;;  %v5281_v28 = vsub.f32 %v13943_v17, %v5261_v45  ;;  %v5280_v7 = vsub.f32 %v13940_v58, %v5259_v12  ;;  %v8729_v61 = vpack.c.bf16 %v15965_v39, %v15965_v39  ;;  %v15966_v12 = vld [vmem:[#allocation93_spill] sm:$0xff] }
0x10c9   :  { %v13978_v24 = vpop.eup %10726  ;;  %10738 = vpow2.f32 %v5296_v38  ;;  %v8730_v38 = vpack.c.bf16 %v15966_v12, %v15966_v12 }
0x10ca   :  { %5318 = vadd.xlane.f32.xlu1 %v13978_v24  ;;  %v5308_v63 = vmul.f32 1.442695, %v5281_v28  ;;  %v5306_v27 = vmul.f32 1.442695, %v5280_v7  ;;  %v15972_v28 = vld [vmem:[#allocation31_spill] sm:$0xff]  ;;  %v15974_v7 = vld [vmem:[#allocation69_spill] sm:$0xff] }
0x10cb   :  { %v5255_v44 = vpop.xlane.xlu0 %5254  ;;  %v5257_v29 = vpop.xlane.xlu1 %5256 }
0x10cc   :  { %v5278_v48 = vsub.f32 %v13948_v36, %v5255_v44  ;;  %v5279_v46 = vsub.f32 %v13951_v13, %v5257_v29  ;;  %v15967_v44 = vld [vmem:[#allocation90_spill] sm:$0xff] }
0x10cd   :  { %v13981_v10 = vpop.eup %10728  ;;  %v8728_v45 = vpack.c.bf16 %v15967_v44, %v15967_v44 }
0x10ce   :  { %5324 = vadd.xlane.f32.xlu1 %v13981_v10  ;;  %v13984_v1 = vpop.eup %10730  ;;  %v5302_v15 = vmul.f32 1.442695, %v5278_v48  ;;  %v5304_v14 = vmul.f32 1.442695, %v5279_v46  ;;  %v8747_v46 = vpack.c.bf16 %v15972_v28, %v15972_v28 }
0x10cf   :  { %v5267_v23 = vpop.xlane.xlu0 %5266  ;;  %v5395_v43 = vpop.permute.xlu1 %5394 }
0x10d0   :  { %10740 = vpow2.f32 %v5302_v15  ;;  %v5284_v17 = vsub.f32 %v13956_v40, %v5267_v23  ;;  %v15968_v23 = vld [vmem:[#allocation95_spill] sm:$0xff] }
0x10d1   :  { %v13986_v55 = vpop.eup %10732  ;;  %10742 = vpow2.f32 %v5308_v63  ;;  %v8731_v29 = vpack.c.bf16 %v15968_v23, %v15968_v23  ;;  %v15973_v15 = vld [vmem:[#allocation71_spill] sm:$0xff]  ;;  %v15983_v23 = vld [vmem:[#allocation109_spill] sm:$0xff] }
0x10d2   :  { %5320 = vadd.xlane.f32.xlu1 %v13984_v1  ;;  %5330 = vadd.xlane.f32.xlu0 %v13986_v55  ;;  %v13990_v19 = vpop.eup %10734  ;;  %10744 = vpow2.f32 %v5304_v14  ;;  %v5314_v58 = vmul.f32 1.442695, %v5284_v17  ;;  %v8760_v63 = vpack.c.bf16 %v15973_v15, %v15973_v15  ;;  %v8761_v14 = vpack.c.bf16 %v15974_v7, %v15974_v7  ;;  %v15978_v17 = vld [vmem:[#allocation29_spill] sm:$0xff]  ;;  %v15987_v15 = vld [vmem:[#allocation74_spill] sm:$0xff]  ;;  %v15988_v7 = vld [vmem:[#allocation76_spill] sm:$0xff] }
0x10d3   :  { %v5263_v37 = vpop.xlane.xlu0 %5262  ;;  %10746 = vpow2.f32 %v5306_v27 }
0x10d4   :  { %v5282_v57 = vsub.f32 %v13960_v52, %v5263_v37  ;;  %v15969_v37 = vld [vmem:[#allocation110_spill] sm:$0xff] }
0x10d5   :  { %v13992_v22 = vpop.eup %10736 }
0x10d6   :  { %5332 = vadd.xlane.f32.xlu0 %v13990_v19  ;;  %5326 = vadd.xlane.f32.xlu1 %v13992_v22  ;;  %v13996_v42 = vpop.eup %10738  ;;  %v5310_v13 = vmul.f32 1.442695, %v5282_v57  ;;  %v15976_v57 = vld [vmem:[#allocation68_spill] sm:$0xff] }
0x10d7   :  { %v5397_v53 = vpop.permute.xlu0 %5396 }
0x10d8   :  { %9904 = vmatprep.subr.bf16.mxu0 %v5397_v53 }
0x10d9   :  { %9905 = vmatpush3.bf16.msra.mxu0 %v5397_v53  ;;  %v8744_v53 = vpack.c.bf16 %v15969_v37, %v15969_v37  ;;  %v15984_v37 = vld [vmem:[#allocation25_spill] sm:$0xff] }
0x10da   :  { %9906 = vmatprep.subr.bf16.mxu0 %v5395_v43  ;;  %5328 = vadd.xlane.f32.xlu0 %v13996_v42 }
0x10dd   :  { %9907 = vmatpush3.bf16.msra.mxu0 %v5395_v43  ;;  %v14011_v33 = vpop.eup %10740  ;;  %v15970_v43 = vld [vmem:[#allocation96_spill] sm:$0xff] }
0x10de   :  { %v14014_v52 = vpop.eup %10742 }
0x10e7   :  { %5390 = vrot.lane.b32.xlu1 %v15963_v56, %s11201_s14  ;;  %v8745_v56 = vpack.c.bf16 %v15970_v43, %v15970_v43 }
0x10f0   :  { %5392 = vrot.lane.b32.xlu0 %v15964_v2, %s11201_s14  ;;  %v15971_v2 = vld [vmem:[#allocation24_spill] sm:$0xff] }
0x10f1   :  { %v8746_v48 = vpack.c.bf16 %v15971_v2, %v15971_v2 }
0x1100   :  { %v5269_v21 = vpop.xlane.xlu1 %5268 }
0x1101   :  { %v5285_v0 = vsub.f32 %v13968_v20, %v5269_v21  ;;  %v14016_v20 = vpop.eup %10744  ;;  %v15975_v21 = vld [vmem:[#allocation70_spill] sm:$0xff] }
0x1102   :  { %v14020_v40 = vpop.eup %10746  ;;  %v8762_v27 = vpack.c.bf16 %v15975_v21, %v15975_v21 }
0x1103   :  { %v5316_v4 = vmul.f32 1.442695, %v5285_v0  ;;  %v15977_v0 = vld [vmem:[#allocation92_spill] sm:$0xff] }
0x1104   :  { %v5265_v47 = vpop.xlane.xlu1 %5264 }
0x1105   :  { %v5283_v36 = vsub.f32 %v13972_v51, %v5265_v47  ;;  %v8763_v47 = vpack.c.bf16 %v15976_v57, %v15976_v57 }
0x1107   :  { %v5312_v34 = vmul.f32 1.442695, %v5283_v36  ;;  %v8732_v36 = vpack.c.bf16 %v15977_v0, %v15977_v0  ;;  %v15990_v0 = vld [vmem:[#allocation30_spill] sm:$0xff] }
0x1109   :  { %10748 = vpow2.f32 %v5312_v34  ;;  %v15979_v34 = vld [vmem:[#allocation98_spill] sm:$0xff] }
0x110a   :  { %10750 = vpow2.f32 %v5310_v13  ;;  %v8733_v13 = vpack.c.bf16 %v15978_v17, %v15978_v17  ;;  %v15991_v17 = vld [vmem:[#allocation107_spill] sm:$0xff] }
0x110b   :  { %5334 = vadd.xlane.f32.xlu1 %v14011_v33  ;;  %10752 = vpow2.f32 %v5316_v4  ;;  %v8734_v4 = vpack.c.bf16 %v15979_v34, %v15979_v34 }
0x110c   :  { %10754 = vpow2.f32 %v5314_v58  ;;  %v15980_v58 = vld [vmem:[#allocation27_spill] sm:$0xff] }
0x110d   :  { %v8735_v39 = vpack.c.bf16 %v15980_v58, %v15980_v58  ;;  %v15992_v58 = vld [vmem:[#allocation28_spill] sm:$0xff] }
0x110f   :  { %5336 = vadd.xlane.f32.xlu0 %v14016_v20  ;;  %5340 = vadd.xlane.f32.xlu1 %v14014_v52 }
0x1113   :  { %5338 = vadd.xlane.f32.xlu0 %v14020_v40 }
0x1116   :  { %v14023_v51 = vpop.eup %10748 }
0x1117   :  { %v14025_v31 = vpop.eup %10750  ;;  %5344 = vadd.xlane.f32.xlu1 %v14023_v51 }
0x1118   :  { %5342 = vadd.xlane.f32.xlu0 %v14025_v31  ;;  %v14029_v35 = vpop.eup %10752 }
0x1119   :  { %v14031_v3 = vpop.eup %10754 }
0x111b   :  { %5348 = vadd.xlane.f32.xlu1 %v14029_v35 }
0x111c   :  { %5346 = vadd.xlane.f32.xlu0 %v14031_v3 }
0x112c   :  { %2250 = vrot.lane.b32.xlu1 %v8729_v61, %s11201_s14  ;;  %v15981_v61 = vld [vmem:[#allocation32_spill] sm:$0xff] }
0x112d   :  { %v8748_v12 = vpack.c.bf16 %v15981_v61, %v15981_v61  ;;  %v15993_v61 = vld [vmem:[#allocation34_spill] sm:$0xff] }
0x1130   :  { %2252 = vrot.lane.b32.xlu1 %v8730_v38, %s11201_s14  ;;  %v15982_v38 = vld [vmem:[#allocation99_spill] sm:$0xff] }
0x1131   :  { %v8749_v44 = vpack.c.bf16 %v15982_v38, %v15982_v38 }
0x1132   :  { %2248 = vrot.lane.b32.xlu0 %v8728_v45, %s11201_s14 }
0x1134   :  { %2254 = vrot.lane.b32.xlu1 %v8731_v29, %s11201_s14  ;;  %v8750_v29 = vpack.c.bf16 %v15983_v23, %v15983_v23 }
0x1136   :  { %2811 = vrot.lane.b32.xlu0 %v8744_v53, %s11196_s0  ;;  %v8751_v53 = vpack.c.bf16 %v15984_v37, %v15984_v37  ;;  %v15995_v37 = vld [vmem:[#allocation111_spill] sm:$0xff] }
0x1138   :  { %2813 = vrot.lane.b32.xlu1 %v8745_v56, %s11196_s0  ;;  %v15985_v56 = vld [vmem:[#allocation75_spill] sm:$0xff] }
0x1139   :  { %v8764_v2 = vpack.c.bf16 %v15985_v56, %v15985_v56 }
0x113a   :  { %2815 = vrot.lane.b32.xlu0 %v8746_v48, %s11196_s0  ;;  %v15986_v48 = vld [vmem:[#allocation77_spill] sm:$0xff] }
0x113b   :  { %v8765_v28 = vpack.c.bf16 %v15986_v48, %v15986_v48  ;;  %v15996_v48 = vld [vmem:[#allocation108_spill] sm:$0xff] }
0x113c   :  { %2817 = vrot.lane.b32.xlu1 %v8747_v46, %s11196_s0 }
0x113e   :  { %3374 = vrot.lane.b32.xlu0 %v8760_v63, %s11200_s4  ;;  %v8766_v63 = vpack.c.bf16 %v15987_v15, %v15987_v15 }
0x1140   :  { %3376 = vrot.lane.b32.xlu1 %v8761_v14, %s11200_s4  ;;  %v8767_v14 = vpack.c.bf16 %v15988_v7, %v15988_v7 }
0x1142   :  { %3378 = vrot.lane.b32.xlu0 %v8762_v27, %s11200_s4  ;;  %v15989_v27 = vld [vmem:[#allocation106_spill] sm:$0xff] }
0x1143   :  { %v8736_v57 = vpack.c.bf16 %v15989_v27, %v15989_v27 }
0x1144   :  { %3380 = vrot.lane.b32.xlu1 %v8763_v47, %s11200_s4 }
0x1146   :  { %2256 = vrot.lane.b32.xlu0 %v8732_v36, %s11201_s14  ;;  %v8737_v36 = vpack.c.bf16 %v15990_v0, %v15990_v0  ;;  %v15998_v0 = vld [vmem:[#allocation85_spill] sm:$0xff] }
0x1148   :  { %2258 = vrot.lane.b32.xlu1 %v8733_v13, %s11201_s14  ;;  %v8738_v13 = vpack.c.bf16 %v15991_v17, %v15991_v17 }
0x114a   :  { %2260 = vrot.lane.b32.xlu0 %v8734_v4, %s11201_s14 }
0x114c   :  { %2262 = vrot.lane.b32.xlu1 %v8735_v39, %s11201_s14  ;;  %v8739_v39 = vpack.c.bf16 %v15992_v58, %v15992_v58  ;;  %v16000_v58 = vld [vmem:[#allocation83_spill] sm:$0xff] }
0x114e   :  { %2819 = vrot.lane.b32.xlu0 %v8748_v12, %s11196_s0  ;;  %v8752_v12 = vpack.c.bf16 %v15993_v61, %v15993_v61 }
0x114f   :  { %v5323_v45 = vpop.xlane.xlu1 %5322 }
0x1150   :  { %2821 = vrot.lane.b32.xlu1 %v8749_v44, %s11196_s0  ;;  %v15994_v44 = vld [vmem:[#allocation33_spill] sm:$0xff] }
0x1152   :  { %2823 = vrot.lane.b32.xlu0 %v8750_v29, %s11196_s0 }
0x1153   :  { %v5319_v43 = vpop.xlane.xlu1 %5318 }
0x1154   :  { %2825 = vrot.lane.b32.xlu1 %v8751_v53, %s11196_s0  ;;  %10756 = vrcp.f32 %v5319_v43  ;;  %v8754_v53 = vpack.c.bf16 %v15995_v37, %v15995_v37 }
0x1156   :  { %3382 = vrot.lane.b32.xlu0 %v8764_v2, %s11200_s4 }
0x1157   :  { %v5325_v46 = vpop.xlane.xlu1 %5324 }
0x1158   :  { %3384 = vrot.lane.b32.xlu1 %v8765_v28, %s11200_s4  ;;  %10758 = vrcp.f32 %v5325_v46  ;;  %v8755_v28 = vpack.c.bf16 %v15996_v48, %v15996_v48 }
0x115a   :  { %3386 = vrot.lane.b32.xlu0 %v8766_v63, %s11200_s4 }
0x115b   :  { %v5321_v21 = vpop.xlane.xlu1 %5320  ;;  %v5331_v47 = vpop.xlane.xlu0 %5330 }
0x115c   :  { %10760 = vrcp.f32 %v5321_v21  ;;  %3388 = vrot.lane.b32.xlu1 %v8767_v14, %s11200_s4  ;;  %v10108_v14 = vld [vmem:[#allocation11 + $0x38] sm:$0xff]   ;;  %v15997_v21 = vld [vmem:[#allocation81_spill] sm:$0xff] }
0x115d   :  { %10762 = vrcp.f32 %v5323_v45  ;;  %v8753_v45 = vpack.c.bf16 %v15994_v44, %v15994_v44  ;;  %v8768_v27 = vpack.c.bf16 %v15997_v21, %v15997_v21  ;;  %v10110_v44 = vld [vmem:[#allocation11 + $0x28] sm:$0xff]  }
0x115e   :  { %2264 = vrot.lane.b32.xlu0 %v8736_v57, %s11201_s14 }
0x115f   :  { %v5327_v34 = vpop.xlane.xlu1 %5326  ;;  %v5333_v4 = vpop.xlane.xlu0 %5332 }
0x1160   :  { %2266 = vrot.lane.b32.xlu1 %v8737_v36, %s11201_s14  ;;  %10764 = vrcp.f32 %v5327_v34  ;;  %v8769_v36 = vpack.c.bf16 %v15998_v0, %v15998_v0  ;;  %v16009_v0 = vld [vmem:[#allocation65_spill] sm:$0xff] }
0x1161   :  { %10766 = vrcp.f32 %v5333_v4  ;;  %v10757_v23 = vpop.eup %10756 }
0x1162   :  { %2268 = vrot.lane.b32.xlu0 %v8738_v13, %s11201_s14  ;;  %10768 = vrcp.f32 %v5331_v47  ;;  %v5366_v15 = vmul.f32 %v10757_v23, %v13978_v24  ;;  %v15999_v13 = vld [vmem:[#allocation79_spill] sm:$0xff] }
0x1163   :  { %v5329_v38 = vpop.xlane.xlu0 %5328  ;;  %v5391_v46 = vpop.permute.xlu1 %5390  ;;  %v8770_v34 = vpack.c.bf16 %v15999_v13, %v15999_v13 }
0x1164   :  { %2270 = vrot.lane.b32.xlu1 %v8739_v39, %s11201_s14  ;;  %10770 = vrcp.f32 %v5329_v38  ;;  %v8771_v39 = vpack.c.bf16 %v16000_v58, %v16000_v58 }
0x1165   :  { %v10759_v29 = vpop.eup %10758 }
0x1166   :  { %2827 = vrot.lane.b32.xlu0 %v8752_v12, %s11196_s0  ;;  %v5369_v7 = vmul.f32 %v10759_v29, %v13981_v10  ;;  %v10109_v10 = vld [vmem:[#allocation11 + $0x30] sm:$0xff]  }
0x1167   :  { %v5393_v43 = vpop.permute.xlu0 %5392 }
0x1168   :  { %2829 = vrot.lane.b32.xlu1 %v8753_v45, %s11196_s0  ;;  %9908 = vmatprep.subr.bf16.mxu0 %v5393_v43  ;;  %v16001_v45 = vld [vmem:[#allocation23_spill] sm:$0xff] }
0x1169   :  { %v10761_v56 = vpop.eup %10760  ;;  %9909 = vmatpush3.bf16.msra.mxu0 %v5393_v43  ;;  %v8740_v23 = vpack.c.bf16 %v16001_v45, %v16001_v45 }
0x116a   :  { %v10763_v2 = vpop.eup %10762  ;;  %2831 = vrot.lane.b32.xlu0 %v8754_v53, %s11196_s0  ;;  %v5367_v63 = vmul.f32 %v10761_v56, %v13984_v1  ;;  %9910 = vmatprep.subr.bf16.mxu0 %v5391_v46  ;;  %v16002_v53 = vld [vmem:[#allocation94_spill] sm:$0xff] }
0x116b   :  { %v5368_v47 = vmul.f32 %v10763_v2, %v13975_v32  ;;  %v8741_v43 = vpack.c.bf16 %v16002_v53, %v16002_v53  ;;  %v16004_v2 = vld [vmem:[#allocation22_spill] sm:$0xff]  ;;  %v8810_v53 = vpack.c.bf16 %v13899_v54, %v13899_v54 }
0x116c   :  { %2833 = vrot.lane.b32.xlu1 %v8755_v28, %s11196_s0  ;;  %v5382_v57 = vpack.c.bf16 %v5367_v63, %v5366_v15  ;;  %v8743_v48 = vpack.c.bf16 %v16004_v2, %v16004_v2  ;;  %v16005_v28 = vld [vmem:[#allocation62_spill] sm:$0xff]  ;;  %v16006_v15 = vld [vmem:[#allocation105_spill] sm:$0xff]  ;;  %v16019_v2 = vld [vmem:[#allocation44_spill] sm:$0xff] }
0x116d   :  { %9911 = vmatpush3.bf16.msra.mxu0 %v5391_v46  ;;  %v10765_v24 = vpop.eup %10764  ;;  %v5383_v1 = vpack.c.bf16 %v5369_v7, %v5368_v47  ;;  %v8756_v46 = vpack.c.bf16 %v16005_v28, %v16005_v28  ;;  %v8757_v63 = vpack.c.bf16 %v16006_v15, %v16006_v15  ;;  %v10113_v7 = vld [vmem:[#allocation11 + $0x10] sm:$0xff]   ;;  %v10114_v47 = vld [vmem:[#allocation11 + $0x8] sm:$0xff]   ;;  %v8812_v15 = vpack.c.bf16 %v13909_v26, %v13909_v26 }
0x116e   :  { %3390 = vrot.lane.b32.xlu0 %v8768_v27, %s11200_s4  ;;  %9912 = vmatprep.mubr.bf16.mxu0 %v5382_v57  ;;  %v10767_v17 = vpop.eup %10766  ;;  %v5370_v61 = vmul.f32 %v10765_v24, %v13992_v22  ;;  %v16008_v27 = vld [vmem:[#allocation101_spill] sm:$0xff]  ;;  %v16010_v24 = vld [vmem:[#allocation63_spill] sm:$0xff]  ;;  %v16020_v28 = vld [vmem:[#allocation50_spill] sm:$0xff] }
0x116f   :  { %9928 = vmatprep.subr.bf16.mxu0 %v10108_v14  ;;  %v10769_v4 = vpop.eup %10768  ;;  %v5373_v38 = vmul.f32 %v10767_v17, %v13990_v19  ;;  %v10111_v19 = vld [vmem:[#allocation11 + $0x20] sm:$0xff]   ;;  %v8759_v57 = vpack.c.bf16 %v16008_v27, %v16008_v27 }
0x1170   :  { %3392 = vrot.lane.b32.xlu1 %v8769_v36, %s11200_s4  ;;  %9913 = vmatmul.mubr.bf16.vlgmr.msra.gmra.mxu0 %v5383_v1  ;;  %v5372_v37 = vmul.f32 %v10769_v4, %v13986_v55  ;;  %v10112_v55 = vld [vmem:[#allocation11 + $0x18] sm:$0xff]   ;;  %v8772_v36 = vpack.c.bf16 %v16009_v0, %v16009_v0  ;;  %v8773_v1 = vpack.c.bf16 %v16010_v24, %v16010_v24  ;;  %v16011_v17 = vld [vmem:[#allocation61_spill] sm:$0xff] }
0x1171   :  { %v10771_v32 = vpop.eup %10770  ;;  %9929 = vmatpush3.bf16.msra.mxu0 %v10108_v14  ;;  %v16007_v14 = vld [vmem:[#allocation102_spill] sm:$0xff]  ;;  %v8774_v13 = vpack.c.bf16 %v16011_v17, %v16011_v17 }
0x1172   :  { %3394 = vrot.lane.b32.xlu0 %v8770_v34, %s11200_s4  ;;  %v5371_v12 = vmul.f32 %v10771_v32, %v13996_v42  ;;  %9930 = vmatprep.subr.bf16.mxu0 %v10109_v10  ;;  %v5385_v22 = vpack.c.bf16 %v5373_v38, %v5372_v37  ;;  %v16003_v42 = vld [vmem:[#allocation100_spill] sm:$0xff]  ;;  %v8758_v21 = vpack.c.bf16 %v16007_v14, %v16007_v14  ;;  %v16012_v34 = vld [vmem:[#allocation58_spill] sm:$0xff] }
0x1173   :  { %v8742_v56 = vpack.c.bf16 %v16003_v42, %v16003_v42  ;;  %v8775_v4 = vpack.c.bf16 %v16012_v34, %v16012_v34  ;;  %v16013_v32 = vld [vmem:[#allocation60_spill] sm:$0xff]  ;;  %v8809_v37 = vpack.c.bf16 %v13905_v9, %v13905_v9 }
0x1174   :  { %3396 = vrot.lane.b32.xlu1 %v8771_v39, %s11200_s4  ;;  %v5384_v29 = vpack.c.bf16 %v5371_v12, %v5370_v61  ;;  %v8792_v58 = vpack.c.bf16 %v16013_v32, %v16013_v32  ;;  %v16014_v39 = vld [vmem:[#allocation26_spill] sm:$0xff]  ;;  %v16015_v12 = vld [vmem:[#allocation59_spill] sm:$0xff] }
0x1175   :  { %9931 = vmatpush3.bf16.msra.mxu0 %v10109_v10  ;;  %v10115_v10 = vld [vmem:[#allocation11] sm:$0xff]   ;;  %v8793_v61 = vpack.c.bf16 %v16014_v39, %v16014_v39  ;;  %v8794_v38 = vpack.c.bf16 %v16015_v12, %v16015_v12 }
0x1176   :  { %2272 = vrot.lane.b32.xlu0 %v8740_v23, %s11201_s14  ;;  %9916 = vmatprep.mubr.bf16.mxu0 %v5384_v29  ;;  %v8808_v23 = vpack.c.bf16 %v13901_v60, %v13901_v60  ;;  %v16017_v60 = vld [vmem:[#allocation42_spill] sm:$0xff] }
0x1177   :  { %9932 = vmatprep.subr.bf16.mxu0 %v10110_v44  ;;  %v8796_v42 = vpack.c.bf16 %v16017_v60, %v16017_v60 }
0x1178   :  { %2274 = vrot.lane.b32.xlu1 %v8741_v43, %s11201_s14  ;;  %9917 = vmatmul.mubr.bf16.gmra.mxu0 %v5385_v22 }
0x1179   :  { %9933 = vmatpush3.bf16.msra.mxu0 %v10110_v44  ;;  %v16016_v44 = vld [vmem:[#allocation67_spill] sm:$0xff] }
0x117a   :  { %2276 = vrot.lane.b32.xlu0 %v8742_v56, %s11201_s14  ;;  %9934 = vmatprep.subr.bf16.mxu0 %v10111_v19  ;;  %v8795_v45 = vpack.c.bf16 %v16016_v44, %v16016_v44  ;;  %v16018_v56 = vld [vmem:[#allocation48_spill] sm:$0xff] }
0x117b   :  { %v8797_v54 = vpack.c.bf16 %v16018_v56, %v16018_v56 }
0x117c   :  { %2278 = vrot.lane.b32.xlu1 %v8743_v48, %s11201_s14  ;;  %v8798_v48 = vpack.c.bf16 %v16019_v2, %v16019_v2 }
0x117d   :  { %9935 = vmatpush3.bf16.msra.mxu0 %v10111_v19  ;;  %v8811_v19 = vpack.c.bf16 %v13903_v62, %v13903_v62 }
0x117e   :  { %2835 = vrot.lane.b32.xlu0 %v8756_v46, %s11196_s0  ;;  %9936 = vmatprep.subr.bf16.mxu0 %v10112_v55  ;;  %v8799_v46 = vpack.c.bf16 %v16020_v28, %v16020_v28 }
0x1180   :  { %2837 = vrot.lane.b32.xlu1 %v8757_v63, %s11196_s0 }
0x1181   :  { %9937 = vmatpush3.bf16.msra.mxu0 %v10112_v55 }
0x1182   :  { %2839 = vrot.lane.b32.xlu0 %v8758_v21, %s11196_s0  ;;  %9938 = vmatprep.subr.bf16.mxu0 %v10113_v7  ;;  %v8813_v21 = vpack.c.bf16 %v13913_v11, %v13913_v11  ;;  %v8815_v11 = vpack.c.bf16 %v13911_v49, %v13911_v49 }
0x1184   :  { %2841 = vrot.lane.b32.xlu1 %v8759_v57, %s11196_s0  ;;  %v8814_v57 = vpack.c.bf16 %v13907_v8, %v13907_v8 }
0x1185   :  { %9939 = vmatpush3.bf16.msra.mxu0 %v10113_v7 }
0x1186   :  { %3398 = vrot.lane.b32.xlu0 %v8772_v36, %s11200_s4  ;;  %9940 = vmatprep.subr.bf16.mxu0 %v10114_v47 }
0x1188   :  { %3400 = vrot.lane.b32.xlu1 %v8773_v1, %s11200_s4 }
0x1189   :  { %9941 = vmatpush3.bf16.msra.mxu0 %v10114_v47 }
0x118a   :  { %3402 = vrot.lane.b32.xlu0 %v8774_v13, %s11200_s4  ;;  %9942 = vmatprep.subr.bf16.mxu0 %v10115_v10 }
0x118c   :  { %3404 = vrot.lane.b32.xlu1 %v8775_v4, %s11200_s4  ;;  %v16022_v4 = vld [vmem:[#allocation35_spill] sm:$0xff] }
0x118d   :  { %9943 = vmatpush3.bf16.msra.mxu0 %v10115_v10  ;;  %v16021_v10 = vld [vmem:[#allocation38_spill] sm:$0xff]  ;;  %v8801_v32 = vpack.c.bf16 %v16022_v4, %v16022_v4 }
0x118e   :  { %4435 = vrot.lane.b32.xlu0 %v8792_v58, %s11201_s14  ;;  %v8800_v17 = vpack.c.bf16 %v16021_v10, %v16021_v10 }
0x1190   :  { %4437 = vrot.lane.b32.xlu1 %v8793_v61, %s11201_s14 }
0x1192   :  { %4439 = vrot.lane.b32.xlu0 %v8794_v38, %s11201_s14 }
0x1194   :  { %4441 = vrot.lane.b32.xlu1 %v8795_v45, %s11201_s14  ;;  %v5335_v29 = vpop.xlane.xlu1 %5334 }
0x1195   :  { %10772 = vrcp.f32 %v5335_v29 }
0x1196   :  { %4997 = vrot.lane.b32.xlu0 %v8808_v23, %s11196_s0 }
0x1198   :  { %4999 = vrot.lane.b32.xlu1 %v8809_v37, %s11196_s0  ;;  %v5341_v43 = vpop.xlane.xlu1 %5340  ;;  %v5337_v22 = vpop.xlane.xlu0 %5336 }
0x1199   :  { %10774 = vrcp.f32 %v5337_v22 }
0x119a   :  { %5001 = vrot.lane.b32.xlu0 %v8810_v53, %s11196_s0  ;;  %10776 = vrcp.f32 %v5341_v43 }
0x119c   :  { %5003 = vrot.lane.b32.xlu1 %v8811_v19, %s11196_s0  ;;  %v5339_v9 = vpop.xlane.xlu0 %5338 }
0x119d   :  { %10778 = vrcp.f32 %v5339_v9 }
0x119e   :  { %4443 = vrot.lane.b32.xlu0 %v8796_v42, %s11201_s14 }
0x11a0   :  { %4445 = vrot.lane.b32.xlu1 %v8797_v54, %s11201_s14  ;;  %v5345_v62 = vpop.xlane.xlu1 %5344 }
0x11a1   :  { %10780 = vrcp.f32 %v5345_v62  ;;  %v5343_v55 = vpop.xlane.xlu0 %5342 }
0x11a2   :  { %10782 = vrcp.f32 %v5343_v55  ;;  %4447 = vrot.lane.b32.xlu0 %v8798_v48, %s11201_s14  ;;  %v10773_v14 = vpop.eup %10772 }
0x11a3   :  { %v5374_v36 = vmul.f32 %v10773_v14, %v14011_v33 }
0x11a4   :  { %4449 = vrot.lane.b32.xlu1 %v8799_v46, %s11201_s14  ;;  %v5349_v63 = vpop.xlane.xlu1 %5348 }
0x11a5   :  { %10784 = vrcp.f32 %v5349_v63  ;;  %v5347_v7 = vpop.xlane.xlu0 %5346 }
0x11a6   :  { %10786 = vrcp.f32 %v5347_v7  ;;  %5005 = vrot.lane.b32.xlu0 %v8812_v15, %s11196_s0  ;;  %v10775_v27 = vpop.eup %10774 }
0x11a7   :  { %v10777_v47 = vpop.eup %10776  ;;  %v5375_v24 = vmul.f32 %v10775_v27, %v14016_v20 }
0x11a8   :  { %5007 = vrot.lane.b32.xlu1 %v8813_v21, %s11196_s0  ;;  %v2251_v26 = vpop.permute.xlu1 %2250  ;;  %v5377_v20 = vmul.f32 %v10777_v47, %v14014_v52 }
0x11a9   :  { %2298 = vst.msk [vmem:[#allocation2 + $0x4] sm:$0xf] %vm2296_vm0, %v2251_v26  ;;  %v2249_v0 = vpop.permute.xlu0 %2248  ;;  %v5386_v8 = vpack.c.bf16 %v5375_v24, %v5374_v36 }
0x11aa   :  { %2297 = vst.msk [vmem:[#allocation2] sm:$0xf] %vm2296_vm0, %v2249_v0  ;;  %5009 = vrot.lane.b32.xlu0 %v8814_v57, %s11196_s0  ;;  %v10779_v1 = vpop.eup %10778 }
0x11ab   :  { %v5376_v33 = vmul.f32 %v10779_v1, %v14020_v40  ;;  %9920 = vmatprep.mubr.bf16.mxu0 %v5386_v8 }
0x11ac   :  { %5011 = vrot.lane.b32.xlu1 %v8815_v11, %s11196_s0  ;;  %v2253_v13 = vpop.permute.xlu1 %2252 }
0x11ad   :  { %2299 = vst.msk [vmem:[#allocation2 + $0x8] sm:$0xf] %vm2296_vm0, %v2253_v13  ;;  %v2812_v49 = vpop.permute.xlu0 %2811  ;;  %v5387_v58 = vpack.c.bf16 %v5377_v20, %v5376_v33 }
0x11ae   :  { %v10781_v34 = vpop.eup %10780  ;;  %2860 = vst.msk [vmem:[#allocation2] sm:$0xf] %vm2859_vm3, %v2812_v49  ;;  %4451 = vrot.lane.b32.xlu0 %v8800_v17, %s11201_s14 }
0x11af   :  { %v10783_v39 = vpop.eup %10782  ;;  %v5379_v61 = vmul.f32 %v10781_v34, %v14023_v51  ;;  %9921 = vmatmul.mubr.bf16.gmra.mxu0 %v5387_v58 }
0x11b0   :  { %4453 = vrot.lane.b32.xlu1 %v8801_v32, %s11201_s14  ;;  %v2255_v52 = vpop.permute.xlu1 %2254  ;;  %v5378_v40 = vmul.f32 %v10783_v39, %v14025_v31 }
0x11b1   :  { %2300 = vst.msk [vmem:[#allocation2 + $0xc] sm:$0xf] %vm2296_vm0, %v2255_v52  ;;  %v2816_v12 = vpop.permute.xlu0 %2815 }
0x11b2   :  { %v10785_v38 = vpop.eup %10784  ;;  %2862 = vst.msk [vmem:[#allocation2 + $0x8] sm:$0xf] %vm2859_vm3, %v2816_v12  ;;  %v5388_v44 = vpack.c.bf16 %v5379_v61, %v5378_v40 }
0x11b3   :  { %v10787_v45 = vpop.eup %10786  ;;  %v5381_v23 = vmul.f32 %v10785_v38, %v14029_v35 }
0x11b4   :  { %9924 = vmatprep.mubr.bf16.mxu0 %v5388_v44  ;;  %v2814_v29 = vpop.permute.xlu1 %2813  ;;  %v5380_v51 = vmul.f32 %v10787_v45, %v14031_v3 }
0x11b5   :  { %2861 = vst.msk [vmem:[#allocation2 + $0x4] sm:$0xf] %vm2859_vm3, %v2814_v29  ;;  %v3375_v37 = vpop.permute.xlu0 %3374 }
0x11b6   :  { %3423 = vst.msk [vmem:[#allocation2] sm:$0xf] %vm3422_vm4, %v3375_v37  ;;  %v5389_v31 = vpack.c.bf16 %v5381_v23, %v5380_v51 }
0x11b8   :  { %9925 = vmatmul.mubr.bf16.gmra.mxu0 %v5389_v31  ;;  %v2818_v53 = vpop.permute.xlu1 %2817 }
0x11b9   :  { %2863 = vst.msk [vmem:[#allocation2 + $0xc] sm:$0xf] %vm2859_vm3, %v2818_v53  ;;  %v3379_v43 = vpop.permute.xlu0 %3378 }
0x11ba   :  { %3425 = vst.msk [vmem:[#allocation2 + $0x8] sm:$0xf] %vm3422_vm4, %v3379_v43 }
0x11bc   :  { %v3377_v22 = vpop.permute.xlu1 %3376 }
0x11bd   :  { %3424 = vst.msk [vmem:[#allocation2 + $0x4] sm:$0xf] %vm3422_vm4, %v3377_v22  ;;  %v2257_v35 = vpop.permute.xlu0 %2256 }
0x11be   :  { %2301 = vst.msk [vmem:[#allocation2 + $0x10] sm:$0xf] %vm2296_vm0, %v2257_v35 }
0x11c0   :  { %v3381_v3 = vpop.permute.xlu1 %3380 }
0x11c1   :  { %3426 = vst.msk [vmem:[#allocation2 + $0xc] sm:$0xf] %vm3422_vm4, %v3381_v3  ;;  %v2261_v19 = vpop.permute.xlu0 %2260 }
0x11c2   :  { %2303 = vst.msk [vmem:[#allocation2 + $0x18] sm:$0xf] %vm2296_vm0, %v2261_v19 }
0x11c4   :  { %v2259_v60 = vpop.permute.xlu1 %2258  ;;  %v10116_v42 = vld [vmem:[#allocation2] sm:$0xff]  }
0x11c5   :  { %2302 = vst.msk [vmem:[#allocation2 + $0x14] sm:$0xf] %vm2296_vm0, %v2259_v60  ;;  %v2820_v9 = vpop.permute.xlu0 %2819  ;;  %9944 = vmatprep.mubr.bf16.mxu0 %v10116_v42 }
0x11c6   :  { %2864 = vst.msk [vmem:[#allocation2 + $0x10] sm:$0xf] %vm2859_vm3, %v2820_v9 }
0x11c8   :  { %v2263_v56 = vpop.permute.xlu1 %2262  ;;  %v10117_v54 = vld [vmem:[#allocation2 + $0x8] sm:$0xff]  }
0x11c9   :  { %2304 = vst.msk [vmem:[#allocation2 + $0x1c] sm:$0xf] %vm2296_vm0, %v2263_v56  ;;  %v2824_v2 = vpop.permute.xlu0 %2823  ;;  %9945 = vmatmul.mubr.bf16.vlgmr.msra.gmra.mxu0 %v10117_v54 }
0x11ca   :  { %2866 = vst.msk [vmem:[#allocation2 + $0x18] sm:$0xf] %vm2859_vm3, %v2824_v2 }
0x11cc   :  { %v2822_v48 = vpop.permute.xlu1 %2821 }
0x11cd   :  { %2865 = vst.msk [vmem:[#allocation2 + $0x14] sm:$0xf] %vm2859_vm3, %v2822_v48  ;;  %v3383_v62 = vpop.permute.xlu0 %3382 }
0x11ce   :  { %3427 = vst.msk [vmem:[#allocation2 + $0x10] sm:$0xf] %vm3422_vm4, %v3383_v62 }
0x11d0   :  { %v2826_v55 = vpop.permute.xlu1 %2825 }
0x11d1   :  { %2867 = vst.msk [vmem:[#allocation2 + $0x1c] sm:$0xf] %vm2859_vm3, %v2826_v55  ;;  %v3387_v28 = vpop.permute.xlu0 %3386 }
0x11d2   :  { %3429 = vst.msk [vmem:[#allocation2 + $0x18] sm:$0xf] %vm3422_vm4, %v3387_v28 }
0x11d4   :  { %v3385_v46 = vpop.permute.xlu1 %3384 }
0x11d5   :  { %3428 = vst.msk [vmem:[#allocation2 + $0x14] sm:$0xf] %vm3422_vm4, %v3385_v46  ;;  %v2265_v15 = vpop.permute.xlu0 %2264 }
0x11d6   :  { %2305 = vst.msk [vmem:[#allocation2 + $0x20] sm:$0xf] %vm2296_vm0, %v2265_v15 }
0x11d8   :  { %v3389_v63 = vpop.permute.xlu1 %3388 }
0x11d9   :  { %3430 = vst.msk [vmem:[#allocation2 + $0x1c] sm:$0xf] %vm3422_vm4, %v3389_v63  ;;  %v2269_v7 = vpop.permute.xlu0 %2268  ;;  %v16023_v63 = vld [vmem:[#allocation39_spill] sm:$0xff] }
0x11da   :  { %2307 = vst.msk [vmem:[#allocation2 + $0x28] sm:$0xf] %vm2296_vm0, %v2269_v7  ;;  %v8802_v7 = vpack.c.bf16 %v16023_v63, %v16023_v63 }
0x11dc   :  { %v2267_v14 = vpop.permute.xlu1 %2266  ;;  %v10118_v21 = vld [vmem:[#allocation2 + $0x10] sm:$0xff]  }
0x11dd   :  { %2306 = vst.msk [vmem:[#allocation2 + $0x24] sm:$0xf] %vm2296_vm0, %v2267_v14  ;;  %v2828_v27 = vpop.permute.xlu0 %2827  ;;  %9948 = vmatprep.mubr.bf16.mxu0 %v10118_v21 }
0x11de   :  { %2868 = vst.msk [vmem:[#allocation2 + $0x20] sm:$0xf] %vm2859_vm3, %v2828_v27  ;;  %v16024_v27 = vld [vmem:[#allocation36_spill] sm:$0xff] }
0x11e0   :  { %v2271_v57 = vpop.permute.xlu1 %2270  ;;  %v10119_v26 = vld [vmem:[#allocation2 + $0x18] sm:$0xff]  }
0x11e1   :  { %2308 = vst.msk [vmem:[#allocation2 + $0x2c] sm:$0xf] %vm2296_vm0, %v2271_v57  ;;  %v2832_v47 = vpop.permute.xlu0 %2831  ;;  %9949 = vmatmul.mubr.bf16.gmra.mxu0 %v10119_v26  ;;  %v8803_v57 = vpack.c.bf16 %v16024_v27, %v16024_v27  ;;  %v8816_v26 = vpack.c.bf16 %v13917_v5, %v13917_v5  ;;  %v8818_v5 = vpack.c.bf16 %v13915_v30, %v13915_v30 }
0x11e2   :  { %2870 = vst.msk [vmem:[#allocation2 + $0x28] sm:$0xf] %vm2859_vm3, %v2832_v47 }
0x11e4   :  { %v2830_v0 = vpop.permute.xlu1 %2829 }
0x11e5   :  { %2869 = vst.msk [vmem:[#allocation2 + $0x24] sm:$0xf] %vm2859_vm3, %v2830_v0  ;;  %v3391_v36 = vpop.permute.xlu0 %3390  ;;  %v8817_v0 = vpack.c.bf16 %v13921_v50, %v13921_v50  ;;  %v16025_v50 = vld [vmem:[#allocation56_spill] sm:$0xff] }
0x11e6   :  { %3431 = vst.msk [vmem:[#allocation2 + $0x20] sm:$0xf] %vm3422_vm4, %v3391_v36 }
0x11e8   :  { %v2834_v24 = vpop.permute.xlu1 %2833 }
0x11e9   :  { %2871 = vst.msk [vmem:[#allocation2 + $0x2c] sm:$0xf] %vm2859_vm3, %v2834_v24  ;;  %v3395_v11 = vpop.permute.xlu0 %3394 }
0x11ea   :  { %3433 = vst.msk [vmem:[#allocation2 + $0x28] sm:$0xf] %vm3422_vm4, %v3395_v11 }
0x11ec   :  { %v3393_v1 = vpop.permute.xlu1 %3392 }
0x11ed   :  { %3432 = vst.msk [vmem:[#allocation2 + $0x24] sm:$0xf] %vm3422_vm4, %v3393_v1  ;;  %v2273_v8 = vpop.permute.xlu0 %2272 }
0x11ee   :  { %2309 = vst.msk [vmem:[#allocation2 + $0x30] sm:$0xf] %vm2296_vm0, %v2273_v8 }
0x11f0   :  { %v3397_v10 = vpop.permute.xlu1 %3396 }
0x11f1   :  { %3434 = vst.msk [vmem:[#allocation2 + $0x2c] sm:$0xf] %vm3422_vm4, %v3397_v10  ;;  %v2277_v17 = vpop.permute.xlu0 %2276 }
0x11f2   :  { %2311 = vst.msk [vmem:[#allocation2 + $0x38] sm:$0xf] %vm2296_vm0, %v2277_v17  ;;  %v8804_v17 = vpack.c.bf16 %v16025_v50, %v16025_v50 }
0x11f4   :  { %v2275_v13 = vpop.permute.xlu1 %2274  ;;  %v10120_v33 = vld [vmem:[#allocation2 + $0x20] sm:$0xff]  }
0x11f5   :  { %2310 = vst.msk [vmem:[#allocation2 + $0x34] sm:$0xf] %vm2296_vm0, %v2275_v13  ;;  %v2836_v20 = vpop.permute.xlu0 %2835  ;;  %9952 = vmatprep.mubr.bf16.mxu0 %v10120_v33  ;;  %v8819_v13 = vpack.c.bf16 %v13919_v59, %v13919_v59  ;;  %v16026_v33 = vld [vmem:[#allocation53_spill] sm:$0xff] }
0x11f6   :  { %2872 = vst.msk [vmem:[#allocation2 + $0x30] sm:$0xf] %vm2859_vm3, %v2836_v20  ;;  %v8805_v20 = vpack.c.bf16 %v16026_v33, %v16026_v33  ;;  %v16027_v59 = vld [vmem:[#allocation97_spill] sm:$0xff] }
0x11f8   :  { %v2279_v49 = vpop.permute.xlu1 %2278  ;;  %v10121_v34 = vld [vmem:[#allocation2 + $0x28] sm:$0xff]  }
0x11f9   :  { %2312 = vst.msk [vmem:[#allocation2 + $0x3c] sm:$0xf] %vm2296_vm0, %v2279_v49  ;;  %v2840_v4 = vpop.permute.xlu0 %2839  ;;  %9953 = vmatmul.mubr.bf16.gmra.mxu0 %v10121_v34 }
0x11fa   :  { %2874 = vst.msk [vmem:[#allocation2 + $0x38] sm:$0xf] %vm2859_vm3, %v2840_v4 }
0x11fc   :  { %v2838_v32 = vpop.permute.xlu1 %2837 }
0x11fd   :  { %2873 = vst.msk [vmem:[#allocation2 + $0x34] sm:$0xf] %vm2859_vm3, %v2838_v32  ;;  %v3399_v58 = vpop.permute.xlu0 %3398 }
0x11fe   :  { %3435 = vst.msk [vmem:[#allocation2 + $0x30] sm:$0xf] %vm3422_vm4, %v3399_v58 }
0x1200   :  { %v2842_v39 = vpop.permute.xlu1 %2841 }
0x1201   :  { %2875 = vst.msk [vmem:[#allocation2 + $0x3c] sm:$0xf] %vm2859_vm3, %v2842_v39  ;;  %v3403_v61 = vpop.permute.xlu0 %3402 }
0x1202   :  { %3437 = vst.msk [vmem:[#allocation2 + $0x38] sm:$0xf] %vm3422_vm4, %v3403_v61  ;;  %v8806_v61 = vpack.c.bf16 %v16027_v59, %v16027_v59 }
0x1204   :  { %v3401_v52 = vpop.permute.xlu1 %3400 }
0x1205   :  { %3436 = vst.msk [vmem:[#allocation2 + $0x34] sm:$0xf] %vm3422_vm4, %v3401_v52  ;;  %v4436_v40 = vpop.permute.xlu0 %4435 }
0x1206   :  { %4483 = vst.msk [vmem:[#allocation2 + $0x40] sm:$0xf] %vm2296_vm0, %v4436_v40 }
0x1208   :  { %v3405_v12 = vpop.permute.xlu1 %3404 }
0x1209   :  { %3438 = vst.msk [vmem:[#allocation2 + $0x3c] sm:$0xf] %vm3422_vm4, %v3405_v12  ;;  %v4440_v38 = vpop.permute.xlu0 %4439  ;;  %v16028_v12 = vld [vmem:[#allocation54_spill] sm:$0xff] }
0x120a   :  { %4485 = vst.msk [vmem:[#allocation2 + $0x48] sm:$0xf] %vm2296_vm0, %v4440_v38  ;;  %v8807_v38 = vpack.c.bf16 %v16028_v12, %v16028_v12 }
0x120c   :  { %v4438_v44 = vpop.permute.xlu1 %4437  ;;  %v10122_v45 = vld [vmem:[#allocation2 + $0x30] sm:$0xff]  }
0x120d   :  { %4484 = vst.msk [vmem:[#allocation2 + $0x44] sm:$0xf] %vm2296_vm0, %v4438_v44  ;;  %v4998_v23 = vpop.permute.xlu0 %4997  ;;  %9956 = vmatprep.mubr.bf16.mxu0 %v10122_v45  ;;  %v8820_v44 = vpack.c.bf16 %v13925_v6, %v13925_v6 }
0x120e   :  { %5045 = vst.msk [vmem:[#allocation2 + $0x40] sm:$0xf] %vm2859_vm3, %v4998_v23  ;;  %v8822_v23 = vpack.c.bf16 %v13923_v41, %v13923_v41 }
0x1210   :  { %v4442_v29 = vpop.permute.xlu1 %4441  ;;  %v10123_v51 = vld [vmem:[#allocation2 + $0x38] sm:$0xff]  }
0x1211   :  { %4486 = vst.msk [vmem:[#allocation2 + $0x4c] sm:$0xf] %vm2296_vm0, %v4442_v29  ;;  %v5002_v37 = vpop.permute.xlu0 %5001  ;;  %9957 = vmatmul.mubr.bf16.gmra.mxu0 %v10123_v51  ;;  %v8821_v29 = vpack.c.bf16 %v13929_v25, %v13929_v25 }
0x1212   :  { %5047 = vst.msk [vmem:[#allocation2 + $0x48] sm:$0xf] %vm2859_vm3, %v5002_v37  ;;  %v8823_v37 = vpack.c.bf16 %v13927_v18, %v13927_v18 }
0x1214   :  { %v5000_v31 = vpop.permute.xlu1 %4999 }
0x1215   :  { %5046 = vst.msk [vmem:[#allocation2 + $0x44] sm:$0xf] %vm2859_vm3, %v5000_v31  ;;  %v4444_v53 = vpop.permute.xlu0 %4443 }
0x1216   :  { %4487 = vst.msk [vmem:[#allocation2 + $0x50] sm:$0xf] %vm2296_vm0, %v4444_v53 }
0x1218   :  { %v5004_v43 = vpop.permute.xlu1 %5003 }
0x1219   :  { %5048 = vst.msk [vmem:[#allocation2 + $0x4c] sm:$0xf] %vm2859_vm3, %v5004_v43  ;;  %v4448_v22 = vpop.permute.xlu0 %4447 }
0x121a   :  { %4489 = vst.msk [vmem:[#allocation2 + $0x58] sm:$0xf] %vm2296_vm0, %v4448_v22 }
0x121c   :  { %v4446_v35 = vpop.permute.xlu1 %4445 }
0x121d   :  { %4488 = vst.msk [vmem:[#allocation2 + $0x54] sm:$0xf] %vm2296_vm0, %v4446_v35  ;;  %v5006_v3 = vpop.permute.xlu0 %5005 }
0x121e   :  { %5049 = vst.msk [vmem:[#allocation2 + $0x50] sm:$0xf] %vm2859_vm3, %v5006_v3 }
0x1220   :  { %v4450_v19 = vpop.permute.xlu1 %4449 }
0x1221   :  { %4490 = vst.msk [vmem:[#allocation2 + $0x5c] sm:$0xf] %vm2296_vm0, %v4450_v19  ;;  %v5010_v60 = vpop.permute.xlu0 %5009  ;;  %v10980_v19 = vld [vmem:[#allocation3] sm:$0xff] }
0x1222   :  { %5051 = vst.msk [vmem:[#allocation2 + $0x58] sm:$0xf] %vm2859_vm3, %v5010_v60 }
0x1224   :  { %v5008_v42 = vpop.permute.xlu1 %5007 }
0x1225   :  { %5050 = vst.msk [vmem:[#allocation2 + $0x54] sm:$0xf] %vm2859_vm3, %v5008_v42  ;;  %v4452_v9 = vpop.permute.xlu0 %4451 }
0x1226   :  { %4491 = vst.msk [vmem:[#allocation2 + $0x60] sm:$0xf] %vm2296_vm0, %v4452_v9 }
0x1228   :  { %v5012_v56 = vpop.permute.xlu1 %5011 }
0x1229   :  { %5052 = vst.msk [vmem:[#allocation2 + $0x5c] sm:$0xf] %vm2859_vm3, %v5012_v56  ;;  %v14376_v56 = vld [vmem:[%s15544_s6] ss:$0 sm:$0xff] }
0x122c   :  { %v4454_v54 = vpop.permute.xlu1 %4453 }
0x122d   :  { %4492 = vst.msk [vmem:[#allocation2 + $0x64] sm:$0xf] %vm2296_vm0, %v4454_v54  ;;  %v10981_v54 = vld [vmem:[#allocation3 + $0x10] sm:$0xff] }
0x1230   :  { %v9914_v2 = vpop.f32.mrf.mxu0 }
0x1231   :  { %v8826_v48 = vpack.c.bf16 %v9914_v2, %v9914_v2 }
0x1232   :  { %v5448_v62 = vpop.f32.mrf.mxu0 }
0x1233   :  { %5563 = vrot.lane.b32.xlu0 %v8826_v48, %s11200_s4  ;;  %v8824_v28 = vpack.c.bf16 %v5448_v62, %v5448_v62 }
0x1234   :  { %v9915_v55 = vpop.f32.mrf.mxu0 }
0x1235   :  { %v8827_v46 = vpack.c.bf16 %v9915_v55, %v9915_v55 }
0x1236   :  { %v5451_v15 = vpop.f32.mrf.mxu0 }
0x1237   :  { %5559 = vrot.lane.b32.xlu0 %v8824_v28, %s11200_s4  ;;  %5565 = vrot.lane.b32.xlu1 %v8827_v46, %s11200_s4  ;;  %v8825_v14 = vpack.c.bf16 %v5451_v15, %v5451_v15  ;;  %v10982_v15 = vld [vmem:[#allocation3 + $0x18] sm:$0xff] }
0x1238   :  { %v9918_v21 = vpop.f32.mrf.mxu0 }
0x1239   :  { %v8830_v36 = vpack.c.bf16 %v9918_v21, %v9918_v21 }
0x123a   :  { %v5464_v47 = vpop.f32.mrf.mxu0 }
0x123b   :  { %4455 = vrot.lane.b32.xlu0 %v8802_v7, %s11201_s14  ;;  %5561 = vrot.lane.b32.xlu1 %v8825_v14, %s11200_s4  ;;  %v8828_v11 = vpack.c.bf16 %v5464_v47, %v5464_v47  ;;  %v10983_v7 = vld [vmem:[#allocation3 + $0x8] sm:$0xff]  ;;  %v10984_v47 = vld [vmem:[#allocation3 + $0x20] sm:$0xff] }
0x123c   :  { %v9919_v24 = vpop.f32.mrf.mxu0 }
0x123d   :  { %v8831_v1 = vpack.c.bf16 %v9919_v24, %v9919_v24  ;;  %v10985_v24 = vld [vmem:[#allocation3 + $0x28] sm:$0xff] }
0x123e   :  { %v5467_v8 = vpop.f32.mrf.mxu0 }
0x123f   :  { %5013 = vrot.lane.b32.xlu0 %v8816_v26, %s11196_s0  ;;  %4457 = vrot.lane.b32.xlu1 %v8803_v57, %s11201_s14  ;;  %v8829_v10 = vpack.c.bf16 %v5467_v8, %v5467_v8 }
0x1243   :  { %5015 = vrot.lane.b32.xlu1 %v8817_v0, %s11196_s0  ;;  %5571 = vrot.lane.b32.xlu0 %v8830_v36, %s11200_s4 }
0x1247   :  { %5567 = vrot.lane.b32.xlu0 %v8828_v11, %s11200_s4  ;;  %5573 = vrot.lane.b32.xlu1 %v8831_v1, %s11200_s4 }
0x124b   :  { %5017 = vrot.lane.b32.xlu0 %v8818_v5, %s11196_s0  ;;  %5569 = vrot.lane.b32.xlu1 %v8829_v10, %s11200_s4  ;;  %v10986_v5 = vld [vmem:[#allocation3 + $0x30] sm:$0xff] }
0x124f   :  { %4459 = vrot.lane.b32.xlu0 %v8804_v17, %s11201_s14  ;;  %5019 = vrot.lane.b32.xlu1 %v8819_v13, %s11196_s0  ;;  %v10987_v17 = vld [vmem:[#allocation3 + $0x38] sm:$0xff] }
0x1253   :  { %4461 = vrot.lane.b32.xlu1 %v8805_v20, %s11201_s14 }
0x126f   :  { %v9922_v30 = vpop.f32.mrf.mxu0 }
0x1270   :  { %v8834_v49 = vpack.c.bf16 %v9922_v30, %v9922_v30 }
0x1271   :  { %v5480_v34 = vpop.f32.mrf.mxu0 }
0x1272   :  { %5579 = vrot.lane.b32.xlu0 %v8834_v49, %s11200_s4  ;;  %v8832_v32 = vpack.c.bf16 %v5480_v34, %v5480_v34 }
0x1273   :  { %v9923_v4 = vpop.f32.mrf.mxu0 }
0x1274   :  { %v8835_v58 = vpack.c.bf16 %v9923_v4, %v9923_v4 }
0x1275   :  { %v5483_v39 = vpop.f32.mrf.mxu0 }
0x1276   :  { %5575 = vrot.lane.b32.xlu0 %v8832_v32, %s11200_s4  ;;  %5581 = vrot.lane.b32.xlu1 %v8835_v58, %s11200_s4  ;;  %v8833_v52 = vpack.c.bf16 %v5483_v39, %v5483_v39 }
0x1278   :  { %v9926_v40 = vpop.f32.mrf.mxu0 }
0x1279   :  { %v8838_v53 = vpack.c.bf16 %v9926_v40, %v9926_v40  ;;  %v10988_v40 = vld [vmem:[#allocation3 + $0x40] sm:$0xff] }
0x127a   :  { %4463 = vrot.lane.b32.xlu0 %v8806_v61, %s11201_s14  ;;  %5577 = vrot.lane.b32.xlu1 %v8833_v52, %s11200_s4  ;;  %v5496_v45 = vpop.f32.mrf.mxu0 }
0x127b   :  { %v8836_v6 = vpack.c.bf16 %v5496_v45, %v5496_v45  ;;  %v10989_v45 = vld [vmem:[#allocation3 + $0x50] sm:$0xff] }
0x127c   :  { %v9927_v51 = vpop.f32.mrf.mxu0 }
0x127d   :  { %v8839_v41 = vpack.c.bf16 %v9927_v51, %v9927_v51 }
0x127e   :  { %5021 = vrot.lane.b32.xlu0 %v8820_v44, %s11196_s0  ;;  %4465 = vrot.lane.b32.xlu1 %v8807_v38, %s11201_s14  ;;  %v5499_v31 = vpop.f32.mrf.mxu0 }
0x127f   :  { %v8837_v43 = vpack.c.bf16 %v5499_v31, %v5499_v31 }
0x1282   :  { %5025 = vrot.lane.b32.xlu0 %v8822_v23, %s11196_s0  ;;  %5023 = vrot.lane.b32.xlu1 %v8821_v29, %s11196_s0 }
0x1286   :  { %5027 = vrot.lane.b32.xlu1 %v8823_v37, %s11196_s0  ;;  %5583 = vrot.lane.b32.xlu0 %v8836_v6, %s11200_s4  ;;  %v10990_v6 = vld [vmem:[#allocation3 + $0x48] sm:$0xff] }
0x1289   :  { %v9946_v25 = vpop.f32.mrf.mxu0 }
0x128a   :  { %5587 = vrot.lane.b32.xlu0 %v8838_v53, %s11200_s4  ;;  %5585 = vrot.lane.b32.xlu1 %v8837_v43, %s11200_s4  ;;  %v5978_v2 = vadd.f32 %v10981_v54, %v9946_v25 }
0x128b   :  { %v5849_v22 = vpop.f32.mrf.mxu0 }
0x128c   :  { %v5976_v60 = vadd.f32 %v10980_v19, %v5849_v22  ;;  %v14386_v46 = vadd.f32 %v14376_v56, %v5978_v2 }
0x128d   :  { %v9947_v35 = vpop.f32.mrf.mxu0 }
0x128e   :  { %5589 = vrot.lane.b32.xlu1 %v8839_v41, %s11200_s4  ;;  %v14380_v48 = vadd.f32 %v14376_v56, %v5976_v60  ;;  %v5979_v63 = vadd.f32 %v10982_v15, %v9947_v35  ;;  %v10991_v41 = vld [vmem:[#allocation3 + $0x58] sm:$0xff] }
0x128f   :  { %v5852_v3 = vpop.f32.mrf.mxu0 }
0x1290   :  { %v5977_v14 = vadd.f32 %v10983_v7, %v5852_v3  ;;  %v14392_v26 = vadd.f32 %v14376_v56, %v5979_v63  ;;  %v10994_v63 = vld [vmem:[#allocation3 + $0x68] sm:$0xff] }
0x1292   :  { %v14395_v36 = vadd.f32 %v14376_v56, %v5977_v14 }
0x12a1   :  { %v9950_v18 = vpop.f32.mrf.mxu0 }
0x12a2   :  { %v5982_v10 = vadd.f32 %v10986_v5, %v9950_v18 }
0x12a3   :  { %v5865_v42 = vpop.f32.mrf.mxu0 }
0x12a4   :  { %v5980_v0 = vadd.f32 %v10984_v47, %v5865_v42  ;;  %v14412_v4 = vadd.f32 %v14376_v56, %v5982_v10 }
0x12a5   :  { %v5564_v9 = vpop.permute.xlu0 %5563  ;;  %v9951_v62 = vpop.f32.mrf.mxu0 }
0x12a6   :  { %5609 = vst.msk [vmem:[#allocation2 + $0x48] sm:$0xf] %vm3422_vm4, %v5564_v9  ;;  %v14402_v50 = vadd.f32 %v14376_v56, %v5980_v0  ;;  %v5983_v13 = vadd.f32 %v10987_v17, %v9951_v62  ;;  %v10992_v9 = vld [vmem:[#allocation3 + $0x60] sm:$0xff]  ;;  %v10993_v62 = vld [vmem:[#allocation3 + $0x70] sm:$0xff] }
0x12a7   :  { %v5868_v21 = vpop.f32.mrf.mxu0 }
0x12a8   :  { %v5981_v11 = vadd.f32 %v10985_v24, %v5868_v21  ;;  %v14415_v32 = vadd.f32 %v14376_v56, %v5983_v13  ;;  %v10995_v21 = vld [vmem:[#allocation3 + $0x78] sm:$0xff] }
0x12a9   :  { %v5566_v55 = vpop.permute.xlu1 %5565  ;;  %6049 = vadd.xlane.f32.xlu0 %v14380_v48  ;;  %v5560_v28 = vpop.permute.xlu0 %5559 }
0x12aa   :  { %5610 = vst.msk [vmem:[#allocation2 + $0x4c] sm:$0xf] %vm3422_vm4, %v5566_v55  ;;  %5607 = vst.msk [vmem:[#allocation2 + $0x40] sm:$0xf] %vm3422_vm4, %v5560_v28  ;;  %v14405_v33 = vadd.f32 %v14376_v56, %v5981_v11 }
0x12ad   :  { %v5562_v27 = vpop.permute.xlu1 %5561  ;;  %6053 = vadd.xlane.f32.xlu0 %v14386_v46  ;;  %v4456_v57 = vpop.permute.xlu0 %4455 }
0x12ae   :  { %5608 = vst.msk [vmem:[#allocation2 + $0x44] sm:$0xf] %vm3422_vm4, %v5562_v27 }
0x12af   :  { %4493 = vst.msk [vmem:[#allocation2 + $0x68] sm:$0xf] %vm2296_vm0, %v4456_v57 }
0x12b1   :  { %v4458_v1 = vpop.permute.xlu1 %4457  ;;  %6055 = vadd.xlane.f32.xlu0 %v14392_v26  ;;  %v5014_v8 = vpop.permute.xlu0 %5013  ;;  %v10125_v34 = vld [vmem:[#allocation2 + $0x48] sm:$0xff]  }
0x12b2   :  { %4494 = vst.msk [vmem:[#allocation2 + $0x6c] sm:$0xf] %vm2296_vm0, %v4458_v1  ;;  %6051 = vadd.xlane.f32.xlu1 %v14395_v36 }
0x12b3   :  { %5053 = vst.msk [vmem:[#allocation2 + $0x60] sm:$0xf] %vm2859_vm3, %v5014_v8 }
0x12b5   :  { %v5016_v20 = vpop.permute.xlu1 %5015  ;;  %6057 = vadd.xlane.f32.xlu0 %v14402_v50  ;;  %v5572_v30 = vpop.permute.xlu0 %5571  ;;  %v10124_v49 = vld [vmem:[#allocation2 + $0x40] sm:$0xff]  }
0x12b6   :  { %5054 = vst.msk [vmem:[#allocation2 + $0x64] sm:$0xf] %vm2859_vm3, %v5016_v20  ;;  %6059 = vadd.xlane.f32.xlu1 %v14405_v33  ;;  %9960 = vmatprep.mubr.bf16.mxu0 %v10124_v49 }
0x12b7   :  { %5613 = vst.msk [vmem:[#allocation2 + $0x58] sm:$0xf] %vm3422_vm4, %v5572_v30  ;;  %9961 = vmatmul.mubr.bf16.gmra.mxu0 %v10125_v34 }
0x12b9   :  { %v5574_v58 = vpop.permute.xlu1 %5573  ;;  %6061 = vadd.xlane.f32.xlu0 %v14412_v4  ;;  %v5568_v39 = vpop.permute.xlu0 %5567 }
0x12ba   :  { %5614 = vst.msk [vmem:[#allocation2 + $0x5c] sm:$0xf] %vm3422_vm4, %v5574_v58  ;;  %5611 = vst.msk [vmem:[#allocation2 + $0x50] sm:$0xf] %vm3422_vm4, %v5568_v39  ;;  %6063 = vadd.xlane.f32.xlu1 %v14415_v32  ;;  %v9954_v59 = vpop.f32.mrf.mxu0 }
0x12bb   :  { %v5986_v23 = vadd.f32 %v10989_v45, %v9954_v59 }
0x12bc   :  { %v5881_v61 = vpop.f32.mrf.mxu0 }
0x12bd   :  { %v5570_v52 = vpop.permute.xlu1 %5569  ;;  %v5984_v12 = vadd.f32 %v10988_v40, %v5881_v61  ;;  %v5018_v38 = vpop.permute.xlu0 %5017  ;;  %v14430_v43 = vadd.f32 %v14376_v56, %v5986_v23 }
0x12be   :  { %5612 = vst.msk [vmem:[#allocation2 + $0x54] sm:$0xf] %vm3422_vm4, %v5570_v52  ;;  %v9955_v44 = vpop.f32.mrf.mxu0 }
0x12bf   :  { %5055 = vst.msk [vmem:[#allocation2 + $0x68] sm:$0xf] %vm2859_vm3, %v5018_v38  ;;  %v14424_v29 = vadd.f32 %v14376_v56, %v5984_v12  ;;  %v5987_v25 = vadd.f32 %v10991_v41, %v9955_v44  ;;  %v10996_v44 = vld [vmem:[#allocation3 + $0x80] sm:$0xff] }
0x12c0   :  { %v5884_v51 = vpop.f32.mrf.mxu0 }
0x12c1   :  { %v5020_v37 = vpop.permute.xlu1 %5019  ;;  %v5985_v31 = vadd.f32 %v10990_v6, %v5884_v51  ;;  %v4460_v53 = vpop.permute.xlu0 %4459  ;;  %6065 = vadd.xlane.f32.xlu0 %v14424_v29  ;;  %v10127_v18 = vld [vmem:[#allocation2 + $0x58] sm:$0xff]   ;;  %v14439_v19 = vadd.f32 %v14376_v56, %v5987_v25  ;;  %v10998_v25 = vld [vmem:[#allocation3 + $0x88] sm:$0xff] }
0x12c2   :  { %5056 = vst.msk [vmem:[#allocation2 + $0x6c] sm:$0xf] %vm2859_vm3, %v5020_v37  ;;  %v10997_v37 = vld [vmem:[#allocation3 + $0x90] sm:$0xff] }
0x12c3   :  { %4495 = vst.msk [vmem:[#allocation2 + $0x70] sm:$0xf] %vm2296_vm0, %v4460_v53  ;;  %v14433_v22 = vadd.f32 %v14376_v56, %v5985_v31 }
0x12c5   :  { %v4462_v35 = vpop.permute.xlu1 %4461  ;;  %6069 = vadd.xlane.f32.xlu0 %v14430_v43  ;;  %6067 = vadd.xlane.f32.xlu1 %v14433_v22  ;;  %v10126_v3 = vld [vmem:[#allocation2 + $0x50] sm:$0xff]  }
0x12c6   :  { %4496 = vst.msk [vmem:[#allocation2 + $0x74] sm:$0xf] %vm2296_vm0, %v4462_v35  ;;  %9964 = vmatprep.mubr.bf16.mxu0 %v10126_v3 }
0x12c7   :  { %9965 = vmatmul.mubr.bf16.gmra.mxu0 %v10127_v18 }
0x12c9   :  { %6071 = vadd.xlane.f32.xlu1 %v14439_v19 }
0x12d1   :  { %v9958_v60 = vpop.f32.mrf.mxu0 }
0x12d2   :  { %v5990_v55 = vadd.f32 %v10993_v62, %v9958_v60 }
0x12d3   :  { %v5897_v42 = vpop.f32.mrf.mxu0 }
0x12d4   :  { %v5988_v54 = vadd.f32 %v10992_v9, %v5897_v42  ;;  %v14447_v14 = vadd.f32 %v14376_v56, %v5990_v55  ;;  %v10999_v42 = vld [vmem:[#allocation3 + $0x98] sm:$0xff] }
0x12d5   :  { %v9959_v2 = vpop.f32.mrf.mxu0 }
0x12d6   :  { %v14443_v28 = vadd.f32 %v14376_v56, %v5988_v54  ;;  %16029 = vst [vmem:[#allocation49_spill] sm:$0xff] %v14447_v14  ;;  %v5991_v27 = vadd.f32 %v10995_v21, %v9959_v2 }
0x12d7   :  { %v5900_v15 = vpop.f32.mrf.mxu0 }
0x12d8   :  { %v5989_v7 = vadd.f32 %v10994_v63, %v5900_v15  ;;  %6073 = vadd.xlane.f32.xlu0 %v14443_v28  ;;  %v14455_v47 = vadd.f32 %v14376_v56, %v5991_v27 }
0x12da   :  { %v14450_v57 = vadd.f32 %v14376_v56, %v5989_v7  ;;  %16030 = vst [vmem:[#allocation47_spill] sm:$0xff] %v14455_v47 }
0x12dc   :  { %6077 = vadd.xlane.f32.xlu0 %v14447_v14  ;;  %6075 = vadd.xlane.f32.xlu1 %v14450_v57 }
0x12e0   :  { %6079 = vadd.xlane.f32.xlu1 %v14455_v47 }
0x12e4   :  { %v5580_v0 = vpop.permute.xlu0 %5579 }
0x12e5   :  { %5617 = vst.msk [vmem:[#allocation2 + $0x68] sm:$0xf] %vm3422_vm4, %v5580_v0 }
0x12e8   :  { %v5582_v24 = vpop.permute.xlu1 %5581  ;;  %v5576_v11 = vpop.permute.xlu0 %5575 }
0x12e9   :  { %5618 = vst.msk [vmem:[#allocation2 + $0x6c] sm:$0xf] %vm3422_vm4, %v5582_v24  ;;  %5615 = vst.msk [vmem:[#allocation2 + $0x60] sm:$0xf] %vm3422_vm4, %v5576_v11  ;;  %v11000_v24 = vld [vmem:[#allocation3 + $0xa0] sm:$0xff] }
0x12ec   :  { %v5578_v1 = vpop.permute.xlu1 %5577  ;;  %v4464_v8 = vpop.permute.xlu0 %4463 }
0x12ed   :  { %5616 = vst.msk [vmem:[#allocation2 + $0x64] sm:$0xf] %vm3422_vm4, %v5578_v1 }
0x12ee   :  { %4497 = vst.msk [vmem:[#allocation2 + $0x78] sm:$0xf] %vm2296_vm0, %v4464_v8 }
0x12f0   :  { %v4466_v5 = vpop.permute.xlu1 %4465  ;;  %v5022_v10 = vpop.permute.xlu0 %5021  ;;  %v10129_v30 = vld [vmem:[#allocation2 + $0x68] sm:$0xff]  }
0x12f1   :  { %4498 = vst.msk [vmem:[#allocation2 + $0x7c] sm:$0xf] %vm2296_vm0, %v4466_v5 }
0x12f2   :  { %5057 = vst.msk [vmem:[#allocation2 + $0x70] sm:$0xf] %vm2859_vm3, %v5022_v10 }
0x12f4   :  { %v5024_v17 = vpop.permute.xlu1 %5023  ;;  %v5026_v13 = vpop.permute.xlu0 %5025  ;;  %v10128_v20 = vld [vmem:[#allocation2 + $0x60] sm:$0xff]  }
0x12f5   :  { %5058 = vst.msk [vmem:[#allocation2 + $0x74] sm:$0xf] %vm2859_vm3, %v5024_v17  ;;  %5059 = vst.msk [vmem:[#allocation2 + $0x78] sm:$0xf] %vm2859_vm3, %v5026_v13  ;;  %9968 = vmatprep.mubr.bf16.mxu0 %v10128_v20  ;;  %v10134_v20 = vld [vmem:[#allocation12 + $0xe4] ss:$16 sps:$4 sm:$0xff]  }
0x12f6   :  { %9969 = vmatmul.mubr.bf16.gmra.mxu0 %v10129_v30  ;;  %v10137_v30 = vld [vmem:[#allocation12 + $0xec] ss:$16 sps:$4 sm:$0xff]   ;;  %6707 = vmatprep.subr.bf16.mxu1 %v10134_v20  ;;  %v10159_v20 = vld [vmem:[#allocation12 + $0x68] ss:$16 sps:$4 sm:$0xff]  }
0x12f7   :  { %6900 = vmatprep.subr.bf16.mxu0 %v10137_v30  ;;  %v10164_v30 = vld [vmem:[#allocation12 + $0x44] ss:$16 sps:$4 sm:$0xff]  }
0x12f8   :  { %v5028_v49 = vpop.permute.xlu1 %5027  ;;  %v5584_v34 = vpop.permute.xlu0 %5583 }
0x12f9   :  { %5060 = vst.msk [vmem:[#allocation2 + $0x7c] sm:$0xf] %vm2859_vm3, %v5028_v49  ;;  %v11001_v49 = vld [vmem:[#allocation3 + $0xa8] sm:$0xff] }
0x12fa   :  { %5619 = vst.msk [vmem:[#allocation2 + $0x70] sm:$0xf] %vm3422_vm4, %v5584_v34 }
0x12fc   :  { %v5586_v58 = vpop.permute.xlu1 %5585  ;;  %v5588_v39 = vpop.permute.xlu0 %5587 }
0x12fd   :  { %5620 = vst.msk [vmem:[#allocation2 + $0x74] sm:$0xf] %vm3422_vm4, %v5586_v58  ;;  %5621 = vst.msk [vmem:[#allocation2 + $0x78] sm:$0xf] %vm3422_vm4, %v5588_v39  ;;  %v10132_v58 = vld [vmem:[#allocation12 + $0xe0] ss:$16 sps:$4 sm:$0xff]  }
0x12fe   :  { %v10135_v39 = vld [vmem:[#allocation12 + $0xe8] ss:$16 sps:$4 sm:$0xff]   ;;  %6708 = vmatpush1.bf16.msra.mxu1 %v10132_v58 }
0x12ff   :  { %6901 = vmatpush1.bf16.msra.mxu0 %v10135_v39  ;;  %v10165_v58 = vld [vmem:[#allocation12 + $0x48] ss:$16 sps:$4 sm:$0xff]   ;;  %v10170_v39 = vld [vmem:[#allocation12 + $0x24] ss:$16 sps:$4 sm:$0xff]  }
0x1300   :  { %v5590_v59 = vpop.permute.xlu1 %5589 }
0x1301   :  { %5622 = vst.msk [vmem:[#allocation2 + $0x7c] sm:$0xf] %vm3422_vm4, %v5590_v59 }
0x1304   :  { %v10130_v61 = vld [vmem:[#allocation2 + $0x70] sm:$0xff]  }
0x1305   :  { %9972 = vmatprep.mubr.bf16.mxu0 %v10130_v61 }
0x1308   :  { %v10131_v52 = vld [vmem:[#allocation2 + $0x78] sm:$0xff]  }
0x1309   :  { %9973 = vmatmul.mubr.bf16.gmra.mxu0 %v10131_v52  ;;  %v11002_v52 = vld [vmem:[#allocation3 + $0xb0] sm:$0xff] }
0x130a   :  { %6932 = vmatprep.mubr.bf16.mxu0 %v15961_v16 }
0x1332   :  { %v6050_v12 = vpop.xlane.xlu0 %6049 }
0x1333   :  { %v6113_v23 = vmul.f32 0.0078125, %v6050_v12 }
0x1335   :  { %v14478_v3 = vsub.f32 %v14380_v48, %v6113_v23  ;;  %v10143_v23 = vld [vmem:[#allocation12 + $0xcc] ss:$16 sps:$4 sm:$0xff]  }
0x1336   :  { %v6054_v2 = vpop.xlane.xlu0 %6053  ;;  %6902 = vmatprep.subr.bf16.mxu0 %v10143_v23  ;;  %v10177_v23 = vld [vmem:[#allocation12 + $0x8] ss:$16 sps:$4 sm:$0xff]  }
0x1337   :  { %v6177_v15 = vmul.f32 %v14478_v3, %v14478_v3  ;;  %v6115_v21 = vmul.f32 0.0078125, %v6054_v2  ;;  %v10144_v2 = vld [vmem:[#allocation12 + $0xa0] ss:$16 sps:$4 sm:$0xff]  }
0x1339   :  { %v14500_v5 = vsub.f32 %v14386_v46, %v6115_v21 }
0x133a   :  { %v6056_v63 = vpop.xlane.xlu0 %6055 }
0x133b   :  { %v6052_v53 = vpop.xlane.xlu1 %6051  ;;  %v6116_v1 = vmul.f32 0.0078125, %v6056_v63 }
0x133c   :  { %v6114_v18 = vmul.f32 0.0078125, %v6052_v53 }
0x133d   :  { %v14507_v59 = vsub.f32 %v14392_v26, %v6116_v1 }
0x133e   :  { %v14489_v62 = vsub.f32 %v14395_v36, %v6114_v18  ;;  %v6058_v17 = vpop.xlane.xlu0 %6057 }
0x133f   :  { %v6117_v61 = vmul.f32 0.0078125, %v6058_v17  ;;  %v10161_v17 = vld [vmem:[#allocation12 + $0x6c] ss:$16 sps:$4 sm:$0xff]  }
0x1340   :  { %v6178_v27 = vmul.f32 %v14489_v62, %v14489_v62 }
0x1341   :  { %v14518_v53 = vsub.f32 %v14402_v50, %v6117_v61  ;;  %v10173_v61 = vld [vmem:[#allocation12 + $0x2c] ss:$16 sps:$4 sm:$0xff]  }
0x1343   :  { %v6181_v21 = vmul.f32 %v14518_v53, %v14518_v53 }
0x1377   :  { %v9962_v40 = vpop.f32.mrf.mxu0 }
0x1378   :  { %v5994_v6 = vadd.f32 %v10997_v37, %v9962_v40  ;;  %v10141_v37 = vld [vmem:[#allocation12 + $0xc8] ss:$16 sps:$4 sm:$0xff]  }
0x1379   :  { %v5913_v38 = vpop.f32.mrf.mxu0  ;;  %6903 = vmatpush1.bf16.msra.mxu0 %v10141_v37 }
0x137a   :  { %v5992_v45 = vadd.f32 %v10996_v44, %v5913_v38  ;;  %v14481_v60 = vadd.f32 %v14376_v56, %v5994_v6  ;;  %v6179_v38 = vmul.f32 %v14500_v5, %v14500_v5  ;;  %v6060_v44 = vpop.xlane.xlu1 %6059  ;;  %v6180_v6 = vmul.f32 %v14507_v59, %v14507_v59 }
0x137b   :  { %v9963_v51 = vpop.f32.mrf.mxu0 }
0x137c   :  { %v14474_v31 = vadd.f32 %v14376_v56, %v5992_v45  ;;  %16032 = vst [vmem:[#allocation41_spill] sm:$0xff] %v14481_v60  ;;  %v5995_v9 = vadd.f32 %v10999_v42, %v9963_v51  ;;  %v10140_v45 = vld [vmem:[#allocation12 + $0xc4] ss:$16 sps:$4 sm:$0xff]   ;;  %v10138_v51 = vld [vmem:[#allocation12 + $0xc0] ss:$16 sps:$4 sm:$0xff]  }
0x137d   :  { %v5916_v41 = vpop.f32.mrf.mxu0  ;;  %6709 = vmatprep.subr.bf16.mxu1 %v10140_v45  ;;  %v10146_v42 = vld [vmem:[#allocation12 + $0xa4] ss:$16 sps:$4 sm:$0xff]   ;;  %v10174_v45 = vld [vmem:[#allocation12] ss:$16 sps:$4 sm:$0xff]  }
0x137e   :  { %16031 = vst [vmem:[#allocation43_spill] sm:$0xff] %v14474_v31  ;;  %v5993_v35 = vadd.f32 %v10998_v25, %v5916_v41  ;;  %6081 = vadd.xlane.f32.xlu0 %v14474_v31  ;;  %v14492_v55 = vadd.f32 %v14376_v56, %v5995_v9  ;;  %v6118_v41 = vmul.f32 0.0078125, %v6060_v44  ;;  %6710 = vmatpush1.bf16.msra.mxu1 %v10138_v51  ;;  %v10149_v9 = vld [vmem:[#allocation12 + $0xac] ss:$16 sps:$4 sm:$0xff]   ;;  %v6062_v51 = vpop.xlane.xlu0 %6061 }
0x137f   :  { %6711 = vmatprep.subr.bf16.mxu1 %v10146_v42  ;;  %6904 = vmatprep.subr.bf16.mxu0 %v10149_v9  ;;  %v10179_v44 = vld [vmem:[#allocation12 + $0xc] ss:$16 sps:$4 sm:$0xff]  }
0x1380   :  { %v14484_v54 = vadd.f32 %v14376_v56, %v5993_v35  ;;  %16034 = vst [vmem:[#allocation51_spill] sm:$0xff] %v14492_v55  ;;  %v11003_v35 = vld [vmem:[#allocation3 + $0xb8] sm:$0xff]  ;;  %v14525_v63 = vsub.f32 %v14405_v33, %v6118_v41  ;;  %v6064_v41 = vpop.xlane.xlu1 %6063 }
0x1381   :  { %v6120_v9 = vmul.f32 0.0078125, %v6064_v41 }
0x1382   :  { %16033 = vst [vmem:[#allocation45_spill] sm:$0xff] %v14484_v54  ;;  %6085 = vadd.xlane.f32.xlu0 %v14481_v60  ;;  %6083 = vadd.xlane.f32.xlu1 %v14484_v54  ;;  %v6182_v1 = vmul.f32 %v14525_v63, %v14525_v63 }
0x1383   :  { %6712 = vmatpush1.bf16.msra.mxu1 %v10144_v2 }
0x1386   :  { %6087 = vadd.xlane.f32.xlu1 %v14492_v55  ;;  %6209 = vadd.xlane.f32.xlu0 %v6177_v15  ;;  %v10147_v15 = vld [vmem:[#allocation12 + $0xa8] ss:$16 sps:$4 sm:$0xff]  }
0x1387   :  { %v9966_v7 = vpop.f32.mrf.mxu0  ;;  %6905 = vmatpush1.bf16.msra.mxu0 %v10147_v15 }
0x1388   :  { %v5998_v40 = vadd.f32 %v11002_v52, %v9966_v7  ;;  %v10168_v52 = vld [vmem:[#allocation12 + $0x20] ss:$16 sps:$4 sm:$0xff]  }
0x1389   :  { %v5929_v0 = vpop.f32.mrf.mxu0 }
0x138a   :  { %v5996_v11 = vadd.f32 %v11000_v24, %v5929_v0  ;;  %6211 = vadd.xlane.f32.xlu1 %v6178_v27  ;;  %v14521_v25 = vadd.f32 %v14376_v56, %v5998_v40  ;;  %v10152_v27 = vld [vmem:[#allocation12 + $0x84] ss:$16 sps:$4 sm:$0xff]   ;;  %v10155_v0 = vld [vmem:[#allocation12 + $0x8c] ss:$16 sps:$4 sm:$0xff]   ;;  %v10150_v24 = vld [vmem:[#allocation12 + $0x80] ss:$16 sps:$4 sm:$0xff]  }
0x138b   :  { %v9967_v8 = vpop.f32.mrf.mxu0  ;;  %6713 = vmatprep.subr.bf16.mxu1 %v10152_v27  ;;  %6906 = vmatprep.subr.bf16.mxu0 %v10155_v0  ;;  %v10171_v40 = vld [vmem:[#allocation12 + $0x28] ss:$16 sps:$4 sm:$0xff]   ;;  %v6066_v27 = vpop.xlane.xlu0 %6065 }
0x138c   :  { %v14503_v10 = vadd.f32 %v14376_v56, %v5996_v11  ;;  %16037 = vst [vmem:[#allocation37_spill] sm:$0xff] %v14521_v25  ;;  %v5999_v18 = vadd.f32 %v11003_v35, %v9967_v8  ;;  %v10153_v11 = vld [vmem:[#allocation12 + $0x88] ss:$16 sps:$4 sm:$0xff]   ;;  %6714 = vmatpush1.bf16.msra.mxu1 %v10150_v24  ;;  %v10158_v8 = vld [vmem:[#allocation12 + $0x64] ss:$16 sps:$4 sm:$0xff]  }
0x138d   :  { %v5932_v13 = vpop.f32.mrf.mxu0  ;;  %6907 = vmatpush1.bf16.msra.mxu0 %v10153_v11  ;;  %6715 = vmatprep.subr.bf16.mxu1 %v10158_v8  ;;  %v11005_v24 = vld [vmem:[#allocation3 + $0xc8] sm:$0xff]  ;;  %v6121_v8 = vmul.f32 0.0078125, %v6066_v27 }
0x138e   :  { %16035 = vst [vmem:[#allocation55_spill] sm:$0xff] %v14503_v10  ;;  %v5997_v34 = vadd.f32 %v11001_v49, %v5932_v13  ;;  %6089 = vadd.xlane.f32.xlu0 %v14503_v10  ;;  %v14528_v7 = vadd.f32 %v14376_v56, %v5999_v18  ;;  %v10156_v13 = vld [vmem:[#allocation12 + $0x60] ss:$16 sps:$4 sm:$0xff]   ;;  %6908 = vmatprep.subr.bf16.mxu0 %v10161_v17  ;;  %v10167_v49 = vld [vmem:[#allocation12 + $0x4c] ss:$16 sps:$4 sm:$0xff]  }
0x138f   :  { %v11004_v18 = vld [vmem:[#allocation3 + $0xc0] sm:$0xff]  ;;  %v11006_v17 = vld [vmem:[#allocation3 + $0xd0] sm:$0xff] }
0x1390   :  { %v14510_v12 = vadd.f32 %v14376_v56, %v5997_v34  ;;  %16038 = vst [vmem:[#allocation40_spill] sm:$0xff] %v14528_v7  ;;  %6716 = vmatpush1.bf16.msra.mxu1 %v10156_v13  ;;  %v10162_v34 = vld [vmem:[#allocation12 + $0x40] ss:$16 sps:$4 sm:$0xff]  }
0x1391   :  { %6909 = vmatpush1.bf16.msra.mxu0 %v10159_v20  ;;  %6717 = vmatprep.subr.bf16.mxu1 %v10164_v30 }
0x1392   :  { %16036 = vst [vmem:[#allocation57_spill] sm:$0xff] %v14510_v12  ;;  %6091 = vadd.xlane.f32.xlu1 %v14510_v12  ;;  %6213 = vadd.xlane.f32.xlu0 %v6179_v38  ;;  %v10176_v38 = vld [vmem:[#allocation12 + $0x4] ss:$16 sps:$4 sm:$0xff]  }
0x1393   :  { %6910 = vmatprep.subr.bf16.mxu0 %v10167_v49  ;;  %v6068_v49 = vpop.xlane.xlu1 %6067 }
0x1394   :  { %6718 = vmatpush1.bf16.msra.mxu1 %v10162_v34 }
0x1395   :  { %6911 = vmatpush1.bf16.msra.mxu0 %v10165_v58  ;;  %6719 = vmatprep.subr.bf16.mxu1 %v10170_v39  ;;  %v14554_v58 = vsub.f32 %v14424_v29, %v6121_v8  ;;  %v6122_v39 = vmul.f32 0.0078125, %v6068_v49  ;;  %v11009_v8 = vld [vmem:[#allocation3 + $0xe8] sm:$0xff] }
0x1396   :  { %6093 = vadd.xlane.f32.xlu0 %v14521_v25  ;;  %6215 = vadd.xlane.f32.xlu1 %v6180_v6  ;;  %v6119_v6 = vmul.f32 0.0078125, %v6062_v51 }
0x1397   :  { %6912 = vmatprep.subr.bf16.mxu0 %v10173_v61 }
0x1398   :  { %6720 = vmatpush1.bf16.msra.mxu1 %v10168_v52  ;;  %v14536_v15 = vsub.f32 %v14412_v4, %v6119_v6  ;;  %v11007_v52 = vld [vmem:[#allocation3 + $0xd8] sm:$0xff]  ;;  %v6072_v6 = vpop.xlane.xlu1 %6071 }
0x1399   :  { %6913 = vmatpush1.bf16.msra.mxu0 %v10171_v40  ;;  %6721 = vmatprep.subr.bf16.mxu1 %v10176_v38  ;;  %v14561_v38 = vsub.f32 %v14433_v22, %v6122_v39 }
0x139a   :  { %6095 = vadd.xlane.f32.xlu1 %v14528_v7  ;;  %6217 = vadd.xlane.f32.xlu0 %v6181_v21  ;;  %v6183_v30 = vmul.f32 %v14536_v15, %v14536_v15 }
0x139b   :  { %6914 = vmatprep.subr.bf16.mxu0 %v10179_v44  ;;  %v6070_v44 = vpop.xlane.xlu0 %6069 }
0x139c   :  { %6722 = vmatpush1.bf16.msra.mxu1 %v10174_v45  ;;  %v6076_v49 = vpop.xlane.xlu1 %6075 }
0x139d   :  { %6915 = vmatpush1.bf16.msra.mxu0 %v10177_v23  ;;  %v6185_v23 = vmul.f32 %v14554_v58, %v14554_v58 }
0x139e   :  { %6219 = vadd.xlane.f32.xlu1 %v6182_v1  ;;  %v14543_v1 = vsub.f32 %v14415_v32, %v6120_v9  ;;  %v6124_v9 = vmul.f32 0.0078125, %v6072_v6  ;;  %v6126_v6 = vmul.f32 0.0078125, %v6076_v49 }
0x13a0   :  { %v6184_v34 = vmul.f32 %v14543_v1, %v14543_v1 }
0x13b6   :  { %v9970_v37 = vpop.f32.mrf.mxu0 }
0x13b7   :  { %v6002_v13 = vadd.f32 %v11006_v17, %v9970_v37  ;;  %v6123_v37 = vmul.f32 0.0078125, %v6070_v44 }
0x13b8   :  { %v5945_v35 = vpop.f32.mrf.mxu0 }
0x13b9   :  { %v6000_v42 = vadd.f32 %v11004_v18, %v5945_v35  ;;  %v14557_v61 = vadd.f32 %v14376_v56, %v6002_v13  ;;  %v6186_v35 = vmul.f32 %v14561_v38, %v14561_v38  ;;  %v11008_v18 = vld [vmem:[#allocation3 + $0xe0] sm:$0xff]  ;;  %v14579_v13 = vsub.f32 %v14439_v19, %v6124_v9 }
0x13ba   :  { %v9971_v2 = vpop.f32.mrf.mxu0 }
0x13bb   :  { %v14539_v21 = vadd.f32 %v14376_v56, %v6000_v42  ;;  %16041 = vst [vmem:[#allocation78_spill] sm:$0xff] %v14557_v61  ;;  %v6003_v40 = vadd.f32 %v11007_v52, %v9971_v2  ;;  %v6074_v2 = vpop.xlane.xlu0 %6073 }
0x13bc   :  { %v5948_v0 = vpop.f32.mrf.mxu0 }
0x13bd   :  { %16039 = vst [vmem:[#allocation46_spill] sm:$0xff] %v14539_v21  ;;  %v6001_v11 = vadd.f32 %v11005_v24, %v5948_v0  ;;  %6097 = vadd.xlane.f32.xlu0 %v14539_v21  ;;  %v14564_v45 = vadd.f32 %v14376_v56, %v6003_v40  ;;  %v14572_v0 = vsub.f32 %v14430_v43, %v6123_v37 }
0x13be   :  { %v6188_v37 = vmul.f32 %v14579_v13, %v14579_v13 }
0x13bf   :  { %v14546_v20 = vadd.f32 %v14376_v56, %v6001_v11  ;;  %16042 = vst [vmem:[#allocation80_spill] sm:$0xff] %v14564_v45  ;;  %v6187_v40 = vmul.f32 %v14572_v0, %v14572_v0  ;;  %v6078_v44 = vpop.xlane.xlu0 %6077 }
0x13c1   :  { %16040 = vst [vmem:[#allocation52_spill] sm:$0xff] %v14546_v20  ;;  %6099 = vadd.xlane.f32.xlu1 %v14546_v20  ;;  %6221 = vadd.xlane.f32.xlu0 %v6183_v30  ;;  %v6125_v30 = vmul.f32 0.0078125, %v6074_v2  ;;  %v14599_v2 = vsub.f32 %v14450_v57, %v6126_v6 }
0x13c5   :  { %6223 = vadd.xlane.f32.xlu1 %v6184_v34  ;;  %6101 = vadd.xlane.f32.xlu0 %v14557_v61  ;;  %v11010_v34 = vld [vmem:[#allocation3 + $0xf0] sm:$0xff] }
0x13c9   :  { %v9974_v51 = vpop.f32.mrf.mxu0  ;;  %6103 = vadd.xlane.f32.xlu1 %v14564_v45  ;;  %6225 = vadd.xlane.f32.xlu0 %v6185_v23  ;;  %v14588_v23 = vsub.f32 %v14443_v28, %v6125_v30  ;;  %v6190_v30 = vmul.f32 %v14599_v2, %v14599_v2 }
0x13ca   :  { %v6006_v39 = vadd.f32 %v11010_v34, %v9974_v51 }
0x13cb   :  { %v5961_v41 = vpop.f32.mrf.mxu0  ;;  %v6189_v9 = vmul.f32 %v14588_v23, %v14588_v23 }
0x13cc   :  { %v6004_v42 = vadd.f32 %v11008_v18, %v5961_v41  ;;  %v6127_v41 = vmul.f32 0.0078125, %v6078_v44  ;;  %v14593_v51 = vadd.f32 %v14376_v56, %v6006_v39 }
0x13cd   :  { %v9975_v27 = vpop.f32.mrf.mxu0  ;;  %6227 = vadd.xlane.f32.xlu1 %v6186_v35  ;;  %v11011_v35 = vld [vmem:[#allocation3 + $0xf8] sm:$0xff] }
0x13ce   :  { %v14575_v24 = vadd.f32 %v14376_v56, %v6004_v42  ;;  %16045 = vst [vmem:[#allocation86_spill] sm:$0xff] %v14593_v51  ;;  %v6007_v18 = vadd.f32 %v11011_v35, %v9975_v27  ;;  %v6080_v42 = vpop.xlane.xlu1 %6079 }
0x13cf   :  { %v5964_v11 = vpop.f32.mrf.mxu0 }
0x13d0   :  { %16043 = vst [vmem:[#allocation82_spill] sm:$0xff] %v14575_v24  ;;  %v6005_v17 = vadd.f32 %v11009_v8, %v5964_v11  ;;  %6105 = vadd.xlane.f32.xlu0 %v14575_v24  ;;  %v14602_v11 = vsub.f32 %v14447_v14, %v6127_v41  ;;  %v6128_v8 = vmul.f32 0.0078125, %v6080_v42 }
0x13d2   :  { %v14582_v52 = vadd.f32 %v14376_v56, %v6005_v17  ;;  %v14605_v17 = vadd.f32 %v14376_v56, %v6007_v18  ;;  %v14609_v27 = vsub.f32 %v14455_v47, %v6128_v8  ;;  %v6191_v49 = vmul.f32 %v14602_v11, %v14602_v11 }
0x13d4   :  { %16044 = vst [vmem:[#allocation84_spill] sm:$0xff] %v14582_v52  ;;  %6107 = vadd.xlane.f32.xlu1 %v14582_v52  ;;  %6229 = vadd.xlane.f32.xlu0 %v6187_v40  ;;  %16046 = vst [vmem:[#allocation88_spill] sm:$0xff] %v14605_v17  ;;  %v6192_v34 = vmul.f32 %v14609_v27, %v14609_v27 }
0x13d8   :  { %6231 = vadd.xlane.f32.xlu1 %v6188_v37  ;;  %6109 = vadd.xlane.f32.xlu0 %v14593_v51 }
0x13dc   :  { %6111 = vadd.xlane.f32.xlu1 %v14605_v17  ;;  %6233 = vadd.xlane.f32.xlu0 %v6189_v9 }
0x13e0   :  { %6235 = vadd.xlane.f32.xlu1 %v6190_v30  ;;  %6237 = vadd.xlane.f32.xlu0 %v6191_v49 }
0x13e4   :  { %6239 = vadd.xlane.f32.xlu1 %v6192_v34 }
0x1407   :  { %v6082_v56 = vpop.xlane.xlu0 %6081 }
0x1408   :  { %v6129_v39 = vmul.f32 0.0078125, %v6082_v56 }
0x140a   :  { %v14618_v40 = vsub.f32 %v14474_v31, %v6129_v39 }
0x140b   :  { %v6084_v44 = vpop.xlane.xlu1 %6083  ;;  %v6086_v37 = vpop.xlane.xlu0 %6085 }
0x140c   :  { %v6130_v6 = vmul.f32 0.0078125, %v6084_v44  ;;  %v6131_v41 = vmul.f32 0.0078125, %v6086_v37  ;;  %v6193_v35 = vmul.f32 %v14618_v40, %v14618_v40 }
0x140e   :  { %v14623_v18 = vsub.f32 %v14484_v54, %v6130_v6  ;;  %v14626_v42 = vsub.f32 %v14481_v60, %v6131_v41  ;;  %6241 = vadd.xlane.f32.xlu0 %v6193_v35 }
0x140f   :  { %v6088_v9 = vpop.xlane.xlu1 %6087  ;;  %v6210_v8 = vpop.xlane.xlu0 %6209 }
0x1410   :  { %v6132_v30 = vmul.f32 0.0078125, %v6088_v9  ;;  %v6273_v49 = vmul.f32 0.0078125, %v6210_v8  ;;  %v6194_v34 = vmul.f32 %v14623_v18, %v14623_v18  ;;  %v6195_v56 = vmul.f32 %v14626_v42, %v14626_v42 }
0x1412   :  { %v14633_v39 = vsub.f32 %v14492_v55, %v6132_v30  ;;  %v6305_v44 = vadd.f32 1e-05, %v6273_v49  ;;  %6243 = vadd.xlane.f32.xlu1 %v6194_v34  ;;  %6245 = vadd.xlane.f32.xlu0 %v6195_v56 }
0x1413   :  { %v6212_v37 = vpop.xlane.xlu1 %6211 }
0x1414   :  { %10788 = vrsqrt.f32 %v6305_v44  ;;  %v6274_v6 = vmul.f32 0.0078125, %v6212_v37  ;;  %v6196_v41 = vmul.f32 %v14633_v39, %v14633_v39 }
0x1416   :  { %v6306_v35 = vadd.f32 1e-05, %v6274_v6  ;;  %6247 = vadd.xlane.f32.xlu1 %v6196_v41 }
0x1417   :  { %v6090_v9 = vpop.xlane.xlu0 %6089 }
0x1418   :  { %10790 = vrsqrt.f32 %v6306_v35  ;;  %v6133_v8 = vmul.f32 0.0078125, %v6090_v9 }
0x141a   :  { %v14638_v60 = vsub.f32 %v14503_v10, %v6133_v8 }
0x141b   :  { %v6092_v54 = vpop.xlane.xlu1 %6091  ;;  %v6214_v30 = vpop.xlane.xlu0 %6213 }
0x141c   :  { %v6134_v55 = vmul.f32 0.0078125, %v6092_v54  ;;  %v6275_v49 = vmul.f32 0.0078125, %v6214_v30  ;;  %v6197_v34 = vmul.f32 %v14638_v60, %v14638_v60 }
0x141e   :  { %v14643_v56 = vsub.f32 %v14510_v12, %v6134_v55  ;;  %v6307_v44 = vadd.f32 1e-05, %v6275_v49  ;;  %6249 = vadd.xlane.f32.xlu0 %v6197_v34  ;;  %v14654_v55 = vld [vmem:[%s15545_s7] ss:$0 sm:$0xff] }
0x141f   :  { %v6216_v37 = vpop.xlane.xlu1 %6215  ;;  %v6094_v6 = vpop.xlane.xlu0 %6093 }
0x1420   :  { %10792 = vrsqrt.f32 %v6307_v44  ;;  %v6276_v41 = vmul.f32 0.0078125, %v6216_v37  ;;  %v6135_v35 = vmul.f32 0.0078125, %v6094_v6  ;;  %v6198_v9 = vmul.f32 %v14643_v56, %v14643_v56 }
0x1421   :  { %v10789_v8 = vpop.eup %10788 }
0x1422   :  { %v6369_v54 = vmul.f32 %v10789_v8, %v14478_v3  ;;  %v6308_v30 = vadd.f32 1e-05, %v6276_v41  ;;  %v14649_v10 = vsub.f32 %v14521_v25, %v6135_v35  ;;  %6251 = vadd.xlane.f32.xlu1 %v6198_v9 }
0x1423   :  { %v6096_v49 = vpop.xlane.xlu1 %6095  ;;  %v6218_v34 = vpop.xlane.xlu0 %6217 }
0x1424   :  { %10794 = vrsqrt.f32 %v6308_v30  ;;  %v6136_v44 = vmul.f32 0.0078125, %v6096_v49  ;;  %v6277_v37 = vmul.f32 0.0078125, %v6218_v34  ;;  %v6199_v12 = vmul.f32 %v14649_v10, %v14649_v10  ;;  %v14666_v30 = vld [vmem:[%s15546_s8] ss:$0 sm:$0xff] }
0x1425   :  { %v10791_v6 = vpop.eup %10790  ;;  %v6407_v3 = vmul.f32 %v14654_v55, %v6369_v54 }
0x1426   :  { %v6370_v41 = vmul.f32 %v10791_v6, %v14489_v62  ;;  %v14661_v35 = vsub.f32 %v14528_v7, %v6136_v44  ;;  %v6309_v9 = vadd.f32 1e-05, %v6277_v37  ;;  %6253 = vadd.xlane.f32.xlu0 %v6199_v12 }
0x1427   :  { %v6220_v8 = vpop.xlane.xlu1 %6219  ;;  %v6445_v62 = vadd.f32 %v14666_v30, %v6407_v3 }
0x1428   :  { %v6408_v49 = vmul.f32 %v14654_v55, %v6370_v41  ;;  %10796 = vrsqrt.f32 %v6309_v9  ;;  %v6278_v34 = vmul.f32 0.0078125, %v6220_v8  ;;  %v6200_v54 = vmul.f32 %v14661_v35, %v14661_v35 }
0x142a   :  { %v6310_v25 = vadd.f32 1e-05, %v6278_v34  ;;  %6255 = vadd.xlane.f32.xlu1 %v6200_v54  ;;  %v6446_v44 = vadd.f32 %v14666_v30, %v6408_v49 }
0x142c   :  { %10798 = vrsqrt.f32 %v6310_v25  ;;  %v6477_v12 = vpack.c.bf16 %v6446_v44, %v6445_v62 }
0x142d   :  { %v10793_v37 = vpop.eup %10792 }
0x142e   :  { %6740 = vmatmul.mubr.bf16.vlgmr.msra.gmra.mxu1 %v6477_v12  ;;  %6933 = vmatmul.mubr.bf16.vlgmr.msra.gmra.mxu0 %v6477_v12  ;;  %v6371_v6 = vmul.f32 %v10793_v37, %v14500_v5 }
0x142f   :  { %6749 = vmatprep.mubr.bf16.mxu1 %v15961_v16  ;;  %6942 = vmatprep.mubr.bf16.mxu0 %v15961_v16 }
0x1430   :  { %v6409_v8 = vmul.f32 %v14654_v55, %v6371_v6 }
0x1431   :  { %v10795_v41 = vpop.eup %10794 }
0x1432   :  { %v6372_v9 = vmul.f32 %v10795_v41, %v14507_v59  ;;  %v6447_v25 = vadd.f32 %v14666_v30, %v6409_v8 }
0x1434   :  { %v6410_v3 = vmul.f32 %v14654_v55, %v6372_v9 }
0x1435   :  { %v10797_v34 = vpop.eup %10796 }
0x1436   :  { %v6448_v49 = vadd.f32 %v14666_v30, %v6410_v3  ;;  %v6373_v54 = vmul.f32 %v10797_v34, %v14518_v53 }
0x1438   :  { %v6478_v62 = vpack.c.bf16 %v6448_v49, %v6447_v25  ;;  %v6411_v12 = vmul.f32 %v14654_v55, %v6373_v54 }
0x1439   :  { %v10799_v5 = vpop.eup %10798 }
0x143a   :  { %6750 = vmatmul.mubr.bf16.gmra.mxu1 %v6478_v62  ;;  %6943 = vmatmul.mubr.bf16.gmra.mxu0 %v6478_v62  ;;  %v6374_v44 = vmul.f32 %v10799_v5, %v14525_v63  ;;  %v6449_v37 = vadd.f32 %v14666_v30, %v6411_v12 }
0x143b   :  { %6759 = vmatprep.mubr.bf16.mxu1 %v15961_v16  ;;  %6952 = vmatprep.mubr.bf16.mxu0 %v15961_v16 }
0x143c   :  { %v6412_v59 = vmul.f32 %v14654_v55, %v6374_v44 }
0x143e   :  { %v6450_v6 = vadd.f32 %v14666_v30, %v6412_v59 }
0x1440   :  { %v6479_v41 = vpack.c.bf16 %v6450_v6, %v6449_v37 }
0x1442   :  { %6760 = vmatmul.mubr.bf16.gmra.mxu1 %v6479_v41  ;;  %6953 = vmatmul.mubr.bf16.gmra.mxu0 %v6479_v41 }
0x1443   :  { %6769 = vmatprep.mubr.bf16.mxu1 %v15961_v16  ;;  %6962 = vmatprep.mubr.bf16.mxu0 %v15961_v16 }
0x1446   :  { %v6098_v53 = vpop.xlane.xlu0 %6097 }
0x1447   :  { %v6137_v63 = vmul.f32 0.0078125, %v6098_v53 }
0x1449   :  { %v14692_v9 = vsub.f32 %v14539_v21, %v6137_v63 }
0x144a   :  { %v6100_v8 = vpop.xlane.xlu1 %6099  ;;  %v6222_v3 = vpop.xlane.xlu0 %6221 }
0x144b   :  { %v6138_v34 = vmul.f32 0.0078125, %v6100_v8  ;;  %v6279_v25 = vmul.f32 0.0078125, %v6222_v3  ;;  %v6201_v49 = vmul.f32 %v14692_v9, %v14692_v9 }
0x144d   :  { %v14697_v54 = vsub.f32 %v14546_v20, %v6138_v34  ;;  %v6311_v62 = vadd.f32 1e-05, %v6279_v25  ;;  %6257 = vadd.xlane.f32.xlu0 %v6201_v49 }
0x144e   :  { %v6224_v5 = vpop.xlane.xlu1 %6223  ;;  %v6102_v44 = vpop.xlane.xlu0 %6101 }
0x144f   :  { %10800 = vrsqrt.f32 %v6311_v62  ;;  %v6280_v12 = vmul.f32 0.0078125, %v6224_v5  ;;  %v6139_v59 = vmul.f32 0.0078125, %v6102_v44  ;;  %v6202_v37 = vmul.f32 %v14697_v54, %v14697_v54 }
0x1451   :  { %v6312_v6 = vadd.f32 1e-05, %v6280_v12  ;;  %v14702_v41 = vsub.f32 %v14557_v61, %v6139_v59  ;;  %6259 = vadd.xlane.f32.xlu1 %v6202_v37 }
0x1452   :  { %v6104_v53 = vpop.xlane.xlu1 %6103  ;;  %v6226_v63 = vpop.xlane.xlu0 %6225 }
0x1453   :  { %10802 = vrsqrt.f32 %v6312_v6  ;;  %v6140_v8 = vmul.f32 0.0078125, %v6104_v53  ;;  %v6281_v3 = vmul.f32 0.0078125, %v6226_v63  ;;  %v6203_v34 = vmul.f32 %v14702_v41, %v14702_v41 }
0x1455   :  { %v14707_v25 = vsub.f32 %v14564_v45, %v6140_v8  ;;  %v6313_v49 = vadd.f32 1e-05, %v6281_v3  ;;  %6261 = vadd.xlane.f32.xlu0 %v6203_v34 }
0x1456   :  { %v6228_v62 = vpop.xlane.xlu1 %6227 }
0x1457   :  { %10804 = vrsqrt.f32 %v6313_v49  ;;  %v6282_v5 = vmul.f32 0.0078125, %v6228_v62  ;;  %v6204_v44 = vmul.f32 %v14707_v25, %v14707_v25 }
0x1459   :  { %v6314_v12 = vadd.f32 1e-05, %v6282_v5  ;;  %6263 = vadd.xlane.f32.xlu1 %v6204_v44  ;;  %v6106_v59 = vpop.xlane.xlu0 %6105 }
0x145a   :  { %v6141_v37 = vmul.f32 0.0078125, %v6106_v59 }
0x145b   :  { %10806 = vrsqrt.f32 %v6314_v12 }
0x145c   :  { %v10801_v6 = vpop.eup %10800  ;;  %v14712_v53 = vsub.f32 %v14575_v24, %v6141_v37 }
0x145d   :  { %v6108_v63 = vpop.xlane.xlu1 %6107  ;;  %v6230_v8 = vpop.xlane.xlu0 %6229  ;;  %v6375_v3 = vmul.f32 %v10801_v6, %v14536_v15 }
0x145e   :  { %v6142_v34 = vmul.f32 0.0078125, %v6108_v63  ;;  %v6283_v45 = vmul.f32 0.0078125, %v6230_v8  ;;  %v6205_v49 = vmul.f32 %v14712_v53, %v14712_v53 }
0x145f   :  { %v6413_v24 = vmul.f32 %v14654_v55, %v6375_v3 }
0x1460   :  { %v10803_v62 = vpop.eup %10802  ;;  %v14718_v5 = vsub.f32 %v14582_v52, %v6142_v34  ;;  %v6315_v44 = vadd.f32 1e-05, %v6283_v45  ;;  %6265 = vadd.xlane.f32.xlu0 %v6205_v49 }
0x1461   :  { %v6232_v12 = vpop.xlane.xlu1 %6231  ;;  %v6110_v59 = vpop.xlane.xlu0 %6109  ;;  %v6376_v37 = vmul.f32 %v10803_v62, %v14543_v1  ;;  %v6451_v1 = vadd.f32 %v14666_v30, %v6413_v24 }
0x1462   :  { %10808 = vrsqrt.f32 %v6315_v44  ;;  %v6284_v61 = vmul.f32 0.0078125, %v6232_v12  ;;  %v6143_v15 = vmul.f32 0.0078125, %v6110_v59  ;;  %v6206_v6 = vmul.f32 %v14718_v5, %v14718_v5 }
0x1463   :  { %v6414_v63 = vmul.f32 %v14654_v55, %v6376_v37 }
0x1464   :  { %v10805_v8 = vpop.eup %10804  ;;  %v6316_v20 = vadd.f32 1e-05, %v6284_v61  ;;  %v14726_v34 = vsub.f32 %v14593_v51, %v6143_v15  ;;  %6267 = vadd.xlane.f32.xlu1 %v6206_v6 }
0x1465   :  { %v6112_v45 = vpop.xlane.xlu1 %6111  ;;  %v6234_v49 = vpop.xlane.xlu0 %6233  ;;  %v6452_v3 = vadd.f32 %v14666_v30, %v6414_v63  ;;  %v6377_v62 = vmul.f32 %v10805_v8, %v14554_v58 }
0x1466   :  { %10810 = vrsqrt.f32 %v6316_v20  ;;  %v6144_v44 = vmul.f32 0.0078125, %v6112_v45  ;;  %v6285_v12 = vmul.f32 0.0078125, %v6234_v49  ;;  %v6207_v59 = vmul.f32 %v14726_v34, %v14726_v34 }
0x1467   :  { %v6480_v37 = vpack.c.bf16 %v6452_v3, %v6451_v1  ;;  %v6415_v20 = vmul.f32 %v14654_v55, %v6377_v62 }
0x1468   :  { %v10807_v61 = vpop.eup %10806  ;;  %v14734_v15 = vsub.f32 %v14605_v17, %v6144_v44  ;;  %v6317_v6 = vadd.f32 1e-05, %v6285_v12  ;;  %6269 = vadd.xlane.f32.xlu0 %v6207_v59 }
0x1469   :  { %v6236_v51 = vpop.xlane.xlu1 %6235  ;;  %6770 = vmatmul.mubr.bf16.gmra.mxu1 %v6480_v37  ;;  %6963 = vmatmul.mubr.bf16.gmra.mxu0 %v6480_v37  ;;  %v6238_v24 = vpop.xlane.xlu0 %6237  ;;  %v6378_v63 = vmul.f32 %v10807_v61, %v14561_v38  ;;  %v6453_v38 = vadd.f32 %v14666_v30, %v6415_v20 }
0x146a   :  { %10812 = vrsqrt.f32 %v6317_v6  ;;  %v6286_v58 = vmul.f32 0.0078125, %v6236_v51  ;;  %v6287_v8 = vmul.f32 0.0078125, %v6238_v24  ;;  %v6208_v45 = vmul.f32 %v14734_v15, %v14734_v15  ;;  %6779 = vmatprep.mubr.bf16.mxu1 %v15961_v16  ;;  %6972 = vmatprep.mubr.bf16.mxu0 %v15961_v16 }
0x146b   :  { %v6416_v49 = vmul.f32 %v14654_v55, %v6378_v63 }
0x146c   :  { %v6318_v1 = vadd.f32 1e-05, %v6286_v58  ;;  %v6319_v3 = vadd.f32 1e-05, %v6287_v8  ;;  %6271 = vadd.xlane.f32.xlu1 %v6208_v45  ;;  %v10180_v8 = vld [vmem:[#allocation14 + $0x78] sm:$0xff]  }
0x146d   :  { %v6240_v44 = vpop.xlane.xlu1 %6239  ;;  %v6454_v62 = vadd.f32 %v14666_v30, %v6416_v49  ;;  %v10181_v45 = vld [vmem:[#allocation14 + $0xf8] sm:$0xff]   ;;  %9144 = vmatprep.subr.bf16.mxu1 %v10180_v8 }
0x146e   :  { %10814 = vrsqrt.f32 %v6318_v1  ;;  %v6288_v51 = vmul.f32 0.0078125, %v6240_v44  ;;  %v10183_v44 = vld [vmem:[#allocation14 + $0xb8] sm:$0xff]   ;;  %9256 = vmatprep.subr.bf16.mxu0 %v10181_v45 }
0x146f   :  { %v10809_v12 = vpop.eup %10808  ;;  %v6481_v59 = vpack.c.bf16 %v6454_v62, %v6453_v38  ;;  %10816 = vrsqrt.f32 %v6319_v3  ;;  %v10182_v3 = vld [vmem:[#allocation14 + $0x38] sm:$0xff]   ;;  %9257 = vmatpush3.bf16.msra.mxu0 %v10183_v44  ;;  %v10184_v62 = vld [vmem:[#allocation14 + $0x70] sm:$0xff]   ;;  %v10192_v44 = vld [vmem:[#allocation14 + $0x60] sm:$0xff]  }
0x1470   :  { %v6320_v37 = vadd.f32 1e-05, %v6288_v51  ;;  %v6379_v61 = vmul.f32 %v10809_v12, %v14572_v0  ;;  %9145 = vmatpush3.bf16.msra.mxu1 %v10182_v3  ;;  %v10185_v51 = vld [vmem:[#allocation14 + $0xf0] sm:$0xff]  }
0x1471   :  { %6780 = vmatmul.mubr.bf16.gmra.mxu1 %v6481_v59  ;;  %6973 = vmatmul.mubr.bf16.gmra.mxu0 %v6481_v59 }
0x1472   :  { %10818 = vrsqrt.f32 %v6320_v37  ;;  %6789 = vmatprep.mubr.bf16.mxu1 %v15961_v16  ;;  %6982 = vmatprep.mubr.bf16.mxu0 %v15961_v16  ;;  %v6417_v63 = vmul.f32 %v14654_v55, %v6379_v61  ;;  %v10186_v37 = vld [vmem:[#allocation14 + $0x30] sm:$0xff]  }
0x1473   :  { %v10811_v6 = vpop.eup %10810  ;;  %v10187_v61 = vld [vmem:[#allocation14 + $0xb0] sm:$0xff]   ;;  %9146 = vmatprep.subr.bf16.mxu1 %v10184_v62  ;;  %9258 = vmatprep.subr.bf16.mxu0 %v10185_v51  ;;  %v10194_v62 = vld [vmem:[#allocation14 + $0x20] sm:$0xff]  }
0x1474   :  { %v6380_v24 = vmul.f32 %v10811_v6, %v14579_v13  ;;  %v6455_v49 = vadd.f32 %v14666_v30, %v6417_v63  ;;  %9147 = vmatpush3.bf16.msra.mxu1 %v10186_v37  ;;  %9259 = vmatpush3.bf16.msra.mxu0 %v10187_v61  ;;  %v10188_v63 = vld [vmem:[#allocation14 + $0x68] sm:$0xff]   ;;  %v10195_v51 = vld [vmem:[#allocation14 + $0xa0] sm:$0xff]   ;;  %v10198_v37 = vld [vmem:[#allocation14 + $0x18] sm:$0xff]  }
0x1475   :  { %9148 = vmatprep.subr.bf16.mxu1 %v10188_v63  ;;  %v10199_v61 = vld [vmem:[#allocation14 + $0x98] sm:$0xff]   ;;  %v10202_v63 = vld [vmem:[#allocation14 + $0x10] sm:$0xff]  }
0x1476   :  { %v6418_v20 = vmul.f32 %v14654_v55, %v6380_v24 }
0x1477   :  { %v10813_v58 = vpop.eup %10812 }
0x1478   :  { %v6456_v0 = vadd.f32 %v14666_v30, %v6418_v20  ;;  %v6381_v1 = vmul.f32 %v10813_v58, %v14588_v23  ;;  %v10189_v20 = vld [vmem:[#allocation14 + $0xe8] sm:$0xff]  }
0x1479   :  { %9260 = vmatprep.subr.bf16.mxu0 %v10189_v20  ;;  %v10203_v20 = vld [vmem:[#allocation14 + $0x90] sm:$0xff]  }
0x147a   :  { %v6482_v38 = vpack.c.bf16 %v6456_v0, %v6455_v49  ;;  %v6419_v59 = vmul.f32 %v14654_v55, %v6381_v1  ;;  %v10190_v49 = vld [vmem:[#allocation14 + $0x28] sm:$0xff]  }
0x147b   :  { %v10815_v13 = vpop.eup %10814  ;;  %v10191_v0 = vld [vmem:[#allocation14 + $0xa8] sm:$0xff]   ;;  %9149 = vmatpush3.bf16.msra.mxu1 %v10190_v49  ;;  %v10208_v49 = vld [vmem:[#allocation14 + $0x40] sm:$0xff]  }
0x147c   :  { %6790 = vmatmul.mubr.bf16.gmra.mxu1 %v6482_v38  ;;  %6983 = vmatmul.mubr.bf16.gmra.mxu0 %v6482_v38  ;;  %v6382_v12 = vmul.f32 %v10815_v13, %v14599_v2  ;;  %v10817_v6 = vpop.eup %10816  ;;  %v6457_v2 = vadd.f32 %v14666_v30, %v6419_v59  ;;  %v10193_v38 = vld [vmem:[#allocation14 + $0xe0] sm:$0xff]  }
0x147d   :  { %6799 = vmatprep.mubr.bf16.mxu1 %v15961_v16  ;;  %6992 = vmatprep.mubr.bf16.mxu0 %v15961_v16  ;;  %v6383_v8 = vmul.f32 %v10817_v6, %v14602_v11 }
0x147e   :  { %v6420_v23 = vmul.f32 %v14654_v55, %v6382_v12  ;;  %9261 = vmatpush3.bf16.msra.mxu0 %v10191_v0  ;;  %9150 = vmatprep.subr.bf16.mxu1 %v10192_v44  ;;  %v10197_v12 = vld [vmem:[#allocation14 + $0xd8] sm:$0xff]   ;;  %v10209_v0 = vld [vmem:[#allocation14 + $0xc0] sm:$0xff]  }
0x147f   :  { %v10819_v24 = vpop.eup %10818  ;;  %v6421_v13 = vmul.f32 %v14654_v55, %v6383_v8  ;;  %9262 = vmatprep.subr.bf16.mxu0 %v10193_v38  ;;  %9151 = vmatpush3.bf16.msra.mxu1 %v10194_v62  ;;  %v10206_v8 = vld [vmem:[#allocation14 + $0x8] sm:$0xff]  }
0x1480   :  { %v6458_v58 = vadd.f32 %v14666_v30, %v6420_v23  ;;  %v6384_v45 = vmul.f32 %v10819_v24, %v14609_v27  ;;  %v10196_v27 = vld [vmem:[#allocation14 + $0x58] sm:$0xff]   ;;  %v10200_v23 = vld [vmem:[#allocation14 + $0x50] sm:$0xff]  }
0x1481   :  { %v6459_v59 = vadd.f32 %v14666_v30, %v6421_v13  ;;  %9152 = vmatprep.subr.bf16.mxu1 %v10196_v27  ;;  %v10201_v24 = vld [vmem:[#allocation14 + $0xd0] sm:$0xff]  }
0x1482   :  { %v6483_v1 = vpack.c.bf16 %v6458_v58, %v6457_v2  ;;  %v6422_v3 = vmul.f32 %v14654_v55, %v6384_v45  ;;  %9263 = vmatpush3.bf16.msra.mxu0 %v10195_v51  ;;  %v10204_v2 = vld [vmem:[#allocation14 + $0x48] sm:$0xff]  }
0x1483   :  { %9264 = vmatprep.subr.bf16.mxu0 %v10197_v12  ;;  %9153 = vmatpush3.bf16.msra.mxu1 %v10198_v37  ;;  %v10205_v58 = vld [vmem:[#allocation14 + $0xc8] sm:$0xff]  }
0x1484   :  { %6800 = vmatmul.mubr.bf16.gmra.mxu1 %v6483_v1  ;;  %6993 = vmatmul.mubr.bf16.gmra.mxu0 %v6483_v1  ;;  %v6460_v11 = vadd.f32 %v14666_v30, %v6422_v3  ;;  %v10207_v45 = vld [vmem:[#allocation14 + $0x88] sm:$0xff]   ;;  %v10210_v1 = vld [vmem:[#allocation14] sm:$0xff]  }
0x1485   :  { %6809 = vmatprep.mubr.bf16.mxu1 %v15961_v16  ;;  %7002 = vmatprep.mubr.bf16.mxu0 %v15961_v16  ;;  %v10211_v3 = vld [vmem:[#allocation14 + $0x80] sm:$0xff]  }
0x1486   :  { %v6484_v6 = vpack.c.bf16 %v6460_v11, %v6459_v59  ;;  %9265 = vmatpush3.bf16.msra.mxu0 %v10199_v61  ;;  %9154 = vmatprep.subr.bf16.mxu1 %v10200_v23 }
0x1487   :  { %9266 = vmatprep.subr.bf16.mxu0 %v10201_v24  ;;  %9155 = vmatpush3.bf16.msra.mxu1 %v10202_v63 }
0x1488   :  { %9156 = vmatprep.subr.bf16.mxu1 %v10204_v2 }
0x148a   :  { %9267 = vmatpush3.bf16.msra.mxu0 %v10203_v20 }
0x148b   :  { %9268 = vmatprep.subr.bf16.mxu0 %v10205_v58  ;;  %9157 = vmatpush3.bf16.msra.mxu1 %v10206_v8 }
0x148c   :  { %6810 = vmatmul.mubr.bf16.gmra.mxu1 %v6484_v6  ;;  %7003 = vmatmul.mubr.bf16.gmra.mxu0 %v6484_v6 }
0x148d   :  { %6819 = vmatprep.mubr.bf16.mxu1 %v15961_v16  ;;  %7012 = vmatprep.mubr.bf16.mxu0 %v15961_v16 }
0x148e   :  { %9269 = vmatpush3.bf16.msra.mxu0 %v10207_v45  ;;  %9158 = vmatprep.subr.bf16.mxu1 %v10208_v49 }
0x148f   :  { %9270 = vmatprep.subr.bf16.mxu0 %v10209_v0  ;;  %9159 = vmatpush3.bf16.msra.mxu1 %v10210_v1 }
0x1492   :  { %9271 = vmatpush3.bf16.msra.mxu0 %v10211_v3 }
0x1497   :  { %v6242_v44 = vpop.xlane.xlu0 %6241 }
0x1498   :  { %v6289_v38 = vmul.f32 0.0078125, %v6242_v44 }
0x149a   :  { %v6321_v13 = vadd.f32 1e-05, %v6289_v38 }
0x149b   :  { %v6244_v62 = vpop.xlane.xlu1 %6243  ;;  %v6246_v51 = vpop.xlane.xlu0 %6245 }
0x149c   :  { %10820 = vrsqrt.f32 %v6321_v13  ;;  %v6290_v11 = vmul.f32 0.0078125, %v6244_v62  ;;  %v6291_v27 = vmul.f32 0.0078125, %v6246_v51 }
0x149e   :  { %v6322_v12 = vadd.f32 1e-05, %v6290_v11  ;;  %v6323_v59 = vadd.f32 1e-05, %v6291_v27 }
0x149f   :  { %v6248_v37 = vpop.xlane.xlu1 %6247 }
0x14a0   :  { %10822 = vrsqrt.f32 %v6322_v12  ;;  %v6292_v61 = vmul.f32 0.0078125, %v6248_v37 }
0x14a1   :  { %10824 = vrsqrt.f32 %v6323_v59 }
0x14a2   :  { %v6324_v6 = vadd.f32 1e-05, %v6292_v61 }
0x14a4   :  { %10826 = vrsqrt.f32 %v6324_v6 }
0x14a7   :  { %v6250_v23 = vpop.xlane.xlu0 %6249 }
0x14a8   :  { %v6293_v24 = vmul.f32 0.0078125, %v6250_v23 }
0x14a9   :  { %v10821_v63 = vpop.eup %10820 }
0x14aa   :  { %v6325_v20 = vadd.f32 1e-05, %v6293_v24  ;;  %v6385_v2 = vmul.f32 %v10821_v63, %v14618_v40 }
0x14ab   :  { %v6252_v58 = vpop.xlane.xlu1 %6251 }
0x14ac   :  { %10828 = vrsqrt.f32 %v6325_v20  ;;  %v6294_v8 = vmul.f32 0.0078125, %v6252_v58  ;;  %v6423_v1 = vmul.f32 %v14654_v55, %v6385_v2 }
0x14ad   :  { %v10823_v45 = vpop.eup %10822 }
0x14ae   :  { %v6326_v49 = vadd.f32 1e-05, %v6294_v8  ;;  %v6386_v0 = vmul.f32 %v10823_v45, %v14623_v18  ;;  %v10825_v3 = vpop.eup %10824  ;;  %v6461_v51 = vadd.f32 %v14666_v30, %v6423_v1 }
0x14af   :  { %v6254_v44 = vpop.xlane.xlu0 %6253  ;;  %v6387_v11 = vmul.f32 %v10825_v3, %v14626_v42 }
0x14b0   :  { %10830 = vrsqrt.f32 %v6326_v49  ;;  %v6424_v38 = vmul.f32 %v14654_v55, %v6386_v0  ;;  %v6295_v62 = vmul.f32 0.0078125, %v6254_v44 }
0x14b1   :  { %v10827_v13 = vpop.eup %10826  ;;  %v6425_v23 = vmul.f32 %v14654_v55, %v6387_v11 }
0x14b2   :  { %v6462_v40 = vadd.f32 %v14666_v30, %v6424_v38  ;;  %v6388_v27 = vmul.f32 %v10827_v13, %v14633_v39  ;;  %v6327_v12 = vadd.f32 1e-05, %v6295_v62 }
0x14b3   :  { %v6256_v59 = vpop.xlane.xlu1 %6255  ;;  %v6463_v24 = vadd.f32 %v14666_v30, %v6425_v23 }
0x14b4   :  { %v6296_v18 = vmul.f32 0.0078125, %v6256_v59  ;;  %v6485_v37 = vpack.c.bf16 %v6462_v40, %v6461_v51  ;;  %v6426_v61 = vmul.f32 %v14654_v55, %v6388_v27  ;;  %10832 = vrsqrt.f32 %v6327_v12 }
0x14b6   :  { %v6328_v6 = vadd.f32 1e-05, %v6296_v18  ;;  %6820 = vmatmul.mubr.bf16.gmra.mxu1 %v6485_v37  ;;  %7013 = vmatmul.mubr.bf16.gmra.mxu0 %v6485_v37  ;;  %v6464_v42 = vadd.f32 %v14666_v30, %v6426_v61 }
0x14b7   :  { %6829 = vmatprep.mubr.bf16.mxu1 %v15961_v16  ;;  %7022 = vmatprep.mubr.bf16.mxu0 %v15961_v16 }
0x14b8   :  { %10834 = vrsqrt.f32 %v6328_v6  ;;  %v6486_v20 = vpack.c.bf16 %v6464_v42, %v6463_v24 }
0x14b9   :  { %v10829_v39 = vpop.eup %10828 }
0x14ba   :  { %v6389_v63 = vmul.f32 %v10829_v39, %v14638_v60 }
0x14bc   :  { %v6427_v8 = vmul.f32 %v14654_v55, %v6389_v63 }
0x14bd   :  { %v10831_v2 = vpop.eup %10830 }
0x14be   :  { %6830 = vmatmul.mubr.bf16.gmra.mxu1 %v6486_v20  ;;  %7023 = vmatmul.mubr.bf16.gmra.mxu0 %v6486_v20  ;;  %v6390_v58 = vmul.f32 %v10831_v2, %v14643_v56  ;;  %v6465_v0 = vadd.f32 %v14666_v30, %v6427_v8  ;;  %v6525_v2 = vld [vmem:[%s15548_s10] sm:$0xf] }
0x14bf   :  { %6839 = vmatprep.mubr.bf16.mxu1 %v15961_v16  ;;  %7032 = vmatprep.mubr.bf16.mxu0 %v15961_v16 }
0x14c0   :  { %v6428_v45 = vmul.f32 %v14654_v55, %v6390_v58 }
0x14c1   :  { %v10833_v49 = vpop.eup %10832 }
0x14c2   :  { %v6466_v1 = vadd.f32 %v14666_v30, %v6428_v45  ;;  %v6391_v60 = vmul.f32 %v10833_v49, %v14649_v10 }
0x14c4   :  { %v6487_v3 = vpack.c.bf16 %v6466_v1, %v6465_v0  ;;  %v6429_v38 = vmul.f32 %v14654_v55, %v6391_v60  ;;  %v16047_v60 = vld [vmem:[#allocation21_spill] sm:$0xff] }
0x14c5   :  { %v10835_v44 = vpop.eup %10834 }
0x14c6   :  { %6840 = vmatmul.mubr.bf16.gmra.mxu1 %v6487_v3  ;;  %7033 = vmatmul.mubr.bf16.gmra.mxu0 %v6487_v3  ;;  %v6392_v56 = vmul.f32 %v10835_v44, %v14661_v35  ;;  %v6467_v62 = vadd.f32 %v14666_v30, %v6429_v38  ;;  %v16048_v3 = vsub.s32 0, %v16047_v60  ;;  %v6541_v38 = vsub.s32 3, %v16047_v60 }
0x14c7   :  { %6849 = vmatprep.mubr.bf16.mxu1 %v15961_v16  ;;  %7042 = vmatprep.mubr.bf16.mxu0 %v15961_v16 }
0x14c8   :  { %v6430_v13 = vmul.f32 %v14654_v55, %v6392_v56  ;;  %v14811_v44 = vrot.slane %v6525_v2, %v16048_v3 }
0x14ca   :  { %v6468_v51 = vadd.f32 %v14666_v30, %v6430_v13  ;;  %v16049_v13 = vsub.s32 2, %v16047_v60 }
0x14cc   :  { %v6488_v40 = vpack.c.bf16 %v6468_v51, %v6467_v62  ;;  %v14816_v62 = vrot.slane %v6525_v2, %v16049_v13 }
0x14ce   :  { %6850 = vmatmul.mubr.bf16.gmra.mxu1 %v6488_v40  ;;  %7043 = vmatmul.mubr.bf16.gmra.mxu0 %v6488_v40 }
0x14cf   :  { %6859 = vmatprep.mubr.bf16.mxu1 %v15961_v16  ;;  %7052 = vmatprep.mubr.bf16.mxu0 %v15961_v16 }
0x14d6   :  { %v6258_v10 = vpop.xlane.xlu0 %6257 }
0x14d7   :  { %v6297_v35 = vmul.f32 0.0078125, %v6258_v10  ;;  %v16050_v10 = vsub.s32 1, %v16047_v60 }
0x14d9   :  { %v6329_v11 = vadd.f32 1e-05, %v6297_v35  ;;  %v14821_v35 = vrot.slane %v6525_v2, %v16050_v10 }
0x14da   :  { %v6260_v27 = vpop.xlane.xlu1 %6259 }
0x14db   :  { %10836 = vrsqrt.f32 %v6329_v11  ;;  %v6298_v12 = vmul.f32 0.0078125, %v6260_v27 }
0x14dd   :  { %v6330_v59 = vadd.f32 1e-05, %v6298_v12 }
0x14de   :  { %v6262_v18 = vpop.xlane.xlu0 %6261 }
0x14df   :  { %10838 = vrsqrt.f32 %v6330_v59  ;;  %v6299_v37 = vmul.f32 0.0078125, %v6262_v18 }
0x14e1   :  { %v6331_v61 = vadd.f32 1e-05, %v6299_v37 }
0x14e2   :  { %v6264_v6 = vpop.xlane.xlu1 %6263 }
0x14e3   :  { %10840 = vrsqrt.f32 %v6331_v61  ;;  %v6300_v23 = vmul.f32 0.0078125, %v6264_v6  ;;  %v14827_v6 = vrot.slane %v6525_v2, %v6541_v38 }
0x14e5   :  { %v6332_v42 = vadd.f32 1e-05, %v6300_v23 }
0x14e7   :  { %10842 = vrsqrt.f32 %v6332_v42 }
0x14e8   :  { %v10837_v39 = vpop.eup %10836 }
0x14e9   :  { %v6266_v24 = vpop.xlane.xlu0 %6265  ;;  %v6393_v63 = vmul.f32 %v10837_v39, %v14692_v9 }
0x14ea   :  { %v6301_v20 = vmul.f32 0.0078125, %v6266_v24 }
0x14eb   :  { %v6431_v0 = vmul.f32 %v14654_v55, %v6393_v63 }
0x14ec   :  { %v10839_v58 = vpop.eup %10838  ;;  %v6333_v8 = vadd.f32 1e-05, %v6301_v20 }
0x14ed   :  { %v6268_v45 = vpop.xlane.xlu1 %6267  ;;  %v6394_v49 = vmul.f32 %v10839_v58, %v14697_v54  ;;  %v6469_v59 = vadd.f32 %v14666_v30, %v6431_v0 }
0x14ee   :  { %10844 = vrsqrt.f32 %v6333_v8  ;;  %v6302_v1 = vmul.f32 0.0078125, %v6268_v45  ;;  %v6741_v56 = vpop.f32.mrf.mxu1  ;;  %v6934_v9 = vpop.f32.mrf.mxu0 }
0x14ef   :  { %v6432_v51 = vmul.f32 %v14654_v55, %v6394_v49  ;;  %v6742_v61 = vadd.f32 %v6741_v56, %v14811_v44  ;;  %v6935_v24 = vadd.f32 %v6934_v9, %v14816_v62 }
0x14f0   :  { %v10841_v40 = vpop.eup %10840  ;;  %v6334_v54 = vadd.f32 1e-05, %v6302_v1  ;;  %v6743_v11 = vpop.f32.mrf.mxu1 }
0x14f1   :  { %v6936_v27 = vpop.f32.mrf.mxu0  ;;  %v6270_v12 = vpop.xlane.xlu0 %6269  ;;  %v6470_v18 = vadd.f32 %v14666_v30, %v6432_v51  ;;  %v6395_v37 = vmul.f32 %v10841_v40, %v14702_v41  ;;  %v6744_v45 = vadd.f32 %v6743_v11, %v14821_v35 }
0x14f2   :  { %10846 = vrsqrt.f32 %v6334_v54  ;;  %v6303_v23 = vmul.f32 0.0078125, %v6270_v12  ;;  %v6745_v42 = vpop.f32.mrf.mxu1  ;;  %v6937_v38 = vadd.f32 %v6936_v27, %v14827_v6 }
0x14f3   :  { %v6938_v39 = vpop.f32.mrf.mxu0  ;;  %v6746_v63 = vadd.f32 %v6745_v42, %v14811_v44  ;;  %v6489_v58 = vpack.c.bf16 %v6470_v18, %v6469_v59  ;;  %v6433_v1 = vmul.f32 %v14654_v55, %v6395_v37 }
0x14f4   :  { %v6939_v20 = vadd.f32 %v6938_v39, %v14816_v62  ;;  %v10843_v8 = vpop.eup %10842  ;;  %v6335_v49 = vadd.f32 1e-05, %v6303_v23  ;;  %v6747_v41 = vpop.f32.mrf.mxu1 }
0x14f5   :  { %v6940_v0 = vpop.f32.mrf.mxu0  ;;  %v14834_v2 = vpack.c.bf16 %v6746_v63, %v6742_v61  ;;  %v6748_v3 = vadd.f32 %v6747_v41, %v14821_v35  ;;  %v6272_v9 = vpop.xlane.xlu1 %6271  ;;  %6860 = vmatmul.mubr.bf16.gmra.mxu1 %v6489_v58  ;;  %7053 = vmatmul.mubr.bf16.gmra.mxu0 %v6489_v58  ;;  %v6396_v51 = vmul.f32 %v10843_v8, %v14707_v25 }
0x14f6   :  { %v14836_v60 = vpack.c.bf16 %v6939_v20, %v6935_v24  ;;  %v6941_v56 = vadd.f32 %v6940_v0, %v14827_v6  ;;  %10848 = vrsqrt.f32 %v6335_v49  ;;  %v6304_v13 = vmul.f32 0.0078125, %v6272_v9  ;;  %6869 = vmatprep.mubr.bf16.mxu1 %v15961_v16  ;;  %7062 = vmatprep.mubr.bf16.mxu0 %v15961_v16 }
0x14f7   :  { %v7221_v40 = vmul.bf16 1027030327, %v14834_v2  ;;  %v14844_v54 = vpack.c.bf16 %v6748_v3, %v6744_v45  ;;  %v6434_v27 = vmul.f32 %v14654_v55, %v6396_v51  ;;  %v6471_v37 = vadd.f32 %v14666_v30, %v6433_v1 }
0x14f8   :  { %v7223_v10 = vmul.bf16 1027030327, %v14836_v60  ;;  %v14848_v11 = vpack.c.bf16 %v6941_v56, %v6937_v38  ;;  %v6336_v12 = vadd.f32 1e-05, %v6304_v13 }
0x14f9   :  { %v7285_v59 = vmul.bf16 %v7221_v40, %v14834_v2  ;;  %v7222_v18 = vmul.bf16 1027030327, %v14844_v54  ;;  %v6472_v39 = vadd.f32 %v14666_v30, %v6434_v27 }
0x14fa   :  { %v7287_v25 = vmul.bf16 %v7223_v10, %v14836_v60  ;;  %v7224_v61 = vmul.bf16 1027030327, %v14848_v11  ;;  %10850 = vrsqrt.f32 %v6336_v12  ;;  %v6751_v23 = vpop.f32.mrf.mxu1  ;;  %v6944_v42 = vpop.f32.mrf.mxu0 }
0x14fb   :  { %v10845_v24 = vpop.eup %10844  ;;  %v7349_v63 = vmul.bf16 %v7285_v59, %v14834_v2  ;;  %v7286_v20 = vmul.bf16 %v7222_v18, %v14844_v54  ;;  %v6490_v49 = vpack.c.bf16 %v6472_v39, %v6471_v37  ;;  %v6752_v1 = vadd.f32 %v6751_v23, %v14811_v44 }
0x14fc   :  { %v7351_v58 = vmul.bf16 %v7287_v25, %v14836_v60  ;;  %v6753_v8 = vpop.f32.mrf.mxu1  ;;  %v6946_v45 = vpop.f32.mrf.mxu0  ;;  %v6397_v41 = vmul.f32 %v10845_v24, %v14712_v53  ;;  %v6945_v3 = vadd.f32 %v6944_v42, %v14816_v62  ;;  %v7288_v40 = vmul.bf16 %v7224_v61, %v14848_v11 }
0x14fd   :  { %v7413_v0 = vadd.bf16 %v7349_v63, %v14834_v2  ;;  %v7350_v56 = vmul.bf16 %v7286_v20, %v14844_v54  ;;  %6870 = vmatmul.mubr.bf16.gmra.mxu1 %v6490_v49  ;;  %7063 = vmatmul.mubr.bf16.gmra.mxu0 %v6490_v49  ;;  %v6754_v12 = vadd.f32 %v6753_v8, %v14821_v35 }
0x14fe   :  { %v7415_v9 = vadd.bf16 %v7351_v58, %v14836_v60  ;;  %v6755_v38 = vpop.f32.mrf.mxu1  ;;  %v6948_v13 = vpop.f32.mrf.mxu0  ;;  %v6435_v51 = vmul.f32 %v14654_v55, %v6397_v41  ;;  %6879 = vmatprep.mubr.bf16.mxu1 %v15961_v16  ;;  %7072 = vmatprep.mubr.bf16.mxu0 %v15961_v16  ;;  %v6947_v37 = vadd.f32 %v6946_v45, %v14827_v6 }
0x14ff   :  { %v10847_v10 = vpop.eup %10846  ;;  %v7477_v53 = vmul.bf16 1061961548, %v7413_v0  ;;  %v6756_v27 = vadd.f32 %v6755_v38, %v14811_v44  ;;  %v6949_v59 = vadd.f32 %v6948_v13, %v14816_v62  ;;  %v7414_v61 = vadd.bf16 %v7350_v56, %v14844_v54 }
0x1500   :  { %v7479_v18 = vmul.bf16 1061961548, %v7415_v9  ;;  %v6757_v25 = vpop.f32.mrf.mxu1  ;;  %v6950_v23 = vpop.f32.mrf.mxu0  ;;  %v6398_v42 = vmul.f32 %v10847_v10, %v14718_v5  ;;  %v6473_v20 = vadd.f32 %v14666_v30, %v6435_v51  ;;  %v7352_v41 = vmul.bf16 %v7288_v40, %v14848_v11 }
0x1501   :  { %v14876_v39 = vpack.c.bf16 %v6756_v27, %v6752_v1  ;;  %v14878_v24 = vpack.c.bf16 %v6949_v59, %v6945_v3  ;;  %v6758_v63 = vadd.f32 %v6757_v25, %v14821_v35  ;;  %10852 = vtanh.bf16 %v7477_v53 }
0x1502   :  { %v6951_v58 = vadd.f32 %v6950_v23, %v14827_v6  ;;  %v6761_v8 = vpop.f32.mrf.mxu1  ;;  %v6954_v49 = vpop.f32.mrf.mxu0  ;;  %v6436_v45 = vmul.f32 %v14654_v55, %v6398_v42  ;;  %10854 = vtanh.bf16 %v7479_v18  ;;  %v7478_v10 = vmul.bf16 1061961548, %v7414_v61 }
0x1503   :  { %v10849_v5 = vpop.eup %10848  ;;  %v7225_v0 = vmul.bf16 1027030327, %v14876_v39  ;;  %v7227_v1 = vmul.bf16 1027030327, %v14878_v24  ;;  %v14887_v3 = vpack.c.bf16 %v6758_v63, %v6754_v12  ;;  %v6762_v27 = vadd.f32 %v6761_v8, %v14811_v44 }
0x1504   :  { %v14889_v56 = vpack.c.bf16 %v6951_v58, %v6947_v37  ;;  %v6763_v9 = vpop.f32.mrf.mxu1  ;;  %v6956_v38 = vpop.f32.mrf.mxu0  ;;  %v6474_v13 = vadd.f32 %v14666_v30, %v6436_v45  ;;  %v6399_v51 = vmul.f32 %v10849_v5, %v14726_v34  ;;  %v6955_v59 = vadd.f32 %v6954_v49, %v14816_v62 }
0x1505   :  { %v7289_v53 = vmul.bf16 %v7225_v0, %v14876_v39  ;;  %v7291_v40 = vmul.bf16 %v7227_v1, %v14878_v24  ;;  %v7226_v12 = vmul.bf16 1027030327, %v14887_v3  ;;  %v6764_v37 = vadd.f32 %v6763_v9, %v14821_v35 }
0x1506   :  { %v7228_v18 = vmul.bf16 1027030327, %v14889_v56  ;;  %v6765_v25 = vpop.f32.mrf.mxu1  ;;  %v6958_v23 = vpop.f32.mrf.mxu0  ;;  %v6491_v42 = vpack.c.bf16 %v6474_v13, %v6473_v20  ;;  %v6957_v34 = vadd.f32 %v6956_v38, %v14827_v6  ;;  %v6437_v8 = vmul.f32 %v14654_v55, %v6399_v51 }
0x1507   :  { %v10851_v63 = vpop.eup %10850  ;;  %v6766_v61 = vadd.f32 %v6765_v25, %v14811_v44  ;;  %v6959_v58 = vadd.f32 %v6958_v23, %v14816_v62  ;;  %v7353_v49 = vmul.bf16 %v7289_v53, %v14876_v39  ;;  %10856 = vtanh.bf16 %v7478_v10 }
0x1508   :  { %v6767_v45 = vpop.f32.mrf.mxu1  ;;  %6880 = vmatmul.mubr.bf16.gmra.mxu1 %v6491_v42  ;;  %v6960_v5 = vpop.f32.mrf.mxu0  ;;  %7073 = vmatmul.mubr.bf16.gmra.mxu0 %v6491_v42  ;;  %v6400_v0 = vmul.f32 %v10851_v63, %v14734_v15  ;;  %v7416_v20 = vadd.bf16 %v7352_v41, %v14848_v11  ;;  %v7355_v55 = vmul.bf16 %v7291_v40, %v14878_v24  ;;  %v11012_v15 = vld [vmem:[%s15545_s7] ss:$0 sm:$0xff] }
0x1509   :  { %v14907_v1 = vpack.c.bf16 %v6766_v61, %v6762_v27  ;;  %v14909_v9 = vpack.c.bf16 %v6959_v58, %v6955_v59  ;;  %v6768_v38 = vadd.f32 %v6767_v45, %v14821_v35  ;;  %v6961_v13 = vadd.f32 %v6960_v5, %v14827_v6  ;;  %6889 = vmatprep.mubr.bf16.mxu1 %v15961_v16 }
0x150a   :  { %7082 = vmatprep.mubr.bf16.mxu0 %v15961_v16  ;;  %v6438_v51 = vmul.f32 %v11012_v15, %v6400_v0  ;;  %v7480_v41 = vmul.bf16 1061961548, %v7416_v20  ;;  %v7290_v10 = vmul.bf16 %v7226_v12, %v14887_v3  ;;  %v6475_v25 = vadd.f32 %v14666_v30, %v6437_v8  ;;  %v11013_v16 = vld [vmem:[%s15546_s8] ss:$0 sm:$0xff] }
0x150b   :  { %v7229_v53 = vmul.bf16 1027030327, %v14907_v1  ;;  %v7231_v27 = vmul.bf16 1027030327, %v14909_v9  ;;  %v14922_v59 = vpack.c.bf16 %v6768_v38, %v6764_v37  ;;  %v14925_v23 = vpack.c.bf16 %v6961_v13, %v6957_v34 }
0x150c   :  { %v6476_v40 = vadd.f32 %v11013_v16, %v6438_v51  ;;  %10858 = vtanh.bf16 %v7480_v41  ;;  %v7354_v42 = vmul.bf16 %v7290_v10, %v14887_v3  ;;  %v7292_v30 = vmul.bf16 %v7228_v18, %v14889_v56 }
0x150d   :  { %v7293_v12 = vmul.bf16 %v7229_v53, %v14907_v1  ;;  %v7295_v63 = vmul.bf16 %v7231_v27, %v14909_v9  ;;  %v7230_v61 = vmul.bf16 1027030327, %v14922_v59  ;;  %v7417_v34 = vadd.bf16 %v7353_v49, %v14876_v39 }
0x150e   :  { %v6492_v37 = vpack.c.bf16 %v6476_v40, %v6475_v25  ;;  %v7418_v58 = vadd.bf16 %v7354_v42, %v14887_v3  ;;  %v7232_v45 = vmul.bf16 1027030327, %v14925_v23  ;;  %v7356_v0 = vmul.bf16 %v7292_v30, %v14889_v56 }
0x150f   :  { %v10853_v8 = vpop.eup %10852  ;;  %v7419_v20 = vadd.bf16 %v7355_v55, %v14878_v24  ;;  %v7357_v13 = vmul.bf16 %v7293_v12, %v14907_v1  ;;  %v7359_v15 = vmul.bf16 %v7295_v63, %v14909_v9  ;;  %v7481_v51 = vmul.bf16 1061961548, %v7417_v34 }
0x1510   :  { %6890 = vmatmul.mubr.bf16.gmra.mxu1 %v6492_v37  ;;  %7083 = vmatmul.mubr.bf16.gmra.mxu0 %v6492_v37  ;;  %v7482_v5 = vmul.bf16 1061961548, %v7418_v58  ;;  %v10855_v38 = vpop.eup %10854  ;;  %v7294_v18 = vmul.bf16 %v7230_v61, %v14922_v59  ;;  %v7420_v49 = vadd.bf16 %v7356_v0, %v14889_v56  ;;  %v7296_v27 = vmul.bf16 %v7232_v45, %v14925_v23 }
0x1511   :  { %v7483_v41 = vmul.bf16 1061961548, %v7419_v20  ;;  %v7421_v25 = vadd.bf16 %v7357_v13, %v14907_v1  ;;  %v7423_v16 = vadd.bf16 %v7359_v15, %v14909_v9  ;;  %v7605_v42 = vadd.bf16 1065369472, %v10853_v8 }
0x1512   :  { %10860 = vtanh.bf16 %v7482_v5  ;;  %v7358_v10 = vmul.bf16 %v7294_v18, %v14922_v59  ;;  %v7484_v53 = vmul.bf16 1061961548, %v7420_v49  ;;  %v7158_v12 = vmul.bf16 1056980736, %v14844_v54 }
0x1513   :  { %10862 = vtanh.bf16 %v7481_v51  ;;  %v7360_v63 = vmul.bf16 %v7296_v27, %v14925_v23  ;;  %v7485_v58 = vmul.bf16 1061961548, %v7421_v25  ;;  %v7157_v30 = vmul.bf16 1056980736, %v14834_v2 }
0x1514   :  { %10864 = vtanh.bf16 %v7483_v41  ;;  %v7422_v55 = vadd.bf16 %v7358_v10, %v14922_v59  ;;  %v7487_v45 = vmul.bf16 1061961548, %v7423_v16  ;;  %v7607_v13 = vadd.bf16 1065369472, %v10855_v38 }
0x1515   :  { %v10857_v40 = vpop.eup %10856  ;;  %10866 = vtanh.bf16 %v7484_v53  ;;  %v7424_v34 = vadd.bf16 %v7360_v63, %v14925_v23  ;;  %v7669_v20 = vmul.bf16 %v7605_v42, %v7157_v30  ;;  %v7160_v54 = vmul.bf16 1056980736, %v14848_v11 }
0x1516   :  { %v7606_v61 = vadd.bf16 1065369472, %v10857_v40  ;;  %v7486_v37 = vmul.bf16 1061961548, %v7422_v55  ;;  %v7159_v51 = vmul.bf16 1056980736, %v14836_v60 }
0x1517   :  { %v7488_v15 = vmul.bf16 1061961548, %v7424_v34  ;;  %v7162_v10 = vmul.bf16 1056980736, %v14887_v3  ;;  %v7161_v27 = vmul.bf16 1056980736, %v14876_v39 }
0x1518   :  { %v7670_v5 = vmul.bf16 %v7606_v61, %v7158_v12  ;;  %10868 = vtanh.bf16 %v7486_v37  ;;  %v7671_v18 = vmul.bf16 %v7607_v13, %v7159_v51  ;;  %v7164_v60 = vmul.bf16 1056980736, %v14889_v56 }
0x1519   :  { %10870 = vtanh.bf16 %v7485_v58  ;;  %v7163_v12 = vmul.bf16 1056980736, %v14878_v24  ;;  %v7166_v58 = vmul.bf16 1056980736, %v14922_v59  ;;  %v7165_v56 = vmul.bf16 1056980736, %v14907_v1 }
0x151a   :  { %v10859_v0 = vpop.eup %10858  ;;  %8028 = vmatprep.mubr.bf16.mxu1 %v7670_v5  ;;  %10872 = vtanh.bf16 %v7487_v45  ;;  %v7168_v13 = vmul.bf16 1056980736, %v14925_v23 }
0x151b   :  { %v7608_v8 = vadd.bf16 1065369472, %v10859_v0  ;;  %8029 = vmatmul.mubr.bf16.vlgmr.msra.gmra.mxu1 %v7669_v20  ;;  %10874 = vtanh.bf16 %v7488_v15 }
0x151d   :  { %v7672_v2 = vmul.bf16 %v7608_v8, %v7160_v54 }
0x151f   :  { %8189 = vmatprep.mubr.bf16.mxu0 %v7672_v2  ;;  %v7167_v2 = vmul.bf16 1056980736, %v14909_v9 }
0x1520   :  { %v10861_v49 = vpop.eup %10860  ;;  %8190 = vmatmul.mubr.bf16.vlgmr.msra.gmra.mxu0 %v7671_v18 }
0x1521   :  { %v10863_v41 = vpop.eup %10862  ;;  %v7610_v38 = vadd.bf16 1065369472, %v10861_v49 }
0x1522   :  { %v10865_v53 = vpop.eup %10864  ;;  %v7609_v55 = vadd.bf16 1065369472, %v10863_v41 }
0x1523   :  { %v7674_v11 = vmul.bf16 %v7610_v38, %v7162_v10  ;;  %v10867_v25 = vpop.eup %10866  ;;  %v7611_v40 = vadd.bf16 1065369472, %v10865_v53 }
0x1524   :  { %v7673_v16 = vmul.bf16 %v7609_v55, %v7161_v27  ;;  %v7612_v42 = vadd.bf16 1065369472, %v10867_v25 }
0x1525   :  { %8036 = vmatprep.mubr.bf16.mxu1 %v7674_v11  ;;  %v7675_v3 = vmul.bf16 %v7611_v40, %v7163_v12 }
0x1526   :  { %8037 = vmatmul.mubr.bf16.gmra.mxu1 %v7673_v16  ;;  %v10869_v63 = vpop.eup %10868  ;;  %v7676_v61 = vmul.bf16 %v7612_v42, %v7164_v60 }
0x1527   :  { %v10871_v37 = vpop.eup %10870  ;;  %v7614_v30 = vadd.bf16 1065369472, %v10869_v63 }
0x1528   :  { %v10873_v39 = vpop.eup %10872  ;;  %8197 = vmatprep.mubr.bf16.mxu0 %v7676_v61  ;;  %v7613_v5 = vadd.bf16 1065369472, %v10871_v37 }
0x1529   :  { %v6771_v34 = vpop.f32.mrf.mxu1  ;;  %v6964_v45 = vpop.f32.mrf.mxu0  ;;  %8198 = vmatmul.mubr.bf16.gmra.mxu0 %v7675_v3  ;;  %v7678_v20 = vmul.bf16 %v7614_v30, %v7166_v58  ;;  %v7615_v8 = vadd.bf16 1065369472, %v10873_v39 }
0x152a   :  { %v10875_v0 = vpop.eup %10874  ;;  %v7677_v51 = vmul.bf16 %v7613_v5, %v7165_v56  ;;  %v6772_v41 = vadd.f32 %v6771_v34, %v14811_v44  ;;  %v6965_v10 = vadd.f32 %v6964_v45, %v14816_v62 }
0x152b   :  { %v7616_v24 = vadd.bf16 1065369472, %v10875_v0  ;;  %v6773_v15 = vpop.f32.mrf.mxu1  ;;  %v6966_v54 = vpop.f32.mrf.mxu0  ;;  %8044 = vmatprep.mubr.bf16.mxu1 %v7678_v20  ;;  %v7679_v27 = vmul.bf16 %v7615_v8, %v7167_v2 }
0x152c   :  { %v6774_v38 = vadd.f32 %v6773_v15, %v14821_v35  ;;  %v6967_v53 = vadd.f32 %v6966_v54, %v14827_v6 }
0x152d   :  { %v7680_v59 = vmul.bf16 %v7616_v24, %v7168_v13  ;;  %v6775_v18 = vpop.f32.mrf.mxu1  ;;  %v6968_v49 = vpop.f32.mrf.mxu0 }
0x152e   :  { %8045 = vmatmul.mubr.bf16.gmra.mxu1 %v7677_v51  ;;  %v6776_v1 = vadd.f32 %v6775_v18, %v14811_v44  ;;  %v6969_v23 = vadd.f32 %v6968_v49, %v14816_v62 }
0x152f   :  { %8205 = vmatprep.mubr.bf16.mxu0 %v7680_v59  ;;  %v6777_v55 = vpop.f32.mrf.mxu1  ;;  %v6970_v11 = vpop.f32.mrf.mxu0 }
0x1530   :  { %v14969_v9 = vpack.c.bf16 %v6776_v1, %v6772_v41  ;;  %v14971_v25 = vpack.c.bf16 %v6969_v23, %v6965_v10  ;;  %v6778_v16 = vadd.f32 %v6777_v55, %v14821_v35  ;;  %v6971_v40 = vadd.f32 %v6970_v11, %v14827_v6 }
0x1531   :  { %v6781_v60 = vpop.f32.mrf.mxu1  ;;  %v6974_v42 = vpop.f32.mrf.mxu0  ;;  %8206 = vmatmul.mubr.bf16.gmra.mxu0 %v7679_v27 }
0x1532   :  { %v7233_v12 = vmul.bf16 1027030327, %v14969_v9  ;;  %v7235_v63 = vmul.bf16 1027030327, %v14971_v25  ;;  %v14977_v61 = vpack.c.bf16 %v6778_v16, %v6774_v38  ;;  %v14979_v37 = vpack.c.bf16 %v6971_v40, %v6967_v53 }
0x1533   :  { %v6783_v3 = vpop.f32.mrf.mxu1  ;;  %v6976_v58 = vpop.f32.mrf.mxu0  ;;  %v6782_v5 = vadd.f32 %v6781_v60, %v14811_v44  ;;  %v6975_v0 = vadd.f32 %v6974_v42, %v14816_v62  ;;  %v16053_v47 = vmul.bf16 1056980736, %v14969_v9 }
0x1534   :  { %v7297_v30 = vmul.bf16 %v7233_v12, %v14969_v9  ;;  %v7299_v39 = vmul.bf16 %v7235_v63, %v14971_v25  ;;  %v7234_v34 = vmul.bf16 1027030327, %v14977_v61  ;;  %v7236_v45 = vmul.bf16 1027030327, %v14979_v37 }
0x1535   :  { %v6785_v20 = vpop.f32.mrf.mxu1  ;;  %v6978_v56 = vpop.f32.mrf.mxu0  ;;  %v6784_v8 = vadd.f32 %v6783_v3, %v14821_v35  ;;  %v6977_v51 = vadd.f32 %v6976_v58, %v14827_v6 }
0x1536   :  { %v7361_v13 = vmul.bf16 %v7297_v30, %v14969_v9  ;;  %v7363_v24 = vmul.bf16 %v7299_v39, %v14971_v25  ;;  %v6786_v15 = vadd.f32 %v6785_v20, %v14811_v44  ;;  %v6979_v54 = vadd.f32 %v6978_v56, %v14816_v62 }
0x1537   :  { %v6787_v59 = vpop.f32.mrf.mxu1  ;;  %v6980_v2 = vpop.f32.mrf.mxu0  ;;  %v7298_v18 = vmul.bf16 %v7234_v34, %v14977_v61  ;;  %v7300_v49 = vmul.bf16 %v7236_v45, %v14979_v37 }
0x1538   :  { %v14995_v41 = vpack.c.bf16 %v6786_v15, %v6782_v5  ;;  %v14997_v10 = vpack.c.bf16 %v6979_v54, %v6975_v0  ;;  %v6788_v1 = vadd.f32 %v6787_v59, %v14821_v35  ;;  %v6981_v23 = vadd.f32 %v6980_v2, %v14827_v6 }
0x1539   :  { %v7362_v38 = vmul.bf16 %v7298_v18, %v14977_v61  ;;  %v7364_v53 = vmul.bf16 %v7300_v49, %v14979_v37  ;;  %v7425_v27 = vadd.bf16 %v7361_v13, %v14969_v9  ;;  %v7427_v55 = vadd.bf16 %v7363_v24, %v14971_v25 }
0x153a   :  { %v7237_v11 = vmul.bf16 1027030327, %v14995_v41  ;;  %v15006_v16 = vpack.c.bf16 %v6788_v1, %v6784_v8  ;;  %v15008_v40 = vpack.c.bf16 %v6981_v23, %v6977_v51  ;;  %v7239_v60 = vmul.bf16 1027030327, %v14997_v10 }
0x153b   :  { %v7426_v42 = vadd.bf16 %v7362_v38, %v14977_v61  ;;  %v7428_v12 = vadd.bf16 %v7364_v53, %v14979_v37  ;;  %v7489_v63 = vmul.bf16 1061961548, %v7425_v27  ;;  %v7491_v0 = vmul.bf16 1061961548, %v7427_v55 }
0x153c   :  { %v7301_v3 = vmul.bf16 %v7237_v11, %v14995_v41  ;;  %v7238_v58 = vmul.bf16 1027030327, %v15006_v16  ;;  %v7240_v30 = vmul.bf16 1027030327, %v15008_v40  ;;  %v6791_v39 = vpop.f32.mrf.mxu1  ;;  %v6984_v34 = vpop.f32.mrf.mxu0  ;;  %v7303_v54 = vmul.bf16 %v7239_v60, %v14997_v10 }
0x153d   :  { %v7490_v45 = vmul.bf16 1061961548, %v7426_v42  ;;  %v7492_v5 = vmul.bf16 1061961548, %v7428_v12  ;;  %10876 = vtanh.bf16 %v7489_v63  ;;  %v6792_v8 = vadd.f32 %v6791_v39, %v14811_v44 }
0x153e   :  { %v6793_v20 = vpop.f32.mrf.mxu1  ;;  %v6986_v56 = vpop.f32.mrf.mxu0  ;;  %v7302_v51 = vmul.bf16 %v7238_v58, %v15006_v16  ;;  %v7365_v59 = vmul.bf16 %v7301_v3, %v14995_v41  ;;  %v6985_v2 = vadd.f32 %v6984_v34, %v14816_v62  ;;  %v7304_v1 = vmul.bf16 %v7240_v30, %v15008_v40 }
0x153f   :  { %10878 = vtanh.bf16 %v7490_v45  ;;  %v6794_v27 = vadd.f32 %v6793_v20, %v14821_v35  ;;  %v6987_v55 = vadd.f32 %v6986_v56, %v14827_v6  ;;  %v7367_v39 = vmul.bf16 %v7303_v54, %v14997_v10 }
0x1540   :  { %v6795_v18 = vpop.f32.mrf.mxu1  ;;  %v6988_v49 = vpop.f32.mrf.mxu0  ;;  %10880 = vtanh.bf16 %v7492_v5  ;;  %v7366_v53 = vmul.bf16 %v7302_v51, %v15006_v16  ;;  %v7368_v12 = vmul.bf16 %v7304_v1, %v15008_v40  ;;  %v7429_v20 = vadd.bf16 %v7365_v59, %v14995_v41 }
0x1541   :  { %v6796_v23 = vadd.f32 %v6795_v18, %v14811_v44  ;;  %v6989_v38 = vadd.f32 %v6988_v49, %v14816_v62  ;;  %10882 = vtanh.bf16 %v7491_v0 }
0x1542   :  { %v6797_v11 = vpop.f32.mrf.mxu1  ;;  %v6990_v60 = vpop.f32.mrf.mxu0  ;;  %v7430_v5 = vadd.bf16 %v7366_v53, %v15006_v16  ;;  %v7432_v0 = vadd.bf16 %v7368_v12, %v15008_v40  ;;  %v7431_v12 = vadd.bf16 %v7367_v39, %v14997_v10 }
0x1543   :  { %v15032_v63 = vpack.c.bf16 %v6796_v23, %v6792_v8  ;;  %v15034_v3 = vpack.c.bf16 %v6989_v38, %v6985_v2  ;;  %v6798_v58 = vadd.f32 %v6797_v11, %v14821_v35  ;;  %v6991_v30 = vadd.f32 %v6990_v60, %v14827_v6 }
0x1544   :  { %v6801_v34 = vpop.f32.mrf.mxu1  ;;  %v6994_v45 = vpop.f32.mrf.mxu0  ;;  %v7494_v1 = vmul.bf16 1061961548, %v7430_v5  ;;  %v7496_v23 = vmul.bf16 1061961548, %v7432_v0 }
0x1545   :  { %v7241_v56 = vmul.bf16 1027030327, %v15032_v63  ;;  %v15043_v8 = vpack.c.bf16 %v6798_v58, %v6794_v27  ;;  %v15045_v51 = vpack.c.bf16 %v6991_v30, %v6987_v55  ;;  %v7243_v18 = vmul.bf16 1027030327, %v15034_v3 }
0x1546   :  { %v6803_v49 = vpop.f32.mrf.mxu1  ;;  %v6996_v54 = vpop.f32.mrf.mxu0  ;;  %v6802_v11 = vadd.f32 %v6801_v34, %v14811_v44  ;;  %10884 = vtanh.bf16 %v7494_v1  ;;  %v7493_v55 = vmul.bf16 1061961548, %v7429_v20  ;;  %v6995_v30 = vadd.f32 %v6994_v45, %v14816_v62 }
0x1547   :  { %v7242_v38 = vmul.bf16 1027030327, %v15043_v8  ;;  %v7244_v53 = vmul.bf16 1027030327, %v15045_v51  ;;  %v15055_v58 = vmul.bf16 %v7241_v56, %v15032_v63  ;;  %v15061_v2 = vmul.bf16 %v7243_v18, %v15034_v3 }
0x1548   :  { %v6805_v27 = vpop.f32.mrf.mxu1  ;;  %v6998_v60 = vpop.f32.mrf.mxu0  ;;  %10886 = vtanh.bf16 %v7496_v23  ;;  %v7495_v23 = vmul.bf16 1061961548, %v7431_v12 }
0x1549   :  { %v6806_v5 = vadd.f32 %v6805_v27, %v14811_v44  ;;  %v6999_v0 = vadd.f32 %v6998_v60, %v14816_v62  ;;  %v7306_v1 = vmul.bf16 %v7242_v38, %v15043_v8  ;;  %v7308_v20 = vmul.bf16 %v7244_v53, %v15045_v51 }
0x154a   :  { %v6807_v59 = vpop.f32.mrf.mxu1  ;;  %v7000_v34 = vpop.f32.mrf.mxu0  ;;  %v6804_v60 = vadd.f32 %v6803_v49, %v14821_v35  ;;  %10888 = vtanh.bf16 %v7493_v55  ;;  %v7369_v53 = vmul.bf16 %v15055_v58, %v15032_v63  ;;  %v7371_v49 = vmul.bf16 %v15061_v2, %v15034_v3 }
0x154b   :  { %v15065_v39 = vpack.c.bf16 %v6806_v5, %v6802_v11  ;;  %v15067_v56 = vpack.c.bf16 %v6999_v0, %v6995_v30  ;;  %v6808_v45 = vadd.f32 %v6807_v59, %v14821_v35  ;;  %v7001_v27 = vadd.f32 %v7000_v34, %v14827_v6  ;;  %v10877_v15 = vpop.eup %10876 }
0x154c   :  { %v6811_v18 = vpop.f32.mrf.mxu1  ;;  %v7004_v24 = vpop.f32.mrf.mxu0  ;;  %v6997_v11 = vadd.f32 %v6996_v54, %v14827_v6  ;;  %v7617_v42 = vadd.bf16 1065369472, %v10877_v15  ;;  %v7370_v55 = vmul.bf16 %v7306_v1, %v15043_v8  ;;  %v7372_v52 = vmul.bf16 %v7308_v20, %v15045_v51 }
0x154d   :  { %v10879_v38 = vpop.eup %10878  ;;  %v7245_v30 = vmul.bf16 1027030327, %v15065_v39  ;;  %v7247_v59 = vmul.bf16 1027030327, %v15067_v56  ;;  %v15081_v17 = vpack.c.bf16 %v6808_v45, %v6804_v60  ;;  %v6812_v54 = vadd.f32 %v6811_v18, %v14811_v44 }
0x154e   :  { %v10881_v5 = vpop.eup %10880  ;;  %v6813_v0 = vpop.f32.mrf.mxu1  ;;  %v7618_v13 = vadd.bf16 1065369472, %v10879_v38  ;;  %v15083_v58 = vpack.c.bf16 %v7001_v27, %v6997_v11  ;;  %v7005_v2 = vadd.f32 %v7004_v24, %v14816_v62  ;;  %v16051_v15 = vmul.bf16 1056980736, %v14977_v61 }
0x154f   :  { %v7006_v34 = vpop.f32.mrf.mxu0  ;;  %v10883_v12 = vpop.eup %10882  ;;  %v15088_v21 = vmul.bf16 %v7245_v30, %v15065_v39  ;;  %v7620_v1 = vadd.bf16 1065369472, %v10881_v5  ;;  %v7311_v45 = vmul.bf16 %v7247_v59, %v15067_v56  ;;  %v6814_v27 = vadd.f32 %v6813_v0, %v14821_v35 }
0x1550   :  { %v6815_v7 = vpop.f32.mrf.mxu1  ;;  %v7682_v38 = vmul.bf16 %v7618_v13, %v16051_v15  ;;  %v16052_v20 = vmul.bf16 1056980736, %v14979_v37  ;;  %v7681_v14 = vmul.bf16 %v7617_v42, %v16053_v47  ;;  %v7619_v61 = vadd.bf16 1065369472, %v10883_v12 }
0x1551   :  { %v7008_v31 = vpop.f32.mrf.mxu0  ;;  %v6816_v60 = vadd.f32 %v6815_v7, %v14811_v44  ;;  %10890 = vtanh.bf16 %v7495_v23  ;;  %v16054_v37 = vmul.bf16 1056980736, %v14971_v25  ;;  %v7434_v9 = vadd.bf16 %v7370_v55, %v15043_v8 }
0x1552   :  { %v7009_v18 = vadd.f32 %v7008_v31, %v14816_v62  ;;  %8052 = vmatprep.mubr.bf16.mxu1 %v7682_v38  ;;  %v7684_v11 = vmul.bf16 %v7620_v1, %v16052_v20  ;;  %v6817_v30 = vpop.f32.mrf.mxu1  ;;  %v7246_v31 = vmul.bf16 1027030327, %v15081_v17  ;;  %v7436_v47 = vadd.bf16 %v7372_v52, %v15045_v51 }
0x1553   :  { %v7010_v24 = vpop.f32.mrf.mxu0  ;;  %v15101_v13 = vpack.c.bf16 %v6816_v60, %v6812_v54  ;;  %v6818_v5 = vadd.f32 %v6817_v30, %v14821_v35  ;;  %8053 = vmatmul.mubr.bf16.gmra.mxu1 %v7681_v14  ;;  %v7683_v0 = vmul.bf16 %v7619_v61, %v16054_v37  ;;  %v7007_v42 = vadd.f32 %v7006_v34, %v14827_v6 }
0x1554   :  { %v15103_v59 = vpack.c.bf16 %v7009_v18, %v7005_v2  ;;  %v7011_v7 = vadd.f32 %v7010_v24, %v14827_v6  ;;  %8213 = vmatprep.mubr.bf16.mxu0 %v7684_v11  ;;  %v10885_v2 = vpop.eup %10884  ;;  %v7498_v15 = vmul.bf16 1061961548, %v7434_v9  ;;  %v7500_v38 = vmul.bf16 1061961548, %v7436_v47 }
0x1555   :  { %v7249_v23 = vmul.bf16 1027030327, %v15101_v13  ;;  %v15115_v54 = vpack.c.bf16 %v6818_v5, %v6814_v27  ;;  %8214 = vmatmul.mubr.bf16.gmra.mxu0 %v7683_v0  ;;  %v7433_v14 = vadd.bf16 %v7369_v53, %v15032_v63  ;;  %v7435_v25 = vadd.bf16 %v7371_v49, %v15034_v3 }
0x1556   :  { %v7251_v12 = vmul.bf16 1027030327, %v15103_v59  ;;  %v7373_v55 = vmul.bf16 %v15088_v21, %v15065_v39  ;;  %v7375_v52 = vmul.bf16 %v7311_v45, %v15067_v56  ;;  %v7248_v34 = vmul.bf16 1027030327, %v15083_v58  ;;  %v10887_v60 = vpop.eup %10886 }
0x1557   :  { %v15123_v1 = vpack.c.bf16 %v7011_v7, %v7007_v42  ;;  %v7622_v27 = vadd.bf16 1065369472, %v10885_v2  ;;  %10892 = vtanh.bf16 %v7498_v15  ;;  %v7497_v18 = vmul.bf16 1061961548, %v7433_v14 }
0x1558   :  { %v7499_v20 = vmul.bf16 1061961548, %v7435_v25  ;;  %v7313_v11 = vmul.bf16 %v7249_v23, %v15101_v13  ;;  %v7315_v53 = vmul.bf16 %v7251_v12, %v15103_v59  ;;  %v7624_v30 = vadd.bf16 1065369472, %v10887_v60  ;;  %v10889_v49 = vpop.eup %10888 }
0x1559   :  { %10894 = vtanh.bf16 %v7500_v38  ;;  %v7250_v21 = vmul.bf16 1027030327, %v15115_v54  ;;  %v16055_v45 = vmul.bf16 1056980736, %v15006_v16  ;;  %v7310_v61 = vmul.bf16 %v7246_v31, %v15081_v17 }
0x155a   :  { %10896 = vtanh.bf16 %v7497_v18  ;;  %v7252_v5 = vmul.bf16 1027030327, %v15123_v1  ;;  %v16056_v7 = vmul.bf16 1056980736, %v15008_v40  ;;  %v7621_v0 = vadd.bf16 1065369472, %v10889_v49 }
0x155b   :  { %v7686_v24 = vmul.bf16 %v7622_v27, %v16055_v45  ;;  %10898 = vtanh.bf16 %v7499_v20  ;;  %v7374_v9 = vmul.bf16 %v7310_v61, %v15081_v17  ;;  %v7312_v47 = vmul.bf16 %v7248_v34, %v15083_v58 }
0x155c   :  { %v7688_v37 = vmul.bf16 %v7624_v30, %v16056_v7  ;;  %v7437_v42 = vadd.bf16 %v7373_v55, %v15065_v39  ;;  %v7377_v16 = vmul.bf16 %v7313_v11, %v15101_v13  ;;  %v16057_v23 = vmul.bf16 1056980736, %v14995_v41 }
0x155d   :  { %8060 = vmatprep.mubr.bf16.mxu1 %v7686_v24  ;;  %v7439_v12 = vadd.bf16 %v7375_v52, %v15067_v56  ;;  %v7438_v40 = vadd.bf16 %v7374_v9, %v15081_v17  ;;  %v7376_v2 = vmul.bf16 %v7312_v47, %v15083_v58  ;;  %v7314_v38 = vmul.bf16 %v7250_v21, %v15115_v54 }
0x155e   :  { %8221 = vmatprep.mubr.bf16.mxu0 %v7688_v37  ;;  %v7685_v31 = vmul.bf16 %v7621_v0, %v16057_v23  ;;  %v7501_v15 = vmul.bf16 1061961548, %v7437_v42  ;;  %v7379_v14 = vmul.bf16 %v7315_v53, %v15103_v59  ;;  %v7175_v25 = vmul.bf16 1056980736, %v14997_v10 }
0x155f   :  { %v7503_v55 = vmul.bf16 1061961548, %v7439_v12  ;;  %v7316_v34 = vmul.bf16 %v7252_v5, %v15123_v1  ;;  %v10891_v60 = vpop.eup %10890  ;;  %v7502_v41 = vmul.bf16 1061961548, %v7438_v40  ;;  %v7440_v27 = vadd.bf16 %v7376_v2, %v15083_v58 }
0x1560   :  { %8061 = vmatmul.mubr.bf16.gmra.mxu1 %v7685_v31  ;;  %10900 = vtanh.bf16 %v7501_v15  ;;  %v7378_v52 = vmul.bf16 %v7314_v38, %v15115_v54  ;;  %v7623_v18 = vadd.bf16 1065369472, %v10891_v60  ;;  %v7441_v11 = vadd.bf16 %v7377_v16, %v15101_v13 }
0x1561   :  { %10902 = vtanh.bf16 %v7503_v55  ;;  %v7380_v20 = vmul.bf16 %v7316_v34, %v15123_v1  ;;  %v7504_v53 = vmul.bf16 1061961548, %v7440_v27  ;;  %v7443_v45 = vadd.bf16 %v7379_v14, %v15103_v59 }
0x1562   :  { %10904 = vtanh.bf16 %v7502_v41  ;;  %v7442_v10 = vadd.bf16 %v7378_v52, %v15115_v54  ;;  %v7687_v30 = vmul.bf16 %v7623_v18, %v7175_v25  ;;  %v7505_v21 = vmul.bf16 1061961548, %v7441_v11 }
0x1563   :  { %v7444_v49 = vadd.bf16 %v7380_v20, %v15123_v1  ;;  %10906 = vtanh.bf16 %v7504_v53  ;;  %v7507_v5 = vmul.bf16 1061961548, %v7443_v45  ;;  %v7178_v0 = vmul.bf16 1056980736, %v15043_v8 }
0x1564   :  { %v7506_v24 = vmul.bf16 1061961548, %v7442_v10  ;;  %8222 = vmatmul.mubr.bf16.gmra.mxu0 %v7687_v30  ;;  %10908 = vtanh.bf16 %v7505_v21  ;;  %v7180_v42 = vmul.bf16 1056980736, %v15045_v51  ;;  %v7177_v12 = vmul.bf16 1056980736, %v15032_v63 }
0x1565   :  { %v7508_v61 = vmul.bf16 1061961548, %v7444_v49  ;;  %v10893_v7 = vpop.eup %10892  ;;  %v7179_v15 = vmul.bf16 1056980736, %v15034_v3  ;;  %v7182_v60 = vmul.bf16 1056980736, %v15081_v17 }
0x1566   :  { %10910 = vtanh.bf16 %v7506_v24  ;;  %v7626_v9 = vadd.bf16 1065369472, %v10893_v7  ;;  %v7181_v27 = vmul.bf16 1056980736, %v15065_v39  ;;  %v7184_v20 = vmul.bf16 1056980736, %v15083_v58 }
0x1567   :  { %v10895_v37 = vpop.eup %10894  ;;  %10912 = vtanh.bf16 %v7508_v61  ;;  %v7183_v30 = vmul.bf16 1056980736, %v15067_v56  ;;  %v7186_v45 = vmul.bf16 1056980736, %v15115_v54  ;;  %v7188_v39 = vmul.bf16 1056980736, %v15123_v1 }
0x1568   :  { %v10897_v47 = vpop.eup %10896  ;;  %v7628_v16 = vadd.bf16 1065369472, %v10895_v37  ;;  %v7690_v31 = vmul.bf16 %v7626_v9, %v7178_v0  ;;  %10914 = vtanh.bf16 %v7507_v5  ;;  %v7185_v54 = vmul.bf16 1056980736, %v15101_v13 }
0x1569   :  { %v10899_v23 = vpop.eup %10898  ;;  %v7625_v40 = vadd.bf16 1065369472, %v10897_v47 }
0x156a   :  { %v7692_v2 = vmul.bf16 %v7628_v16, %v7180_v42  ;;  %v7627_v38 = vadd.bf16 1065369472, %v10899_v23  ;;  %8068 = vmatprep.mubr.bf16.mxu1 %v7690_v31 }
0x156b   :  { %v7689_v14 = vmul.bf16 %v7625_v40, %v7177_v12 }
0x156c   :  { %8229 = vmatprep.mubr.bf16.mxu0 %v7692_v2  ;;  %v7691_v8 = vmul.bf16 %v7627_v38, %v7179_v15  ;;  %v7187_v15 = vmul.bf16 1056980736, %v15103_v59 }
0x156d   :  { %8069 = vmatmul.mubr.bf16.gmra.mxu1 %v7689_v14 }
0x156e   :  { %v10901_v25 = vpop.eup %10900  ;;  %8230 = vmatmul.mubr.bf16.gmra.mxu0 %v7691_v8 }
0x156f   :  { %v10903_v55 = vpop.eup %10902  ;;  %v7629_v34 = vadd.bf16 1065369472, %v10901_v25 }
0x1570   :  { %v10905_v51 = vpop.eup %10904  ;;  %v7631_v52 = vadd.bf16 1065369472, %v10903_v55 }
0x1571   :  { %v7630_v41 = vadd.bf16 1065369472, %v10905_v51  ;;  %v10907_v63 = vpop.eup %10906  ;;  %v7693_v10 = vmul.bf16 %v7629_v34, %v7181_v27 }
0x1572   :  { %v10909_v18 = vpop.eup %10908  ;;  %v7632_v11 = vadd.bf16 1065369472, %v10907_v63  ;;  %v7695_v24 = vmul.bf16 %v7631_v52, %v7183_v30 }
0x1573   :  { %v7694_v3 = vmul.bf16 %v7630_v41, %v7182_v60  ;;  %v7633_v9 = vadd.bf16 1065369472, %v10909_v18 }
0x1574   :  { %v10911_v53 = vpop.eup %10910  ;;  %v7696_v21 = vmul.bf16 %v7632_v11, %v7184_v20 }
0x1575   :  { %v10913_v49 = vpop.eup %10912  ;;  %8076 = vmatprep.mubr.bf16.mxu1 %v7694_v3  ;;  %v7634_v17 = vadd.bf16 1065369472, %v10911_v53  ;;  %v7697_v2 = vmul.bf16 %v7633_v9, %v7185_v54 }
0x1576   :  { %8077 = vmatmul.mubr.bf16.gmra.mxu1 %v7693_v10  ;;  %v7636_v61 = vadd.bf16 1065369472, %v10913_v49  ;;  %v6821_v5 = vpop.f32.mrf.mxu1  ;;  %v7014_v7 = vpop.f32.mrf.mxu0  ;;  %8237 = vmatprep.mubr.bf16.mxu0 %v7696_v21 }
0x1577   :  { %v10915_v37 = vpop.eup %10914  ;;  %v7698_v58 = vmul.bf16 %v7634_v17, %v7186_v45  ;;  %8238 = vmatmul.mubr.bf16.gmra.mxu0 %v7695_v24  ;;  %v6822_v1 = vadd.f32 %v6821_v5, %v14811_v44  ;;  %v7015_v31 = vadd.f32 %v7014_v7, %v14816_v62 }
0x1578   :  { %v7700_v0 = vmul.bf16 %v7636_v61, %v7188_v39  ;;  %v6823_v56 = vpop.f32.mrf.mxu1  ;;  %v7016_v47 = vpop.f32.mrf.mxu0  ;;  %v7635_v42 = vadd.bf16 1065369472, %v10915_v37 }
0x1579   :  { %8084 = vmatprep.mubr.bf16.mxu1 %v7698_v58  ;;  %v6824_v38 = vadd.f32 %v6823_v56, %v14821_v35  ;;  %v7017_v14 = vadd.f32 %v7016_v47, %v14827_v6 }
0x157a   :  { %8245 = vmatprep.mubr.bf16.mxu0 %v7700_v0  ;;  %v6825_v16 = vpop.f32.mrf.mxu1  ;;  %v7018_v23 = vpop.f32.mrf.mxu0  ;;  %v7699_v60 = vmul.bf16 %v7635_v42, %v7187_v15 }
0x157b   :  { %v6826_v12 = vadd.f32 %v6825_v16, %v14811_v44  ;;  %v7019_v40 = vadd.f32 %v7018_v23, %v14816_v62 }
0x157c   :  { %v6827_v8 = vpop.f32.mrf.mxu1  ;;  %v7020_v13 = vpop.f32.mrf.mxu0 }
0x157d   :  { %v15172_v25 = vpack.c.bf16 %v6826_v12, %v6822_v1  ;;  %v15174_v55 = vpack.c.bf16 %v7019_v40, %v7015_v31  ;;  %v6828_v51 = vadd.f32 %v6827_v8, %v14821_v35  ;;  %v7021_v34 = vadd.f32 %v7020_v13, %v14827_v6 }
0x157e   :  { %8085 = vmatmul.mubr.bf16.gmra.mxu1 %v7697_v2  ;;  %v6831_v41 = vpop.f32.mrf.mxu1  ;;  %v7024_v63 = vpop.f32.mrf.mxu0 }
0x157f   :  { %v7253_v59 = vmul.bf16 1027030327, %v15172_v25  ;;  %v7255_v27 = vmul.bf16 1027030327, %v15174_v55  ;;  %v15180_v52 = vpack.c.bf16 %v6828_v51, %v6824_v38  ;;  %v15182_v18 = vpack.c.bf16 %v7021_v34, %v7017_v14  ;;  %8246 = vmatmul.mubr.bf16.gmra.mxu0 %v7699_v60 }
0x1580   :  { %v6833_v3 = vpop.f32.mrf.mxu1  ;;  %v7026_v20 = vpop.f32.mrf.mxu0  ;;  %v6832_v49 = vadd.f32 %v6831_v41, %v14811_v44  ;;  %v7025_v17 = vadd.f32 %v7024_v63, %v14816_v62 }
0x1581   :  { %v7317_v11 = vmul.bf16 %v7253_v59, %v15172_v25  ;;  %v7319_v53 = vmul.bf16 %v7255_v27, %v15174_v55  ;;  %v7254_v10 = vmul.bf16 1027030327, %v15180_v52  ;;  %v7256_v30 = vmul.bf16 1027030327, %v15182_v18 }
0x1582   :  { %v6835_v21 = vpop.f32.mrf.mxu1  ;;  %v7028_v45 = vpop.f32.mrf.mxu0  ;;  %v6834_v24 = vadd.f32 %v6833_v3, %v14821_v35  ;;  %v7027_v16 = vadd.f32 %v7026_v20, %v14827_v6 }
0x1583   :  { %v6836_v39 = vadd.f32 %v6835_v21, %v14811_v44  ;;  %v7029_v61 = vadd.f32 %v7028_v45, %v14816_v62  ;;  %v7381_v5 = vmul.bf16 %v7317_v11, %v15172_v25  ;;  %v7383_v7 = vmul.bf16 %v7319_v53, %v15174_v55 }
0x1584   :  { %v6837_v37 = vpop.f32.mrf.mxu1  ;;  %v7030_v58 = vpop.f32.mrf.mxu0  ;;  %v7318_v0 = vmul.bf16 %v7254_v10, %v15180_v52  ;;  %v7320_v9 = vmul.bf16 %v7256_v30, %v15182_v18 }
0x1585   :  { %v15197_v56 = vpack.c.bf16 %v6836_v39, %v6832_v49  ;;  %v15199_v47 = vpack.c.bf16 %v7029_v61, %v7025_v17  ;;  %v6838_v54 = vadd.f32 %v6837_v37, %v14821_v35  ;;  %v7031_v42 = vadd.f32 %v7030_v58, %v14827_v6 }
0x1586   :  { %v6841_v23 = vpop.f32.mrf.mxu1  ;;  %v7034_v1 = vpop.f32.mrf.mxu0  ;;  %v7382_v31 = vmul.bf16 %v7318_v0, %v15180_v52  ;;  %v7384_v12 = vmul.bf16 %v7320_v9, %v15182_v18  ;;  %v7445_v34 = vadd.bf16 %v7381_v5, %v15172_v25  ;;  %v7447_v41 = vadd.bf16 %v7383_v7, %v15174_v55 }
0x1587   :  { %v7257_v40 = vmul.bf16 1027030327, %v15197_v56  ;;  %v7259_v2 = vmul.bf16 1027030327, %v15199_v47  ;;  %v15208_v15 = vpack.c.bf16 %v6838_v54, %v6834_v24  ;;  %v15210_v38 = vpack.c.bf16 %v7031_v42, %v7027_v16 }
0x1588   :  { %v6843_v14 = vpop.f32.mrf.mxu1  ;;  %v7036_v8 = vpop.f32.mrf.mxu0  ;;  %v7446_v13 = vadd.bf16 %v7382_v31, %v15180_v52  ;;  %v7448_v51 = vadd.bf16 %v7384_v12, %v15182_v18  ;;  %v6842_v60 = vadd.f32 %v6841_v23, %v14811_v44  ;;  %v7035_v59 = vadd.f32 %v7034_v1, %v14816_v62 }
0x1589   :  { %v7258_v63 = vmul.bf16 1027030327, %v15208_v15  ;;  %v7321_v53 = vmul.bf16 %v7257_v40, %v15197_v56  ;;  %v15221_v10 = vmul.bf16 %v7259_v2, %v15199_v47  ;;  %v7260_v21 = vmul.bf16 1027030327, %v15210_v38 }
0x158a   :  { %v6845_v27 = vpop.f32.mrf.mxu1  ;;  %v7038_v3 = vpop.f32.mrf.mxu0  ;;  %v7510_v20 = vmul.bf16 1061961548, %v7446_v13  ;;  %v7512_v11 = vmul.bf16 1061961548, %v7448_v51  ;;  %v6844_v45 = vadd.f32 %v6843_v14, %v14821_v35  ;;  %v7509_v39 = vmul.bf16 1061961548, %v7445_v34 }
0x158b   :  { %v6846_v30 = vadd.f32 %v6845_v27, %v14811_v44  ;;  %v7039_v49 = vadd.f32 %v7038_v3, %v14816_v62  ;;  %v7511_v9 = vmul.bf16 1061961548, %v7447_v41  ;;  %v7322_v54 = vmul.bf16 %v7258_v63, %v15208_v15 }
0x158c   :  { %v6847_v17 = vpop.f32.mrf.mxu1  ;;  %v7040_v24 = vpop.f32.mrf.mxu0  ;;  %10916 = vtanh.bf16 %v7510_v20  ;;  %v7037_v42 = vadd.f32 %v7036_v8, %v14827_v6  ;;  %v7385_v31 = vmul.bf16 %v7321_v53, %v15197_v56  ;;  %v7324_v14 = vmul.bf16 %v7260_v21, %v15210_v38 }
0x158d   :  { %v15227_v61 = vpack.c.bf16 %v6846_v30, %v6842_v60  ;;  %v15229_v5 = vpack.c.bf16 %v7039_v49, %v7035_v59  ;;  %v6848_v7 = vadd.f32 %v6847_v17, %v14821_v35  ;;  %v7041_v37 = vadd.f32 %v7040_v24, %v14827_v6 }
0x158e   :  { %v6851_v58 = vpop.f32.mrf.mxu1  ;;  %v7044_v0 = vpop.f32.mrf.mxu0  ;;  %10918 = vtanh.bf16 %v7512_v11  ;;  %v7386_v2 = vmul.bf16 %v7322_v54, %v15208_v15  ;;  %v7387_v13 = vmul.bf16 %v15221_v10, %v15199_v47  ;;  %v7189_v34 = vmul.bf16 1056980736, %v15172_v25 }
0x158f   :  { %v7261_v16 = vmul.bf16 1027030327, %v15227_v61  ;;  %v7263_v23 = vmul.bf16 1027030327, %v15229_v5  ;;  %v15237_v1 = vpack.c.bf16 %v6848_v7, %v6844_v45  ;;  %10920 = vtanh.bf16 %v7509_v39 }
0x1590   :  { %v6853_v12 = vpop.f32.mrf.mxu1  ;;  %v7046_v40 = vpop.f32.mrf.mxu0  ;;  %v15244_v51 = vpack.c.bf16 %v7041_v37, %v7037_v42  ;;  %v6852_v8 = vadd.f32 %v6851_v58, %v14811_v44  ;;  %v7045_v41 = vadd.f32 %v7044_v0, %v14816_v62  ;;  %10922 = vtanh.bf16 %v7511_v9 }
0x1591   :  { %v7325_v60 = vmul.bf16 %v7261_v16, %v15227_v61  ;;  %v7450_v27 = vadd.bf16 %v7386_v2, %v15208_v15  ;;  %v7327_v3 = vmul.bf16 %v7263_v23, %v15229_v5  ;;  %v7262_v20 = vmul.bf16 1027030327, %v15237_v1 }
0x1592   :  { %v6855_v63 = vpop.f32.mrf.mxu1  ;;  %v7048_v59 = vpop.f32.mrf.mxu0  ;;  %v6854_v10 = vadd.f32 %v6853_v12, %v14821_v35  ;;  %v7388_v45 = vmul.bf16 %v7324_v14, %v15210_v38  ;;  %v7449_v17 = vadd.bf16 %v7385_v31, %v15197_v56  ;;  %v7264_v58 = vmul.bf16 1027030327, %v15244_v51 }
0x1593   :  { %v6856_v11 = vadd.f32 %v6855_v63, %v14811_v44  ;;  %v7049_v53 = vadd.f32 %v7048_v59, %v14816_v62  ;;  %v7514_v21 = vmul.bf16 1061961548, %v7450_v27  ;;  %v7389_v54 = vmul.bf16 %v7325_v60, %v15227_v61 }
0x1594   :  { %v6857_v30 = vpop.f32.mrf.mxu1  ;;  %v7050_v49 = vpop.f32.mrf.mxu0  ;;  %v7452_v0 = vadd.bf16 %v7388_v45, %v15210_v38  ;;  %v7513_v9 = vmul.bf16 1061961548, %v7449_v17  ;;  %v7047_v42 = vadd.f32 %v7046_v40, %v14827_v6  ;;  %v7451_v2 = vadd.bf16 %v7387_v13, %v15199_v47 }
0x1595   :  { %v15258_v24 = vpack.c.bf16 %v6856_v11, %v6852_v8  ;;  %v15260_v39 = vpack.c.bf16 %v7049_v53, %v7045_v41  ;;  %v6858_v7 = vadd.f32 %v6857_v30, %v14821_v35  ;;  %v7051_v37 = vadd.f32 %v7050_v49, %v14827_v6 }
0x1596   :  { %10924 = vtanh.bf16 %v7514_v21  ;;  %v7516_v12 = vmul.bf16 1061961548, %v7452_v0  ;;  %v7391_v14 = vmul.bf16 %v7327_v3, %v15229_v5  ;;  %v7190_v41 = vmul.bf16 1056980736, %v15180_v52 }
0x1597   :  { %v7265_v16 = vmul.bf16 1027030327, %v15258_v24  ;;  %v15269_v23 = vpack.c.bf16 %v6858_v7, %v6854_v10  ;;  %v7267_v31 = vmul.bf16 1027030327, %v15260_v39  ;;  %10926 = vtanh.bf16 %v7513_v9 }
0x1598   :  { %v15274_v8 = vpack.c.bf16 %v7051_v37, %v7047_v42  ;;  %v7191_v60 = vmul.bf16 1056980736, %v15174_v55  ;;  %10928 = vtanh.bf16 %v7516_v12  ;;  %v7515_v59 = vmul.bf16 1061961548, %v7451_v2 }
0x1599   :  { %v7329_v40 = vmul.bf16 %v7265_v16, %v15258_v24  ;;  %v7326_v27 = vmul.bf16 %v7262_v20, %v15237_v1  ;;  %v7266_v11 = vmul.bf16 1027030327, %v15269_v23  ;;  %v7192_v13 = vmul.bf16 1056980736, %v15182_v18 }
0x159a   :  { %v10917_v63 = vpop.eup %10916  ;;  %v7328_v3 = vmul.bf16 %v7264_v58, %v15244_v51  ;;  %v7331_v30 = vmul.bf16 %v7267_v31, %v15260_v39  ;;  %10930 = vtanh.bf16 %v7515_v59  ;;  %v7453_v52 = vadd.bf16 %v7389_v54, %v15227_v61 }
0x159b   :  { %v7638_v53 = vadd.bf16 1065369472, %v10917_v63  ;;  %v7390_v55 = vmul.bf16 %v7326_v27, %v15237_v1  ;;  %v7268_v49 = vmul.bf16 1027030327, %v15274_v8  ;;  %v7393_v7 = vmul.bf16 %v7329_v40, %v15258_v24 }
0x159c   :  { %v10919_v10 = vpop.eup %10918  ;;  %v7392_v20 = vmul.bf16 %v7328_v3, %v15244_v51  ;;  %v7517_v37 = vmul.bf16 1061961548, %v7453_v52  ;;  %v7455_v58 = vadd.bf16 %v7391_v14, %v15229_v5  ;;  %v7330_v54 = vmul.bf16 %v7266_v11, %v15269_v23 }
0x159d   :  { %v7702_v21 = vmul.bf16 %v7638_v53, %v7190_v41  ;;  %v7640_v45 = vadd.bf16 1065369472, %v10919_v10  ;;  %v10921_v17 = vpop.eup %10920  ;;  %v7454_v18 = vadd.bf16 %v7390_v55, %v15237_v1  ;;  %v7395_v31 = vmul.bf16 %v7331_v30, %v15260_v39 }
0x159e   :  { %v7637_v9 = vadd.bf16 1065369472, %v10921_v17  ;;  %v7456_v42 = vadd.bf16 %v7392_v20, %v15244_v51  ;;  %v10923_v16 = vpop.eup %10922  ;;  %10932 = vtanh.bf16 %v7517_v37  ;;  %v7519_v2 = vmul.bf16 1061961548, %v7455_v58 }
0x159f   :  { %8092 = vmatprep.mubr.bf16.mxu1 %v7702_v21  ;;  %v7704_v0 = vmul.bf16 %v7640_v45, %v7192_v13  ;;  %v7518_v12 = vmul.bf16 1061961548, %v7454_v18  ;;  %v7639_v63 = vadd.bf16 1065369472, %v10923_v16  ;;  %v7394_v14 = vmul.bf16 %v7330_v54, %v15269_v23 }
0x15a0   :  { %v7701_v41 = vmul.bf16 %v7637_v9, %v7189_v34  ;;  %v7520_v40 = vmul.bf16 1061961548, %v7456_v42  ;;  %v7332_v59 = vmul.bf16 %v7268_v49, %v15274_v8  ;;  %v7457_v27 = vadd.bf16 %v7393_v7, %v15258_v24 }
0x15a1   :  { %8253 = vmatprep.mubr.bf16.mxu0 %v7704_v0  ;;  %10934 = vtanh.bf16 %v7518_v12  ;;  %v7703_v11 = vmul.bf16 %v7639_v63, %v7191_v60  ;;  %v7458_v53 = vadd.bf16 %v7394_v14, %v15269_v23  ;;  %v7459_v34 = vadd.bf16 %v7395_v31, %v15260_v39 }
0x15a2   :  { %8093 = vmatmul.mubr.bf16.gmra.mxu1 %v7701_v41  ;;  %10936 = vtanh.bf16 %v7520_v40  ;;  %v7396_v3 = vmul.bf16 %v7332_v59, %v15274_v8  ;;  %v7521_v25 = vmul.bf16 1061961548, %v7457_v27  ;;  %v7194_v10 = vmul.bf16 1056980736, %v15208_v15 }
0x15a3   :  { %10938 = vtanh.bf16 %v7519_v2  ;;  %8254 = vmatmul.mubr.bf16.gmra.mxu0 %v7703_v11  ;;  %v7522_v55 = vmul.bf16 1061961548, %v7458_v53  ;;  %v7523_v60 = vmul.bf16 1061961548, %v7459_v34  ;;  %v7193_v45 = vmul.bf16 1056980736, %v15197_v56 }
0x15a4   :  { %v10925_v13 = vpop.eup %10924  ;;  %v7460_v49 = vadd.bf16 %v7396_v3, %v15274_v8  ;;  %10940 = vtanh.bf16 %v7521_v25  ;;  %v7196_v18 = vmul.bf16 1056980736, %v15210_v38  ;;  %v7195_v9 = vmul.bf16 1056980736, %v15199_v47 }
0x15a5   :  { %v7642_v30 = vadd.bf16 1065369472, %v10925_v13  ;;  %v10927_v52 = vpop.eup %10926  ;;  %10942 = vtanh.bf16 %v7522_v55  ;;  %v7198_v2 = vmul.bf16 1056980736, %v15237_v1  ;;  %v7200_v63 = vmul.bf16 1056980736, %v15244_v51 }
0x15a6   :  { %v7641_v20 = vadd.bf16 1065369472, %v10927_v52  ;;  %v10929_v17 = vpop.eup %10928  ;;  %v7524_v7 = vmul.bf16 1061961548, %v7460_v49  ;;  %10944 = vtanh.bf16 %v7523_v60  ;;  %v7197_v14 = vmul.bf16 1056980736, %v15227_v61 }
0x15a7   :  { %v7706_v21 = vmul.bf16 %v7642_v30, %v7194_v10  ;;  %v7644_v37 = vadd.bf16 1065369472, %v10929_v17  ;;  %v7199_v47 = vmul.bf16 1056980736, %v15229_v5  ;;  %v7202_v51 = vmul.bf16 1056980736, %v15269_v23 }
0x15a8   :  { %v7705_v15 = vmul.bf16 %v7641_v20, %v7193_v45  ;;  %v10931_v58 = vpop.eup %10930  ;;  %10946 = vtanh.bf16 %v7524_v7  ;;  %v7204_v60 = vmul.bf16 1056980736, %v15274_v8  ;;  %v7201_v7 = vmul.bf16 1056980736, %v15258_v24 }
0x15a9   :  { %8100 = vmatprep.mubr.bf16.mxu1 %v7706_v21  ;;  %v7708_v0 = vmul.bf16 %v7644_v37, %v7196_v18  ;;  %v7643_v42 = vadd.bf16 1065369472, %v10931_v58  ;;  %v7203_v58 = vmul.bf16 1056980736, %v15260_v39 }
0x15aa   :  { %8101 = vmatmul.mubr.bf16.gmra.mxu1 %v7705_v15 }
0x15ab   :  { %8261 = vmatprep.mubr.bf16.mxu0 %v7708_v0  ;;  %v7707_v54 = vmul.bf16 %v7643_v42, %v7195_v9 }
0x15ac   :  { %v10933_v56 = vpop.eup %10932 }
0x15ad   :  { %8262 = vmatmul.mubr.bf16.gmra.mxu0 %v7707_v54  ;;  %v7645_v31 = vadd.bf16 1065369472, %v10933_v56 }
0x15af   :  { %v10935_v16 = vpop.eup %10934  ;;  %v7709_v13 = vmul.bf16 %v7645_v31, %v7197_v14 }
0x15b0   :  { %v10937_v12 = vpop.eup %10936  ;;  %v7646_v41 = vadd.bf16 1065369472, %v10935_v16 }
0x15b1   :  { %v10939_v38 = vpop.eup %10938  ;;  %v7648_v40 = vadd.bf16 1065369472, %v10937_v12 }
0x15b2   :  { %v7710_v59 = vmul.bf16 %v7646_v41, %v7198_v2  ;;  %v7647_v27 = vadd.bf16 1065369472, %v10939_v38  ;;  %v10941_v11 = vpop.eup %10940 }
0x15b3   :  { %v7712_v53 = vmul.bf16 %v7648_v40, %v7200_v63  ;;  %v10943_v3 = vpop.eup %10942  ;;  %v7649_v49 = vadd.bf16 1065369472, %v10941_v11 }
0x15b4   :  { %8108 = vmatprep.mubr.bf16.mxu1 %v7710_v59  ;;  %v7711_v25 = vmul.bf16 %v7647_v27, %v7199_v47  ;;  %v10945_v10 = vpop.eup %10944  ;;  %v7650_v30 = vadd.bf16 1065369472, %v10943_v3 }
0x15b5   :  { %v6861_v34 = vpop.f32.mrf.mxu1  ;;  %8269 = vmatprep.mubr.bf16.mxu0 %v7712_v53  ;;  %8109 = vmatmul.mubr.bf16.gmra.mxu1 %v7709_v13  ;;  %v7054_v1 = vpop.f32.mrf.mxu0  ;;  %v7651_v45 = vadd.bf16 1065369472, %v10945_v10  ;;  %v7713_v42 = vmul.bf16 %v7649_v49, %v7201_v7 }
0x15b6   :  { %8270 = vmatmul.mubr.bf16.gmra.mxu0 %v7711_v25  ;;  %v10947_v55 = vpop.eup %10946  ;;  %v7714_v52 = vmul.bf16 %v7650_v30, %v7202_v51  ;;  %v6862_v17 = vadd.f32 %v6861_v34, %v14811_v44  ;;  %v7055_v37 = vadd.f32 %v7054_v1, %v14816_v62 }
0x15b7   :  { %v6863_v61 = vpop.f32.mrf.mxu1  ;;  %v7056_v5 = vpop.f32.mrf.mxu0  ;;  %v7652_v21 = vadd.bf16 1065369472, %v10947_v55  ;;  %v7715_v31 = vmul.bf16 %v7651_v45, %v7203_v58 }
0x15b8   :  { %8116 = vmatprep.mubr.bf16.mxu1 %v7714_v52  ;;  %v6864_v8 = vadd.f32 %v6863_v61, %v14821_v35  ;;  %v7057_v24 = vadd.f32 %v7056_v5, %v14827_v6 }
0x15b9   :  { %v6865_v20 = vpop.f32.mrf.mxu1  ;;  %v7058_v23 = vpop.f32.mrf.mxu0  ;;  %v7716_v15 = vmul.bf16 %v7652_v21, %v7204_v60 }
0x15ba   :  { %v6866_v18 = vadd.f32 %v6865_v20, %v14811_v44  ;;  %v7059_v0 = vadd.f32 %v7058_v23, %v14816_v62 }
0x15bb   :  { %v6867_v9 = vpop.f32.mrf.mxu1  ;;  %v7060_v16 = vpop.f32.mrf.mxu0  ;;  %8277 = vmatprep.mubr.bf16.mxu0 %v7716_v15 }
0x15bc   :  { %v15320_v54 = vpack.c.bf16 %v6866_v18, %v6862_v17  ;;  %v6868_v56 = vadd.f32 %v6867_v9, %v14821_v35  ;;  %v15324_v12 = vpack.c.bf16 %v7059_v0, %v7055_v37  ;;  %v7061_v2 = vadd.f32 %v7060_v16, %v14827_v6 }
0x15bd   :  { %8117 = vmatmul.mubr.bf16.gmra.mxu1 %v7713_v42  ;;  %v6871_v38 = vpop.f32.mrf.mxu1  ;;  %v7064_v63 = vpop.f32.mrf.mxu0 }
0x15be   :  { %v7269_v39 = vmul.bf16 1027030327, %v15320_v54  ;;  %v15328_v41 = vpack.c.bf16 %v6868_v56, %v6864_v8  ;;  %8278 = vmatmul.mubr.bf16.gmra.mxu0 %v7715_v31  ;;  %v7271_v40 = vmul.bf16 1027030327, %v15324_v12  ;;  %v15331_v14 = vpack.c.bf16 %v7061_v2, %v7057_v24 }
0x15bf   :  { %v6873_v27 = vpop.f32.mrf.mxu1  ;;  %v7066_v11 = vpop.f32.mrf.mxu0  ;;  %v6872_v25 = vadd.f32 %v6871_v38, %v14811_v44  ;;  %v7065_v34 = vadd.f32 %v7064_v63, %v14816_v62 }
0x15c0   :  { %v7333_v59 = vmul.bf16 %v7269_v39, %v15320_v54  ;;  %v7270_v47 = vmul.bf16 1027030327, %v15328_v41  ;;  %v7335_v53 = vmul.bf16 %v7271_v40, %v15324_v12  ;;  %v7272_v13 = vmul.bf16 1027030327, %v15331_v14 }
0x15c1   :  { %v6875_v10 = vpop.f32.mrf.mxu1  ;;  %v7068_v1 = vpop.f32.mrf.mxu0  ;;  %v6874_v5 = vadd.f32 %v6873_v27, %v14821_v35  ;;  %v7067_v49 = vadd.f32 %v7066_v11, %v14827_v6 }
0x15c2   :  { %v7397_v3 = vmul.bf16 %v7333_v59, %v15320_v54  ;;  %v7334_v51 = vmul.bf16 %v7270_v47, %v15328_v41  ;;  %v7399_v30 = vmul.bf16 %v7335_v53, %v15324_v12  ;;  %v6876_v61 = vadd.f32 %v6875_v10, %v14811_v44 }
0x15c3   :  { %v7069_v55 = vadd.f32 %v7068_v1, %v14816_v62  ;;  %v7336_v52 = vmul.bf16 %v7272_v13, %v15331_v14  ;;  %v6877_v60 = vpop.f32.mrf.mxu1  ;;  %v7070_v21 = vpop.f32.mrf.mxu0 }
0x15c4   :  { %v7398_v45 = vmul.bf16 %v7334_v51, %v15328_v41  ;;  %v7461_v20 = vadd.bf16 %v7397_v3, %v15320_v54  ;;  %v15349_v17 = vpack.c.bf16 %v6876_v61, %v6872_v25  ;;  %v6878_v18 = vadd.f32 %v6877_v60, %v14821_v35 }
0x15c5   :  { %v15351_v7 = vpack.c.bf16 %v7069_v55, %v7065_v34  ;;  %v7071_v23 = vadd.f32 %v7070_v21, %v14827_v6  ;;  %v7400_v15 = vmul.bf16 %v7336_v52, %v15331_v14  ;;  %v7463_v0 = vadd.bf16 %v7399_v30, %v15324_v12 }
0x15c6   :  { %v7462_v37 = vadd.bf16 %v7398_v45, %v15328_v41  ;;  %v7525_v58 = vmul.bf16 1061961548, %v7461_v20  ;;  %v7273_v9 = vmul.bf16 1027030327, %v15349_v17  ;;  %v15360_v42 = vpack.c.bf16 %v6878_v18, %v6874_v5 }
0x15c7   :  { %v7275_v8 = vmul.bf16 1027030327, %v15351_v7  ;;  %v15362_v56 = vpack.c.bf16 %v7071_v23, %v7067_v49  ;;  %v7464_v2 = vadd.bf16 %v7400_v15, %v15331_v14  ;;  %v7527_v40 = vmul.bf16 1061961548, %v7463_v0 }
0x15c8   :  { %v6881_v16 = vpop.f32.mrf.mxu1  ;;  %v7074_v24 = vpop.f32.mrf.mxu0  ;;  %v7526_v31 = vmul.bf16 1061961548, %v7462_v37  ;;  %10948 = vtanh.bf16 %v7525_v58  ;;  %v7337_v39 = vmul.bf16 %v7273_v9, %v15349_v17  ;;  %v7274_v38 = vmul.bf16 1027030327, %v15360_v42 }
0x15c9   :  { %v7276_v63 = vmul.bf16 1027030327, %v15362_v56  ;;  %v7339_v59 = vmul.bf16 %v7275_v8, %v15351_v7  ;;  %v7528_v11 = vmul.bf16 1061961548, %v7464_v2  ;;  %v6882_v13 = vadd.f32 %v6881_v16, %v14811_v44 }
0x15ca   :  { %v6883_v47 = vpop.f32.mrf.mxu1  ;;  %v7076_v27 = vpop.f32.mrf.mxu0  ;;  %10950 = vtanh.bf16 %v7526_v31  ;;  %v7401_v53 = vmul.bf16 %v7337_v39, %v15349_v17  ;;  %v7075_v3 = vadd.f32 %v7074_v24, %v14816_v62  ;;  %v7338_v10 = vmul.bf16 %v7274_v38, %v15360_v42 }
0x15cb   :  { %10952 = vtanh.bf16 %v7528_v11  ;;  %v7340_v30 = vmul.bf16 %v7276_v63, %v15362_v56  ;;  %v7403_v61 = vmul.bf16 %v7339_v59, %v15351_v7  ;;  %v6884_v55 = vadd.f32 %v6883_v47, %v14821_v35 }
0x15cc   :  { %v6885_v25 = vpop.f32.mrf.mxu1  ;;  %v7078_v34 = vpop.f32.mrf.mxu0  ;;  %10954 = vtanh.bf16 %v7527_v40  ;;  %v7402_v49 = vmul.bf16 %v7338_v10, %v15360_v42  ;;  %v7465_v60 = vadd.bf16 %v7401_v53, %v15349_v17  ;;  %v7206_v15 = vmul.bf16 1056980736, %v15328_v41 }
0x15cd   :  { %v6886_v1 = vadd.f32 %v6885_v25, %v14811_v44  ;;  %v7079_v51 = vadd.f32 %v7078_v34, %v14816_v62  ;;  %v7205_v58 = vmul.bf16 1056980736, %v15320_v54  ;;  %v7404_v9 = vmul.bf16 %v7340_v30, %v15362_v56 }
0x15ce   :  { %v6887_v52 = vpop.f32.mrf.mxu1  ;;  %v7080_v5 = vpop.f32.mrf.mxu0  ;;  %v7466_v0 = vadd.bf16 %v7402_v49, %v15360_v42  ;;  %v7077_v8 = vadd.f32 %v7076_v27, %v14827_v6  ;;  %v7207_v38 = vmul.bf16 1056980736, %v15324_v12  ;;  %v7467_v40 = vadd.bf16 %v7403_v61, %v15351_v7 }
0x15cf   :  { %v15380_v21 = vpack.c.bf16 %v6886_v1, %v6882_v13  ;;  %v15382_v45 = vpack.c.bf16 %v7079_v51, %v7075_v3  ;;  %v6888_v20 = vadd.f32 %v6887_v52, %v14821_v35  ;;  %v7081_v18 = vadd.f32 %v7080_v5, %v14827_v6 }
0x15d0   :  { %v6891_v23 = vpop.f32.mrf.mxu1  ;;  %v7084_v37 = vpop.f32.mrf.mxu0  ;;  %v7530_v63 = vmul.bf16 1061961548, %v7466_v0  ;;  %v7468_v41 = vadd.bf16 %v7404_v9, %v15362_v56  ;;  %v7529_v11 = vmul.bf16 1061961548, %v7465_v60  ;;  %v7531_v49 = vmul.bf16 1061961548, %v7467_v40 }
0x15d1   :  { %v7277_v16 = vmul.bf16 1027030327, %v15380_v21  ;;  %v7279_v24 = vmul.bf16 1027030327, %v15382_v45  ;;  %v15393_v31 = vpack.c.bf16 %v6888_v20, %v6884_v55  ;;  %v15399_v47 = vpack.c.bf16 %v7081_v18, %v7077_v8 }
0x15d2   :  { %v6893_v2 = vpop.f32.mrf.mxu1  ;;  %v7086_v39 = vpop.f32.mrf.mxu0  ;;  %v6892_v27 = vadd.f32 %v6891_v23, %v14811_v44  ;;  %v7085_v13 = vadd.f32 %v7084_v37, %v14816_v62  ;;  %10956 = vtanh.bf16 %v7530_v63  ;;  %v7532_v34 = vmul.bf16 1061961548, %v7468_v41 }
0x15d3   :  { %v7278_v59 = vmul.bf16 1027030327, %v15393_v31  ;;  %v7341_v53 = vmul.bf16 %v7277_v16, %v15380_v21  ;;  %v7343_v10 = vmul.bf16 %v7279_v24, %v15382_v45  ;;  %v6894_v1 = vadd.f32 %v6893_v2, %v14821_v35 }
0x15d4   :  { %v6895_v3 = vpop.f32.mrf.mxu1  ;;  %v7088_v25 = vpop.f32.mrf.mxu0  ;;  %v7087_v55 = vadd.f32 %v7086_v39, %v14827_v6  ;;  %10958 = vtanh.bf16 %v7532_v34  ;;  %v7208_v0 = vmul.bf16 1056980736, %v15331_v14 }
0x15d5   :  { %v6896_v51 = vadd.f32 %v6895_v3, %v14811_v44  ;;  %v7089_v30 = vadd.f32 %v7088_v25, %v14816_v62  ;;  %v7342_v60 = vmul.bf16 %v7278_v59, %v15393_v31  ;;  %v7280_v62 = vmul.bf16 1027030327, %v15399_v47 }
0x15d6   :  { %v10949_v61 = vpop.eup %10948  ;;  %v6897_v52 = vpop.f32.mrf.mxu1  ;;  %10960 = vtanh.bf16 %v7529_v11  ;;  %v7407_v14 = vmul.bf16 %v7343_v10, %v15382_v45 }
0x15d7   :  { %v7090_v5 = vpop.f32.mrf.mxu0  ;;  %v15410_v20 = vpack.c.bf16 %v6896_v51, %v6892_v27  ;;  %v15412_v18 = vpack.c.bf16 %v7089_v30, %v7085_v13  ;;  %v6898_v23 = vadd.f32 %v6897_v52, %v14821_v35  ;;  %v7406_v9 = vmul.bf16 %v7342_v60, %v15393_v31 }
0x15d8   :  { %v7091_v37 = vadd.f32 %v7090_v5, %v14827_v6  ;;  %v10951_v44 = vpop.eup %10950  ;;  %v7653_v2 = vadd.bf16 1065369472, %v10949_v61  ;;  %v7405_v35 = vmul.bf16 %v7341_v53, %v15380_v21  ;;  %10962 = vtanh.bf16 %v7531_v49  ;;  %v15439_v61 = vld [vmem:[%s15550_s12] ss:$0 sm:$0xff]  ;;  %s11203_s12 = smov [#allocation15]  }
0x15d9   :  { %v7281_v8 = vmul.bf16 1027030327, %v15410_v20  ;;  %v15420_v16 = vpack.c.bf16 %v6898_v23, %v6894_v1  ;;  %v10953_v39 = vpop.eup %10952  ;;  %v7654_v63 = vadd.bf16 1065369472, %v10951_v44  ;;  %v7470_v6 = vadd.bf16 %v7406_v9, %v15393_v31  ;;  %s8387_s0 = sshll.u32 %s11203_s12, 4  ;;  %s8388_s0 = int_to_ptr.vmem [resolvable:$true] %s8387_s0 }
0x15da   :  { %v15422_v24 = vpack.c.bf16 %v7091_v37, %v7087_v55  ;;  %v10955_v41 = vpop.eup %10954  ;;  %v7283_v59 = vmul.bf16 1027030327, %v15412_v18  ;;  %v7656_v3 = vadd.bf16 1065369472, %v10953_v39  ;;  %v7717_v1 = vmul.bf16 %v7653_v2, %v7205_v58  ;;  %s11154_s1 = scalar_lea.vmem %s8388_s0, 4096  ;;  %p11159_p8 = scmp.lt.s32.totalorder %s8388_s0, %s8388_s0 }
0x15db   :  { %v7345_v40 = vmul.bf16 %v7281_v8, %v15410_v20  ;;  %v7282_v27 = vmul.bf16 1027030327, %v15420_v16  ;;  %v9160_v11 = vpop.f32.mrf.mxu1  ;;  %v7718_v13 = vmul.bf16 %v7654_v63, %v7206_v15  ;;  %v7655_v25 = vadd.bf16 1065369472, %v10955_v41  ;;  %p11155_p7 = scmp.ne.s32.totalorder %s8388_s0, %s11154_s1  ;;  %p11160_p9 = scmp.lt.s32.totalorder %s11154_s1, %s11154_s1 }
0x15dc   :  { %v7534_v34 = vmul.bf16 1061961548, %v7470_v6  ;;  %v7284_v53 = vmul.bf16 1027030327, %v15422_v24  ;;  %v7210_v51 = vmul.bf16 1056980736, %v15360_v42  ;;  %v7344_v10 = vmul.bf16 %v7280_v62, %v15399_v47 }
0x15dd   :  { %v7409_v30 = vmul.bf16 %v7345_v40, %v15410_v20  ;;  %v9161_v15 = vpop.f32.mrf.mxu1  ;;  %8124 = vmatprep.mubr.bf16.mxu1 %v7718_v13  ;;  %v7720_v55 = vmul.bf16 %v7656_v3, %v7208_v0  ;;  %v7469_v52 = vadd.bf16 %v7405_v35, %v15380_v21  ;;  %v7719_v54 = vmul.bf16 %v7655_v25, %v7207_v38  ;;  %p11161_p10 = por %p11160_p9, %p11159_p8 }
0x15de   :  { %10964 = vtanh.bf16 %v7534_v34  ;;  %v9162_v5 = vadd.f32 %v9161_v15, %v9160_v11  ;;  %8125 = vmatmul.mubr.bf16.gmra.mxu1 %v7717_v1  ;;  %v7408_v42 = vmul.bf16 %v7344_v10, %v15399_v47  ;;  %v7471_v58 = vadd.bf16 %v7407_v14, %v15382_v45 }
0x15df   :  { %v7347_v49 = vmul.bf16 %v7283_v59, %v15412_v18  ;;  %v9163_v23 = vpop.f32.mrf.mxu1  ;;  %8285 = vmatprep.mubr.bf16.mxu0 %v7720_v55  ;;  %v7212_v37 = vmul.bf16 1056980736, %v15362_v56  ;;  %v7533_v44 = vmul.bf16 1061961548, %v7469_v52  ;;  %v7346_v62 = vmul.bf16 %v7282_v27, %v15420_v16  ;;  %p11162_p11 = pnand %p11161_p10, %p11155_p7 }
0x15e0   :  { %v9272_v60 = vpop.f32.mrf.mxu0  ;;  %v8031_v0 = vadd.f32 %v9162_v5, %v15439_v61  ;;  %8286 = vmatmul.mubr.bf16.gmra.mxu0 %v7719_v54  ;;  %v7472_v12 = vadd.bf16 %v7408_v42, %v15399_v47  ;;  %v7535_v38 = vmul.bf16 1061961548, %v7471_v58  ;;  %v7348_v9 = vmul.bf16 %v7284_v53, %v15422_v24  ;;  %v10957_v8 = vpop.eup %10956 }
0x15e1   :  { %v9164_v39 = vpop.f32.mrf.mxu1  ;;  %v7209_v35 = vmul.bf16 1056980736, %v15349_v17  ;;  %10966 = vtanh.bf16 %v7533_v44  ;;  %v7410_v63 = vmul.bf16 %v7346_v62, %v15420_v16  ;;  %v7473_v56 = vadd.bf16 %v7409_v30, %v15410_v20 }
0x15e2   :  { %v9273_v2 = vpop.f32.mrf.mxu0  ;;  %v9165_v41 = vadd.f32 %v9164_v39, %v9163_v23  ;;  %v7658_v14 = vadd.bf16 1065369472, %v10957_v8  ;;  %v7536_v40 = vmul.bf16 1061961548, %v7472_v12  ;;  %v10959_v59 = vpop.eup %10958  ;;  %v7411_v27 = vmul.bf16 %v7347_v49, %v15412_v18 }
0x15e3   :  { %v9274_v6 = vadd.f32 %v9273_v2, %v9272_v60  ;;  %10968 = vtanh.bf16 %v7535_v38  ;;  %v7474_v13 = vadd.bf16 %v7410_v63, %v15420_v16  ;;  %v7412_v3 = vmul.bf16 %v7348_v9, %v15422_v24 }
0x15e4   :  { %v9275_v11 = vpop.f32.mrf.mxu0  ;;  %v8034_v17 = vadd.f32 %v9165_v41, %v15439_v61  ;;  %v7722_v34 = vmul.bf16 %v7658_v14, %v7210_v51  ;;  %v7660_v53 = vadd.bf16 1065369472, %v10959_v59  ;;  %v10961_v1 = vpop.eup %10960  ;;  %10970 = vtanh.bf16 %v7536_v40 }
0x15e5   :  { %v8192_v25 = vadd.f32 %v9274_v6, %v8031_v0  ;;  %v7538_v15 = vmul.bf16 1061961548, %v7474_v13  ;;  %v7476_v55 = vadd.bf16 %v7412_v3, %v15422_v24  ;;  %v7537_v52 = vmul.bf16 1061961548, %v7473_v56 }
0x15e6   :  { %v9276_v10 = vpop.f32.mrf.mxu0  ;;  %v9166_v30 = vpop.f32.mrf.mxu1  ;;  %8132 = vmatprep.mubr.bf16.mxu1 %v7722_v34  ;;  %v7724_v42 = vmul.bf16 %v7660_v53, %v7212_v37  ;;  %v7657_v58 = vadd.bf16 1065369472, %v10961_v1  ;;  %v7211_v23 = vmul.bf16 1056980736, %v15351_v7  ;;  %v7475_v44 = vadd.bf16 %v7411_v27, %v15412_v18 }
0x15e7   :  { %v8318_v5 = vadd.f32 %v8192_v25, %v14380_v48  ;;  %v9277_v54 = vadd.f32 %v9276_v10, %v9275_v11  ;;  %v10963_v49 = vpop.eup %10962  ;;  %10972 = vtanh.bf16 %v7538_v15  ;;  %v7540_v51 = vmul.bf16 1061961548, %v7476_v55 }
0x15e8   :  { %v9167_v60 = vpop.f32.mrf.mxu1  ;;  %8293 = vmatprep.mubr.bf16.mxu0 %v7724_v42  ;;  %v7721_v12 = vmul.bf16 %v7657_v58, %v7209_v35  ;;  %v7659_v38 = vadd.bf16 1065369472, %v10963_v49  ;;  %v7539_v8 = vmul.bf16 1061961548, %v7475_v44  ;;  %v7214_v41 = vmul.bf16 1056980736, %v15393_v31 }
0x15e9   :  { %8350 = vst [vmem:[#allocation15] sm:$0xff] %v8318_v5  ;;  %v8195_v62 = vadd.f32 %v9277_v54, %v8034_v17  ;;  %v9168_v0 = vadd.f32 %v9167_v60, %v9166_v30  ;;  %v9278_v9 = vpop.f32.mrf.mxu0  ;;  %10974 = vtanh.bf16 %v7540_v51  ;;  %v7213_v17 = vmul.bf16 1056980736, %v15380_v21 }
0x15ea   :  { %v9169_v48 = vpop.f32.mrf.mxu1  ;;  %8133 = vmatmul.mubr.bf16.gmra.mxu1 %v7721_v12  ;;  %v7723_v7 = vmul.bf16 %v7659_v38, %v7211_v23  ;;  %10976 = vtanh.bf16 %v7537_v52  ;;  %v7216_v58 = vmul.bf16 1056980736, %v15399_v47  ;;  %v7218_v12 = vmul.bf16 1056980736, %v15420_v16 }
0x15eb   :  { %v8319_v37 = vadd.f32 %v8195_v62, %v14395_v36  ;;  %v8039_v2 = vadd.f32 %v9168_v0, %v15439_v61  ;;  %v9279_v63 = vpop.f32.mrf.mxu0  ;;  %10978 = vtanh.bf16 %v7539_v8  ;;  %v7215_v0 = vmul.bf16 1056980736, %v15382_v45 }
0x15ec   :  { %v10965_v39 = vpop.eup %10964  ;;  %v9170_v56 = vpop.f32.mrf.mxu1  ;;  %v9280_v6 = vadd.f32 %v9279_v63, %v9278_v9  ;;  %8294 = vmatmul.mubr.bf16.gmra.mxu0 %v7723_v7  ;;  %v7217_v16 = vmul.bf16 1056980736, %v15410_v20 }
0x15ed   :  { %8351 = vst [vmem:[#allocation15 + $0x8] sm:$0xff] %v8319_v37  ;;  %v9171_v35 = vadd.f32 %v9170_v56, %v9169_v48  ;;  %v7662_v14 = vadd.bf16 1065369472, %v10965_v39  ;;  %v9281_v40 = vpop.f32.mrf.mxu0 }
0x15ee   :  { %v9172_v59 = vpop.f32.mrf.mxu1  ;;  %v8200_v27 = vadd.f32 %v9280_v6, %v8039_v2 }
0x15ef   :  { %v8042_v36 = vadd.f32 %v9171_v35, %v15439_v61  ;;  %v7726_v11 = vmul.bf16 %v7662_v14, %v7214_v41  ;;  %v10967_v13 = vpop.eup %10966  ;;  %v9282_v3 = vpop.f32.mrf.mxu0 }
0x15f0   :  { %v9173_v25 = vpop.f32.mrf.mxu1  ;;  %v8320_v34 = vadd.f32 %v8200_v27, %v14386_v46  ;;  %v9283_v53 = vadd.f32 %v9282_v3, %v9281_v40  ;;  %v7661_v10 = vadd.bf16 1065369472, %v10967_v13 }
0x15f1   :  { %v9174_v1 = vadd.f32 %v9173_v25, %v9172_v59  ;;  %8140 = vmatprep.mubr.bf16.mxu1 %v7726_v11  ;;  %v10969_v30 = vpop.eup %10968  ;;  %v9284_v31 = vpop.f32.mrf.mxu0 }
0x15f2   :  { %v9175_v15 = vpop.f32.mrf.mxu1  ;;  %8352 = vst [vmem:[#allocation15 + $0x10] sm:$0xff] %v8320_v34  ;;  %v8203_v55 = vadd.f32 %v9283_v53, %v8042_v36  ;;  %v7725_v5 = vmul.bf16 %v7661_v10, %v7213_v17  ;;  %v10971_v54 = vpop.eup %10970  ;;  %v7663_v21 = vadd.bf16 1065369472, %v10969_v30 }
0x15f3   :  { %v8047_v52 = vadd.f32 %v9174_v1, %v15439_v61  ;;  %v9285_v42 = vpop.f32.mrf.mxu0  ;;  %v7664_v23 = vadd.bf16 1065369472, %v10971_v54 }
0x15f4   :  { %v9176_v49 = vpop.f32.mrf.mxu1  ;;  %v8321_v46 = vadd.f32 %v8203_v55, %v14392_v26  ;;  %v9286_v60 = vadd.f32 %v9285_v42, %v9284_v31  ;;  %8141 = vmatmul.mubr.bf16.gmra.mxu1 %v7725_v5  ;;  %v7727_v2 = vmul.bf16 %v7663_v21, %v7215_v0  ;;  %v7220_v26 = vmul.bf16 1056980736, %v15422_v24 }
0x15f5   :  { %v9177_v51 = vadd.f32 %v9176_v49, %v9175_v15  ;;  %v10973_v44 = vpop.eup %10972  ;;  %v9287_v62 = vpop.f32.mrf.mxu0  ;;  %v7728_v9 = vmul.bf16 %v7664_v23, %v7216_v58 }
0x15f6   :  { %8353 = vst [vmem:[#allocation15 + $0x18] sm:$0xff] %v8321_v46  ;;  %v8208_v38 = vadd.f32 %v9286_v60, %v8047_v52  ;;  %v7666_v47 = vadd.bf16 1065369472, %v10973_v44 }
0x15f7   :  { %v8050_v48 = vadd.f32 %v9177_v51, %v15439_v61  ;;  %v10975_v8 = vpop.eup %10974  ;;  %v9288_v37 = vpop.f32.mrf.mxu0  ;;  %8301 = vmatprep.mubr.bf16.mxu0 %v7728_v9 }
0x15f8   :  { %v10977_v7 = vpop.eup %10976  ;;  %v8322_v39 = vadd.f32 %v8208_v38, %v14402_v50  ;;  %v9289_v63 = vadd.f32 %v9288_v37, %v9287_v62  ;;  %v7730_v56 = vmul.bf16 %v7666_v47, %v7218_v12  ;;  %v7668_v45 = vadd.bf16 1065369472, %v10975_v8  ;;  %8302 = vmatmul.mubr.bf16.gmra.mxu0 %v7727_v2 }
0x15f9   :  { %v10979_v6 = vpop.eup %10978  ;;  %v7665_v35 = vadd.bf16 1065369472, %v10977_v7  ;;  %v7219_v50 = vmul.bf16 1056980736, %v15412_v18 }
0x15fa   :  { %8354 = vst [vmem:[#allocation15 + $0x20] sm:$0xff] %v8322_v39  ;;  %v8211_v41 = vadd.f32 %v9289_v63, %v8050_v48  ;;  %8148 = vmatprep.mubr.bf16.mxu1 %v7730_v56  ;;  %v7732_v14 = vmul.bf16 %v7668_v45, %v7220_v26  ;;  %v7667_v59 = vadd.bf16 1065369472, %v10979_v6 }
0x15fb   :  { %v7729_v40 = vmul.bf16 %v7665_v35, %v7217_v16 }
0x15fc   :  { %v8323_v24 = vadd.f32 %v8211_v41, %v14405_v33  ;;  %8309 = vmatprep.mubr.bf16.mxu0 %v7732_v14  ;;  %v7731_v27 = vmul.bf16 %v7667_v59, %v7219_v50 }
0x15fd   :  { %8149 = vmatmul.mubr.bf16.gmra.mxu1 %v7729_v40 }
0x15fe   :  { %8355 = vst [vmem:[#allocation15 + $0x28] sm:$0xff] %v8323_v24 }
0x1600   :  { %8310 = vmatmul.mubr.bf16.gmra.mxu0 %v7731_v27 }
0x1613   :  { %v9178_v36 = vpop.f32.mrf.mxu1 }
0x1615   :  { %v9290_v11 = vpop.f32.mrf.mxu0  ;;  %v9179_v13 = vpop.f32.mrf.mxu1 }
0x1616   :  { %v9180_v20 = vadd.f32 %v9179_v13, %v9178_v36 }
0x1617   :  { %v9291_v3 = vpop.f32.mrf.mxu0  ;;  %v9181_v25 = vpop.f32.mrf.mxu1 }
0x1618   :  { %v8055_v17 = vadd.f32 %v9180_v20, %v15439_v61  ;;  %v9292_v34 = vadd.f32 %v9291_v3, %v9290_v11 }
0x1619   :  { %v9293_v53 = vpop.f32.mrf.mxu0  ;;  %v9182_v1 = vpop.f32.mrf.mxu1 }
0x161a   :  { %v8216_v10 = vadd.f32 %v9292_v34, %v8055_v17  ;;  %v9183_v33 = vadd.f32 %v9182_v1, %v9181_v25 }
0x161b   :  { %v9294_v30 = vpop.f32.mrf.mxu0 }
0x161c   :  { %v8324_v31 = vadd.f32 %v8216_v10, %v14412_v4  ;;  %v8058_v18 = vadd.f32 %v9183_v33, %v15439_v61  ;;  %v9295_v15 = vadd.f32 %v9294_v30, %v9293_v53 }
0x161e   :  { %8356 = vst [vmem:[#allocation15 + $0x30] sm:$0xff] %v8324_v31  ;;  %v8219_v55 = vadd.f32 %v9295_v15, %v8058_v18 }
0x1620   :  { %v9184_v52 = vpop.f32.mrf.mxu1  ;;  %v8325_v5 = vadd.f32 %v8219_v55, %v14415_v32 }
0x1622   :  { %v9185_v54 = vpop.f32.mrf.mxu1  ;;  %8357 = vst [vmem:[#allocation15 + $0x38] sm:$0xff] %v8325_v5 }
0x1623   :  { %v9186_v42 = vadd.f32 %v9185_v54, %v9184_v52 }
0x1624   :  { %v9187_v58 = vpop.f32.mrf.mxu1  ;;  %v9296_v49 = vpop.f32.mrf.mxu0 }
0x1625   :  { %v8063_v46 = vadd.f32 %v9186_v42, %v15439_v61 }
0x1626   :  { %v9188_v21 = vpop.f32.mrf.mxu1  ;;  %v9297_v23 = vpop.f32.mrf.mxu0 }
0x1627   :  { %v9189_v60 = vadd.f32 %v9188_v21, %v9187_v58  ;;  %v9298_v51 = vadd.f32 %v9297_v23, %v9296_v49  ;;  %v16058_v21 = vld [vmem:[#allocation49_spill] sm:$0xff] }
0x1628   :  { %v9299_v4 = vpop.f32.mrf.mxu0 }
0x1629   :  { %v8224_v44 = vadd.f32 %v9298_v51, %v8063_v46  ;;  %v8066_v62 = vadd.f32 %v9189_v60, %v15439_v61 }
0x162a   :  { %v9300_v0 = vpop.f32.mrf.mxu0 }
0x162b   :  { %v8326_v12 = vadd.f32 %v8224_v44, %v14424_v29  ;;  %v9301_v38 = vadd.f32 %v9300_v0, %v9299_v4  ;;  %v16059_v4 = vld [vmem:[#allocation47_spill] sm:$0xff] }
0x162d   :  { %v9190_v32 = vpop.f32.mrf.mxu1  ;;  %8358 = vst [vmem:[#allocation15 + $0x40] sm:$0xff] %v8326_v12  ;;  %v8227_v9 = vadd.f32 %v9301_v38, %v8066_v62 }
0x162e   :  { %v9302_v48 = vpop.f32.mrf.mxu0 }
0x162f   :  { %v9191_v47 = vpop.f32.mrf.mxu1  ;;  %v8327_v8 = vadd.f32 %v8227_v9, %v14433_v22 }
0x1630   :  { %v9192_v37 = vadd.f32 %v9191_v47, %v9190_v32  ;;  %v9303_v2 = vpop.f32.mrf.mxu0 }
0x1631   :  { %v9193_v26 = vpop.f32.mrf.mxu1  ;;  %8359 = vst [vmem:[#allocation15 + $0x48] sm:$0xff] %v8327_v8  ;;  %v9304_v39 = vadd.f32 %v9303_v2, %v9302_v48 }
0x1632   :  { %v8071_v7 = vadd.f32 %v9192_v37, %v15439_v61  ;;  %v9305_v63 = vpop.f32.mrf.mxu0 }
0x1633   :  { %v9194_v56 = vpop.f32.mrf.mxu1 }
0x1634   :  { %v8232_v45 = vadd.f32 %v9304_v39, %v8071_v7  ;;  %v9195_v6 = vadd.f32 %v9194_v56, %v9193_v26  ;;  %v9306_v29 = vpop.f32.mrf.mxu0  ;;  %v16060_v39 = vld [vmem:[#allocation43_spill] sm:$0xff] }
0x1635   :  { %v9307_v41 = vadd.f32 %v9306_v29, %v9305_v63 }
0x1636   :  { %v8328_v16 = vadd.f32 %v8232_v45, %v14430_v43  ;;  %v8074_v35 = vadd.f32 %v9195_v6, %v15439_v61  ;;  %v9196_v14 = vpop.f32.mrf.mxu1 }
0x1637   :  { %v9308_v40 = vpop.f32.mrf.mxu0 }
0x1638   :  { %8360 = vst [vmem:[#allocation15 + $0x50] sm:$0xff] %v8328_v16  ;;  %v8235_v22 = vadd.f32 %v9307_v41, %v8074_v35  ;;  %v9197_v59 = vpop.f32.mrf.mxu1 }
0x1639   :  { %v9198_v24 = vadd.f32 %v9197_v59, %v9196_v14  ;;  %v9309_v27 = vpop.f32.mrf.mxu0  ;;  %v16061_v14 = vld [vmem:[#allocation45_spill] sm:$0xff] }
0x163a   :  { %v8329_v50 = vadd.f32 %v8235_v22, %v14439_v19  ;;  %v9199_v36 = vpop.f32.mrf.mxu1  ;;  %v9310_v13 = vadd.f32 %v9309_v27, %v9308_v40 }
0x163b   :  { %v8079_v11 = vadd.f32 %v9198_v24, %v15439_v61  ;;  %v9311_v20 = vpop.f32.mrf.mxu0 }
0x163c   :  { %8361 = vst [vmem:[#allocation15 + $0x58] sm:$0xff] %v8329_v50  ;;  %v9200_v3 = vpop.f32.mrf.mxu1 }
0x163d   :  { %v8240_v43 = vadd.f32 %v9310_v13, %v8079_v11  ;;  %v9201_v25 = vadd.f32 %v9200_v3, %v9199_v36  ;;  %v9312_v17 = vpop.f32.mrf.mxu0  ;;  %v16062_v3 = vld [vmem:[#allocation41_spill] sm:$0xff] }
0x163e   :  { %v9202_v34 = vpop.f32.mrf.mxu1  ;;  %v9313_v10 = vadd.f32 %v9312_v17, %v9311_v20 }
0x163f   :  { %v8330_v53 = vadd.f32 %v8240_v43, %v14443_v28  ;;  %v8082_v1 = vadd.f32 %v9201_v25, %v15439_v61  ;;  %v9314_v33 = vpop.f32.mrf.mxu0 }
0x1640   :  { %v9203_v30 = vpop.f32.mrf.mxu1 }
0x1641   :  { %8362 = vst [vmem:[#allocation15 + $0x60] sm:$0xff] %v8330_v53  ;;  %v8243_v19 = vadd.f32 %v9313_v10, %v8082_v1  ;;  %v9204_v31 = vadd.f32 %v9203_v30, %v9202_v34  ;;  %v9315_v18 = vpop.f32.mrf.mxu0  ;;  %v16063_v30 = vld [vmem:[#allocation51_spill] sm:$0xff] }
0x1642   :  { %v9205_v15 = vpop.f32.mrf.mxu1  ;;  %v9316_v5 = vadd.f32 %v9315_v18, %v9314_v33 }
0x1643   :  { %v8331_v55 = vadd.f32 %v8243_v19, %v14450_v57  ;;  %v8087_v52 = vadd.f32 %v9204_v31, %v15439_v61  ;;  %v9317_v54 = vpop.f32.mrf.mxu0 }
0x1644   :  { %v9206_v42 = vpop.f32.mrf.mxu1 }
0x1645   :  { %8363 = vst [vmem:[#allocation15 + $0x68] sm:$0xff] %v8331_v55  ;;  %v8248_v58 = vadd.f32 %v9316_v5, %v8087_v52  ;;  %v9207_v28 = vadd.f32 %v9206_v42, %v9205_v15  ;;  %v9318_v49 = vpop.f32.mrf.mxu0 }
0x1646   :  { %v9319_v23 = vadd.f32 %v9318_v49, %v9317_v54 }
0x1647   :  { %v8332_v46 = vadd.f32 %v8248_v58, %v16058_v21  ;;  %v8090_v60 = vadd.f32 %v9207_v28, %v15439_v61  ;;  %v16064_v28 = vld [vmem:[#allocation55_spill] sm:$0xff] }
0x1649   :  { %8364 = vst [vmem:[#allocation15 + $0x70] sm:$0xff] %v8332_v46  ;;  %v8251_v51 = vadd.f32 %v9319_v23, %v8090_v60 }
0x164b   :  { %v8333_v44 = vadd.f32 %v8251_v51, %v16059_v4 }
0x164d   :  { %8365 = vst [vmem:[#allocation15 + $0x78] sm:$0xff] %v8333_v44 }
0x1662   :  { %v9208_v57 = vpop.f32.mrf.mxu1 }
0x1663   :  { %v9320_v62 = vpop.f32.mrf.mxu0 }
0x1664   :  { %v9209_v0 = vpop.f32.mrf.mxu1 }
0x1665   :  { %v9210_v12 = vadd.f32 %v9209_v0, %v9208_v57  ;;  %v9321_v38 = vpop.f32.mrf.mxu0 }
0x1666   :  { %v9211_v32 = vpop.f32.mrf.mxu1  ;;  %v9322_v48 = vadd.f32 %v9321_v38, %v9320_v62  ;;  %v16065_v62 = vld [vmem:[#allocation57_spill] sm:$0xff] }
0x1667   :  { %v8095_v9 = vadd.f32 %v9210_v12, %v15439_v61  ;;  %v9323_v47 = vpop.f32.mrf.mxu0 }
0x1668   :  { %v9212_v8 = vpop.f32.mrf.mxu1 }
0x1669   :  { %v8256_v37 = vadd.f32 %v9322_v48, %v8095_v9  ;;  %v9213_v2 = vadd.f32 %v9212_v8, %v9211_v32  ;;  %v9324_v26 = vpop.f32.mrf.mxu0 }
0x166a   :  { %v9214_v7 = vpop.f32.mrf.mxu1  ;;  %v9325_v45 = vadd.f32 %v9324_v26, %v9323_v47 }
0x166b   :  { %v8334_v63 = vadd.f32 %v8256_v37, %v16060_v39  ;;  %v8098_v56 = vadd.f32 %v9213_v2, %v15439_v61  ;;  %v16066_v37 = vld [vmem:[#allocation37_spill] sm:$0xff] }
0x166c   :  { %v9215_v6 = vpop.f32.mrf.mxu1 }
0x166d   :  { %8366 = vst [vmem:[#allocation15 + $0x80] sm:$0xff] %v8334_v63  ;;  %v8259_v29 = vadd.f32 %v9325_v45, %v8098_v56  ;;  %v9216_v16 = vadd.f32 %v9215_v6, %v9214_v7  ;;  %v9326_v35 = vpop.f32.mrf.mxu0  ;;  %v16067_v63 = vld [vmem:[#allocation40_spill] sm:$0xff] }
0x166e   :  { %v9217_v41 = vpop.f32.mrf.mxu1 }
0x166f   :  { %v8335_v22 = vadd.f32 %v8259_v29, %v16061_v14  ;;  %v8103_v40 = vadd.f32 %v9216_v16, %v15439_v61  ;;  %v9327_v59 = vpop.f32.mrf.mxu0 }
0x1670   :  { %v9218_v24 = vpop.f32.mrf.mxu1  ;;  %v9328_v50 = vadd.f32 %v9327_v59, %v9326_v35 }
0x1671   :  { %8367 = vst [vmem:[#allocation15 + $0x88] sm:$0xff] %v8335_v22  ;;  %v9219_v27 = vadd.f32 %v9218_v24, %v9217_v41  ;;  %v9329_v36 = vpop.f32.mrf.mxu0 }
0x1672   :  { %v8264_v11 = vadd.f32 %v9328_v50, %v8103_v40 }
0x1673   :  { %v8106_v13 = vadd.f32 %v9219_v27, %v15439_v61  ;;  %v9330_v20 = vpop.f32.mrf.mxu0 }
0x1674   :  { %v8336_v43 = vadd.f32 %v8264_v11, %v16062_v3  ;;  %v9331_v25 = vadd.f32 %v9330_v20, %v9329_v36  ;;  %v16068_v36 = vld [vmem:[#allocation46_spill] sm:$0xff] }
0x1675   :  { %v9220_v17 = vpop.f32.mrf.mxu1 }
0x1676   :  { %v9332_v34 = vpop.f32.mrf.mxu0  ;;  %8368 = vst [vmem:[#allocation15 + $0x90] sm:$0xff] %v8336_v43  ;;  %v8267_v53 = vadd.f32 %v9331_v25, %v8106_v13  ;;  %v16069_v25 = vld [vmem:[#allocation52_spill] sm:$0xff] }
0x1677   :  { %v9221_v1 = vpop.f32.mrf.mxu1 }
0x1678   :  { %v9222_v10 = vadd.f32 %v9221_v1, %v9220_v17  ;;  %v9333_v33 = vpop.f32.mrf.mxu0  ;;  %v8337_v19 = vadd.f32 %v8267_v53, %v16063_v30 }
0x1679   :  { %v9223_v31 = vpop.f32.mrf.mxu1  ;;  %v9334_v15 = vadd.f32 %v9333_v33, %v9332_v34 }
0x167a   :  { %v8111_v18 = vadd.f32 %v9222_v10, %v15439_v61  ;;  %v9335_v55 = vpop.f32.mrf.mxu0  ;;  %8369 = vst [vmem:[#allocation15 + $0x98] sm:$0xff] %v8337_v19 }
0x167b   :  { %v9224_v52 = vpop.f32.mrf.mxu1 }
0x167c   :  { %v8272_v5 = vadd.f32 %v9334_v15, %v8111_v18  ;;  %v9225_v54 = vadd.f32 %v9224_v52, %v9223_v31  ;;  %v9336_v42 = vpop.f32.mrf.mxu0 }
0x167d   :  { %v9226_v58 = vpop.f32.mrf.mxu1  ;;  %v9337_v46 = vadd.f32 %v9336_v42, %v9335_v55 }
0x167e   :  { %v8338_v49 = vadd.f32 %v8272_v5, %v16064_v28  ;;  %v8114_v21 = vadd.f32 %v9225_v54, %v15439_v61  ;;  %v9338_v60 = vpop.f32.mrf.mxu0  ;;  %v16070_v5 = vld [vmem:[#allocation78_spill] sm:$0xff] }
0x167f   :  { %v9227_v23 = vpop.f32.mrf.mxu1 }
0x1680   :  { %8370 = vst [vmem:[#allocation15 + $0xa0] sm:$0xff] %v8338_v49  ;;  %v8275_v51 = vadd.f32 %v9337_v46, %v8114_v21  ;;  %v9228_v4 = vadd.f32 %v9227_v23, %v9226_v58  ;;  %v9339_v44 = vpop.f32.mrf.mxu0  ;;  %v16071_v46 = vld [vmem:[#allocation80_spill] sm:$0xff] }
0x1681   :  { %v9229_v57 = vpop.f32.mrf.mxu1  ;;  %v9340_v38 = vadd.f32 %v9339_v44, %v9338_v60 }
0x1682   :  { %v8339_v0 = vadd.f32 %v8275_v51, %v16065_v62  ;;  %v8119_v12 = vadd.f32 %v9228_v4, %v15439_v61  ;;  %v9341_v32 = vpop.f32.mrf.mxu0 }
0x1683   :  { %v9230_v9 = vpop.f32.mrf.mxu1 }
0x1684   :  { %8371 = vst [vmem:[#allocation15 + $0xa8] sm:$0xff] %v8339_v0  ;;  %v8280_v48 = vadd.f32 %v9340_v38, %v8119_v12  ;;  %v9231_v47 = vadd.f32 %v9230_v9, %v9229_v57  ;;  %v9342_v8 = vpop.f32.mrf.mxu0 }
0x1685   :  { %v9343_v7 = vadd.f32 %v9342_v8, %v9341_v32 }
0x1686   :  { %v8340_v2 = vadd.f32 %v8280_v48, %v16066_v37  ;;  %v8122_v26 = vadd.f32 %v9231_v47, %v15439_v61  ;;  %v16072_v37 = vld [vmem:[#allocation82_spill] sm:$0xff] }
0x1688   :  { %8372 = vst [vmem:[#allocation15 + $0xb0] sm:$0xff] %v8340_v2  ;;  %v8283_v39 = vadd.f32 %v9343_v7, %v8122_v26 }
0x168a   :  { %v8341_v56 = vadd.f32 %v8283_v39, %v16067_v63 }
0x168c   :  { %8373 = vst [vmem:[#allocation15 + $0xb8] sm:$0xff] %v8341_v56 }
0x169e   :  { %v9232_v45 = vpop.f32.mrf.mxu1 }
0x16a0   :  { %v9344_v6 = vpop.f32.mrf.mxu0  ;;  %v9233_v29 = vpop.f32.mrf.mxu1 }
0x16a1   :  { %v9234_v16 = vadd.f32 %v9233_v29, %v9232_v45 }
0x16a2   :  { %v9345_v35 = vpop.f32.mrf.mxu0  ;;  %v9235_v41 = vpop.f32.mrf.mxu1 }
0x16a3   :  { %v8127_v14 = vadd.f32 %v9234_v16, %v15439_v61  ;;  %v9346_v22 = vadd.f32 %v9345_v35, %v9344_v6  ;;  %v16073_v16 = vld [vmem:[#allocation84_spill] sm:$0xff] }
0x16a4   :  { %v9347_v40 = vpop.f32.mrf.mxu0  ;;  %v9236_v59 = vpop.f32.mrf.mxu1 }
0x16a5   :  { %v8288_v24 = vadd.f32 %v9346_v22, %v8127_v14  ;;  %v9237_v50 = vadd.f32 %v9236_v59, %v9235_v41 }
0x16a6   :  { %v9348_v27 = vpop.f32.mrf.mxu0 }
0x16a7   :  { %v8342_v11 = vadd.f32 %v8288_v24, %v16068_v36  ;;  %v8130_v13 = vadd.f32 %v9237_v50, %v15439_v61  ;;  %v9349_v20 = vadd.f32 %v9348_v27, %v9347_v40  ;;  %v16074_v50 = vld [vmem:[#allocation86_spill] sm:$0xff] }
0x16a9   :  { %8374 = vst [vmem:[#allocation15 + $0xc0] sm:$0xff] %v8342_v11  ;;  %v8291_v3 = vadd.f32 %v9349_v20, %v8130_v13  ;;  %v16075_v13 = vld [vmem:[#allocation88_spill] sm:$0xff] }
0x16aa   :  { %v9238_v43 = vpop.f32.mrf.mxu1 }
0x16ab   :  { %v8343_v17 = vadd.f32 %v8291_v3, %v16069_v25 }
0x16ac   :  { %v9350_v34 = vpop.f32.mrf.mxu0  ;;  %v9239_v53 = vpop.f32.mrf.mxu1 }
0x16ad   :  { %8375 = vst [vmem:[#allocation15 + $0xc8] sm:$0xff] %v8343_v17  ;;  %v9240_v1 = vadd.f32 %v9239_v53, %v9238_v43 }
0x16ae   :  { %v9351_v10 = vpop.f32.mrf.mxu0  ;;  %v9241_v33 = vpop.f32.mrf.mxu1 }
0x16af   :  { %v8135_v30 = vadd.f32 %v9240_v1, %v15439_v61  ;;  %v9352_v19 = vadd.f32 %v9351_v10, %v9350_v34 }
0x16b0   :  { %v9353_v31 = vpop.f32.mrf.mxu0  ;;  %v9242_v18 = vpop.f32.mrf.mxu1 }
0x16b1   :  { %v8296_v15 = vadd.f32 %v9352_v19, %v8135_v30  ;;  %v9243_v55 = vadd.f32 %v9242_v18, %v9241_v33 }
0x16b2   :  { %v9354_v52 = vpop.f32.mrf.mxu0 }
0x16b3   :  { %v8344_v54 = vadd.f32 %v8296_v15, %v16070_v5  ;;  %v8138_v42 = vadd.f32 %v9243_v55, %v15439_v61  ;;  %v9355_v58 = vadd.f32 %v9354_v52, %v9353_v31 }
0x16b4   :  { %v9244_v28 = vpop.f32.mrf.mxu1 }
0x16b5   :  { %8376 = vst [vmem:[#allocation15 + $0xd0] sm:$0xff] %v8344_v54  ;;  %v8299_v49 = vadd.f32 %v9355_v58, %v8138_v42 }
0x16b6   :  { %v9245_v21 = vpop.f32.mrf.mxu1 }
0x16b7   :  { %v8345_v60 = vadd.f32 %v8299_v49, %v16071_v46  ;;  %v9246_v23 = vadd.f32 %v9245_v21, %v9244_v28 }
0x16b8   :  { %v9247_v51 = vpop.f32.mrf.mxu1  ;;  %v9356_v4 = vpop.f32.mrf.mxu0 }
0x16b9   :  { %8377 = vst [vmem:[#allocation15 + $0xd8] sm:$0xff] %v8345_v60  ;;  %v8143_v44 = vadd.f32 %v9246_v23, %v15439_v61 }
0x16ba   :  { %v9248_v57 = vpop.f32.mrf.mxu1  ;;  %v9357_v62 = vpop.f32.mrf.mxu0 }
0x16bb   :  { %v9249_v0 = vadd.f32 %v9248_v57, %v9247_v51  ;;  %v9358_v12 = vadd.f32 %v9357_v62, %v9356_v4 }
0x16bc   :  { %v9359_v38 = vpop.f32.mrf.mxu0 }
0x16bd   :  { %v9250_v32 = vpop.f32.mrf.mxu1  ;;  %v8304_v9 = vadd.f32 %v9358_v12, %v8143_v44  ;;  %v8146_v48 = vadd.f32 %v9249_v0, %v15439_v61 }
0x16be   :  { %v9360_v47 = vpop.f32.mrf.mxu0 }
0x16bf   :  { %v9251_v8 = vpop.f32.mrf.mxu1  ;;  %v8346_v2 = vadd.f32 %v8304_v9, %v16072_v37  ;;  %v9361_v26 = vadd.f32 %v9360_v47, %v9359_v38 }
0x16c0   :  { %v9252_v7 = vadd.f32 %v9251_v8, %v9250_v32  ;;  %v9362_v39 = vpop.f32.mrf.mxu0 }
0x16c1   :  { %v9253_v63 = vpop.f32.mrf.mxu1  ;;  %8378 = vst [vmem:[#allocation15 + $0xe0] sm:$0xff] %v8346_v2  ;;  %v8307_v56 = vadd.f32 %v9361_v26, %v8146_v48 }
0x16c2   :  { %v8151_v45 = vadd.f32 %v9252_v7, %v15439_v61  ;;  %v9363_v6 = vpop.f32.mrf.mxu0 }
0x16c3   :  { %v9254_v29 = vpop.f32.mrf.mxu1  ;;  %v8347_v35 = vadd.f32 %v8307_v56, %v16073_v16  ;;  %v9364_v41 = vadd.f32 %v9363_v6, %v9362_v39 }
0x16c4   :  { %v9255_v14 = vadd.f32 %v9254_v29, %v9253_v63  ;;  %v9365_v22 = vpop.f32.mrf.mxu0 }
0x16c5   :  { %8379 = vst [vmem:[#allocation15 + $0xe8] sm:$0xff] %v8347_v35  ;;  %v8312_v40 = vadd.f32 %v9364_v41, %v8151_v45 }
0x16c6   :  { %v8154_v59 = vadd.f32 %v9255_v14, %v15439_v61  ;;  %v9366_v24 = vpop.f32.mrf.mxu0 }
0x16c7   :  { %v8348_v27 = vadd.f32 %v8312_v40, %v16074_v50  ;;  %v9367_v36 = vadd.f32 %v9366_v24, %v9365_v22 }
0x16c9   :  { %8380 = vst [vmem:[#allocation15 + $0xf0] sm:$0xff] %v8348_v27  ;;  %v8315_v11 = vadd.f32 %v9367_v36, %v8154_v59 }
0x16cb   :  { %v8349_v20 = vadd.f32 %v8315_v11, %v16075_v13 }
0x16cd   :  { %8381 = vst [vmem:[#allocation15 + $0xf8] sm:$0xff] %v8349_v20 }
0x16ce   :  { %11165 = shalt.err (!%p11162_p11)
}
0x16cf   :  { %8393 = dma.vmem_to_hbm [thread:$0]  %s8388_s0, 4096, %s15551_s13, [#allocation5], %s11192_s28, %s11192_s28, %s11193_s30  }
0x16d0   :  { %11182 = dma.done.wait [#allocation5], 4096  }
0x16d1   :  { %11183 = vsyncadd [#allocation5], 4294963200 }
0x16d2   :  { %8397 = vsyncpa [#allocation4], 1 }
0x16d3   :  { %8398 = vsyncpa [#allocation7], 1 }
0x16d4   :  { %8399 = vsyncpa [#allocation10], 1 }
0x16d5   :  { %8400 = vsyncpa [#allocation13], 1 }
0x16d6   :  { %8401 = vsyncpa [#allocation5], 1 }

</bundles_post_ra>
